<compile_context>
chip_gen: v5e
topology: v5e:2x2
jax: 0.10.0
libtpu: 0.0.40
codegen_flags: <defaults>
</compile_context>

<pallas_src>
import jax
import jax.numpy as jnp
from jax.experimental import pallas as pl
from jax.experimental.pallas import tpu as pltpu

HID = 64  # fixed intermediate channel count of the `cnv` block in the module


# --------------------------------------------------------------------------- #
# Kernel: three clean MXU matmuls on a (Bt, C*E) batch slab.
# --------------------------------------------------------------------------- #
def decoder_kernel(x_ref,    # (Bt, C*E)        bf16
                   w0_ref,   # (C*E, C*2E)      bf16  kron(I_C, W_lin0^T)
                   b0_ref,   # (1,   C*2E)      f32
                   w1_ref,   # (C*2E, HID*4E)   bf16  kron((Wc1@Wc0)^T, W_lin1^T)
                   b1_ref,   # (1,   HID*4E)    f32   folded conv/linear biases
                   w2_ref,   # (HID*4E, O*D)    bf16  kron(Wc2^T, W_lin2^T)
                   b2_ref,   # (1,   O*D)       f32   folded output bias
                   o_ref):   # (Bt,  O*D)       f32   lane-dense
    f32 = jnp.float32

    # 1) per-channel Linear(E->2E) (block-diagonal weight) + bias + ReLU
    h = jnp.dot(x_ref[...], w0_ref[...], preferred_element_type=f32)
    h = jnp.maximum(h + b0_ref[...], 0.0)

    # 2) fused Conv1d(C->2C) . Linear(2E->4E) . Conv1d(2C->64) + folded bias + ReLU
    h = jnp.dot(h.astype(w1_ref.dtype), w1_ref[...], preferred_element_type=f32)
    h = jnp.maximum(h + b1_ref[...], 0.0)

    # 3) fused Conv1d(64->O) . Linear(4E->dates) + folded bias; lane-dense store
    out = jnp.dot(h.astype(w2_ref.dtype), w2_ref[...], preferred_element_type=f32)
    o_ref[...] = (out + b2_ref[...]).astype(o_ref.dtype)


# --------------------------------------------------------------------------- #
# Host-side folding — call ONCE and cache the result (perf-feedback item).
# --------------------------------------------------------------------------- #
def fold_decoder_params(params, dates, output_size, embedding_size,
                        weight_dtype=jnp.bfloat16):
    C, E = embedding_size
    O, D = output_size, dates
    f32 = jnp.float32

    W0t = params["w_lin0"].astype(f32).T           # (E, 2E)
    b0  = params["b_lin0"].astype(f32)
    W1t = params["w_lin1"].astype(f32).T           # (2E, 4E)
    b1  = params["b_lin1"].astype(f32)
    Wc0 = params["w_c0"].astype(f32)                # (2C, C)
    bc0 = params["b_c0"].astype(f32)
    Wc1 = params["w_c1"].astype(f32)                # (HID, 2C)
    bc1 = params["b_c1"].astype(f32)
    Wc2 = params["w_c2"].astype(f32)                # (O, HID)
    bc2 = params["b_c2"].astype(f32)
    W2t = params["w_lin2"].astype(f32).T           # (4E, D)
    b2  = params["b_lin2"].astype(f32)
    hid = Wc1.shape[0]

    # per-channel Linear(E->2E) as one block-diagonal matmul
    w0blk = jnp.kron(jnp.eye(C, dtype=f32), W0t)                  # (C*E, C*2E)
    b0row = jnp.tile(b0, C)[None, :]                               # (1, C*2E)

    # Conv1d(C->2C) o Linear(2E->4E) o Conv1d(2C->64) -> single matmul + bias
    Wfold = Wc1 @ Wc0                                              # (HID, C)
    w1fold = jnp.kron(Wfold.T, W1t)                                # (C*2E, HID*4E)
    bfold = (jnp.outer(Wc1 @ bc0, W1t.sum(axis=0))
             + jnp.outer(Wc1.sum(axis=1), b1)
             + bc1[:, None]).reshape(1, hid * 4 * E)               # (1, HID*4E)

    # Conv1d(64->O) o Linear(4E->dates) -> single lane-dense matmul + bias
    wlast = jnp.kron(Wc2.T, W2t)                                   # (HID*4E, O*D)
    bout = (bc2[:, None] * W2t.sum(axis=0)[None, :]
            + jnp.broadcast_to(b2[None, :], (O, D))).reshape(1, O * D)

    return dict(
        w0=w0blk.astype(weight_dtype), b0=b0row,
        w1=w1fold.astype(weight_dtype), b1=bfold,
        w2=wlast.astype(weight_dtype), b2=bout,
    )


# --------------------------------------------------------------------------- #
# Wrapper: batch tiling (padded, sublane-aligned, >=2 grid steps) + pallas_call
# --------------------------------------------------------------------------- #
def decoder_forward(x, folded, dates, output_size, *, block_b=128):
    B, C, E = x.shape
    O, D = output_size, dates
    w0, b0, w1, b1, w2, b2 = (folded[k] for k in ("w0", "b0", "w1", "b1", "w2", "b2"))
    CE, C2E = w0.shape
    K, OD = w2.shape
    assert CE == C * E and OD == O * D
    # TODO(synk): if O*dates is ever not a multiple of 128, pad the output lane
    # axis host-side to keep stores unmasked.

    def rup(a, m):
        return ((a + m - 1) // m) * m

    # Sublane-aligned batch tile, B padded up to a whole number of tiles, and at
    # least 2 grid steps whenever possible (so v7x's two TensorCores both work).
    bt = max(8, min(rup(block_b, 8), rup(B, 8)))
    Bp = rup(B, bt)
    if Bp // bt < 2 and Bp >= 16:
        bt = rup(Bp // 2, 8)
        Bp = rup(B, bt)
    grid = (Bp // bt,)

    x2d = x.reshape(B, CE).astype(w0.dtype)        # bf16, lane-dense input slab
    if Bp != B:
        x2d = jnp.pad(x2d, ((0, Bp - B), (0, 0)))

    weights = (w0, b0, w1, b1, w2, b2)

    def batch_spec(cols):
        return pl.BlockSpec((bt, cols), lambda i: (i, 0))

    def full_spec(a):                               # constant index_map: fetched once
        return pl.BlockSpec(a.shape, lambda i: (0, 0))

    cost = pl.CostEstimate(
        flops=int(2 * Bp * (CE * C2E + C2E * K + K * OD)),
        transcendentals=0,
        bytes_accessed=int(x2d.size * x2d.dtype.itemsize
                           + sum(w.size * w.dtype.itemsize for w in weights)
                           + Bp * OD * x.dtype.itemsize),
    )

    out2d = pl.pallas_call(
        decoder_kernel,
        out_shape=jax.ShapeDtypeStruct((Bp, OD), x.dtype),
        grid_spec=pltpu.PrefetchScalarGridSpec(
            num_scalar_prefetch=0,
            grid=grid,
            in_specs=[batch_spec(CE)] + [full_spec(w) for w in weights],
            out_specs=batch_spec(OD),
        ),
        compiler_params=pltpu.CompilerParams(
            dimension_semantics=("parallel",),
            vmem_limit_bytes=64 * 1024 * 1024,
        ),
        cost_estimate=cost,
    )(x2d, *weights)

    return out2d[:B].reshape(B, O, D)


# --------------------------------------------------------------------------- #
# Parameter init + pure-JAX reference (mirrors the PyTorch forward) for testing
# --------------------------------------------------------------------------- #
def make_decoder_params(dates, output_size, embedding_size, key):
    C, E = embedding_size
    ks = jax.random.split(key, 12)

    def init(k, shape, fan_in):
        bound = 1.0 / jnp.sqrt(fan_in)
        return jax.random.uniform(k, shape, jnp.float32, -bound, bound)

    return dict(
        w_lin0=init(ks[0], (2 * E, E), E),          b_lin0=init(ks[1], (2 * E,), E),
        w_c0=init(ks[2], (2 * C, C), C),            b_c0=init(ks[3], (2 * C,), C),
        w_lin1=init(ks[4], (4 * E, 2 * E), 2 * E),  b_lin1=init(ks[5], (4 * E,), 2 * E),
        w_c1=init(ks[6], (HID, 2 * C), 2 * C),      b_c1=init(ks[7], (HID,), 2 * C),
        w_c2=init(ks[8], (output_size, HID), HID),  b_c2=init(ks[9], (output_size,), HID),
        w_lin2=init(ks[10], (dates, 4 * E), 4 * E), b_lin2=init(ks[11], (dates,), 4 * E),
    )


def decoder_reference(x, params):
    h = jnp.einsum("bce,fe->bcf", x, params["w_lin0"]) + params["b_lin0"]
    h = jnp.maximum(h, 0.0)
    h = jnp.einsum("oc,bcl->bol", params["w_c0"], h) + params["b_c0"][None, :, None]
    h = jnp.einsum("bcf,gf->bcg", h, params["w_lin1"]) + params["b_lin1"]
    h = jnp.einsum("oc,bcl->bol", params["w_c1"], h) + params["b_c1"][None, :, None]
    h = jnp.maximum(h, 0.0)
    h = jnp.einsum("oc,bcl->bol", params["w_c2"], h) + params["b_c2"][None, :, None]
    h = jnp.einsum("bcf,df->bcd", h, params["w_lin2"]) + params["b_lin2"]
    return h


if __name__ == "__main__":
    dates = 16
    output_size = 8
    embedding_size = (4, 32)   # (channels C, features E); O*dates = 128 (lane-dense)
    B = 16

    key = jax.random.PRNGKey(0)
    k_x, k_p = jax.random.split(key)
    x = jax.random.normal(k_x, (B,) + embedding_size, dtype=jnp.float32)
    params = make_decoder_params(dates, output_size, embedding_size, k_p)

    folded = fold_decoder_params(params, dates, output_size, embedding_size)  # once
    out = decoder_forward(x, folded, dates, output_size, block_b=128)
    out = jax.block_until_ready(out)

    ref = decoder_reference(x, params)
    assert out.shape == (B, output_size, dates)
    max_err = float(jnp.max(jnp.abs(out - ref)))
    # bf16 matmul operands, f32 accumulation -> loosened tolerance vs f32 reference
    assert jnp.allclose(out, ref, atol=2e-2, rtol=2e-2), f"max_abs_err={max_err}"

    print("KERNEL_OK")
</pallas_src>

<mosaic_0001>
module attributes {stable_mosaic.version = 11 : i64} {
  func.func @decoder_kernel(%arg0: i32, %arg1: memref<8x128xbf16, #tpu.memory_space<vmem>>, %arg2: memref<128x256xbf16, #tpu.memory_space<vmem>>, %arg3: memref<1x256xf32, #tpu.memory_space<vmem>>, %arg4: memref<256x8192xbf16, #tpu.memory_space<vmem>>, %arg5: memref<1x8192xf32, #tpu.memory_space<vmem>>, %arg6: memref<8192x128xbf16, #tpu.memory_space<vmem>>, %arg7: memref<1x128xf32, #tpu.memory_space<vmem>>, %arg8: memref<8x128xf32, #tpu.memory_space<vmem>>) attributes {dimension_semantics = [#tpu.dimension_semantics<parallel>], iteration_bounds = array<i64: 2>, scalar_prefetch = 0 : i64, scratch_operands = 0 : i64, tpu.core_type = #tpu.core_type<tc>, window_params = [{transform_indices = @transform_0, window_bounds = array<i64: 8, 128>}, {pipeline_mode = #tpu.pipeline_mode<synchronous>, transform_indices = @transform_1, window_bounds = array<i64: 128, 256>}, {pipeline_mode = #tpu.pipeline_mode<synchronous>, transform_indices = @transform_2, window_bounds = array<i64: 1, 256>}, {pipeline_mode = #tpu.pipeline_mode<synchronous>, transform_indices = @transform_3, window_bounds = array<i64: 256, 8192>}, {pipeline_mode = #tpu.pipeline_mode<synchronous>, transform_indices = @transform_4, window_bounds = array<i64: 1, 8192>}, {pipeline_mode = #tpu.pipeline_mode<synchronous>, transform_indices = @transform_5, window_bounds = array<i64: 8192, 128>}, {pipeline_mode = #tpu.pipeline_mode<synchronous>, transform_indices = @transform_6, window_bounds = array<i64: 1, 128>}, {transform_indices = @transform_7, window_bounds = array<i64: 8, 128>}]} {
    %c0 = arith.constant 0 : index
    %c0_0 = arith.constant 0 : index
    %0 = vector.load %arg1[%c0, %c0_0] : memref<8x128xbf16, #tpu.memory_space<vmem>>, vector<8x128xbf16>
    %c0_1 = arith.constant 0 : index
    %c0_2 = arith.constant 0 : index
    %1 = vector.load %arg2[%c0_1, %c0_2] : memref<128x256xbf16, #tpu.memory_space<vmem>>, vector<128x256xbf16>
    %cst = arith.constant dense<0.000000e+00> : vector<8x256xf32>
    %2 = tpu.matmul %0, %1, %cst {dimension_numbers = #tpu.dot_dimension_numbers<[1], [0], [0], [1], [0, 0, 1, 1], [], []>} : vector<8x128xbf16>, vector<128x256xbf16>, vector<8x256xf32> -> vector<8x256xf32>
    %c0_3 = arith.constant 0 : index
    %c0_4 = arith.constant 0 : index
    %3 = vector.load %arg3[%c0_3, %c0_4] : memref<1x256xf32, #tpu.memory_space<vmem>>, vector<1x256xf32>
    %4 = vector.broadcast %3 : vector<1x256xf32> to vector<8x256xf32>
    %5 = arith.addf %2, %4 : vector<8x256xf32>
    %cst_5 = arith.constant 0.000000e+00 : f32
    %6 = vector.broadcast %cst_5 : f32 to vector<8x256xf32>
    %7 = arith.maximumf %5, %6 : vector<8x256xf32>
    %8 = arith.truncf %7 : vector<8x256xf32> to vector<8x256xbf16>
    %c0_6 = arith.constant 0 : index
    %c0_7 = arith.constant 0 : index
    %9 = vector.load %arg4[%c0_6, %c0_7] : memref<256x8192xbf16, #tpu.memory_space<vmem>>, vector<256x8192xbf16>
    %cst_8 = arith.constant dense<0.000000e+00> : vector<8x8192xf32>
    %10 = tpu.matmul %8, %9, %cst_8 {dimension_numbers = #tpu.dot_dimension_numbers<[1], [0], [0], [1], [0, 0, 1, 1], [], []>} : vector<8x256xbf16>, vector<256x8192xbf16>, vector<8x8192xf32> -> vector<8x8192xf32>
    %c0_9 = arith.constant 0 : index
    %c0_10 = arith.constant 0 : index
    %11 = vector.load %arg5[%c0_9, %c0_10] : memref<1x8192xf32, #tpu.memory_space<vmem>>, vector<1x8192xf32>
    %12 = vector.broadcast %11 : vector<1x8192xf32> to vector<8x8192xf32>
    %13 = arith.addf %10, %12 : vector<8x8192xf32>
    %cst_11 = arith.constant 0.000000e+00 : f32
    %14 = vector.broadcast %cst_11 : f32 to vector<8x8192xf32>
    %15 = arith.maximumf %13, %14 : vector<8x8192xf32>
    %16 = arith.truncf %15 : vector<8x8192xf32> to vector<8x8192xbf16>
    %c0_12 = arith.constant 0 : index
    %c0_13 = arith.constant 0 : index
    %17 = vector.load %arg6[%c0_12, %c0_13] : memref<8192x128xbf16, #tpu.memory_space<vmem>>, vector<8192x128xbf16>
    %cst_14 = arith.constant dense<0.000000e+00> : vector<8x128xf32>
    %18 = tpu.matmul %16, %17, %cst_14 {dimension_numbers = #tpu.dot_dimension_numbers<[1], [0], [0], [1], [0, 0, 1, 1], [], []>} : vector<8x8192xbf16>, vector<8192x128xbf16>, vector<8x128xf32> -> vector<8x128xf32>
    %c0_15 = arith.constant 0 : index
    %c0_16 = arith.constant 0 : index
    %19 = vector.load %arg7[%c0_15, %c0_16] : memref<1x128xf32, #tpu.memory_space<vmem>>, vector<1x128xf32>
    %20 = vector.broadcast %19 : vector<1x128xf32> to vector<8x128xf32>
    %21 = arith.addf %18, %20 : vector<8x128xf32>
    %c0_17 = arith.constant 0 : index
    %c0_18 = arith.constant 0 : index
    %22 = vector.load %arg8[%c0_17, %c0_18] : memref<8x128xf32, #tpu.memory_space<vmem>>, vector<8x128xf32>
    tpu.vector_store %arg8[%c0_17, %c0_18], %21 {strides = array<i32>} : memref<8x128xf32, #tpu.memory_space<vmem>>, vector<8x128xf32>,
    return
  }
  func.func @transform_0(%arg0: i32) -> (i32, i32) {
    %c0_i32 = arith.constant 0 : i32
    %c0_i32_0 = arith.constant 0 : i32
    return %arg0, %c0_i32 : i32, i32
  }
  func.func @transform_1(%arg0: i32) -> (i32, i32) {
    %c0_i32 = arith.constant 0 : i32
    %c0_i32_0 = arith.constant 0 : i32
    %c0_i32_1 = arith.constant 0 : i32
    return %c0_i32, %c0_i32_0 : i32, i32
  }
  func.func @transform_2(%arg0: i32) -> (i32, i32) {
    %c0_i32 = arith.constant 0 : i32
    %c0_i32_0 = arith.constant 0 : i32
    %c0_i32_1 = arith.constant 0 : i32
    return %c0_i32, %c0_i32_0 : i32, i32
  }
  func.func @transform_3(%arg0: i32) -> (i32, i32) {
    %c0_i32 = arith.constant 0 : i32
    %c0_i32_0 = arith.constant 0 : i32
    %c0_i32_1 = arith.constant 0 : i32
    return %c0_i32, %c0_i32_0 : i32, i32
  }
  func.func @transform_4(%arg0: i32) -> (i32, i32) {
    %c0_i32 = arith.constant 0 : i32
    %c0_i32_0 = arith.constant 0 : i32
    %c0_i32_1 = arith.constant 0 : i32
    return %c0_i32, %c0_i32_0 : i32, i32
  }
  func.func @transform_5(%arg0: i32) -> (i32, i32) {
    %c0_i32 = arith.constant 0 : i32
    %c0_i32_0 = arith.constant 0 : i32
    %c0_i32_1 = arith.constant 0 : i32
    return %c0_i32, %c0_i32_0 : i32, i32
  }
  func.func @transform_6(%arg0: i32) -> (i32, i32) {
    %c0_i32 = arith.constant 0 : i32
    %c0_i32_0 = arith.constant 0 : i32
    %c0_i32_1 = arith.constant 0 : i32
    return %c0_i32, %c0_i32_0 : i32, i32
  }
  func.func @transform_7(%arg0: i32) -> (i32, i32) {
    %c0_i32 = arith.constant 0 : i32
    %c0_i32_0 = arith.constant 0 : i32
    return %arg0, %c0_i32 : i32, i32
  }
}

</mosaic_0001>

<bundles_post_ra>
// kernel: tpu_custom_call.1
= control target key start
LH: loop header
LB: loop body
LE: loop exit
PB: predicated region body
PF: predicated region fallthrough
CT: control target
= control target key end

     0   :  { %s22537_s0 = inlined_call_operand.hbm [shape: bf16[16,128], index: 0, kind: input, shape index: {}]   ;;  %s22538_s1 = inlined_call_operand.hbm [shape: bf16[128,256], index: 1, kind: input, shape index: {}]   ;;  %s22539_s2 = inlined_call_operand.hbm [shape: f32[1,256], index: 2, kind: input, shape index: {}]   ;;  %s22540_s3 = inlined_call_operand.hbm [shape: bf16[256,8192], index: 3, kind: input, shape index: {}]   ;;  %s22541_s4 = inlined_call_operand.hbm [shape: f32[1,8192], index: 4, kind: input, shape index: {}]   ;;  %s22542_s5 = inlined_call_operand.hbm [shape: bf16[8192,128], index: 5, kind: input, shape index: {}]   ;;  %s22543_s6 = inlined_call_operand.hbm [shape: f32[1,128], index: 6, kind: input, shape index: {}]   ;;  %s22544_s7 = inlined_call_operand.hbm [shape: f32[16,128], index: 7, kind: output, shape index: {}]  }
   0x1   :  { %22545 = sst [smem:[#allocation44_spill]] %s22538_s1 }
   0x2   :  { %22546 = sst [smem:[#allocation45_spill]] %s22539_s2 }
   0x3   :  { %12 = vsyncpa [#allocation3], 0 }
   0x4   :  { %14 = vsyncpa [#allocation3 + $0x1], 0 }
   0x5   :  { %15 = vsyncpa [#allocation6], 0 }
   0x6   :  { %16 = vsyncpa [#allocation9], 0 }
   0x7   :  { %17 = vsyncpa [#allocation12], 0 }
   0x8   :  { %18 = vsyncpa [#allocation4], 0 }
   0x9   :  { %20 = vsyncpa [#allocation4 + $0x1], 0  ;;  %s21918_s24 = smov 0   ;;  %s21920_s25 = smov 0  }
   0xa   :  { %s21922_s26 = smov 0   ;;  %s21924_s27 = smov 0  }
   0xb LB: > { %s22547_s1 = sld [smem:[#allocation44_spill]]  ;;  %s21942_s8 = sadd.s32 4294967295, %s21864_s27   ;;  %s21864_s27 = sphi %s21924_s27, %s22608_s27   ;;  %s21860_s26 = sphi %s21922_s26, %s22607_s26   ;;  %s21856_s25 = sphi %s21920_s25, %s22606_s25   ;;  %s21852_s24 = sphi %s21918_s24, %s22605_s24  }
   0xc   : > { %p13679_p0 = scmp.ge.s32.totalorder %s21864_s27, 1  ;;  %p47_p1 = scmp.eq.s32.totalorder %s21942_s8, 0 }
   0xd   : > { %p209_p2 = scmp.lt.s32.totalorder %s21864_s27, 3  ;;  %s21866_s10 = smov [#allocation5]  }
   0xe   : > { %s222_s11 = sshll.u32 %s21866_s10, 4  ;;  %s246_s14 = sshll.u32 %s22540_s3, 4  ;;  %s223_s11 = int_to_ptr.vmem [resolvable:$true] %s222_s11  ;;  %s247_s14 = int_to_ptr.hbm [resolvable:$true] %s246_s14 }
   0xf   : > { %p21947_p3 = pnand %p13679_p0, %p209_p2  ;;  %s21867_s16 = smov [#allocation8]  }
  0x10   : > { %s248_s17 = sshll.u32 %s21867_s16, 4  ;;  %s21868_s18 = smov 128   ;;  %s249_s17 = int_to_ptr.vmem [resolvable:$true] %s248_s17 }
  0x11   : > { %s220_s30 = sshll.u32 %s22547_s1, 4  ;;  %p21490_p4 = pneg %p21947_p3  ;;  %s221_s30 = int_to_ptr.hbm [resolvable:$true] %s220_s30 }
  0x12   : > { %s21869_s19 = smov 8   ;;  %s21870_s20 = smov 4096  }
  0x13   : > { %p21959_p6 = pnand %p21490_p4, %p47_p1  ;;  %s21871_s21 = smov 256  }
  0x14   : > { %s272_s28 = sshll.u32 %s22542_s5, 4  ;;  %s21872_s29 = smov [#allocation11]   ;;  %s273_s28 = int_to_ptr.hbm [resolvable:$true] %s272_s28 }
  0x15   : > { %21493 = dma.hbm_to_vmem [thread:$0]  (!%p21959_p6), %s221_s30, 2048, %s223_s11, [#allocation6], %s21868_s18, %s21868_s18, %s21869_s19  }
  0x16   : > { %21499 = dma.hbm_to_vmem [thread:$0]  (!%p21959_p6), %s247_s14, 131072, %s249_s17, [#allocation9], %s21870_s20, %s21870_s20, %s21871_s21  }
  0x17   : > { %s274_s10 = sshll.u32 %s21872_s29, 4  ;;  %s22550_s2 = sld [smem:[#allocation45_spill]]  ;;  %s275_s10 = int_to_ptr.vmem [resolvable:$true] %s274_s10 }
  0x18   : > { %s21873_s30 = smov 64   ;;  %s21874_s11 = smov 4  }
  0x19   : > { %21505 = dma.hbm_to_vmem [thread:$0]  (!%p21959_p6), %s273_s28, 65536, %s275_s10, [#allocation12], %s21873_s30, %s21873_s30, %s21874_s11  }
  0x1a   : > { %s21875_s14 = smov [#allocation7]   ;;  %s261_s20 = sshll.u32 %s22541_s4, 4  ;;  %s262_s20 = int_to_ptr.hbm [resolvable:$true] %s261_s20 }
  0x1b   : > { %s237_s17 = sshll.u32 %s21875_s14, 4  ;;  %s287_s23 = sshll.u32 %s22543_s6, 4  ;;  %s238_s17 = int_to_ptr.vmem [resolvable:$true] %s237_s17  ;;  %s288_s23 = int_to_ptr.hbm [resolvable:$true] %s287_s23 }
  0x1c   : > { %s21876_s28 = smov [#allocation10]   ;;  %s21877_s10 = smov [#allocation13]  }
  0x1d   : > { %s235_s16 = sshll.u32 %s22550_s2, 4  ;;  %s263_s29 = sshll.u32 %s21876_s28, 4  ;;  %s236_s16 = int_to_ptr.hbm [resolvable:$true] %s235_s16  ;;  %s264_s29 = int_to_ptr.vmem [resolvable:$true] %s263_s29 }
  0x1e   : > { %21496 = dma.hbm_to_vmem [thread:$0]  (!%p21959_p6), %s236_s16, 32, %s238_s17, [#allocation6]  }
  0x1f   : > { %21502 = dma.hbm_to_vmem [thread:$0]  (!%p21959_p6), %s262_s20, 1024, %s264_s29, [#allocation9]  }
  0x20   : > { %s289_s12 = sshll.u32 %s21877_s10, 4  ;;  %s13678_s13 = sadd.s32 4294967294, %s21864_s27   ;;  %s290_s12 = int_to_ptr.vmem [resolvable:$true] %s289_s12 }
  0x21   : > { %21508 = dma.hbm_to_vmem [thread:$0]  (!%p21959_p6), %s288_s23, 16, %s290_s12, [#allocation12]  }
  0x22   : > { %s21989_s16 = sadd.s32 1, %s21864_s27   ;;  %s33_s11 = sadd.s32 1, %s21860_s26 }
  0x23   : > { %s30_s30 = ssub.s32 %s21864_s27, %s21989_s16  ;;  %p40_p8 = scmp.ne.s32.totalorder %s21860_s26, %s21856_s25 }
  0x24   : > { %p31_p7 = scmp.eq.s32.totalorder %s30_s30, 0  ;;  %p41_p9 = scmp.eq.s32.totalorder %s21864_s27, 0 }
  0x25   : > { %p46_p10 = scmp.ne.s32.totalorder %s21856_s25, %s21852_s24  ;;  %p196_p13 = scmp.eq.s32.totalorder %s21942_s8, 1 }
  0x26   : > { %s22000_s14 = scalar_select %p31_p7, %s21860_s26, %s33_s11  }
  0x27   : > { %p22002_p11 = por %p41_p9, %p40_p8  ;;  %p22008_p12 = por %p47_p1, %p46_p10 }
  0x28   : > { %p202_p0 = scmp.eq.s32.totalorder %s13678_s13, 1  ;;  %p21523_p2 = scmp.lt.s32.totalorder %s21864_s27, 2 }
  0x29   : > { %s300_s18 = sand.u32 1, %s21860_s26   ;;  %p22015_p4 = por %p196_p13, %p40_p8 }
  0x2a   : > { %p22019_p6 = por %p202_p0, %p46_p10  ;;  %s13687_s21 = sshll.u32 %s300_s18, 2 }
  0x2b   : > { %s13688_s22 = sshll.u32 %s21864_s27, 2  ;;  %s304_s10 = scalar_lea.vmem [#allocation2], %s13687_s21 }
  0x2c   : > { %s308_s29 = scalar_lea.hbm %s22537_s0, %s13688_s22  ;;  %s312_s12 = sshll.u32 %s304_s10, 4  ;;  %s313_s12 = int_to_ptr.vmem [resolvable:$true] %s312_s12 }
  0x2d   : > { %s310_s30 = sshll.u32 %s308_s29, 4  ;;  %p22029_p7 = pnand %p21523_p2, %p22002_p11  ;;  %s311_s30 = int_to_ptr.hbm [resolvable:$true] %s310_s30 }
  0x2e   : > { %s301_s11 = scalar_lea.sflag [#allocation3], %s300_s18  ;;  %s21756_s1 = sshra.s32 %s311_s30, 4  ;;  %s21757_s1 = int_to_ptr.hbm [resolvable:$true] %s21756_s1 }
  0x2f   : > { %s21758_s2 = scalar_lea.hbm %s21757_s1, 4  ;;  %p21760_p9 = pneg %p22029_p7 }
  0x30   : > { %p21759_p8 = scmp.ne.s32.totalorder %s21757_s1, %s21758_s2  ;;  %s21763_s23 = scalar_lea.hbm %s22537_s0, 8 }
  0x31   : > { %p21764_p11 = scmp.lt.s32.totalorder %s21757_s1, %s22537_s0  ;;  %p21765_p0 = scmp.lt.s32.totalorder %s21763_s23, %s21758_s2 }
  0x32   : > { %p21761_p10 = pnand %p21760_p9, %p21759_p8 }
  0x33   : > { %p21766_p2 = por %p21765_p0, %p21764_p11 }
  0x34   : > { %p21762_p13 = pneg %p21761_p10 }
  0x36   : > { %p21767_p5 = pnand %p21766_p2, %p21762_p13 }
  0x38   : > { %21770 = shalt.err (!%p21767_p5)
}
  0x39   : > { %21512 = dma.hbm_to_vmem [thread:$0]  (!%p22029_p7), %s311_s30, 64, %s313_s12, %s301_s11  }
  0x3a   : > { %321 = sbr.rel (%p21947_p3) target bundleno = 1855 (0x73f), region = 48 }
  0x3f   : > { %s22046_s18 = sand.u32 1, %s21856_s25  }
  0x40   : > { %s13690_s29 = sshll.u32 %s22046_s18, 2  ;;  %s324_s10 = scalar_lea.sflag [#allocation3], %s22046_s18 }
  0x41   : > { %s22050_s21 = scalar_lea.vmem [#allocation2], %s13690_s29 }
  0x42   : > { %21831 = dma.done.wait (%p22008_p12), %s324_s10, 64  }
  0x43   : > { %21833 = vsyncadd (%p22008_p12), %s324_s10, 4294967232 }
  0x44   : > { %21835 = dma.done.wait (%p47_p1), [#allocation6], 2080  }
  0x45   : > { %21837 = vsyncadd (%p47_p1), [#allocation6], 4294965216 }
  0x46   : > { %21839 = dma.done.wait (%p47_p1), [#allocation9], 132096  }
  0x47   : > { %21841 = vsyncadd (%p47_p1), [#allocation9], 4294835200 }
  0x48   : > { %21843 = dma.done.wait (%p47_p1), [#allocation12], 65552  }
  0x49   : > { %21845 = vsyncadd (%p47_p1), [#allocation12], 4294901744  ;;  %v13756_v0 = vld [vmem:[#allocation5 + $0x70] sm:$0xf]  ;;  %v19925_v1 = vld [vmem:[#allocation5 + $0x74] sm:$0xf0] }
  0x4a   : > { %v19924_v2 = vld [vmem:[#allocation5 + $0x74] sm:$0xf]  ;;  %v13757_v3 = vor.u32 %v19925_v1, %v13756_v0  ;;  %v13758_v4 = vld [vmem:[#allocation5 + $0x78] sm:$0xf0]  ;;  %v13748_v5 = vld [vmem:[#allocation5 + $0x60] sm:$0xf] }
  0x4b   : > { %v19923_v6 = vld [vmem:[#allocation5 + $0x64] sm:$0xf0]  ;;  %v13761_v7 = vor.u32 %v19924_v2, %v13758_v4  ;;  %v19922_v8 = vld [vmem:[#allocation5 + $0x64] sm:$0xf]  ;;  %v13750_v9 = vld [vmem:[#allocation5 + $0x68] sm:$0xf0] }
  0x4c   : > { %492 = vmatpush.bf16.msra.mxu0 %v13757_v3  ;;  %v13749_v10 = vor.u32 %v19923_v6, %v13748_v5  ;;  %v13753_v11 = vor.u32 %v19922_v8, %v13750_v9  ;;  %v13740_v12 = vld [vmem:[#allocation5 + $0x50] sm:$0xf]  ;;  %v19921_v13 = vld [vmem:[#allocation5 + $0x54] sm:$0xf0]  ;;  %v19920_v14 = vld [vmem:[#allocation5 + $0x54] sm:$0xf] }
  0x4d   : > { %505 = vmatpush.bf16.msra.mxu1 %v13761_v7  ;;  %v13742_v15 = vld [vmem:[#allocation5 + $0x58] sm:$0xf0]  ;;  %v13741_v16 = vor.u32 %v19921_v13, %v13740_v12  ;;  %v13732_v18 = vld [vmem:[#allocation5 + $0x40] sm:$0xf]  ;;  %v19919_v19 = vld [vmem:[#allocation5 + $0x44] sm:$0xf0] }
  0x4e   : > { %v13745_v17 = vor.u32 %v19920_v14, %v13742_v15  ;;  %v19918_v20 = vld [vmem:[#allocation5 + $0x44] sm:$0xf]  ;;  %v13734_v21 = vld [vmem:[#allocation5 + $0x48] sm:$0xf0]  ;;  %v13733_v22 = vor.u32 %v19919_v19, %v13732_v18  ;;  %v13724_v27 = vld [vmem:[#allocation5 + $0x30] sm:$0xf] }
  0x4f   : > { %v15556_v23 = vld [vmem:[#allocation8 + $0xe00] sm:$0xf]  ;;  %v13737_v26 = vor.u32 %v19918_v20, %v13734_v21  ;;  %v19917_v28 = vld [vmem:[#allocation5 + $0x34] sm:$0xf0]  ;;  %v19916_v31 = vld [vmem:[#allocation5 + $0x34] sm:$0xf] }
  0x50   : > { %493 = vmatpush.bf16.msra.mxu0 %v13749_v10  ;;  %v20406_v24 = vld [vmem:[#allocation8 + $0xefc] sm:$0xf0]  ;;  %v13726_v32 = vld [vmem:[#allocation5 + $0x38] sm:$0xf0]  ;;  %v13725_v38 = vor.u32 %v19917_v28, %v13724_v27  ;;  %v19915_v40 = vld [vmem:[#allocation5 + $0x24] sm:$0xf0] }
  0x51   : > { %506 = vmatpush.bf16.msra.mxu1 %v13753_v11  ;;  %v17604_v25 = vld [vmem:[#allocation8 + $0x1e00] sm:$0xf]  ;;  %v15557_v29 = vor.u32 %v20406_v24, %v15556_v23  ;;  %v13729_v43 = vor.u32 %v19916_v31, %v13726_v32  ;;  %v13718_v47 = vld [vmem:[#allocation5 + $0x28] sm:$0xf0]  ;;  %v13708_v52 = vld [vmem:[#allocation5 + $0x10] sm:$0xf] }
  0x52   : > { %v20918_v30 = vld [vmem:[#allocation8 + $0x1efc] sm:$0xf0]  ;;  %v19913_v57 = vld [vmem:[#allocation5 + $0x14] sm:$0xf0]  ;;  %v19912_v60 = vld [vmem:[#allocation5 + $0x14] sm:$0xf] }
  0x53   : > { %v17605_v33 = vor.u32 %v20918_v30, %v17604_v25  ;;  %v15300_v34 = vld [vmem:[#allocation8 + $0xc00] sm:$0xf]  ;;  %6810 = vmatpush.bf16.msra.mxu2 %v15557_v29  ;;  %v13710_v61 = vld [vmem:[#allocation5 + $0x18] sm:$0xf0]  ;;  %v13709_v0 = vor.u32 %v19913_v57, %v13708_v52  ;;  %v19911_v1 = vld [vmem:[#allocation5 + $0x4] sm:$0xf0] }
  0x54   : > { %494 = vmatpush.bf16.msra.mxu0 %v13741_v16  ;;  %v20342_v35 = vld [vmem:[#allocation8 + $0xcfc] sm:$0xf0]  ;;  %v13713_v5 = vor.u32 %v19912_v60, %v13710_v61  ;;  %v13702_v9 = vld [vmem:[#allocation5 + $0x8] sm:$0xf0]  ;;  %v20374_v10 = vld [vmem:[#allocation8 + $0xe04] sm:$0xf] }
  0x55   : > { %507 = vmatpush.bf16.msra.mxu1 %v13745_v17  ;;  %v17348_v36 = vld [vmem:[#allocation8 + $0x1c00] sm:$0xf]  ;;  %6823 = vmatpush.bf16.msra.mxu3 %v17605_v33  ;;  %v15301_v41 = vor.u32 %v20342_v35, %v15300_v34  ;;  %v15558_v11 = vld [vmem:[#allocation8 + $0xf00] sm:$0xf0]  ;;  %v389_v29 = vld [vmem:[%s22050_s21] sm:$0xf] }
  0x56   : > { %v20854_v37 = vld [vmem:[#allocation8 + $0x1cfc] sm:$0xf0]  ;;  %v20886_v12 = vld [vmem:[#allocation8 + $0x1e04] sm:$0xf]  ;;  %v15561_v20 = vor.u32 %v20374_v10, %v15558_v11  ;;  %s13697_s1 = sshll.u32 %s22046_s18, 3  ;;  %s19907_s2 = sshll.u32 %s21942_s8, 3 }
  0x57   : > { %v13716_v39 = vld [vmem:[#allocation5 + $0x20] sm:$0xf]  ;;  %v17349_v42 = vor.u32 %v20854_v37, %v17348_v36  ;;  %v19914_v44 = vld [vmem:[#allocation5 + $0x24] sm:$0xf]  ;;  %6811 = vmatpush.bf16.msra.mxu2 %v15301_v41  ;;  %s13546_s12 = scalar_lea.hbm %s22544_s7, %s19907_s2  ;;  %s388_s30 = scalar_lea.vmem [#allocation14], %s13697_s1 }
  0x58   : > { %495 = vmatpush.bf16.msra.mxu0 %v13733_v22  ;;  %v15044_v45 = vld [vmem:[#allocation8 + $0xa00] sm:$0xf]  ;;  %v13717_v51 = vor.u32 %v19915_v40, %v13716_v39  ;;  %v13721_v56 = vor.u32 %v19914_v44, %v13718_v47  ;;  %v17606_v13 = vld [vmem:[#allocation8 + $0x1f00] sm:$0xf0]  ;;  %s13548_s13 = sshll.u32 %s388_s30, 4  ;;  %s13550_s11 = sshll.u32 %s13546_s12, 4  ;;  %s13549_s13 = int_to_ptr.vmem [resolvable:$true] %s13548_s13  ;;  %s13551_s11 = int_to_ptr.hbm [resolvable:$true] %s13550_s11 }
  0x59   : > { %508 = vmatpush.bf16.msra.mxu1 %v13737_v26  ;;  %v20278_v46 = vld [vmem:[#allocation8 + $0xafc] sm:$0xf0]  ;;  %6824 = vmatpush.bf16.msra.mxu3 %v17349_v42  ;;  %v17609_v23 = vor.u32 %v20886_v12, %v17606_v13  ;;  %v20310_v24 = vld [vmem:[#allocation8 + $0xc04] sm:$0xf]  ;;  %v15052_v12 = vld [vmem:[#allocation8 + $0xa08] sm:$0xf] }
  0x5a   : > { %v17092_v48 = vld [vmem:[#allocation8 + $0x1a00] sm:$0xf]  ;;  %v15045_v50 = vor.u32 %v20278_v46, %v15044_v45  ;;  %v15302_v25 = vld [vmem:[#allocation8 + $0xd00] sm:$0xf0]  ;;  %v20279_v13 = vld [vmem:[#allocation8 + $0xb04] sm:$0xf0] }
  0x5b   : > { %v20790_v49 = vld [vmem:[#allocation8 + $0x1afc] sm:$0xf0]  ;;  %v20822_v26 = vld [vmem:[#allocation8 + $0x1c04] sm:$0xf]  ;;  %v15305_v33 = vor.u32 %v20310_v24, %v15302_v25  ;;  %v20215_v24 = vld [vmem:[#allocation8 + $0x904] sm:$0xf0] }
  0x5c   : > { %496 = vmatpush.bf16.msra.mxu0 %v13725_v38  ;;  %v17093_v53 = vor.u32 %v20790_v49, %v17092_v48  ;;  %v14788_v54 = vld [vmem:[#allocation8 + $0x800] sm:$0xf]  ;;  %6812 = vmatpush.bf16.msra.mxu2 %v15045_v50  ;;  %v17350_v27 = vld [vmem:[#allocation8 + $0x1d00] sm:$0xf0]  ;;  %v15564_v49 = vld [vmem:[#allocation8 + $0xe08] sm:$0xf] }
  0x5d   : > { %v20214_v55 = vld [vmem:[#allocation8 + $0x8fc] sm:$0xf0]  ;;  %509 = vmatpush.bf16.msra.mxu1 %v13729_v43  ;;  %v17353_v36 = vor.u32 %v20822_v26, %v17350_v27  ;;  %v20246_v37 = vld [vmem:[#allocation8 + $0xa04] sm:$0xf]  ;;  %v20407_v50 = vld [vmem:[#allocation8 + $0xf04] sm:$0xf0] }
  0x5e   : > { %v16836_v58 = vld [vmem:[#allocation8 + $0x1800] sm:$0xf]  ;;  %v14789_v63 = vor.u32 %v20214_v55, %v14788_v54  ;;  %6825 = vmatpush.bf16.msra.mxu3 %v17093_v53  ;;  %v15046_v38 = vld [vmem:[#allocation8 + $0xb00] sm:$0xf0]  ;;  %v17612_v53 = vld [vmem:[#allocation8 + $0x1e08] sm:$0xf] }
  0x5f   : > { %v20726_v59 = vld [vmem:[#allocation8 + $0x18fc] sm:$0xf0]  ;;  %v20758_v39 = vld [vmem:[#allocation8 + $0x1a04] sm:$0xf]  ;;  %v15049_v47 = vor.u32 %v20246_v37, %v15046_v38  ;;  %v20919_v54 = vld [vmem:[#allocation8 + $0x1f04] sm:$0xf0] }
  0x60   : > { %v13700_v62 = vld [vmem:[#allocation5] sm:$0xf]  ;;  %497 = vmatpush.bf16.msra.mxu0 %v13717_v51  ;;  %v16837_v2 = vor.u32 %v20726_v59, %v16836_v58  ;;  %v19910_v6 = vld [vmem:[#allocation5 + $0x4] sm:$0xf]  ;;  %6813 = vmatpush.bf16.msra.mxu2 %v14789_v63  ;;  %v15565_v59 = vor.u32 %v20407_v50, %v15564_v49  ;;  %v15308_v63 = vld [vmem:[#allocation8 + $0xc08] sm:$0xf] }
  0x61   : > { %v14532_v3 = vld [vmem:[#allocation8 + $0x600] sm:$0xf]  ;;  %510 = vmatpush.bf16.msra.mxu1 %v13721_v56  ;;  %v13701_v15 = vor.u32 %v19911_v1, %v13700_v62  ;;  %v13705_v19 = vor.u32 %v19910_v6, %v13702_v9  ;;  %v17094_v40 = vld [vmem:[#allocation8 + $0x1b00] sm:$0xf0]  ;;  %v17613_v62 = vor.u32 %v20919_v54, %v17612_v53  ;;  %v16844_v27 = vld [vmem:[#allocation8 + $0x1808] sm:$0xf] }
  0x62   : > { %v20150_v4 = vld [vmem:[#allocation8 + $0x6fc] sm:$0xf0]  ;;  %6826 = vmatpush.bf16.msra.mxu3 %v16837_v2  ;;  %v20182_v42 = vld [vmem:[#allocation8 + $0x804] sm:$0xf]  ;;  %v17097_v51 = vor.u32 %v20758_v39, %v17094_v40  ;;  %v20151_v37 = vld [vmem:[#allocation8 + $0x704] sm:$0xf0] }
  0x63   : > { %v16580_v7 = vld [vmem:[#allocation8 + $0x1600] sm:$0xf]  ;;  %v14533_v14 = vor.u32 %v20150_v4, %v14532_v3  ;;  %v14790_v52 = vld [vmem:[#allocation8 + $0x900] sm:$0xf0]  ;;  %v17356_v3 = vld [vmem:[#allocation8 + $0x1c08] sm:$0xf] }
  0x64   : > { %v20662_v8 = vld [vmem:[#allocation8 + $0x16fc] sm:$0xf0]  ;;  %498 = vmatpush.bf16.msra.mxu0 %v13709_v0  ;;  %v20694_v55 = vld [vmem:[#allocation8 + $0x1804] sm:$0xf]  ;;  %v14793_v60 = vor.u32 %v20182_v42, %v14790_v52  ;;  %v20343_v0 = vld [vmem:[#allocation8 + $0xd04] sm:$0xf0] }
  0x65   : > { %v16581_v16 = vor.u32 %v20662_v8, %v16580_v7  ;;  %v14276_v17 = vld [vmem:[#allocation8 + $0x400] sm:$0xf]  ;;  %511 = vmatpush.bf16.msra.mxu1 %v13713_v5  ;;  %6814 = vmatpush.bf16.msra.mxu2 %v14533_v14  ;;  %v16838_v56 = vld [vmem:[#allocation8 + $0x1900] sm:$0xf0]  ;;  %v20855_v4 = vld [vmem:[#allocation8 + $0x1d04] sm:$0xf0]  ;;  %v15309_v8 = vor.u32 %v20343_v0, %v15308_v63 }
  0x66   : > { %v20086_v18 = vld [vmem:[#allocation8 + $0x4fc] sm:$0xf0]  ;;  %v20118_v61 = vld [vmem:[#allocation8 + $0x604] sm:$0xf]  ;;  %v16841_v1 = vor.u32 %v20694_v55, %v16838_v56  ;;  %v17357_v11 = vor.u32 %v20855_v4, %v17356_v3  ;;  %v16588_v40 = vld [vmem:[#allocation8 + $0x1608] sm:$0xf] }
  0x67   : > { %v16324_v21 = vld [vmem:[#allocation8 + $0x1400] sm:$0xf]  ;;  %v14277_v28 = vor.u32 %v20086_v18, %v14276_v17  ;;  %6827 = vmatpush.bf16.msra.mxu3 %v16581_v16  ;;  %v14534_v2 = vld [vmem:[#allocation8 + $0x700] sm:$0xf0]  ;;  %v20791_v16 = vld [vmem:[#allocation8 + $0x1b04] sm:$0xf0] }
  0x68   : > { %v20598_v22 = vld [vmem:[#allocation8 + $0x14fc] sm:$0xf0]  ;;  %499 = vmatpush.bf16.msra.mxu0 %v13701_v15  ;;  %v20630_v5 = vld [vmem:[#allocation8 + $0x1604] sm:$0xf]  ;;  %v14537_v9 = vor.u32 %v20118_v61, %v14534_v2  ;;  %v17100_v15 = vld [vmem:[#allocation8 + $0x1a08] sm:$0xf] }
  0x69   : > { %v16325_v30 = vor.u32 %v20598_v22, %v16324_v21  ;;  %v14020_v31 = vld [vmem:[#allocation8 + $0x200] sm:$0xf]  ;;  %512 = vmatpush.bf16.msra.mxu1 %v13705_v19  ;;  %6815 = vmatpush.bf16.msra.mxu2 %v14277_v28  ;;  %v16582_v6 = vld [vmem:[#allocation8 + $0x1700] sm:$0xf0]  ;;  %v15053_v19 = vor.u32 %v20279_v13, %v15052_v12  ;;  %v17101_v22 = vor.u32 %v20791_v16, %v17100_v15  ;;  %v20727_v28 = vld [vmem:[#allocation8 + $0x1904] sm:$0xf0] }
  0x6a   : > { %v20022_v32 = vld [vmem:[#allocation8 + $0x2fc] sm:$0xf0]  ;;  %v20054_v7 = vld [vmem:[#allocation8 + $0x404] sm:$0xf]  ;;  %v16585_v14 = vor.u32 %v20630_v5, %v16582_v6  ;;  %v14284_v50 = vld [vmem:[#allocation8 + $0x408] sm:$0xf] }
  0x6b   : > { %v16068_v34 = vld [vmem:[#allocation8 + $0x1200] sm:$0xf]  ;;  %500 = vmatmul.bf16.vlgmr.msra.gmra.mxu0 %v389_v29  ;;  %v14021_v41 = vor.u32 %v20022_v32, %v14020_v31  ;;  %6828 = vmatpush.bf16.msra.mxu3 %v16325_v30  ;;  %v14278_v10 = vld [vmem:[#allocation8 + $0x500] sm:$0xf0]  ;;  %v16332_v54 = vld [vmem:[#allocation8 + $0x1408] sm:$0xf] }
  0x6c   : > { %6836 = vmatpush.bf16.msrb.mxu0 %v15561_v20  ;;  %v20534_v35 = vld [vmem:[#allocation8 + $0x12fc] sm:$0xf0]  ;;  %513 = vmatmul.bf16.vlgmr.msra.gmra.mxu1 %v389_v29  ;;  %v20566_v17 = vld [vmem:[#allocation8 + $0x1404] sm:$0xf]  ;;  %v14281_v20 = vor.u32 %v20054_v7, %v14278_v10  ;;  %v20599_v55 = vld [vmem:[#allocation8 + $0x1504] sm:$0xf0] }
  0x6d   : > { %6849 = vmatpush.bf16.msrb.mxu1 %v17609_v23  ;;  %v16069_v43 = vor.u32 %v20534_v35, %v16068_v34  ;;  %v13764_v44 = vld [vmem:[#allocation8] sm:$0xf]  ;;  %6816 = vmatpush.bf16.msra.mxu2 %v14021_v41  ;;  %v16326_v18 = vld [vmem:[#allocation8 + $0x1500] sm:$0xf0]  ;;  %v14796_v23 = vld [vmem:[#allocation8 + $0x808] sm:$0xf]  ;;  %v16845_v35 = vor.u32 %v20727_v28, %v16844_v27 }
  0x6e   : > { %v19958_v45 = vld [vmem:[#allocation8 + $0xfc] sm:$0xf0]  ;;  %v19990_v21 = vld [vmem:[#allocation8 + $0x204] sm:$0xf]  ;;  %v16329_v25 = vor.u32 %v20566_v17, %v16326_v18  ;;  %v14797_v32 = vor.u32 %v20215_v24, %v14796_v23  ;;  %v20663_v41 = vld [vmem:[#allocation8 + $0x1704] sm:$0xf0] }
  0x6f   : > { %v15812_v46 = vld [vmem:[#allocation8 + $0x1000] sm:$0xf]  ;;  %v13765_v57 = vor.u32 %v19958_v45, %v13764_v44  ;;  %6829 = vmatpush.bf16.msra.mxu3 %v16069_v43  ;;  %v14022_v26 = vld [vmem:[#allocation8 + $0x300] sm:$0xf0]  ;;  %v20375_v43 = vld [vmem:[#allocation8 + $0xe0c] sm:$0xf]  ;;  %v16589_v49 = vor.u32 %v20663_v41, %v16588_v40 }
  0x70   : > { %6837 = vmatpush.bf16.msrb.mxu0 %v15305_v33  ;;  %v20470_v48 = vld [vmem:[#allocation8 + $0x10fc] sm:$0xf0]  ;;  %v20502_v29 = vld [vmem:[#allocation8 + $0x1204] sm:$0xf]  ;;  %v14025_v33 = vor.u32 %v19990_v21, %v14022_v26  ;;  %v15566_v44 = vld [vmem:[#allocation8 + $0xf08] sm:$0xf0] }
  0x71   : > { %6850 = vmatpush.bf16.msrb.mxu1 %v17353_v36  ;;  %v15813_v58 = vor.u32 %v20470_v48, %v15812_v46  ;;  %6817 = vmatpush.bf16.msra.mxu2 %v13765_v57  ;;  %v16070_v30 = vld [vmem:[#allocation8 + $0x1300] sm:$0xf0]  ;;  %v14540_v36 = vld [vmem:[#allocation8 + $0x608] sm:$0xf]  ;;  %v20887_v45 = vld [vmem:[#allocation8 + $0x1e0c] sm:$0xf]  ;;  %v15569_v53 = vor.u32 %v20375_v43, %v15566_v44 }
  0x72   : > { %v19926_v31 = vld [vmem:[#allocation8 + $0x4] sm:$0xf]  ;;  %v16073_v38 = vor.u32 %v20502_v29, %v16070_v30  ;;  %v17614_v46 = vld [vmem:[#allocation8 + $0x1f08] sm:$0xf0]  ;;  %v20023_v26 = vld [vmem:[#allocation8 + $0x304] sm:$0xf0] }
  0x73   : > { %6830 = vmatpush.bf16.msra.mxu3 %v15813_v58  ;;  %v13766_v34 = vld [vmem:[#allocation8 + $0x100] sm:$0xf0]  ;;  %v17617_v56 = vor.u32 %v20887_v45, %v17614_v46  ;;  %v20311_v57 = vld [vmem:[#allocation8 + $0xc0c] sm:$0xf]  ;;  %v16076_v28 = vld [vmem:[#allocation8 + $0x1208] sm:$0xf] }
  0x74   : > { %6838 = vmatpush.bf16.msrb.mxu0 %v15049_v47  ;;  %v20438_v39 = vld [vmem:[#allocation8 + $0x1004] sm:$0xf]  ;;  %v14541_v47 = vor.u32 %v20151_v37, %v14540_v36  ;;  %v13769_v48 = vor.u32 %v19926_v31, %v13766_v34  ;;  %v15310_v58 = vld [vmem:[#allocation8 + $0xd08] sm:$0xf0]  ;;  %v20535_v29 = vld [vmem:[#allocation8 + $0x1304] sm:$0xf0] }
  0x75   : > { %6851 = vmatpush.bf16.msrb.mxu1 %v17097_v51  ;;  %6862 = vmatpush.bf16.msrb.mxu2 %v15565_v59  ;;  %v15814_v42 = vld [vmem:[#allocation8 + $0x1100] sm:$0xf0]  ;;  %v20087_v51 = vld [vmem:[#allocation8 + $0x504] sm:$0xf0]  ;;  %v20823_v59 = vld [vmem:[#allocation8 + $0x1c0c] sm:$0xf]  ;;  %v15313_v63 = vor.u32 %v20311_v57, %v15310_v58  ;;  %v16077_v31 = vor.u32 %v20535_v29, %v16076_v28 }
  0x76   : > { %v15817_v52 = vor.u32 %v20438_v39, %v15814_v42  ;;  %v14285_v61 = vor.u32 %v20087_v51, %v14284_v50  ;;  %v15054_v2 = vld [vmem:[#allocation8 + $0xb08] sm:$0xf0]  ;;  %v13772_v37 = vld [vmem:[#allocation8 + $0x8] sm:$0xf]  ;;  %v17620_v57 = vld [vmem:[#allocation8 + $0x1e10] sm:$0xf] }
  0x77   : > { %6875 = vmatpush.bf16.msrb.mxu3 %v17613_v62  ;;  %v16333_v62 = vor.u32 %v20599_v55, %v16332_v54  ;;  %v20759_v3 = vld [vmem:[#allocation8 + $0x1a0c] sm:$0xf]  ;;  %v15820_v39 = vld [vmem:[#allocation8 + $0x1008] sm:$0xf]  ;;  %v15572_v55 = vld [vmem:[#allocation8 + $0xe10] sm:$0xf] }
  0x78   : > { %6839 = vmatpush.bf16.msrb.mxu0 %v14793_v60  ;;  %v17358_v60 = vld [vmem:[#allocation8 + $0x1d08] sm:$0xf0]  ;;  %v20471_v41 = vld [vmem:[#allocation8 + $0x1104] sm:$0xf0]  ;;  %v20760_v28 = vld [vmem:[#allocation8 + $0x1a14] sm:$0xf] }
  0x79   : > { %6852 = vmatpush.bf16.msrb.mxu1 %v16841_v1  ;;  %6863 = vmatpush.bf16.msrb.mxu2 %v15309_v8  ;;  %v17361_v0 = vor.u32 %v20823_v59, %v17358_v60  ;;  %v20247_v1 = vld [vmem:[#allocation8 + $0xa0c] sm:$0xf]  ;;  %v15821_v44 = vor.u32 %v20471_v41, %v15820_v39  ;;  %v20920_v59 = vld [vmem:[#allocation8 + $0x1f0c] sm:$0xf0]  ;;  %v20376_v60 = vld [vmem:[#allocation8 + $0xe14] sm:$0xf] }
  0x7a   : > { %v17102_v4 = vld [vmem:[#allocation8 + $0x1b08] sm:$0xf0]  ;;  %v15057_v5 = vor.u32 %v20247_v1, %v15054_v2  ;;  %v17110_v29 = vld [vmem:[#allocation8 + $0x1b10] sm:$0xf0]  ;;  %s13536_s8 = scalar_lea.sflag [#allocation4], %s22046_s18  ;;  %s21800_s22 = sshra.s32 %s13551_s11, 4  ;;  %s21801_s22 = int_to_ptr.hbm [resolvable:$true] %s21800_s22 }
  0x7b   : > { %6876 = vmatpush.bf16.msrb.mxu3 %v17357_v11  ;;  %v17105_v6 = vor.u32 %v20759_v3, %v17102_v4  ;;  %v20183_v7 = vld [vmem:[#allocation8 + $0x80c] sm:$0xf]  ;;  %v17621_v4 = vor.u32 %v20920_v59, %v17620_v57  ;;  %v14806_v39 = vld [vmem:[#allocation8 + $0x910] sm:$0xf0]  ;;  %v20088_v57 = vld [vmem:[#allocation8 + $0x50c] sm:$0xf0]  ;;  %p21807_p12 = scmp.lt.s32.totalorder %s21801_s22, %s22544_s7 }
  0x7c   : > { %6840 = vmatpush.bf16.msrb.mxu0 %v14537_v9  ;;  %v14798_v8 = vld [vmem:[#allocation8 + $0x908] sm:$0xf0]  ;;  %v16854_v41 = vld [vmem:[#allocation8 + $0x1910] sm:$0xf0]  ;;  %s21802_s23 = scalar_lea.hbm %s21801_s22, 8  ;;  %s21806_s29 = scalar_lea.hbm %s22544_s7, 16 }
  0x7d   : > { %6853 = vmatpush.bf16.msrb.mxu1 %v16585_v14  ;;  %6864 = vmatpush.bf16.msrb.mxu2 %v15053_v19  ;;  %v20695_v9 = vld [vmem:[#allocation8 + $0x180c] sm:$0xf]  ;;  %v14801_v11 = vor.u32 %v20183_v7, %v14798_v8  ;;  %p21803_p1 = scmp.ne.s32.totalorder %s21801_s22, %s21802_s23  ;;  %p21808_p7 = scmp.lt.s32.totalorder %s21806_s29, %s21802_s23 }
  0x7e   : > { %v16846_v10 = vld [vmem:[#allocation8 + $0x1908] sm:$0xf0] }
  0x7f   : > { %6877 = vmatpush.bf16.msrb.mxu3 %v17101_v22  ;;  %v16849_v12 = vor.u32 %v20695_v9, %v16846_v10  ;;  %v20119_v13 = vld [vmem:[#allocation8 + $0x60c] sm:$0xf]  ;;  %v17364_v10 = vld [vmem:[#allocation8 + $0x1c10] sm:$0xf]  ;;  %p21804_p3 = pnand %p21803_p1, %p22015_p4  ;;  %p21809_p8 = por %p21808_p7, %p21807_p12 }
  0x80   : > { %6841 = vmatpush.bf16.msrb.mxu0 %v14281_v20  ;;  %v14542_v14 = vld [vmem:[#allocation8 + $0x708] sm:$0xf0] }
  0x81   : > { %6854 = vmatpush.bf16.msrb.mxu1 %v16329_v25  ;;  %6865 = vmatpush.bf16.msrb.mxu2 %v14797_v32  ;;  %v20631_v15 = vld [vmem:[#allocation8 + $0x160c] sm:$0xf]  ;;  %v14545_v17 = vor.u32 %v20119_v13, %v14542_v14  ;;  %v14028_v25 = vld [vmem:[#allocation8 + $0x208] sm:$0xf]  ;;  %v15318_v13 = vld [vmem:[#allocation8 + $0xd10] sm:$0xf0]  ;;  %p21805_p5 = pneg %p21804_p3 }
  0x82   : > { %v16590_v16 = vld [vmem:[#allocation8 + $0x1708] sm:$0xf0]  ;;  %v14029_v27 = vor.u32 %v20023_v26, %v14028_v25  ;;  %v20824_v14 = vld [vmem:[#allocation8 + $0x1c14] sm:$0xf]  ;;  %v20792_v25 = vld [vmem:[#allocation8 + $0x1b0c] sm:$0xf0] }
  0x83   : > { %6878 = vmatpush.bf16.msrb.mxu3 %v16845_v35  ;;  %v16593_v18 = vor.u32 %v20631_v15, %v16590_v16  ;;  %v20055_v19 = vld [vmem:[#allocation8 + $0x40c] sm:$0xf]  ;;  %v17366_v15 = vld [vmem:[#allocation8 + $0x1d10] sm:$0xf0]  ;;  %p21810_p9 = pnand %p21809_p8, %p21805_p5 }
  0x84   : > { %6842 = vmatpush.bf16.msrb.mxu0 %v14025_v33  ;;  %v14286_v20 = vld [vmem:[#allocation8 + $0x508] sm:$0xf0]  ;;  %v20248_v26 = vld [vmem:[#allocation8 + $0xa14] sm:$0xf] }
  0x85   : > { %6855 = vmatpush.bf16.msrb.mxu1 %v16073_v38  ;;  %6866 = vmatpush.bf16.msrb.mxu2 %v14541_v47  ;;  %v20567_v21 = vld [vmem:[#allocation8 + $0x140c] sm:$0xf]  ;;  %v14289_v23 = vor.u32 %v20055_v19, %v14286_v20  ;;  %v19959_v38 = vld [vmem:[#allocation8 + $0x104] sm:$0xf0]  ;;  %v15060_v20 = vld [vmem:[#allocation8 + $0xa10] sm:$0xf] }
  0x86   : > { %v16334_v22 = vld [vmem:[#allocation8 + $0x1508] sm:$0xf0]  ;;  %v13773_v40 = vor.u32 %v19959_v38, %v13772_v37  ;;  %v20728_v37 = vld [vmem:[#allocation8 + $0x190c] sm:$0xf0]  ;;  %v20184_v38 = vld [vmem:[#allocation8 + $0x814] sm:$0xf] }
  0x87   : > { %6879 = vmatpush.bf16.msrb.mxu3 %v16589_v49  ;;  %v16337_v24 = vor.u32 %v20567_v21, %v16334_v22  ;;  %v19991_v30 = vld [vmem:[#allocation8 + $0x20c] sm:$0xf]  ;;  %v406_v49 = vld [vmem:[#allocation7] sm:$0x3]  ;;  %v20280_v21 = vld [vmem:[#allocation8 + $0xb0c] sm:$0xf0] }
  0x88   : > { %6843 = vmatpush.bf16.msrb.mxu0 %v13769_v48  ;;  %v14030_v32 = vld [vmem:[#allocation8 + $0x308] sm:$0xf0]  ;;  %v408_v50 = vperm.slane %v406_v49, 0  ;;  %v409_v51 = vperm.slane %v406_v49, 1  ;;  %v20664_v49 = vld [vmem:[#allocation8 + $0x170c] sm:$0xf0] }
  0x89   : > { %6856 = vmatpush.bf16.msrb.mxu1 %v15817_v52  ;;  %6867 = vmatpush.bf16.msrb.mxu2 %v14285_v61  ;;  %v20503_v33 = vld [vmem:[#allocation8 + $0x120c] sm:$0xf]  ;;  %v14033_v35 = vor.u32 %v19991_v30, %v14030_v32  ;;  %v15574_v61 = vld [vmem:[#allocation8 + $0xf10] sm:$0xf0]  ;;  %v15061_v30 = vor.u32 %v20280_v21, %v15060_v20  ;;  %v14804_v32 = vld [vmem:[#allocation8 + $0x810] sm:$0xf] }
  0x8a   : > { %v16078_v34 = vld [vmem:[#allocation8 + $0x1308] sm:$0xf0]  ;;  %v15577_v8 = vor.u32 %v20376_v60, %v15574_v61  ;;  %v16340_v60 = vld [vmem:[#allocation8 + $0x1410] sm:$0xf] }
  0x8b   : > { %6880 = vmatpush.bf16.msrb.mxu3 %v16333_v62  ;;  %v16081_v36 = vor.u32 %v20503_v33, %v16078_v34  ;;  %v19927_v42 = vld [vmem:[#allocation8 + $0xc] sm:$0xf]  ;;  %v20216_v33 = vld [vmem:[#allocation8 + $0x90c] sm:$0xf0] }
  0x8c   : > { %6888 = vmatpush.bf16.msra.mxu0 %v15569_v53  ;;  %v13774_v43 = vld [vmem:[#allocation8 + $0x108] sm:$0xf0]  ;;  %v20600_v61 = vld [vmem:[#allocation8 + $0x150c] sm:$0xf0] }
  0x8d   : > { %6901 = vmatpush.bf16.msra.mxu1 %v17617_v56  ;;  %6868 = vmatpush.bf16.msrb.mxu2 %v14029_v27  ;;  %v13777_v45 = vor.u32 %v19927_v42, %v13774_v43  ;;  %v20439_v46 = vld [vmem:[#allocation8 + $0x100c] sm:$0xf]  ;;  %v20408_v56 = vld [vmem:[#allocation8 + $0xf0c] sm:$0xf0]  ;;  %v15062_v27 = vld [vmem:[#allocation8 + $0xb10] sm:$0xf0]  ;;  %v14805_v42 = vor.u32 %v20216_v33, %v14804_v32 }
  0x8e   : > { %v15822_v47 = vld [vmem:[#allocation8 + $0x1108] sm:$0xf0]  ;;  %v15573_v3 = vor.u32 %v20408_v56, %v15572_v55  ;;  %v15065_v34 = vor.u32 %v20248_v26, %v15062_v27  ;;  %v14292_v56 = vld [vmem:[#allocation8 + $0x410] sm:$0xf]  ;;  %v20440_v26 = vld [vmem:[#allocation8 + $0x1014] sm:$0xf] }
  0x8f   : > { %6881 = vmatpush.bf16.msrb.mxu3 %v16077_v31  ;;  %v15825_v48 = vor.u32 %v20439_v46, %v15822_v47  ;;  %v14809_v46 = vor.u32 %v20184_v38, %v14806_v39  ;;  %v15828_v20 = vld [vmem:[#allocation8 + $0x1010] sm:$0xf]  ;;  %v15830_v27 = vld [vmem:[#allocation8 + $0x1110] sm:$0xf0]  ;;  %v20377_v32 = vld [vmem:[#allocation8 + $0xe1c] sm:$0xf] }
  0x90   : > { %6889 = vmatpush.bf16.msra.mxu0 %v15313_v63  ;;  %v20888_v63 = vld [vmem:[#allocation8 + $0x1e14] sm:$0xf]  ;;  %v20472_v21 = vld [vmem:[#allocation8 + $0x110c] sm:$0xf0]  ;;  %v15833_v39 = vor.u32 %v20440_v26, %v15830_v27 }
  0x91   : > { %6902 = vmatpush.bf16.msra.mxu1 %v17361_v0  ;;  %6869 = vmatpush.bf16.msrb.mxu2 %v13773_v40  ;;  %v17622_v0 = vld [vmem:[#allocation8 + $0x1f10] sm:$0xf0] }
  0x92   : > { %v17625_v9 = vor.u32 %v20888_v63, %v17622_v0  ;;  %v20696_v40 = vld [vmem:[#allocation8 + $0x1814] sm:$0xf] }
  0x93   : > { %6882 = vmatpush.bf16.msrb.mxu3 %v15821_v44  ;;  %v14548_v44 = vld [vmem:[#allocation8 + $0x610] sm:$0xf]  ;;  %v16857_v47 = vor.u32 %v20696_v40, %v16854_v41  ;;  %v14294_v63 = vld [vmem:[#allocation8 + $0x510] sm:$0xf0] }
  0x94   : > { %6890 = vmatpush.bf16.msra.mxu0 %v15057_v5  ;;  %v15316_v5 = vld [vmem:[#allocation8 + $0xc10] sm:$0xf]  ;;  %v20568_v0 = vld [vmem:[#allocation8 + $0x1414] sm:$0xf] }
  0x95   : > { %6903 = vmatpush.bf16.msra.mxu1 %v17105_v6  ;;  %v20344_v6 = vld [vmem:[#allocation8 + $0xd0c] sm:$0xf0] }
  0x98   : > { %6891 = vmatpush.bf16.msra.mxu0 %v14801_v11  ;;  %v20856_v11 = vld [vmem:[#allocation8 + $0x1d0c] sm:$0xf0] }
  0x99   : > { %6904 = vmatpush.bf16.msra.mxu1 %v16849_v12  ;;  %v20312_v12 = vld [vmem:[#allocation8 + $0xc14] sm:$0xf]  ;;  %v17365_v19 = vor.u32 %v20856_v11, %v17364_v10  ;;  %v16084_v10 = vld [vmem:[#allocation8 + $0x1210] sm:$0xf] }
  0x9a   : > { %v15321_v22 = vor.u32 %v20312_v12, %v15318_v13  ;;  %v20536_v11 = vld [vmem:[#allocation8 + $0x130c] sm:$0xf0]  ;;  %v19992_v12 = vld [vmem:[#allocation8 + $0x214] sm:$0xf] }
  0x9b   : > { %v14038_v13 = vld [vmem:[#allocation8 + $0x310] sm:$0xf0] }
  0x9c   : > { %6892 = vmatpush.bf16.msra.mxu0 %v14545_v17 }
  0x9d   : > { %6905 = vmatpush.bf16.msra.mxu1 %v16593_v18  ;;  %v15317_v18 = vor.u32 %v20344_v6, %v15316_v5  ;;  %v14036_v5 = vld [vmem:[#allocation8 + $0x210] sm:$0xf] }
  0x9e   : > { %v20024_v6 = vld [vmem:[#allocation8 + $0x30c] sm:$0xf0] }
  0xa0   : > { %6893 = vmatpush.bf16.msra.mxu0 %v14289_v23  ;;  %v17369_v23 = vor.u32 %v20824_v14, %v17366_v15  ;;  %v20504_v14 = vld [vmem:[#allocation8 + $0x1214] sm:$0xf] }
  0xa1   : > { %6906 = vmatpush.bf16.msra.mxu1 %v16337_v24  ;;  %v17108_v24 = vld [vmem:[#allocation8 + $0x1a10] sm:$0xf]  ;;  %v16086_v15 = vld [vmem:[#allocation8 + $0x1310] sm:$0xf0] }
  0xa2   : > { %v17109_v31 = vor.u32 %v20792_v25, %v17108_v24  ;;  %v19928_v24 = vld [vmem:[#allocation8 + $0x14] sm:$0xf] }
  0xa3   : > { %v13782_v25 = vld [vmem:[#allocation8 + $0x110] sm:$0xf0] }
  0xa4   : > { %6894 = vmatpush.bf16.msra.mxu0 %v14033_v35  ;;  %v17113_v35 = vor.u32 %v20760_v28, %v17110_v29  ;;  %v15580_v28 = vld [vmem:[#allocation8 + $0xe18] sm:$0xf]  ;;  %v13785_v38 = vor.u32 %v19928_v24, %v13782_v25  ;;  %v20633_v24 = vld [vmem:[#allocation8 + $0x161c] sm:$0xf] }
  0xa5   : > { %6907 = vmatpush.bf16.msra.mxu1 %v16081_v36  ;;  %v16852_v36 = vld [vmem:[#allocation8 + $0x1810] sm:$0xf]  ;;  %v20409_v29 = vld [vmem:[#allocation8 + $0xf14] sm:$0xf0]  ;;  %v16606_v25 = vld [vmem:[#allocation8 + $0x1718] sm:$0xf0] }
  0xa6   : > { %v16853_v43 = vor.u32 %v20728_v37, %v16852_v36  ;;  %v20889_v36 = vld [vmem:[#allocation8 + $0x1e1c] sm:$0xf]  ;;  %v15581_v40 = vor.u32 %v20409_v29, %v15580_v28  ;;  %v14300_v28 = vld [vmem:[#allocation8 + $0x418] sm:$0xf] }
  0xa7   : > { %v17630_v37 = vld [vmem:[#allocation8 + $0x1f18] sm:$0xf0]  ;;  %v20089_v29 = vld [vmem:[#allocation8 + $0x514] sm:$0xf0] }
  0xa8   : > { %6895 = vmatpush.bf16.msra.mxu0 %v13777_v45  ;;  %v20152_v45 = vld [vmem:[#allocation8 + $0x70c] sm:$0xf0] }
  0xa9   : > { %6908 = vmatpush.bf16.msra.mxu1 %v15825_v48  ;;  %v16596_v48 = vld [vmem:[#allocation8 + $0x1610] sm:$0xf] }
  0xaa   : > { %v16597_v55 = vor.u32 %v20664_v49, %v16596_v48  ;;  %v20313_v48 = vld [vmem:[#allocation8 + $0xc1c] sm:$0xf] }
  0xab   : > { %v15326_v49 = vld [vmem:[#allocation8 + $0xd18] sm:$0xf0] }
  0xe8   : > { %v501_v52 = vpop.f32.mrf.mxu0 }
  0xe9   : > { %v502_v53 = vadd.f32 %v501_v52, %v408_v50  ;;  %v514_v54 = vpop.f32.mrf.mxu1  ;;  %v20120_v50 = vld [vmem:[#allocation8 + $0x614] sm:$0xf] }
  0xea   : > { %v515_v58 = vadd.f32 %v514_v54, %v409_v51  ;;  %v14550_v51 = vld [vmem:[#allocation8 + $0x710] sm:$0xf0]  ;;  %v14549_v54 = vor.u32 %v20152_v45, %v14548_v44  ;;  %v17633_v45 = vor.u32 %v20889_v36, %v17630_v37  ;;  %v20569_v36 = vld [vmem:[#allocation8 + $0x141c] sm:$0xf] }
  0xeb   : > { %v518_v62 = vmax.f32 %v502_v53, 0.0  ;;  %v20632_v52 = vld [vmem:[#allocation8 + $0x1614] sm:$0xf]  ;;  %v16350_v37 = vld [vmem:[#allocation8 + $0x1518] sm:$0xf0] }
  0xec   : > { %v519_v1 = vmax.f32 %v515_v58, 0.0  ;;  %v16598_v53 = vld [vmem:[#allocation8 + $0x1710] sm:$0xf0]  ;;  %v14553_v58 = vor.u32 %v20120_v50, %v14550_v51  ;;  %v20825_v50 = vld [vmem:[#allocation8 + $0x1c1c] sm:$0xf] }
  0xed   : > { %v22069_v2 = vpack.c.bf16 %v518_v62, %v518_v62  ;;  %v16601_v59 = vor.u32 %v20632_v52, %v16598_v53  ;;  %v20056_v62 = vld [vmem:[#allocation8 + $0x414] sm:$0xf]  ;;  %v17374_v51 = vld [vmem:[#allocation8 + $0x1d18] sm:$0xf0] }
  0xee   : > { %v22071_v7 = vpack.c.bf16 %v519_v1, %v519_v1  ;;  %v16342_v1 = vld [vmem:[#allocation8 + $0x1510] sm:$0xf0] }
  0xef   : > { %6818 = vmatmul.bf16.vlgmr.msra.gmra.mxu2 %v22069_v2  ;;  %6844 = vmatmul.bf16.vlgmr.msrb.gmra.mxu0 %v22069_v2 }
  0xf0   : > { %6831 = vmatmul.bf16.vlgmr.msra.gmra.mxu3 %v22071_v7  ;;  %6857 = vmatmul.bf16.vlgmr.msrb.gmra.mxu1 %v22071_v7  ;;  %v503_v16 = vpop.f32.mrf.mxu0 }
  0xf1   : > { %6914 = vmatpush.bf16.msra.mxu2 %v15573_v3  ;;  %6927 = vmatpush.bf16.msra.mxu3 %v17621_v4  ;;  %v516_v17 = vpop.f32.mrf.mxu1  ;;  %v14293_v3 = vor.u32 %v20088_v57, %v14292_v56  ;;  %v16341_v4 = vor.u32 %v20600_v61, %v16340_v60  ;;  %v13780_v16 = vld [vmem:[#allocation8 + $0x10] sm:$0xf]  ;;  %v15329_v56 = vor.u32 %v20313_v48, %v15326_v49  ;;  %v20249_v60 = vld [vmem:[#allocation8 + $0xa1c] sm:$0xf] }
  0xf2   : > { %6940 = vmatpush.bf16.msrb.mxu0 %v15577_v8  ;;  %6953 = vmatpush.bf16.msrb.mxu1 %v17625_v9  ;;  %v14297_v8 = vor.u32 %v20056_v62, %v14294_v63  ;;  %v16345_v9 = vor.u32 %v20568_v0, %v16342_v1  ;;  %v14037_v17 = vor.u32 %v20024_v6, %v14036_v5  ;;  %v15070_v61 = vld [vmem:[#allocation8 + $0xb18] sm:$0xf0] }
  0xf3   : > { %v17377_v57 = vor.u32 %v20825_v50, %v17374_v51  ;;  %v20761_v62 = vld [vmem:[#allocation8 + $0x1a1c] sm:$0xf]  ;;  %v15073_v5 = vor.u32 %v20249_v60, %v15070_v61  ;;  %v13788_v50 = vld [vmem:[#allocation8 + $0x18] sm:$0xf] }
  0xf4   : > { %v17118_v63 = vld [vmem:[#allocation8 + $0x1b18] sm:$0xf0] }
  0xf5   : > { %6915 = vmatpush.bf16.msra.mxu2 %v15317_v18  ;;  %6928 = vmatpush.bf16.msra.mxu3 %v17365_v19  ;;  %v16085_v18 = vor.u32 %v20536_v11, %v16084_v10  ;;  %v19960_v19 = vld [vmem:[#allocation8 + $0x10c] sm:$0xf0]  ;;  %v17121_v6 = vor.u32 %v20761_v62, %v17118_v63  ;;  %v20185_v10 = vld [vmem:[#allocation8 + $0x81c] sm:$0xf]  ;;  %v15588_v62 = vld [vmem:[#allocation8 + $0xe20] sm:$0xf] }
  0xf6   : > { %6941 = vmatpush.bf16.msrb.mxu0 %v15321_v22  ;;  %6954 = vmatpush.bf16.msrb.mxu1 %v17369_v23  ;;  %v14041_v22 = vor.u32 %v19992_v12, %v14038_v13  ;;  %v16089_v23 = vor.u32 %v20504_v14, %v16086_v15  ;;  %v13781_v33 = vor.u32 %v19960_v19, %v13780_v16  ;;  %v14814_v11 = vld [vmem:[#allocation8 + $0x918] sm:$0xf0]  ;;  %v14556_v16 = vld [vmem:[#allocation8 + $0x618] sm:$0xf]  ;;  %v20410_v63 = vld [vmem:[#allocation8 + $0xf1c] sm:$0xf0] }
  0xf7   : > { %v20697_v12 = vld [vmem:[#allocation8 + $0x181c] sm:$0xf] }
  0xf8   : > { %v16862_v13 = vld [vmem:[#allocation8 + $0x1918] sm:$0xf0] }
  0xf9   : > { %6916 = vmatpush.bf16.msra.mxu2 %v15061_v30  ;;  %6929 = vmatpush.bf16.msra.mxu3 %v17109_v31  ;;  %v17628_v30 = vld [vmem:[#allocation8 + $0x1e18] sm:$0xf]  ;;  %v16865_v19 = vor.u32 %v20697_v12, %v16862_v13  ;;  %v20505_v48 = vld [vmem:[#allocation8 + $0x121c] sm:$0xf]  ;;  %v15589_v12 = vor.u32 %v20410_v63, %v15588_v62  ;;  %v14308_v62 = vld [vmem:[#allocation8 + $0x420] sm:$0xf] }
  0xfa   : > { %6942 = vmatpush.bf16.msrb.mxu0 %v15065_v34  ;;  %6955 = vmatpush.bf16.msrb.mxu1 %v17113_v35  ;;  %v20921_v31 = vld [vmem:[#allocation8 + $0x1f14] sm:$0xf0]  ;;  %v15829_v34 = vor.u32 %v20472_v21, %v15828_v20  ;;  %v15582_v35 = vld [vmem:[#allocation8 + $0xf18] sm:$0xf0]  ;;  %v20090_v63 = vld [vmem:[#allocation8 + $0x51c] sm:$0xf0] }
  0xfb   : > { %v17629_v41 = vor.u32 %v20921_v31, %v17628_v30  ;;  %v15585_v44 = vor.u32 %v20377_v32, %v15582_v35  ;;  %v16604_v20 = vld [vmem:[#allocation8 + $0x1618] sm:$0xf]  ;;  %v16609_v31 = vor.u32 %v20633_v24, %v16606_v25  ;;  %v14302_v35 = vld [vmem:[#allocation8 + $0x518] sm:$0xf0] }
  0xfc   : > { %v20665_v21 = vld [vmem:[#allocation8 + $0x1714] sm:$0xf0]  ;;  %v16094_v49 = vld [vmem:[#allocation8 + $0x1318] sm:$0xf0] }
  0xfd   : > { %6917 = vmatpush.bf16.msra.mxu2 %v14805_v42  ;;  %6930 = vmatpush.bf16.msra.mxu3 %v16853_v43  ;;  %v15324_v42 = vld [vmem:[#allocation8 + $0xc18] sm:$0xf]  ;;  %v16605_v27 = vor.u32 %v20665_v21, %v16604_v20  ;;  %v20441_v60 = vld [vmem:[#allocation8 + $0x101c] sm:$0xf]  ;;  %v20314_v20 = vld [vmem:[#allocation8 + $0xc24] sm:$0xf] }
  0xfe   : > { %6943 = vmatpush.bf16.msrb.mxu0 %v14809_v46  ;;  %6956 = vmatpush.bf16.msrb.mxu1 %v16857_v47  ;;  %v20345_v43 = vld [vmem:[#allocation8 + $0xd14] sm:$0xf0]  ;;  %v15838_v61 = vld [vmem:[#allocation8 + $0x1118] sm:$0xf0]  ;;  %v15334_v21 = vld [vmem:[#allocation8 + $0xd20] sm:$0xf0] }
  0xff   : > { %6870 = vmatmul.bf16.vlgmr.msrb.gmra.mxu2 %v22069_v2  ;;  %6896 = vmatmul.bf16.vlgmr.msra.gmra.mxu0 %v22069_v2  ;;  %v17372_v46 = vld [vmem:[#allocation8 + $0x1c18] sm:$0xf]  ;;  %v15325_v52 = vor.u32 %v20345_v43, %v15324_v42  ;;  %v16353_v43 = vor.u32 %v20569_v36, %v16350_v37 }
 0x100   : > { %6883 = vmatmul.bf16.vlgmr.msrb.gmra.mxu3 %v22071_v7  ;;  %6909 = vmatmul.bf16.vlgmr.msra.gmra.mxu1 %v22071_v7  ;;  %v20857_v47 = vld [vmem:[#allocation8 + $0x1d14] sm:$0xf0] }
 0x101   : > { %6918 = vmatpush.bf16.msra.mxu2 %v14549_v54  ;;  %6931 = vmatpush.bf16.msra.mxu3 %v16597_v55  ;;  %v17373_v53 = vor.u32 %v20857_v47, %v17372_v46  ;;  %v15068_v54 = vld [vmem:[#allocation8 + $0xa18] sm:$0xf]  ;;  %v19993_v46 = vld [vmem:[#allocation8 + $0x21c] sm:$0xf] }
 0x102   : > { %6944 = vmatpush.bf16.msrb.mxu0 %v14553_v58  ;;  %6957 = vmatpush.bf16.msrb.mxu1 %v16601_v59  ;;  %v20281_v55 = vld [vmem:[#allocation8 + $0xb14] sm:$0xf0]  ;;  %v14046_v47 = vld [vmem:[#allocation8 + $0x318] sm:$0xf0] }
 0x103   : > { %v17116_v58 = vld [vmem:[#allocation8 + $0x1a18] sm:$0xf]  ;;  %v15069_v0 = vor.u32 %v20281_v55, %v15068_v54 }
 0x104   : > { %v20793_v59 = vld [vmem:[#allocation8 + $0x1b14] sm:$0xf0] }
 0x105   : > { %6919 = vmatpush.bf16.msra.mxu2 %v14293_v3  ;;  %6932 = vmatpush.bf16.msra.mxu3 %v16341_v4  ;;  %v17117_v1 = vor.u32 %v20793_v59, %v17116_v58  ;;  %v14812_v3 = vld [vmem:[#allocation8 + $0x818] sm:$0xf]  ;;  %v19929_v58 = vld [vmem:[#allocation8 + $0x1c] sm:$0xf] }
 0x106   : > { %6945 = vmatpush.bf16.msrb.mxu0 %v14297_v8  ;;  %6958 = vmatpush.bf16.msrb.mxu1 %v16345_v9  ;;  %v20217_v4 = vld [vmem:[#allocation8 + $0x914] sm:$0xf0]  ;;  %v13790_v59 = vld [vmem:[#allocation8 + $0x118] sm:$0xf0] }
 0x107   : > { %v16860_v8 = vld [vmem:[#allocation8 + $0x1818] sm:$0xf]  ;;  %v14813_v14 = vor.u32 %v20217_v4, %v14812_v3  ;;  %v20378_v3 = vld [vmem:[#allocation8 + $0xe24] sm:$0xf] }
 0x108   : > { %v20729_v9 = vld [vmem:[#allocation8 + $0x1914] sm:$0xf0] }
 0x109   : > { %6920 = vmatpush.bf16.msra.mxu2 %v14037_v17  ;;  %6933 = vmatpush.bf16.msra.mxu3 %v16085_v18  ;;  %v16861_v15 = vor.u32 %v20729_v9, %v16860_v8  ;;  %v20153_v17 = vld [vmem:[#allocation8 + $0x714] sm:$0xf0]  ;;  %v14817_v18 = vor.u32 %v20185_v10, %v14814_v11  ;;  %v20890_v8 = vld [vmem:[#allocation8 + $0x1e24] sm:$0xf]  ;;  %v13793_v10 = vor.u32 %v19929_v58, %v13790_v59 }
 0x10a   : > { %6946 = vmatpush.bf16.msrb.mxu0 %v14041_v22  ;;  %6959 = vmatpush.bf16.msrb.mxu1 %v16089_v23  ;;  %v20121_v22 = vld [vmem:[#allocation8 + $0x61c] sm:$0xf]  ;;  %v14557_v26 = vor.u32 %v20153_v17, %v14556_v16  ;;  %v16348_v32 = vld [vmem:[#allocation8 + $0x1418] sm:$0xf]  ;;  %v17638_v9 = vld [vmem:[#allocation8 + $0x1f20] sm:$0xf0]  ;;  %v15841_v11 = vor.u32 %v20441_v60, %v15838_v61 }
 0x10b   : > { %v14558_v23 = vld [vmem:[#allocation8 + $0x718] sm:$0xf0]  ;;  %v15836_v54 = vld [vmem:[#allocation8 + $0x1018] sm:$0xf]  ;;  %v17641_v17 = vor.u32 %v20890_v8, %v17638_v9  ;;  %v20634_v58 = vld [vmem:[#allocation8 + $0x1624] sm:$0xf] }
 0x10c   : > { %v14561_v30 = vor.u32 %v20121_v22, %v14558_v23  ;;  %v20473_v55 = vld [vmem:[#allocation8 + $0x1114] sm:$0xf0]  ;;  %v20826_v22 = vld [vmem:[#allocation8 + $0x1c24] sm:$0xf] }
 0x10d   : > { %6921 = vmatpush.bf16.msra.mxu2 %v13781_v33  ;;  %6934 = vmatpush.bf16.msra.mxu3 %v15829_v34  ;;  %v20601_v33 = vld [vmem:[#allocation8 + $0x1514] sm:$0xf0]  ;;  %v20057_v34 = vld [vmem:[#allocation8 + $0x41c] sm:$0xf]  ;;  %v17382_v23 = vld [vmem:[#allocation8 + $0x1d20] sm:$0xf0] }
 0x10e   : > { %6947 = vmatpush.bf16.msrb.mxu0 %v13785_v38  ;;  %6960 = vmatpush.bf16.msrb.mxu1 %v15833_v39  ;;  %v14301_v38 = vor.u32 %v20089_v29, %v14300_v28  ;;  %v16349_v39 = vor.u32 %v20601_v33, %v16348_v32  ;;  %v14305_v42 = vor.u32 %v20057_v34, %v14302_v35  ;;  %v20250_v32 = vld [vmem:[#allocation8 + $0xa24] sm:$0xf] }
 0x10f   : > { %v15337_v28 = vor.u32 %v20314_v20, %v15334_v21  ;;  %v17385_v29 = vor.u32 %v20826_v22, %v17382_v23  ;;  %v15078_v33 = vld [vmem:[#allocation8 + $0xb20] sm:$0xf0]  ;;  %v13796_v22 = vld [vmem:[#allocation8 + $0x20] sm:$0xf] }
 0x110   : > { %6922 = vmatmul.bf16.vlgmr.msra.gmra.mxu2 %v22069_v2  ;;  %6935 = vmatmul.bf16.vlgmr.msra.gmra.mxu3 %v22071_v7  ;;  %v20762_v34 = vld [vmem:[#allocation8 + $0x1a24] sm:$0xf] }
 0x111   : > { %6966 = vmatpush.bf16.msrb.mxu2 %v15581_v40  ;;  %6979 = vmatpush.bf16.msrb.mxu3 %v17629_v41  ;;  %v14044_v40 = vld [vmem:[#allocation8 + $0x218] sm:$0xf]  ;;  %v17126_v35 = vld [vmem:[#allocation8 + $0x1b20] sm:$0xf0] }
 0x112   : > { %6992 = vmatpush.bf16.msra.mxu0 %v15585_v44  ;;  %7005 = vmatpush.bf16.msra.mxu1 %v17633_v45  ;;  %v20025_v41 = vld [vmem:[#allocation8 + $0x314] sm:$0xf0]  ;;  %v16614_v59 = vld [vmem:[#allocation8 + $0x1720] sm:$0xf0] }
 0x113   : > { %6948 = vmatmul.bf16.vlgmr.msrb.gmra.mxu0 %v22069_v2  ;;  %6961 = vmatmul.bf16.vlgmr.msrb.gmra.mxu1 %v22071_v7  ;;  %v16092_v44 = vld [vmem:[#allocation8 + $0x1218] sm:$0xf]  ;;  %v14045_v51 = vor.u32 %v20025_v41, %v14044_v40  ;;  %v15081_v40 = vor.u32 %v20250_v32, %v15078_v33  ;;  %v17129_v41 = vor.u32 %v20762_v34, %v17126_v35  ;;  %v20570_v8 = vld [vmem:[#allocation8 + $0x1424] sm:$0xf]  ;;  %v15596_v34 = vld [vmem:[#allocation8 + $0xe28] sm:$0xf] }
 0x114   : > { %v20537_v45 = vld [vmem:[#allocation8 + $0x1314] sm:$0xf0]  ;;  %v16358_v9 = vld [vmem:[#allocation8 + $0x1520] sm:$0xf0]  ;;  %v20411_v35 = vld [vmem:[#allocation8 + $0xf24] sm:$0xf0] }
 0x115   : > { %6967 = vmatpush.bf16.msrb.mxu2 %v15325_v52  ;;  %6980 = vmatpush.bf16.msrb.mxu3 %v17373_v53  ;;  %v16093_v52 = vor.u32 %v20537_v45, %v16092_v44  ;;  %v19961_v53 = vld [vmem:[#allocation8 + $0x114] sm:$0xf0]  ;;  %v20186_v44 = vld [vmem:[#allocation8 + $0x824] sm:$0xf] }
 0x116   : > { %6993 = vmatpush.bf16.msra.mxu0 %v15329_v56  ;;  %7006 = vmatpush.bf16.msra.mxu1 %v17377_v57  ;;  %v14049_v56 = vor.u32 %v19993_v46, %v14046_v47  ;;  %v16097_v57 = vor.u32 %v20505_v48, %v16094_v49  ;;  %v13789_v4 = vor.u32 %v19961_v53, %v13788_v50  ;;  %v14822_v45 = vld [vmem:[#allocation8 + $0x920] sm:$0xf0]  ;;  %v14564_v50 = vld [vmem:[#allocation8 + $0x620] sm:$0xf] }
 0x117   : > { %v20698_v46 = vld [vmem:[#allocation8 + $0x1824] sm:$0xf] }
 0x118   : > { %v16870_v47 = vld [vmem:[#allocation8 + $0x1920] sm:$0xf0] }
 0x119   : > { %6968 = vmatpush.bf16.msrb.mxu2 %v15069_v0  ;;  %6981 = vmatpush.bf16.msrb.mxu3 %v17117_v1  ;;  %v17636_v0 = vld [vmem:[#allocation8 + $0x1e20] sm:$0xf]  ;;  %v16873_v53 = vor.u32 %v20698_v46, %v16870_v47  ;;  %v20506_v20 = vld [vmem:[#allocation8 + $0x1224] sm:$0xf]  ;;  %v15597_v46 = vor.u32 %v20411_v35, %v15596_v34  ;;  %v14316_v34 = vld [vmem:[#allocation8 + $0x428] sm:$0xf] }
 0x11a   : > { %6994 = vmatpush.bf16.msra.mxu0 %v15073_v5  ;;  %7007 = vmatpush.bf16.msra.mxu1 %v17121_v6  ;;  %v20922_v1 = vld [vmem:[#allocation8 + $0x1f1c] sm:$0xf0]  ;;  %v15837_v5 = vor.u32 %v20473_v55, %v15836_v54  ;;  %v15590_v6 = vld [vmem:[#allocation8 + $0xf20] sm:$0xf0]  ;;  %v20091_v35 = vld [vmem:[#allocation8 + $0x524] sm:$0xf0] }
 0x11b   : > { %v17637_v13 = vor.u32 %v20922_v1, %v17636_v0  ;;  %v15593_v16 = vor.u32 %v20378_v3, %v15590_v6  ;;  %v16612_v54 = vld [vmem:[#allocation8 + $0x1620] sm:$0xf]  ;;  %v16617_v1 = vor.u32 %v20634_v58, %v16614_v59  ;;  %v14310_v6 = vld [vmem:[#allocation8 + $0x520] sm:$0xf0] }
 0x11c   : > { %v20666_v55 = vld [vmem:[#allocation8 + $0x171c] sm:$0xf0]  ;;  %v16102_v21 = vld [vmem:[#allocation8 + $0x1320] sm:$0xf0] }
 0x11d   : > { %6969 = vmatpush.bf16.msrb.mxu2 %v14813_v14  ;;  %6982 = vmatpush.bf16.msrb.mxu3 %v16861_v15  ;;  %v15332_v14 = vld [vmem:[#allocation8 + $0xc20] sm:$0xf]  ;;  %v16613_v61 = vor.u32 %v20666_v55, %v16612_v54  ;;  %v20442_v32 = vld [vmem:[#allocation8 + $0x1024] sm:$0xf]  ;;  %v20315_v54 = vld [vmem:[#allocation8 + $0xc2c] sm:$0xf] }
 0x11e   : > { %6995 = vmatpush.bf16.msra.mxu0 %v14817_v18  ;;  %7008 = vmatpush.bf16.msra.mxu1 %v16865_v19  ;;  %v20346_v15 = vld [vmem:[#allocation8 + $0xd1c] sm:$0xf0]  ;;  %v15846_v33 = vld [vmem:[#allocation8 + $0x1120] sm:$0xf0]  ;;  %v15342_v55 = vld [vmem:[#allocation8 + $0xd28] sm:$0xf0] }
 0x11f   : > { %v17380_v18 = vld [vmem:[#allocation8 + $0x1c20] sm:$0xf]  ;;  %v15333_v24 = vor.u32 %v20346_v15, %v15332_v14  ;;  %v16361_v15 = vor.u32 %v20570_v8, %v16358_v9 }
 0x120   : > { %v20858_v19 = vld [vmem:[#allocation8 + $0x1d1c] sm:$0xf0] }
 0x121   : > { %6970 = vmatpush.bf16.msrb.mxu2 %v14557_v26  ;;  %6983 = vmatpush.bf16.msrb.mxu3 %v16605_v27  ;;  %v17381_v25 = vor.u32 %v20858_v19, %v17380_v18  ;;  %v15076_v26 = vld [vmem:[#allocation8 + $0xa20] sm:$0xf]  ;;  %v19994_v18 = vld [vmem:[#allocation8 + $0x224] sm:$0xf] }
 0x122   : > { %6996 = vmatpush.bf16.msra.mxu0 %v14561_v30  ;;  %7009 = vmatpush.bf16.msra.mxu1 %v16609_v31  ;;  %v20282_v27 = vld [vmem:[#allocation8 + $0xb1c] sm:$0xf0]  ;;  %v14054_v19 = vld [vmem:[#allocation8 + $0x320] sm:$0xf0] }
 0x123   : > { %v17124_v30 = vld [vmem:[#allocation8 + $0x1a20] sm:$0xf]  ;;  %v15077_v36 = vor.u32 %v20282_v27, %v15076_v26 }
 0x124   : > { %v20794_v31 = vld [vmem:[#allocation8 + $0x1b1c] sm:$0xf0] }
 0x125   : > { %6971 = vmatpush.bf16.msrb.mxu2 %v14301_v38  ;;  %6984 = vmatpush.bf16.msrb.mxu3 %v16349_v39  ;;  %v17125_v37 = vor.u32 %v20794_v31, %v17124_v30  ;;  %v14820_v38 = vld [vmem:[#allocation8 + $0x820] sm:$0xf]  ;;  %v19930_v30 = vld [vmem:[#allocation8 + $0x24] sm:$0xf] }
 0x126   : > { %6997 = vmatpush.bf16.msra.mxu0 %v14305_v42  ;;  %7010 = vmatpush.bf16.msra.mxu1 %v16353_v43  ;;  %v20218_v39 = vld [vmem:[#allocation8 + $0x91c] sm:$0xf0]  ;;  %v13798_v31 = vld [vmem:[#allocation8 + $0x120] sm:$0xf0] }
 0x127   : > { %v16868_v42 = vld [vmem:[#allocation8 + $0x1820] sm:$0xf]  ;;  %v14821_v48 = vor.u32 %v20218_v39, %v14820_v38  ;;  %v20379_v38 = vld [vmem:[#allocation8 + $0xe2c] sm:$0xf] }
 0x128   : > { %v20730_v43 = vld [vmem:[#allocation8 + $0x191c] sm:$0xf0] }
 0x129   : > { %6972 = vmatpush.bf16.msrb.mxu2 %v14045_v51  ;;  %6985 = vmatpush.bf16.msrb.mxu3 %v16093_v52  ;;  %v16869_v49 = vor.u32 %v20730_v43, %v16868_v42  ;;  %v20154_v51 = vld [vmem:[#allocation8 + $0x71c] sm:$0xf0]  ;;  %v14825_v52 = vor.u32 %v20186_v44, %v14822_v45  ;;  %v20891_v42 = vld [vmem:[#allocation8 + $0x1e2c] sm:$0xf]  ;;  %v13801_v44 = vor.u32 %v19930_v30, %v13798_v31 }
 0x12a   : > { %6998 = vmatpush.bf16.msra.mxu0 %v14049_v56  ;;  %7011 = vmatpush.bf16.msra.mxu1 %v16097_v57  ;;  %v20122_v56 = vld [vmem:[#allocation8 + $0x624] sm:$0xf]  ;;  %v14565_v60 = vor.u32 %v20154_v51, %v14564_v50  ;;  %v16356_v3 = vld [vmem:[#allocation8 + $0x1420] sm:$0xf]  ;;  %v17646_v43 = vld [vmem:[#allocation8 + $0x1f28] sm:$0xf0]  ;;  %v15849_v45 = vor.u32 %v20442_v32, %v15846_v33 }
 0x12b   : > { %v14566_v57 = vld [vmem:[#allocation8 + $0x720] sm:$0xf0]  ;;  %v15844_v26 = vld [vmem:[#allocation8 + $0x1020] sm:$0xf]  ;;  %v17649_v51 = vor.u32 %v20891_v42, %v17646_v43  ;;  %v20635_v30 = vld [vmem:[#allocation8 + $0x162c] sm:$0xf] }
 0x12c   : > { %v14569_v0 = vor.u32 %v20122_v56, %v14566_v57  ;;  %v20474_v27 = vld [vmem:[#allocation8 + $0x111c] sm:$0xf0]  ;;  %v20827_v56 = vld [vmem:[#allocation8 + $0x1c2c] sm:$0xf] }
 0x12d   : > { %6973 = vmatpush.bf16.msrb.mxu2 %v13789_v4  ;;  %6986 = vmatpush.bf16.msrb.mxu3 %v15837_v5  ;;  %v20602_v4 = vld [vmem:[#allocation8 + $0x151c] sm:$0xf0]  ;;  %v20058_v5 = vld [vmem:[#allocation8 + $0x424] sm:$0xf]  ;;  %v17390_v57 = vld [vmem:[#allocation8 + $0x1d28] sm:$0xf0] }
 0x12e   : > { %6999 = vmatpush.bf16.msra.mxu0 %v13793_v10  ;;  %7012 = vmatpush.bf16.msra.mxu1 %v15841_v11  ;;  %v14309_v10 = vor.u32 %v20090_v63, %v14308_v62  ;;  %v16357_v11 = vor.u32 %v20602_v4, %v16356_v3  ;;  %v14313_v14 = vor.u32 %v20058_v5, %v14310_v6  ;;  %v20251_v3 = vld [vmem:[#allocation8 + $0xa2c] sm:$0xf] }
 0x12f   : > { %v15345_v62 = vor.u32 %v20315_v54, %v15342_v55  ;;  %v17393_v63 = vor.u32 %v20827_v56, %v17390_v57  ;;  %v15086_v4 = vld [vmem:[#allocation8 + $0xb28] sm:$0xf0]  ;;  %v13804_v56 = vld [vmem:[#allocation8 + $0x28] sm:$0xf] }
 0x130   : > { %6974 = vmatmul.bf16.vlgmr.msrb.gmra.mxu2 %v22069_v2  ;;  %6987 = vmatmul.bf16.vlgmr.msrb.gmra.mxu3 %v22071_v7  ;;  %v20763_v5 = vld [vmem:[#allocation8 + $0x1a2c] sm:$0xf] }
 0x131   : > { %7018 = vmatpush.bf16.msra.mxu2 %v15589_v12  ;;  %7031 = vmatpush.bf16.msra.mxu3 %v17637_v13  ;;  %v14052_v12 = vld [vmem:[#allocation8 + $0x220] sm:$0xf]  ;;  %v17134_v6 = vld [vmem:[#allocation8 + $0x1b28] sm:$0xf0] }
 0x132   : > { %7044 = vmatpush.bf16.msrb.mxu0 %v15593_v16  ;;  %7057 = vmatpush.bf16.msrb.mxu1 %v17641_v17  ;;  %v20026_v13 = vld [vmem:[#allocation8 + $0x31c] sm:$0xf0]  ;;  %v16622_v31 = vld [vmem:[#allocation8 + $0x1728] sm:$0xf0] }
 0x133   : > { %7000 = vmatmul.bf16.vlgmr.msra.gmra.mxu0 %v22069_v2  ;;  %7013 = vmatmul.bf16.vlgmr.msra.gmra.mxu1 %v22071_v7  ;;  %v16100_v16 = vld [vmem:[#allocation8 + $0x1220] sm:$0xf]  ;;  %v14053_v23 = vor.u32 %v20026_v13, %v14052_v12  ;;  %v15089_v12 = vor.u32 %v20251_v3, %v15086_v4  ;;  %v17137_v13 = vor.u32 %v20763_v5, %v17134_v6  ;;  %v20571_v42 = vld [vmem:[#allocation8 + $0x142c] sm:$0xf]  ;;  %v15604_v5 = vld [vmem:[#allocation8 + $0xe30] sm:$0xf] }
 0x134   : > { %v20538_v17 = vld [vmem:[#allocation8 + $0x131c] sm:$0xf0]  ;;  %v16366_v43 = vld [vmem:[#allocation8 + $0x1528] sm:$0xf0]  ;;  %v20412_v6 = vld [vmem:[#allocation8 + $0xf2c] sm:$0xf0] }
 0x135   : > { %7019 = vmatpush.bf16.msra.mxu2 %v15333_v24  ;;  %7032 = vmatpush.bf16.msra.mxu3 %v17381_v25  ;;  %v16101_v24 = vor.u32 %v20538_v17, %v16100_v16  ;;  %v19962_v25 = vld [vmem:[#allocation8 + $0x11c] sm:$0xf0]  ;;  %v20187_v16 = vld [vmem:[#allocation8 + $0x82c] sm:$0xf] }
 0x136   : > { %7045 = vmatpush.bf16.msrb.mxu0 %v15337_v28  ;;  %7058 = vmatpush.bf16.msrb.mxu1 %v17385_v29  ;;  %v14057_v28 = vor.u32 %v19994_v18, %v14054_v19  ;;  %v16105_v29 = vor.u32 %v20506_v20, %v16102_v21  ;;  %v13797_v39 = vor.u32 %v19962_v25, %v13796_v22  ;;  %v14830_v17 = vld [vmem:[#allocation8 + $0x928] sm:$0xf0]  ;;  %v14572_v22 = vld [vmem:[#allocation8 + $0x628] sm:$0xf] }
 0x137   : > { %v20699_v18 = vld [vmem:[#allocation8 + $0x182c] sm:$0xf] }
 0x138   : > { %v16878_v19 = vld [vmem:[#allocation8 + $0x1928] sm:$0xf0] }
 0x139   : > { %7020 = vmatpush.bf16.msra.mxu2 %v15077_v36  ;;  %7033 = vmatpush.bf16.msra.mxu3 %v17125_v37  ;;  %v17644_v36 = vld [vmem:[#allocation8 + $0x1e28] sm:$0xf]  ;;  %v16881_v25 = vor.u32 %v20699_v18, %v16878_v19  ;;  %v20507_v54 = vld [vmem:[#allocation8 + $0x122c] sm:$0xf]  ;;  %v15605_v18 = vor.u32 %v20412_v6, %v15604_v5  ;;  %v16628_v5 = vld [vmem:[#allocation8 + $0x1630] sm:$0xf] }
 0x13a   : > { %7046 = vmatpush.bf16.msrb.mxu0 %v15081_v40  ;;  %7059 = vmatpush.bf16.msrb.mxu1 %v17129_v41  ;;  %v20923_v37 = vld [vmem:[#allocation8 + $0x1f24] sm:$0xf0]  ;;  %v15845_v40 = vor.u32 %v20474_v27, %v15844_v26  ;;  %v15598_v41 = vld [vmem:[#allocation8 + $0xf28] sm:$0xf0]  ;;  %v20668_v6 = vld [vmem:[#allocation8 + $0x172c] sm:$0xf0] }
 0x13b   : > { %v17645_v47 = vor.u32 %v20923_v37, %v17644_v36  ;;  %v15601_v50 = vor.u32 %v20379_v38, %v15598_v41  ;;  %v16620_v26 = vld [vmem:[#allocation8 + $0x1628] sm:$0xf]  ;;  %v16625_v37 = vor.u32 %v20635_v30, %v16622_v31  ;;  %v14318_v41 = vld [vmem:[#allocation8 + $0x528] sm:$0xf0]  ;;  %v17398_v30 = vld [vmem:[#allocation8 + $0x1d30] sm:$0xf0] }
 0x13c   : > { %v20667_v27 = vld [vmem:[#allocation8 + $0x1724] sm:$0xf0]  ;;  %v16110_v55 = vld [vmem:[#allocation8 + $0x1328] sm:$0xf0] }
 0x13d   : > { %7021 = vmatpush.bf16.msra.mxu2 %v14821_v48  ;;  %7034 = vmatpush.bf16.msra.mxu3 %v16869_v49  ;;  %v15340_v48 = vld [vmem:[#allocation8 + $0xc28] sm:$0xf]  ;;  %v16621_v33 = vor.u32 %v20667_v27, %v16620_v26  ;;  %v20443_v3 = vld [vmem:[#allocation8 + $0x102c] sm:$0xf]  ;;  %v20316_v26 = vld [vmem:[#allocation8 + $0xc34] sm:$0xf] }
 0x13e   : > { %7047 = vmatpush.bf16.msrb.mxu0 %v14825_v52  ;;  %7060 = vmatpush.bf16.msrb.mxu1 %v16873_v53  ;;  %v20347_v49 = vld [vmem:[#allocation8 + $0xd24] sm:$0xf0]  ;;  %v15854_v4 = vld [vmem:[#allocation8 + $0x1128] sm:$0xf0]  ;;  %v22093_v27 = vld [vmem:[#allocation10] sm:$0xff] }
 0x13f   : > { %v17388_v52 = vld [vmem:[#allocation8 + $0x1c28] sm:$0xf]  ;;  %v15341_v58 = vor.u32 %v20347_v49, %v15340_v48  ;;  %v16369_v49 = vor.u32 %v20571_v42, %v16366_v43  ;;  %v20764_v42 = vld [vmem:[#allocation8 + $0x1a34] sm:$0xf] }
 0x140   : > { %v20859_v53 = vld [vmem:[#allocation8 + $0x1d24] sm:$0xf0]  ;;  %v17142_v43 = vld [vmem:[#allocation8 + $0x1b30] sm:$0xf0] }
 0x141   : > { %7022 = vmatpush.bf16.msra.mxu2 %v14565_v60  ;;  %7035 = vmatpush.bf16.msra.mxu3 %v16613_v61  ;;  %v17389_v59 = vor.u32 %v20859_v53, %v17388_v52  ;;  %v15084_v60 = vld [vmem:[#allocation8 + $0xa28] sm:$0xf]  ;;  %v19995_v52 = vld [vmem:[#allocation8 + $0x22c] sm:$0xf] }
 0x142   : > { %7048 = vmatpush.bf16.msrb.mxu0 %v14569_v0  ;;  %7061 = vmatpush.bf16.msrb.mxu1 %v16617_v1  ;;  %v20283_v61 = vld [vmem:[#allocation8 + $0xb24] sm:$0xf0]  ;;  %v14062_v53 = vld [vmem:[#allocation8 + $0x328] sm:$0xf0] }
 0x143   : > { %v17132_v0 = vld [vmem:[#allocation8 + $0x1a28] sm:$0xf]  ;;  %v15085_v8 = vor.u32 %v20283_v61, %v15084_v60 }
 0x144   : > { %v20795_v1 = vld [vmem:[#allocation8 + $0x1b24] sm:$0xf0] }
 0x145   : > { %7023 = vmatpush.bf16.msra.mxu2 %v14309_v10  ;;  %7036 = vmatpush.bf16.msra.mxu3 %v16357_v11  ;;  %v17133_v9 = vor.u32 %v20795_v1, %v17132_v0  ;;  %v14828_v10 = vld [vmem:[#allocation8 + $0x828] sm:$0xf]  ;;  %v19931_v0 = vld [vmem:[#allocation8 + $0x2c] sm:$0xf] }
 0x146   : > { %7049 = vmatpush.bf16.msrb.mxu0 %v14313_v14  ;;  %7062 = vmatpush.bf16.msrb.mxu1 %v16361_v15  ;;  %v20219_v11 = vld [vmem:[#allocation8 + $0x924] sm:$0xf0]  ;;  %v13806_v1 = vld [vmem:[#allocation8 + $0x128] sm:$0xf0] }
 0x147   : > { %v16876_v14 = vld [vmem:[#allocation8 + $0x1828] sm:$0xf]  ;;  %v14829_v20 = vor.u32 %v20219_v11, %v14828_v10  ;;  %v20380_v10 = vld [vmem:[#allocation8 + $0xe34] sm:$0xf] }
 0x148   : > { %v20731_v15 = vld [vmem:[#allocation8 + $0x1924] sm:$0xf0] }
 0x149   : > { %7024 = vmatpush.bf16.msra.mxu2 %v14053_v23  ;;  %7037 = vmatpush.bf16.msra.mxu3 %v16101_v24  ;;  %v16877_v21 = vor.u32 %v20731_v15, %v16876_v14  ;;  %v20155_v23 = vld [vmem:[#allocation8 + $0x724] sm:$0xf0]  ;;  %v14833_v24 = vor.u32 %v20187_v16, %v14830_v17  ;;  %v20892_v14 = vld [vmem:[#allocation8 + $0x1e34] sm:$0xf]  ;;  %v13809_v16 = vor.u32 %v19931_v0, %v13806_v1  ;;  %v20156_v0 = vld [vmem:[#allocation8 + $0x72c] sm:$0xf0] }
 0x14a   : > { %7050 = vmatpush.bf16.msrb.mxu0 %v14057_v28  ;;  %7063 = vmatpush.bf16.msrb.mxu1 %v16105_v29  ;;  %v20123_v28 = vld [vmem:[#allocation8 + $0x62c] sm:$0xf]  ;;  %v14573_v32 = vor.u32 %v20155_v23, %v14572_v22  ;;  %v16364_v38 = vld [vmem:[#allocation8 + $0x1428] sm:$0xf]  ;;  %v17654_v15 = vld [vmem:[#allocation8 + $0x1f30] sm:$0xf0]  ;;  %v15857_v17 = vor.u32 %v20443_v3, %v15854_v4 }
 0x14b   : > { %v14574_v29 = vld [vmem:[#allocation8 + $0x728] sm:$0xf0]  ;;  %v15852_v60 = vld [vmem:[#allocation8 + $0x1028] sm:$0xf]  ;;  %v17396_v22 = vld [vmem:[#allocation8 + $0x1c30] sm:$0xf] }
 0x14c   : > { %v14577_v36 = vor.u32 %v20123_v28, %v14574_v29  ;;  %v20475_v61 = vld [vmem:[#allocation8 + $0x1124] sm:$0xf0]  ;;  %v15350_v28 = vld [vmem:[#allocation8 + $0xd30] sm:$0xf0] }
 0x14d   : > { %7025 = vmatpush.bf16.msra.mxu2 %v13797_v39  ;;  %7038 = vmatpush.bf16.msra.mxu3 %v15845_v40  ;;  %v20603_v39 = vld [vmem:[#allocation8 + $0x1524] sm:$0xf0]  ;;  %v20059_v40 = vld [vmem:[#allocation8 + $0x42c] sm:$0xf]  ;;  %v20828_v29 = vld [vmem:[#allocation8 + $0x1c34] sm:$0xf] }
 0x14e   : > { %7051 = vmatpush.bf16.msrb.mxu0 %v13801_v44  ;;  %7064 = vmatpush.bf16.msrb.mxu1 %v15849_v45  ;;  %v14317_v44 = vor.u32 %v20091_v35, %v14316_v34  ;;  %v16365_v45 = vor.u32 %v20603_v39, %v16364_v38  ;;  %v14321_v48 = vor.u32 %v20059_v40, %v14318_v41  ;;  %v20284_v34 = vld [vmem:[#allocation8 + $0xb2c] sm:$0xf0]  ;;  %v1563_v35 = vperm.slane %v22093_v27, 1  ;;  %v20252_v40 = vld [vmem:[#allocation8 + $0xa34] sm:$0xf] }
 0x14f   : > { %v17140_v38 = vld [vmem:[#allocation8 + $0x1a30] sm:$0xf]  ;;  %v15094_v41 = vld [vmem:[#allocation8 + $0xb30] sm:$0xf0] }
 0x150   : > { %7026 = vmatmul.bf16.vlgmr.msra.gmra.mxu2 %v22069_v2  ;;  %7039 = vmatmul.bf16.vlgmr.msra.gmra.mxu3 %v22071_v7  ;;  %v20796_v39 = vld [vmem:[#allocation8 + $0x1b2c] sm:$0xf0] }
 0x151   : > { %7070 = vmatpush.bf16.msrb.mxu2 %v15597_v46  ;;  %7083 = vmatpush.bf16.msrb.mxu3 %v17645_v47  ;;  %v14060_v46 = vld [vmem:[#allocation8 + $0x228] sm:$0xf] }
 0x152   : > { %7096 = vmatpush.bf16.msra.mxu0 %v15601_v50  ;;  %7109 = vmatpush.bf16.msra.mxu1 %v17649_v51  ;;  %v20027_v47 = vld [vmem:[#allocation8 + $0x324] sm:$0xf0] }
 0x153   : > { %7052 = vmatmul.bf16.vlgmr.msrb.gmra.mxu0 %v22069_v2  ;;  %7065 = vmatmul.bf16.vlgmr.msrb.gmra.mxu1 %v22071_v7  ;;  %v16108_v50 = vld [vmem:[#allocation8 + $0x1228] sm:$0xf]  ;;  %v14061_v57 = vor.u32 %v20027_v47, %v14060_v46  ;;  %v17141_v46 = vor.u32 %v20796_v39, %v17140_v38  ;;  %v16116_v38 = vld [vmem:[#allocation8 + $0x1230] sm:$0xf] }
 0x154   : > { %v20539_v51 = vld [vmem:[#allocation8 + $0x1324] sm:$0xf0]  ;;  %v20540_v39 = vld [vmem:[#allocation8 + $0x132c] sm:$0xf0] }
 0x155   : > { %7071 = vmatpush.bf16.msrb.mxu2 %v15341_v58  ;;  %7084 = vmatpush.bf16.msrb.mxu3 %v17389_v59  ;;  %v16109_v58 = vor.u32 %v20539_v51, %v16108_v50  ;;  %v19963_v59 = vld [vmem:[#allocation8 + $0x124] sm:$0xf0]  ;;  %v20220_v50 = vld [vmem:[#allocation8 + $0x92c] sm:$0xf0] }
 0x156   : > { %7097 = vmatpush.bf16.msra.mxu0 %v15345_v62  ;;  %7110 = vmatpush.bf16.msra.mxu1 %v17393_v63  ;;  %v14065_v62 = vor.u32 %v19995_v52, %v14062_v53  ;;  %v16113_v63 = vor.u32 %v20507_v54, %v16110_v55  ;;  %v13805_v11 = vor.u32 %v19963_v59, %v13804_v56  ;;  %v16884_v51 = vld [vmem:[#allocation8 + $0x1830] sm:$0xf]  ;;  %v20188_v55 = vld [vmem:[#allocation8 + $0x834] sm:$0xf] }
 0x157   : > { %v15097_v52 = vor.u32 %v20252_v40, %v15094_v41  ;;  %v17145_v53 = vor.u32 %v20764_v42, %v17142_v43  ;;  %v20732_v54 = vld [vmem:[#allocation8 + $0x192c] sm:$0xf0]  ;;  %v14838_v56 = vld [vmem:[#allocation8 + $0x930] sm:$0xf0] }
 0x158   : > { %v16886_v59 = vld [vmem:[#allocation8 + $0x1930] sm:$0xf0]  ;;  %v14841_v1 = vor.u32 %v20188_v55, %v14838_v56 }
 0x159   : > { %7072 = vmatpush.bf16.msrb.mxu2 %v15085_v8  ;;  %7085 = vmatpush.bf16.msrb.mxu3 %v17133_v9  ;;  %v17652_v8 = vld [vmem:[#allocation8 + $0x1e30] sm:$0xf]  ;;  %v19996_v40 = vld [vmem:[#allocation8 + $0x234] sm:$0xf] }
 0x15a   : > { %7098 = vmatpush.bf16.msra.mxu0 %v15089_v12  ;;  %7111 = vmatpush.bf16.msra.mxu1 %v17137_v13  ;;  %v20924_v9 = vld [vmem:[#allocation8 + $0x1f2c] sm:$0xf0]  ;;  %v15853_v12 = vor.u32 %v20475_v61, %v15852_v60  ;;  %v15606_v13 = vld [vmem:[#allocation8 + $0xf30] sm:$0xf0]  ;;  %v1562_v60 = vperm.slane %v22093_v27, 0 }
 0x15b   : > { %v17653_v19 = vor.u32 %v20924_v9, %v17652_v8  ;;  %v15609_v23 = vor.u32 %v20380_v10, %v15606_v13  ;;  %v20124_v8 = vld [vmem:[#allocation8 + $0x634] sm:$0xf] }
 0x15c   : > { %v16630_v13 = vld [vmem:[#allocation8 + $0x1730] sm:$0xf0] }
 0x15d   : > { %7073 = vmatpush.bf16.msrb.mxu2 %v14829_v20  ;;  %7086 = vmatpush.bf16.msrb.mxu3 %v16877_v21  ;;  %v15348_v20 = vld [vmem:[#allocation8 + $0xc30] sm:$0xf]  ;;  %v14070_v42 = vld [vmem:[#allocation8 + $0x330] sm:$0xf0] }
 0x15e   : > { %7099 = vmatpush.bf16.msra.mxu0 %v14833_v24  ;;  %7112 = vmatpush.bf16.msra.mxu1 %v16881_v25  ;;  %v20348_v21 = vld [vmem:[#allocation8 + $0xd2c] sm:$0xf0]  ;;  %v17657_v24 = vor.u32 %v20892_v14, %v17654_v15  ;;  %v20508_v43 = vld [vmem:[#allocation8 + $0x1234] sm:$0xf]  ;;  %v14073_v55 = vor.u32 %v19996_v40, %v14070_v42  ;;  %v20797_v40 = vld [vmem:[#allocation8 + $0x1b34] sm:$0xf0] }
 0x15f   : > { %v20860_v25 = vld [vmem:[#allocation8 + $0x1d2c] sm:$0xf0]  ;;  %v15349_v31 = vor.u32 %v20348_v21, %v15348_v20  ;;  %v15102_v42 = vld [vmem:[#allocation8 + $0xb38] sm:$0xf0] }
 0x160   : > { %v20092_v20 = vld [vmem:[#allocation8 + $0x52c] sm:$0xf0] }
 0x161   : > { %7074 = vmatpush.bf16.msrb.mxu2 %v14573_v32  ;;  %7087 = vmatpush.bf16.msrb.mxu3 %v16621_v33  ;;  %v17397_v32 = vor.u32 %v20860_v25, %v17396_v22  ;;  %v15092_v33 = vld [vmem:[#allocation8 + $0xa30] sm:$0xf]  ;;  %v20060_v25 = vld [vmem:[#allocation8 + $0x434] sm:$0xf] }
 0x162   : > { %7100 = vmatpush.bf16.msra.mxu0 %v14577_v36  ;;  %7113 = vmatpush.bf16.msra.mxu1 %v16625_v37  ;;  %v15353_v36 = vor.u32 %v20316_v26, %v15350_v28  ;;  %v17401_v37 = vor.u32 %v20828_v29, %v17398_v30  ;;  %v14326_v26 = vld [vmem:[#allocation8 + $0x530] sm:$0xf0] }
 0x163   : > { %v20572_v28 = vld [vmem:[#allocation8 + $0x1434] sm:$0xf] }
 0x164   : > { %v16374_v29 = vld [vmem:[#allocation8 + $0x1530] sm:$0xf0] }
 0x165   : > { %7075 = vmatpush.bf16.msrb.mxu2 %v14317_v44  ;;  %7088 = vmatpush.bf16.msrb.mxu3 %v16365_v45  ;;  %v15093_v45 = vor.u32 %v20284_v34, %v15092_v33  ;;  %v20028_v33 = vld [vmem:[#allocation8 + $0x32c] sm:$0xf0]  ;;  %v1565_v34 = vperm.slane %v22093_v27, 3 }
 0x166   : > { %7101 = vmatpush.bf16.msra.mxu0 %v14321_v48  ;;  %7114 = vmatpush.bf16.msra.mxu1 %v16369_v49  ;;  %v14836_v49 = vld [vmem:[#allocation8 + $0x830] sm:$0xf] }
 0x167   : > { %v14837_v61 = vor.u32 %v20220_v50, %v14836_v49  ;;  %v16117_v49 = vor.u32 %v20540_v39, %v16116_v38  ;;  %v17148_v39 = vld [vmem:[#allocation8 + $0x1a38] sm:$0xf] }
 0x169   : > { %7076 = vmatpush.bf16.msrb.mxu2 %v14061_v57  ;;  %7089 = vmatpush.bf16.msrb.mxu3 %v16109_v58  ;;  %v20700_v58 = vld [vmem:[#allocation8 + $0x1834] sm:$0xf] }
 0x16a   : > { %7102 = vmatpush.bf16.msra.mxu0 %v14065_v62  ;;  %7115 = vmatpush.bf16.msra.mxu1 %v16113_v63  ;;  %v16885_v62 = vor.u32 %v20732_v54, %v16884_v51  ;;  %v14580_v63 = vld [vmem:[#allocation8 + $0x630] sm:$0xf]  ;;  %v16889_v3 = vor.u32 %v20700_v58, %v16886_v59  ;;  %v19932_v54 = vld [vmem:[#allocation8 + $0x34] sm:$0xf] }
 0x16b   : > { %v13814_v58 = vld [vmem:[#allocation8 + $0x130] sm:$0xf0] }
 0x16c   : > { %v6845_v44 = vpop.f32.mrf.mxu0  ;;  %v20444_v59 = vld [vmem:[#allocation8 + $0x1034] sm:$0xf] }
 0x16d   : > { %7077 = vmatpush.bf16.msrb.mxu2 %v13805_v11  ;;  %7090 = vmatpush.bf16.msrb.mxu3 %v15853_v12  ;;  %v6846_v47 = vadd.f32 %v6845_v44, %v1563_v35  ;;  %v6858_v48 = vpop.f32.mrf.mxu1  ;;  %v14582_v11 = vld [vmem:[#allocation8 + $0x730] sm:$0xf0]  ;;  %v14329_v35 = vor.u32 %v20060_v25, %v14326_v26  ;;  %v20861_v25 = vld [vmem:[#allocation8 + $0x1d34] sm:$0xf0]  ;;  %v20317_v26 = vld [vmem:[#allocation8 + $0xc3c] sm:$0xf] }
 0x16e   : > { %7103 = vmatpush.bf16.msra.mxu0 %v13809_v16  ;;  %7116 = vmatpush.bf16.msra.mxu1 %v15857_v17  ;;  %v20636_v12 = vld [vmem:[#allocation8 + $0x1634] sm:$0xf]  ;;  %v14581_v16 = vor.u32 %v20156_v0, %v14580_v63  ;;  %v16629_v17 = vor.u32 %v20668_v6, %v16628_v5  ;;  %v14585_v21 = vor.u32 %v20124_v8, %v14582_v11  ;;  %v20413_v63 = vld [vmem:[#allocation8 + $0xf34] sm:$0xf0]  ;;  %v1564_v0 = vperm.slane %v22093_v27, 2 }
 0x16f   : > { %v22100_v57 = vadd.f32 %v6858_v48, %v6846_v47  ;;  %v16633_v22 = vor.u32 %v20636_v12, %v16630_v13  ;;  %v16118_v44 = vld [vmem:[#allocation8 + $0x1330] sm:$0xf0]  ;;  %v19964_v47 = vld [vmem:[#allocation8 + $0x12c] sm:$0xf0]  ;;  %v15614_v8 = vld [vmem:[#allocation8 + $0xf38] sm:$0xf0]  ;;  %v13817_v11 = vor.u32 %v19932_v54, %v13814_v58 }
 0x170   : > { %7078 = vmatmul.bf16.vlgmr.msrb.gmra.mxu2 %v22069_v2  ;;  %7091 = vmatmul.bf16.vlgmr.msrb.gmra.mxu3 %v22071_v7  ;;  %v16121_v56 = vor.u32 %v20508_v43, %v16118_v44  ;;  %v20765_v43 = vld [vmem:[#allocation8 + $0x1a3c] sm:$0xf]  ;;  %v16892_v54 = vld [vmem:[#allocation8 + $0x1838] sm:$0xf] }
 0x171   : > { %7122 = vmatpush.bf16.msra.mxu2 %v15605_v18  ;;  %7135 = vmatpush.bf16.msra.mxu3 %v17653_v19  ;;  %v14324_v19 = vld [vmem:[#allocation8 + $0x430] sm:$0xf]  ;;  %v17150_v44 = vld [vmem:[#allocation8 + $0x1b38] sm:$0xf0] }
 0x172   : > { %7148 = vmatpush.bf16.msrb.mxu0 %v15609_v23  ;;  %7161 = vmatpush.bf16.msrb.mxu1 %v17657_v24  ;;  %v6819_v4 = vpop.f32.mrf.mxu2  ;;  %v16372_v23 = vld [vmem:[#allocation8 + $0x1430] sm:$0xf]  ;;  %v14325_v30 = vor.u32 %v20092_v20, %v14324_v19  ;;  %v15356_v19 = vld [vmem:[#allocation8 + $0xc38] sm:$0xf]  ;;  %v14846_v58 = vld [vmem:[#allocation8 + $0x938] sm:$0xf0] }
 0x173   : > { %7104 = vmatmul.bf16.vlgmr.msra.gmra.mxu0 %v22069_v2  ;;  %7117 = vmatmul.bf16.vlgmr.msra.gmra.mxu1 %v22071_v7  ;;  %v6820_v9 = vadd.f32 %v6819_v4, %v1562_v60  ;;  %v6832_v10 = vpop.f32.mrf.mxu3  ;;  %v20604_v24 = vld [vmem:[#allocation8 + $0x152c] sm:$0xf0]  ;;  %v15862_v60 = vld [vmem:[#allocation8 + $0x1130] sm:$0xf0]  ;;  %v20381_v4 = vld [vmem:[#allocation8 + $0xe3c] sm:$0xf] }
 0x174   : > { %v6847_v14 = vpop.f32.mrf.mxu0  ;;  %v15865_v12 = vor.u32 %v20444_v59, %v15862_v60  ;;  %v20349_v20 = vld [vmem:[#allocation8 + $0xd34] sm:$0xf0]  ;;  %v20701_v59 = vld [vmem:[#allocation8 + $0x183c] sm:$0xf] }
 0x175   : > { %7123 = vmatpush.bf16.msra.mxu2 %v15349_v31  ;;  %7136 = vmatpush.bf16.msra.mxu3 %v17397_v32  ;;  %v22103_v15 = vadd.f32 %v6832_v10, %v6820_v9  ;;  %v6860_v18 = vpop.f32.mrf.mxu1  ;;  %v16373_v31 = vor.u32 %v20604_v24, %v16372_v23  ;;  %v14068_v32 = vld [vmem:[#allocation8 + $0x230] sm:$0xf]  ;;  %v20893_v9 = vld [vmem:[#allocation8 + $0x1e3c] sm:$0xf]  ;;  %v17404_v24 = vld [vmem:[#allocation8 + $0x1c38] sm:$0xf] }
 0x176   : > { %7149 = vmatpush.bf16.msrb.mxu0 %v15353_v36  ;;  %7162 = vmatpush.bf16.msrb.mxu1 %v17401_v37  ;;  %v16377_v36 = vor.u32 %v20572_v28, %v16374_v29  ;;  %v14069_v48 = vor.u32 %v20028_v33, %v14068_v32  ;;  %v17662_v10 = vld [vmem:[#allocation8 + $0x1f38] sm:$0xf0]  ;;  %v15357_v33 = vor.u32 %v20349_v20, %v15356_v19  ;;  %v14332_v20 = vld [vmem:[#allocation8 + $0x438] sm:$0xf] }
 0x177   : > { %v17406_v32 = vld [vmem:[#allocation8 + $0x1d38] sm:$0xf0] }
 0x178   : > { %v16894_v60 = vld [vmem:[#allocation8 + $0x1938] sm:$0xf0] }
 0x179   : > { %7124 = vmatpush.bf16.msra.mxu2 %v15093_v45  ;;  %7137 = vmatpush.bf16.msra.mxu3 %v17141_v46  ;;  %v13812_v46 = vld [vmem:[#allocation8 + $0x30] sm:$0xf] }
 0x17a   : > { %7150 = vmatpush.bf16.msrb.mxu0 %v15097_v52  ;;  %7163 = vmatpush.bf16.msrb.mxu1 %v17145_v53  ;;  %v6821_v37 = vpop.f32.mrf.mxu2  ;;  %v15860_v52 = vld [vmem:[#allocation8 + $0x1030] sm:$0xf]  ;;  %v13813_v5 = vor.u32 %v19964_v47, %v13812_v46  ;;  %v17149_v47 = vor.u32 %v20797_v40, %v17148_v39  ;;  %v14076_v40 = vld [vmem:[#allocation8 + $0x238] sm:$0xf] }
 0x17b   : > { %v6834_v41 = vpop.f32.mrf.mxu3  ;;  %v20476_v53 = vld [vmem:[#allocation8 + $0x112c] sm:$0xf0] }
 0x17c   : > { %v6897_v45 = vpop.f32.mrf.mxu0  ;;  %v15861_v6 = vor.u32 %v20476_v53, %v15860_v52  ;;  %v20253_v41 = vld [vmem:[#allocation8 + $0xa3c] sm:$0xf]  ;;  %v17153_v53 = vor.u32 %v20765_v43, %v17150_v44  ;;  %v16124_v44 = vld [vmem:[#allocation8 + $0x1238] sm:$0xf] }
 0x17d   : > { %7125 = vmatpush.bf16.msra.mxu2 %v14837_v61  ;;  %7138 = vmatpush.bf16.msra.mxu3 %v16885_v62  ;;  %v6898_v50 = vadd.f32 %v6897_v45, %v1565_v34  ;;  %v6910_v51 = vpop.f32.mrf.mxu1  ;;  %v15612_v62 = vld [vmem:[#allocation8 + $0xe38] sm:$0xf]  ;;  %v17405_v34 = vor.u32 %v20861_v25, %v17404_v24  ;;  %v15105_v52 = vor.u32 %v20253_v41, %v15102_v42 }
 0x17e   : > { %7151 = vmatpush.bf16.msrb.mxu0 %v14841_v1  ;;  %7164 = vmatpush.bf16.msrb.mxu1 %v16889_v3  ;;  %v17660_v1 = vld [vmem:[#allocation8 + $0x1e38] sm:$0xf]  ;;  %v15613_v14 = vor.u32 %v20413_v63, %v15612_v62 }
 0x17f   : > { %v22106_v61 = vadd.f32 %v6910_v51, %v6898_v50  ;;  %v20925_v3 = vld [vmem:[#allocation8 + $0x1f34] sm:$0xf0] }
 0x180   : > { %v14844_v50 = vld [vmem:[#allocation8 + $0x838] sm:$0xf] }
 0x181   : > { %7126 = vmatpush.bf16.msra.mxu2 %v14581_v16  ;;  %7139 = vmatpush.bf16.msra.mxu3 %v16629_v17  ;;  %v17661_v16 = vor.u32 %v20925_v3, %v17660_v1  ;;  %v20221_v51 = vld [vmem:[#allocation8 + $0x934] sm:$0xf0] }
 0x182   : > { %7152 = vmatpush.bf16.msrb.mxu0 %v14585_v21  ;;  %7165 = vmatpush.bf16.msrb.mxu1 %v16633_v22  ;;  %v6871_v13 = vpop.f32.mrf.mxu2  ;;  %v15617_v21 = vor.u32 %v20381_v4, %v15614_v8  ;;  %v17665_v22 = vor.u32 %v20893_v9, %v17662_v10  ;;  %v14588_v3 = vld [vmem:[#allocation8 + $0x638] sm:$0xf]  ;;  %v16897_v9 = vor.u32 %v20701_v59, %v16894_v60 }
 0x183   : > { %v6872_v17 = vadd.f32 %v6871_v13, %v1564_v0  ;;  %v6884_v18 = vpop.f32.mrf.mxu3  ;;  %v14845_v0 = vor.u32 %v20221_v51, %v14844_v50  ;;  %v20157_v4 = vld [vmem:[#allocation8 + $0x734] sm:$0xf0]  ;;  %v20637_v13 = vld [vmem:[#allocation8 + $0x163c] sm:$0xf] }
 0x184   : > { %v6899_v23 = vpop.f32.mrf.mxu0  ;;  %v20669_v10 = vld [vmem:[#allocation8 + $0x1734] sm:$0xf0] }
 0x185   : > { %7127 = vmatpush.bf16.msra.mxu2 %v14325_v30  ;;  %7140 = vmatpush.bf16.msra.mxu3 %v16373_v31  ;;  %v22109_v28 = vadd.f32 %v6884_v18, %v6872_v17  ;;  %v6912_v29 = vpop.f32.mrf.mxu1  ;;  %v15358_v30 = vld [vmem:[#allocation8 + $0xd38] sm:$0xf0]  ;;  %v14589_v18 = vor.u32 %v20157_v4, %v14588_v3  ;;  %v20029_v41 = vld [vmem:[#allocation8 + $0x334] sm:$0xf0]  ;;  %v15620_v3 = vld [vmem:[#allocation8 + $0xe40] sm:$0xf] }
 0x186   : > { %7153 = vmatpush.bf16.msrb.mxu0 %v14329_v35  ;;  %7166 = vmatpush.bf16.msrb.mxu1 %v16377_v36  ;;  %v20829_v31 = vld [vmem:[#allocation8 + $0x1c3c] sm:$0xf]  ;;  %v15100_v35 = vld [vmem:[#allocation8 + $0xa38] sm:$0xf]  ;;  %v15361_v37 = vor.u32 %v20317_v26, %v15358_v30  ;;  %v14077_v51 = vor.u32 %v20029_v41, %v14076_v40  ;;  %v20414_v4 = vld [vmem:[#allocation8 + $0xf3c] sm:$0xf0] }
 0x187   : > { %v20285_v36 = vld [vmem:[#allocation8 + $0xb34] sm:$0xf0]  ;;  %v17409_v38 = vor.u32 %v20829_v31, %v17406_v32  ;;  %v20061_v30 = vld [vmem:[#allocation8 + $0x43c] sm:$0xf]  ;;  %v20798_v40 = vld [vmem:[#allocation8 + $0x1b3c] sm:$0xf0] }
 0x188   : > { %v15101_v46 = vor.u32 %v20285_v36, %v15100_v35  ;;  %v16380_v26 = vld [vmem:[#allocation8 + $0x1438] sm:$0xf]  ;;  %v14334_v32 = vld [vmem:[#allocation8 + $0x538] sm:$0xf0]  ;;  %v20254_v41 = vld [vmem:[#allocation8 + $0xa44] sm:$0xf] }
 0x189   : > { %7128 = vmatpush.bf16.msra.mxu2 %v14069_v48  ;;  %7141 = vmatpush.bf16.msra.mxu3 %v16117_v49  ;;  %v1567_v49 = vperm.slane %v22093_v27, 5  ;;  %v20605_v29 = vld [vmem:[#allocation8 + $0x1534] sm:$0xf0]  ;;  %v14337_v42 = vor.u32 %v20061_v30, %v14334_v32  ;;  %v20830_v30 = vld [vmem:[#allocation8 + $0x1c44] sm:$0xf] }
 0x18a   : > { %7154 = vmatpush.bf16.msrb.mxu0 %v14073_v55  ;;  %7167 = vmatpush.bf16.msrb.mxu1 %v16121_v56  ;;  %v6873_v45 = vpop.f32.mrf.mxu2  ;;  %v20733_v55 = vld [vmem:[#allocation8 + $0x1934] sm:$0xf0]  ;;  %v20189_v56 = vld [vmem:[#allocation8 + $0x83c] sm:$0xf]  ;;  %v16381_v39 = vor.u32 %v20605_v29, %v16380_v26  ;;  %v20318_v26 = vld [vmem:[#allocation8 + $0xc44] sm:$0xf] }
 0x18b   : > { %v6886_v48 = vpop.f32.mrf.mxu3  ;;  %v16893_v1 = vor.u32 %v20733_v55, %v16892_v54  ;;  %v14849_v8 = vor.u32 %v20189_v56, %v14846_v58  ;;  %v20541_v45 = vld [vmem:[#allocation8 + $0x1334] sm:$0xf0]  ;;  %v15366_v29 = vld [vmem:[#allocation8 + $0xd40] sm:$0xf0] }
 0x18c   : > { %v20509_v48 = vld [vmem:[#allocation8 + $0x123c] sm:$0xf]  ;;  %v13820_v50 = vld [vmem:[#allocation8 + $0x38] sm:$0xf] }
 0x18d   : > { %7129 = vmatpush.bf16.msra.mxu2 %v13813_v5  ;;  %7142 = vmatpush.bf16.msra.mxu3 %v15861_v6  ;;  %v16636_v5 = vld [vmem:[#allocation8 + $0x1638] sm:$0xf] }
 0x18e   : > { %7155 = vmatpush.bf16.msrb.mxu0 %v13817_v11  ;;  %7168 = vmatpush.bf16.msrb.mxu1 %v15865_v12  ;;  %v20125_v11 = vld [vmem:[#allocation8 + $0x63c] sm:$0xf]  ;;  %v16637_v19 = vor.u32 %v20669_v10, %v16636_v5  ;;  %v15868_v54 = vld [vmem:[#allocation8 + $0x1038] sm:$0xf]  ;;  %v17668_v5 = vld [vmem:[#allocation8 + $0x1e40] sm:$0xf] }
 0x18f   : > { %v14590_v12 = vld [vmem:[#allocation8 + $0x738] sm:$0xf0]  ;;  %v20477_v55 = vld [vmem:[#allocation8 + $0x1134] sm:$0xf0] }
 0x190   : > { %7130 = vmatmul.bf16.vlgmr.msra.gmra.mxu2 %v22069_v2  ;;  %7143 = vmatmul.bf16.vlgmr.msra.gmra.mxu3 %v22071_v7  ;;  %v6949_v62 = vpop.f32.mrf.mxu0  ;;  %v6962_v63 = vpop.f32.mrf.mxu1  ;;  %v15869_v10 = vor.u32 %v20477_v55, %v15868_v54  ;;  %v20190_v54 = vld [vmem:[#allocation8 + $0x844] sm:$0xf] }
 0x191   : > { %7174 = vmatpush.bf16.msrb.mxu2 %v15613_v14  ;;  %7187 = vmatpush.bf16.msrb.mxu3 %v17661_v16  ;;  %v6950_v6 = vadd.f32 %v6949_v62, %v1567_v49  ;;  %v16638_v14 = vld [vmem:[#allocation8 + $0x1738] sm:$0xf0]  ;;  %v1566_v16 = vperm.slane %v22093_v27, 4  ;;  %v14854_v55 = vld [vmem:[#allocation8 + $0x940] sm:$0xf0] }
 0x192   : > { %7200 = vmatpush.bf16.msra.mxu0 %v15617_v21  ;;  %7213 = vmatpush.bf16.msra.mxu1 %v17665_v22  ;;  %v20093_v21 = vld [vmem:[#allocation8 + $0x534] sm:$0xf0]  ;;  %v14593_v22 = vor.u32 %v20125_v11, %v14590_v12  ;;  %v16641_v23 = vor.u32 %v20637_v13, %v16638_v14  ;;  %v16126_v49 = vld [vmem:[#allocation8 + $0x1338] sm:$0xf0]  ;;  %v15622_v11 = vld [vmem:[#allocation8 + $0xf40] sm:$0xf0] }
 0x193   : > { %7156 = vmatmul.bf16.vlgmr.msrb.gmra.mxu0 %v22069_v2  ;;  %7169 = vmatmul.bf16.vlgmr.msrb.gmra.mxu1 %v22071_v7  ;;  %v22117_v17 = vadd.f32 %v6962_v63, %v6950_v6  ;;  %v6923_v24 = vpop.f32.mrf.mxu2  ;;  %v6936_v25 = vpop.f32.mrf.mxu3  ;;  %v16129_v58 = vor.u32 %v20509_v48, %v16126_v49  ;;  %v19933_v62 = vld [vmem:[#allocation8 + $0x3c] sm:$0xf]  ;;  %v20926_v6 = vld [vmem:[#allocation8 + $0x1f3c] sm:$0xf0]  ;;  %v20894_v12 = vld [vmem:[#allocation8 + $0x1e44] sm:$0xf] }
 0x194   : > { %v6924_v31 = vadd.f32 %v6923_v24, %v1566_v16  ;;  %v13822_v63 = vld [vmem:[#allocation8 + $0x138] sm:$0xf0]  ;;  %v17670_v13 = vld [vmem:[#allocation8 + $0x1f40] sm:$0xf0]  ;;  %v17412_v24 = vld [vmem:[#allocation8 + $0x1c40] sm:$0xf] }
 0x195   : > { %7175 = vmatpush.bf16.msrb.mxu2 %v15357_v33  ;;  %7188 = vmatpush.bf16.msrb.mxu3 %v17405_v34  ;;  %v20573_v33 = vld [vmem:[#allocation8 + $0x143c] sm:$0xf]  ;;  %v13825_v14 = vor.u32 %v19933_v62, %v13822_v63  ;;  %v14852_v48 = vld [vmem:[#allocation8 + $0x840] sm:$0xf] }
 0x196   : > { %7201 = vmatpush.bf16.msra.mxu0 %v15361_v37  ;;  %7214 = vmatpush.bf16.msra.mxu1 %v17409_v38  ;;  %v16382_v34 = vld [vmem:[#allocation8 + $0x1538] sm:$0xf0]  ;;  %v22119_v35 = vadd.f32 %v6936_v25, %v6924_v31  ;;  %v14333_v38 = vor.u32 %v20093_v21, %v14332_v20  ;;  %v15364_v20 = vld [vmem:[#allocation8 + $0xc40] sm:$0xf]  ;;  %v17414_v31 = vld [vmem:[#allocation8 + $0x1d40] sm:$0xf0] }
 0x197   : > { %v16385_v43 = vor.u32 %v20573_v33, %v16382_v34  ;;  %v20350_v21 = vld [vmem:[#allocation8 + $0xd3c] sm:$0xf0] }
 0x198   : > { %v6951_v36 = vpop.f32.mrf.mxu0  ;;  %v6964_v37 = vpop.f32.mrf.mxu1  ;;  %v20862_v25 = vld [vmem:[#allocation8 + $0x1d3c] sm:$0xf0]  ;;  %v15365_v32 = vor.u32 %v20350_v21, %v15364_v20 }
 0x199   : > { %7176 = vmatpush.bf16.msrb.mxu2 %v15101_v46  ;;  %7189 = vmatpush.bf16.msrb.mxu3 %v17149_v47  ;;  %v19997_v46 = vld [vmem:[#allocation8 + $0x23c] sm:$0xf]  ;;  %v17413_v33 = vor.u32 %v20862_v25, %v17412_v24  ;;  %v15108_v34 = vld [vmem:[#allocation8 + $0xa40] sm:$0xf]  ;;  %v15369_v37 = vor.u32 %v20318_v26, %v15366_v29  ;;  %v20062_v29 = vld [vmem:[#allocation8 + $0x444] sm:$0xf] }
 0x19a   : > { %7202 = vmatpush.bf16.msra.mxu0 %v15105_v52  ;;  %7215 = vmatpush.bf16.msra.mxu1 %v17153_v53  ;;  %v14078_v47 = vld [vmem:[#allocation8 + $0x338] sm:$0xf0]  ;;  %v16125_v52 = vor.u32 %v20541_v45, %v16124_v44  ;;  %v19965_v53 = vld [vmem:[#allocation8 + $0x134] sm:$0xf0]  ;;  %v20286_v36 = vld [vmem:[#allocation8 + $0xb3c] sm:$0xf0] }
 0x19b   : > { %v14081_v56 = vor.u32 %v19997_v46, %v14078_v47  ;;  %v6925_v59 = vpop.f32.mrf.mxu2  ;;  %v6938_v60 = vpop.f32.mrf.mxu3  ;;  %v17158_v44 = vld [vmem:[#allocation8 + $0x1b40] sm:$0xf0]  ;;  %v15109_v45 = vor.u32 %v20286_v36, %v15108_v34  ;;  %v1569_v47 = vperm.slane %v22093_v27, 7  ;;  %v20222_v49 = vld [vmem:[#allocation8 + $0x93c] sm:$0xf0] }
 0x19c   : > { %v14853_v62 = vor.u32 %v20222_v49, %v14852_v48  ;;  %v20094_v20 = vld [vmem:[#allocation8 + $0x53c] sm:$0xf0]  ;;  %v16134_v48 = vld [vmem:[#allocation8 + $0x1340] sm:$0xf0] }
 0x19d   : > { %7177 = vmatpush.bf16.msrb.mxu2 %v14845_v0  ;;  %7190 = vmatpush.bf16.msrb.mxu3 %v16893_v1  ;;  %v20445_v0 = vld [vmem:[#allocation8 + $0x103c] sm:$0xf]  ;;  %v16388_v25 = vld [vmem:[#allocation8 + $0x1440] sm:$0xf] }
 0x19e   : > { %7203 = vmatpush.bf16.msra.mxu0 %v14849_v8  ;;  %7216 = vmatpush.bf16.msra.mxu1 %v16897_v9  ;;  %v15870_v1 = vld [vmem:[#allocation8 + $0x1138] sm:$0xf0]  ;;  %v20382_v8 = vld [vmem:[#allocation8 + $0xe44] sm:$0xf]  ;;  %v13821_v9 = vor.u32 %v19965_v53, %v13820_v50  ;;  %v20734_v53 = vld [vmem:[#allocation8 + $0x193c] sm:$0xf0] }
 0x19f   : > { %v15873_v16 = vor.u32 %v20445_v0, %v15870_v1  ;;  %v14596_v0 = vld [vmem:[#allocation8 + $0x640] sm:$0xf] }
 0x1a0   : > { %v20158_v1 = vld [vmem:[#allocation8 + $0x73c] sm:$0xf0] }
 0x1a1   : > { %7178 = vmatpush.bf16.msrb.mxu2 %v14589_v18  ;;  %7191 = vmatpush.bf16.msrb.mxu3 %v16637_v19  ;;  %v15621_v18 = vor.u32 %v20414_v4, %v15620_v3  ;;  %v17669_v19 = vor.u32 %v20926_v6, %v17668_v5  ;;  %v16644_v3 = vld [vmem:[#allocation8 + $0x1640] sm:$0xf]  ;;  %v14857_v5 = vor.u32 %v20190_v54, %v14854_v55 }
 0x1a2   : > { %7204 = vmatpush.bf16.msra.mxu0 %v14593_v22  ;;  %7217 = vmatpush.bf16.msra.mxu1 %v16641_v23  ;;  %v15625_v22 = vor.u32 %v20382_v8, %v15622_v11  ;;  %v17673_v23 = vor.u32 %v20894_v12, %v17670_v13  ;;  %v20670_v8 = vld [vmem:[#allocation8 + $0x173c] sm:$0xf0]  ;;  %v20638_v11 = vld [vmem:[#allocation8 + $0x1644] sm:$0xf]  ;;  %v1568_v13 = vperm.slane %v22093_v27, 6 }
 0x1a3   : > { %v16646_v12 = vld [vmem:[#allocation8 + $0x1740] sm:$0xf0]  ;;  %v20606_v26 = vld [vmem:[#allocation8 + $0x153c] sm:$0xf0] }
 0x1a4   : > { %v20574_v27 = vld [vmem:[#allocation8 + $0x1444] sm:$0xf]  ;;  %v13828_v49 = vld [vmem:[#allocation8 + $0x40] sm:$0xf] }
 0x1a5   : > { %7179 = vmatpush.bf16.msrb.mxu2 %v14333_v38  ;;  %7192 = vmatpush.bf16.msrb.mxu3 %v16381_v39  ;;  %v17417_v38 = vor.u32 %v20830_v30, %v17414_v31  ;;  %v17156_v39 = vld [vmem:[#allocation8 + $0x1a40] sm:$0xf]  ;;  %v14342_v31 = vld [vmem:[#allocation8 + $0x540] sm:$0xf0] }
 0x1a6   : > { %7205 = vmatpush.bf16.msra.mxu0 %v14337_v42  ;;  %7218 = vmatpush.bf16.msra.mxu1 %v16385_v43  ;;  %v15110_v42 = vld [vmem:[#allocation8 + $0xb40] sm:$0xf0]  ;;  %v17157_v46 = vor.u32 %v20798_v40, %v17156_v39  ;;  %v14084_v39 = vld [vmem:[#allocation8 + $0x240] sm:$0xf] }
 0x1a7   : > { %v20766_v43 = vld [vmem:[#allocation8 + $0x1a44] sm:$0xf]  ;;  %v15113_v50 = vor.u32 %v20254_v41, %v15110_v42  ;;  %v20030_v40 = vld [vmem:[#allocation8 + $0x33c] sm:$0xf0]  ;;  %v14345_v41 = vor.u32 %v20062_v29, %v14342_v31  ;;  %v15374_v29 = vld [vmem:[#allocation8 + $0xd48] sm:$0xf0] }
 0x1a8   : > { %v20478_v54 = vld [vmem:[#allocation8 + $0x113c] sm:$0xf0]  ;;  %v17422_v31 = vld [vmem:[#allocation8 + $0x1d48] sm:$0xf0] }
 0x1a9   : > { %7180 = vmatpush.bf16.msrb.mxu2 %v14077_v51  ;;  %7193 = vmatpush.bf16.msrb.mxu3 %v16125_v52  ;;  %v17161_v51 = vor.u32 %v20766_v43, %v17158_v44  ;;  %v16900_v52 = vld [vmem:[#allocation8 + $0x1840] sm:$0xf] }
 0x1aa   : > { %7206 = vmatpush.bf16.msra.mxu0 %v14081_v56  ;;  %7219 = vmatpush.bf16.msra.mxu1 %v16129_v58  ;;  %v20702_v56 = vld [vmem:[#allocation8 + $0x1844] sm:$0xf]  ;;  %v16901_v63 = vor.u32 %v20734_v53, %v16900_v52  ;;  %v16132_v43 = vld [vmem:[#allocation8 + $0x1240] sm:$0xf] }
 0x1ab   : > { %v16902_v58 = vld [vmem:[#allocation8 + $0x1940] sm:$0xf0]  ;;  %v20542_v44 = vld [vmem:[#allocation8 + $0x133c] sm:$0xf0] }
 0x1ac   : > { %v16905_v6 = vor.u32 %v20702_v56, %v16902_v58  ;;  %v19966_v52 = vld [vmem:[#allocation8 + $0x13c] sm:$0xf0] }
 0x1ad   : > { %7181 = vmatpush.bf16.msrb.mxu2 %v13821_v9  ;;  %7194 = vmatpush.bf16.msrb.mxu3 %v15869_v10  ;;  %v20126_v9 = vld [vmem:[#allocation8 + $0x644] sm:$0xf]  ;;  %v15876_v53 = vld [vmem:[#allocation8 + $0x1040] sm:$0xf] }
 0x1ae   : > { %7207 = vmatpush.bf16.msra.mxu0 %v13825_v14  ;;  %7220 = vmatpush.bf16.msra.mxu1 %v15873_v16  ;;  %v14598_v10 = vld [vmem:[#allocation8 + $0x740] sm:$0xf0]  ;;  %v14597_v16 = vor.u32 %v20158_v1, %v14596_v0  ;;  %v15628_v1 = vld [vmem:[#allocation8 + $0xe48] sm:$0xf] }
 0x1af   : > { %v14601_v21 = vor.u32 %v20126_v9, %v14598_v10  ;;  %v15878_v0 = vld [vmem:[#allocation8 + $0x1140] sm:$0xf0]  ;;  %v15877_v9 = vor.u32 %v20478_v54, %v15876_v53  ;;  %v15630_v10 = vld [vmem:[#allocation8 + $0xf48] sm:$0xf0]  ;;  %v16908_v53 = vld [vmem:[#allocation8 + $0x1848] sm:$0xf] }
 0x1b0   : > { %7182 = vmatmul.bf16.vlgmr.msrb.gmra.mxu2 %v22069_v2  ;;  %7195 = vmatmul.bf16.vlgmr.msrb.gmra.mxu3 %v22071_v7  ;;  %v7001_v59 = vpop.f32.mrf.mxu0  ;;  %v7014_v60 = vpop.f32.mrf.mxu1  ;;  %v20735_v54 = vld [vmem:[#allocation8 + $0x1944] sm:$0xf0] }
 0x1b1   : > { %7226 = vmatpush.bf16.msra.mxu2 %v15621_v18  ;;  %7239 = vmatpush.bf16.msra.mxu3 %v17669_v19  ;;  %v7002_v4 = vadd.f32 %v7001_v59, %v1569_v47  ;;  %v16645_v18 = vor.u32 %v20670_v8, %v16644_v3  ;;  %v14340_v19 = vld [vmem:[#allocation8 + $0x440] sm:$0xf]  ;;  %v20510_v47 = vld [vmem:[#allocation8 + $0x1244] sm:$0xf]  ;;  %v20415_v3 = vld [vmem:[#allocation8 + $0xf44] sm:$0xf0]  ;;  %v13829_v8 = vor.u32 %v19966_v52, %v13828_v49 }
 0x1b2   : > { %7252 = vmatpush.bf16.msrb.mxu0 %v15625_v22  ;;  %7265 = vmatpush.bf16.msrb.mxu1 %v17673_v23  ;;  %v16649_v22 = vor.u32 %v20638_v11, %v16646_v12  ;;  %v16137_v56 = vor.u32 %v20510_v47, %v16134_v48  ;;  %v20895_v11 = vld [vmem:[#allocation8 + $0x1e4c] sm:$0xf]  ;;  %v14860_v49 = vld [vmem:[#allocation8 + $0x848] sm:$0xf] }
 0x1b3   : > { %7208 = vmatmul.bf16.vlgmr.msra.gmra.mxu0 %v22069_v2  ;;  %7221 = vmatmul.bf16.vlgmr.msra.gmra.mxu1 %v22071_v7  ;;  %v22127_v14 = vadd.f32 %v7014_v60, %v7002_v4  ;;  %v6975_v23 = vpop.f32.mrf.mxu2  ;;  %v6988_v24 = vpop.f32.mrf.mxu3  ;;  %v19934_v60 = vld [vmem:[#allocation8 + $0x44] sm:$0xf]  ;;  %v17676_v4 = vld [vmem:[#allocation8 + $0x1e48] sm:$0xf]  ;;  %v17678_v12 = vld [vmem:[#allocation8 + $0x1f48] sm:$0xf0] }
 0x1b4   : > { %v6976_v30 = vadd.f32 %v6975_v23, %v1568_v13  ;;  %v17681_v23 = vor.u32 %v20895_v11, %v17678_v12  ;;  %v14606_v11 = vld [vmem:[#allocation8 + $0x748] sm:$0xf0] }
 0x1b5   : > { %7227 = vmatpush.bf16.msra.mxu2 %v15365_v32  ;;  %7240 = vmatpush.bf16.msra.mxu3 %v17413_v33  ;;  %v16390_v32 = vld [vmem:[#allocation8 + $0x1540] sm:$0xf0]  ;;  %v20639_v12 = vld [vmem:[#allocation8 + $0x164c] sm:$0xf] }
 0x1b6   : > { %7253 = vmatpush.bf16.msrb.mxu0 %v15369_v37  ;;  %7266 = vmatpush.bf16.msrb.mxu1 %v17417_v38  ;;  %v22129_v33 = vadd.f32 %v6988_v24, %v6976_v30  ;;  %v14341_v37 = vor.u32 %v20094_v20, %v14340_v19  ;;  %v16389_v38 = vor.u32 %v20606_v26, %v16388_v25  ;;  %v15372_v20 = vld [vmem:[#allocation8 + $0xc48] sm:$0xf]  ;;  %v20319_v26 = vld [vmem:[#allocation8 + $0xc4c] sm:$0xf] }
 0x1b7   : > { %v16393_v42 = vor.u32 %v20574_v27, %v16390_v32  ;;  %v17420_v24 = vld [vmem:[#allocation8 + $0x1c48] sm:$0xf]  ;;  %v20831_v30 = vld [vmem:[#allocation8 + $0x1c4c] sm:$0xf] }
 0x1b8   : > { %v7003_v34 = vpop.f32.mrf.mxu0  ;;  %v7016_v36 = vpop.f32.mrf.mxu1  ;;  %v20863_v25 = vld [vmem:[#allocation8 + $0x1d44] sm:$0xf0] }
 0x1b9   : > { %7228 = vmatpush.bf16.msra.mxu2 %v15109_v45  ;;  %7241 = vmatpush.bf16.msra.mxu3 %v17157_v46  ;;  %v19998_v45 = vld [vmem:[#allocation8 + $0x244] sm:$0xf]  ;;  %v17421_v32 = vor.u32 %v20863_v25, %v17420_v24  ;;  %v15116_v34 = vld [vmem:[#allocation8 + $0xa48] sm:$0xf] }
 0x1ba   : > { %7254 = vmatpush.bf16.msrb.mxu0 %v15113_v50  ;;  %7267 = vmatpush.bf16.msrb.mxu1 %v17161_v51  ;;  %v14086_v46 = vld [vmem:[#allocation8 + $0x340] sm:$0xf0]  ;;  %v14085_v50 = vor.u32 %v20030_v40, %v14084_v39  ;;  %v16133_v51 = vor.u32 %v20542_v44, %v16132_v43  ;;  %v20287_v36 = vld [vmem:[#allocation8 + $0xb44] sm:$0xf0]  ;;  %v17425_v39 = vor.u32 %v20831_v30, %v17422_v31  ;;  %v15118_v43 = vld [vmem:[#allocation8 + $0xb48] sm:$0xf0] }
 0x1bb   : > { %v14089_v55 = vor.u32 %v19998_v45, %v14086_v46  ;;  %v6977_v58 = vpop.f32.mrf.mxu2  ;;  %v6990_v59 = vpop.f32.mrf.mxu3  ;;  %v20799_v40 = vld [vmem:[#allocation8 + $0x1b44] sm:$0xf0]  ;;  %v20767_v44 = vld [vmem:[#allocation8 + $0x1a4c] sm:$0xf]  ;;  %v15117_v46 = vor.u32 %v20287_v36, %v15116_v34 }
 0x1bc   : > { %v17166_v45 = vld [vmem:[#allocation8 + $0x1b48] sm:$0xf0]  ;;  %v20607_v30 = vld [vmem:[#allocation8 + $0x1544] sm:$0xf0] }
 0x1bd   : > { %7229 = vmatpush.bf16.msra.mxu2 %v14853_v62  ;;  %7242 = vmatpush.bf16.msra.mxu3 %v16901_v63  ;;  %v13830_v62 = vld [vmem:[#allocation8 + $0x140] sm:$0xf0]  ;;  %v17169_v52 = vor.u32 %v20767_v44, %v17166_v45  ;;  %v20703_v58 = vld [vmem:[#allocation8 + $0x184c] sm:$0xf]  ;;  %v20031_v44 = vld [vmem:[#allocation8 + $0x344] sm:$0xf0] }
 0x1be   : > { %7255 = vmatpush.bf16.msrb.mxu0 %v14857_v5  ;;  %7268 = vmatpush.bf16.msrb.mxu1 %v16905_v6  ;;  %v20446_v63 = vld [vmem:[#allocation8 + $0x1044] sm:$0xf]  ;;  %v20927_v5 = vld [vmem:[#allocation8 + $0x1f44] sm:$0xf0]  ;;  %v20383_v6 = vld [vmem:[#allocation8 + $0xe4c] sm:$0xf]  ;;  %v13833_v13 = vor.u32 %v19934_v60, %v13830_v62 }
 0x1bf   : > { %v17677_v19 = vor.u32 %v20927_v5, %v17676_v4  ;;  %v16910_v59 = vld [vmem:[#allocation8 + $0x1948] sm:$0xf0]  ;;  %v16652_v4 = vld [vmem:[#allocation8 + $0x1648] sm:$0xf] }
 0x1c0   : > { %v20063_v31 = vld [vmem:[#allocation8 + $0x44c] sm:$0xf] }
 0x1c1   : > { %7230 = vmatpush.bf16.msra.mxu2 %v14597_v16  ;;  %7243 = vmatpush.bf16.msra.mxu3 %v16645_v18  ;;  %v15881_v16 = vor.u32 %v20446_v63, %v15878_v0  ;;  %v15629_v18 = vor.u32 %v20415_v3, %v15628_v1  ;;  %v16909_v0 = vor.u32 %v20735_v54, %v16908_v53  ;;  %v14604_v1 = vld [vmem:[#allocation8 + $0x648] sm:$0xf]  ;;  %v20575_v34 = vld [vmem:[#allocation8 + $0x144c] sm:$0xf] }
 0x1c2   : > { %7256 = vmatpush.bf16.msrb.mxu0 %v14601_v21  ;;  %7269 = vmatpush.bf16.msrb.mxu1 %v16649_v22  ;;  %v20351_v21 = vld [vmem:[#allocation8 + $0xd44] sm:$0xf0]  ;;  %v15633_v22 = vor.u32 %v20383_v6, %v15630_v10  ;;  %v20127_v10 = vld [vmem:[#allocation8 + $0x64c] sm:$0xf] }
 0x1c3   : > { %v15373_v27 = vor.u32 %v20351_v21, %v15372_v20  ;;  %v20159_v3 = vld [vmem:[#allocation8 + $0x744] sm:$0xf0]  ;;  %v16398_v36 = vld [vmem:[#allocation8 + $0x1548] sm:$0xf0] }
 0x1c4   : > { %v14348_v21 = vld [vmem:[#allocation8 + $0x448] sm:$0xf] }
 0x1c5   : > { %7231 = vmatpush.bf16.msra.mxu2 %v14341_v37  ;;  %7244 = vmatpush.bf16.msra.mxu3 %v16389_v38  ;;  %v17164_v37 = vld [vmem:[#allocation8 + $0x1a48] sm:$0xf]  ;;  %v15377_v38 = vor.u32 %v20319_v26, %v15374_v29 }
 0x1c6   : > { %7257 = vmatpush.bf16.msrb.mxu0 %v14345_v41  ;;  %7270 = vmatpush.bf16.msrb.mxu1 %v16393_v42  ;;  %v20255_v41 = vld [vmem:[#allocation8 + $0xa4c] sm:$0xf]  ;;  %v17165_v47 = vor.u32 %v20799_v40, %v17164_v37  ;;  %v16396_v29 = vld [vmem:[#allocation8 + $0x1448] sm:$0xf] }
 0x1c7   : > { %v22131_v42 = vld [vmem:[#allocation10 + $0x8] sm:$0xff] }
 0x1c8   : > { %v1571_v48 = vperm.slane %v22131_v42, 1  ;;  %v13836_v53 = vld [vmem:[#allocation8 + $0x48] sm:$0xf] }
 0x1c9   : > { %7232 = vmatpush.bf16.msra.mxu2 %v14085_v50  ;;  %7245 = vmatpush.bf16.msra.mxu3 %v16133_v51  ;;  %v20223_v50 = vld [vmem:[#allocation8 + $0x944] sm:$0xf0]  ;;  %v15121_v51 = vor.u32 %v20255_v41, %v15118_v43  ;;  %v16397_v41 = vor.u32 %v20607_v30, %v16396_v29 }
 0x1ca   : > { %7258 = vmatpush.bf16.msrb.mxu0 %v14089_v55  ;;  %7271 = vmatpush.bf16.msrb.mxu1 %v16137_v56  ;;  %v20191_v55 = vld [vmem:[#allocation8 + $0x84c] sm:$0xf]  ;;  %v14861_v63 = vor.u32 %v20223_v50, %v14860_v49  ;;  %v14092_v43 = vld [vmem:[#allocation8 + $0x248] sm:$0xf] }
 0x1cb   : > { %v14862_v56 = vld [vmem:[#allocation8 + $0x948] sm:$0xf0]  ;;  %v14093_v54 = vor.u32 %v20031_v44, %v14092_v43  ;;  %v20288_v43 = vld [vmem:[#allocation8 + $0xb4c] sm:$0xf0] }
 0x1cc   : > { %v14865_v6 = vor.u32 %v20191_v55, %v14862_v56  ;;  %v19999_v49 = vld [vmem:[#allocation8 + $0x24c] sm:$0xf]  ;;  %v19967_v56 = vld [vmem:[#allocation8 + $0x144] sm:$0xf0] }
 0x1cd   : > { %7233 = vmatpush.bf16.msra.mxu2 %v13829_v8  ;;  %7246 = vmatpush.bf16.msra.mxu3 %v15877_v9  ;;  %v16913_v8 = vor.u32 %v20703_v58, %v16910_v59  ;;  %v20671_v9 = vld [vmem:[#allocation8 + $0x1744] sm:$0xf0]  ;;  %v14094_v50 = vld [vmem:[#allocation8 + $0x348] sm:$0xf0] }
 0x1ce   : > { %7259 = vmatpush.bf16.msrb.mxu0 %v13833_v13  ;;  %7272 = vmatpush.bf16.msrb.mxu1 %v15881_v16  ;;  %v16654_v13 = vld [vmem:[#allocation8 + $0x1748] sm:$0xf0]  ;;  %v1570_v16 = vperm.slane %v22131_v42, 0  ;;  %v16653_v20 = vor.u32 %v20671_v9, %v16652_v4  ;;  %v15884_v58 = vld [vmem:[#allocation8 + $0x1048] sm:$0xf] }
 0x1cf   : > { %v16657_v24 = vor.u32 %v20639_v12, %v16654_v13  ;;  %v20479_v59 = vld [vmem:[#allocation8 + $0x1144] sm:$0xf0]  ;;  %v20447_v4 = vld [vmem:[#allocation8 + $0x104c] sm:$0xf]  ;;  %v17684_v9 = vld [vmem:[#allocation8 + $0x1e50] sm:$0xf]  ;;  %v13837_v12 = vor.u32 %v19967_v56, %v13836_v53 }
 0x1d0   : > { %7234 = vmatmul.bf16.vlgmr.msra.gmra.mxu2 %v22069_v2  ;;  %7247 = vmatmul.bf16.vlgmr.msra.gmra.mxu3 %v22071_v7  ;;  %v7053_v60 = vpop.f32.mrf.mxu0  ;;  %v7066_v62 = vpop.f32.mrf.mxu1  ;;  %v15885_v13 = vor.u32 %v20479_v59, %v15884_v58  ;;  %v20224_v56 = vld [vmem:[#allocation8 + $0x94c] sm:$0xf0] }
 0x1d1   : > { %7278 = vmatpush.bf16.msrb.mxu2 %v15629_v18  ;;  %7291 = vmatpush.bf16.msrb.mxu3 %v17677_v19  ;;  %v7054_v5 = vadd.f32 %v7053_v60, %v1571_v48  ;;  %v14605_v19 = vor.u32 %v20159_v3, %v14604_v1  ;;  %v20543_v48 = vld [vmem:[#allocation8 + $0x1344] sm:$0xf0]  ;;  %v14097_v60 = vor.u32 %v19999_v49, %v14094_v50  ;;  %v19935_v1 = vld [vmem:[#allocation8 + $0x4c] sm:$0xf]  ;;  %v15126_v49 = vld [vmem:[#allocation8 + $0xb50] sm:$0xf0] }
 0x1d2   : > { %7304 = vmatpush.bf16.msra.mxu0 %v15633_v22  ;;  %7317 = vmatpush.bf16.msra.mxu1 %v17681_v23  ;;  %v20095_v22 = vld [vmem:[#allocation8 + $0x544] sm:$0xf0]  ;;  %v14609_v23 = vor.u32 %v20127_v10, %v14606_v11  ;;  %v13838_v3 = vld [vmem:[#allocation8 + $0x148] sm:$0xf0]  ;;  %v20928_v10 = vld [vmem:[#allocation8 + $0x1f4c] sm:$0xf0] }
 0x1d3   : > { %7260 = vmatmul.bf16.vlgmr.msrb.gmra.mxu0 %v22069_v2  ;;  %7273 = vmatmul.bf16.vlgmr.msrb.gmra.mxu1 %v22071_v7  ;;  %v22139_v18 = vadd.f32 %v7066_v62, %v7054_v5  ;;  %v7027_v25 = vpop.f32.mrf.mxu2  ;;  %v7040_v26 = vpop.f32.mrf.mxu3  ;;  %v14349_v40 = vor.u32 %v20095_v22, %v14348_v21  ;;  %v15886_v5 = vld [vmem:[#allocation8 + $0x1148] sm:$0xf0]  ;;  %v20384_v11 = vld [vmem:[#allocation8 + $0xe54] sm:$0xf]  ;;  %v13841_v21 = vor.u32 %v19935_v1, %v13838_v3 }
 0x1d4   : > { %v15889_v22 = vor.u32 %v20447_v4, %v15886_v5  ;;  %v20768_v50 = vld [vmem:[#allocation8 + $0x1a54] sm:$0xf] }
 0x1d5   : > { %7279 = vmatpush.bf16.msrb.mxu2 %v15373_v27  ;;  %7292 = vmatpush.bf16.msrb.mxu3 %v17421_v32  ;;  %v7028_v27 = vadd.f32 %v7027_v25, %v1570_v16  ;;  %v14350_v32 = vld [vmem:[#allocation8 + $0x548] sm:$0xf0]  ;;  %v15638_v16 = vld [vmem:[#allocation8 + $0xf50] sm:$0xf0]  ;;  %v15380_v25 = vld [vmem:[#allocation8 + $0xc50] sm:$0xf] }
 0x1d6   : > { %7305 = vmatpush.bf16.msra.mxu0 %v15377_v38  ;;  %7318 = vmatpush.bf16.msra.mxu1 %v17425_v39  ;;  %v14353_v45 = vor.u32 %v20063_v31, %v14350_v32  ;;  %v15641_v29 = vor.u32 %v20384_v11, %v15638_v16  ;;  %v17428_v31 = vld [vmem:[#allocation8 + $0x1c50] sm:$0xf]  ;;  %v20320_v32 = vld [vmem:[#allocation8 + $0xc54] sm:$0xf] }
 0x1d7   : > { %v22141_v37 = vadd.f32 %v7040_v26, %v7028_v27  ;;  %v20352_v26 = vld [vmem:[#allocation8 + $0xd4c] sm:$0xf0]  ;;  %v20704_v1 = vld [vmem:[#allocation8 + $0x1854] sm:$0xf] }
 0x1d8   : > { %v7055_v38 = vpop.f32.mrf.mxu0  ;;  %v7068_v39 = vpop.f32.mrf.mxu1  ;;  %v20864_v27 = vld [vmem:[#allocation8 + $0x1d4c] sm:$0xf0]  ;;  %v16918_v3 = vld [vmem:[#allocation8 + $0x1950] sm:$0xf0] }
 0x1d9   : > { %7280 = vmatpush.bf16.msrb.mxu2 %v15117_v46  ;;  %7293 = vmatpush.bf16.msrb.mxu3 %v17165_v47  ;;  %v16401_v46 = vor.u32 %v20575_v34, %v16398_v36  ;;  %v16140_v47 = vld [vmem:[#allocation8 + $0x1248] sm:$0xf]  ;;  %v15382_v34 = vld [vmem:[#allocation8 + $0xd50] sm:$0xf0]  ;;  %v15381_v39 = vor.u32 %v20352_v26, %v15380_v25  ;;  %v16660_v11 = vld [vmem:[#allocation8 + $0x1650] sm:$0xf]  ;;  %v16921_v16 = vor.u32 %v20704_v1, %v16918_v3 }
 0x1da   : > { %7306 = vmatpush.bf16.msra.mxu0 %v15121_v51  ;;  %7319 = vmatpush.bf16.msra.mxu1 %v17169_v52  ;;  %v20511_v51 = vld [vmem:[#allocation8 + $0x124c] sm:$0xf]  ;;  %v16141_v55 = vor.u32 %v20543_v48, %v16140_v47  ;;  %v20832_v36 = vld [vmem:[#allocation8 + $0x1c54] sm:$0xf]  ;;  %v15385_v44 = vor.u32 %v20320_v32, %v15382_v34  ;;  %v20800_v47 = vld [vmem:[#allocation8 + $0x1b4c] sm:$0xf0] }
 0x1db   : > { %v16142_v52 = vld [vmem:[#allocation8 + $0x1348] sm:$0xf0]  ;;  %v17430_v38 = vld [vmem:[#allocation8 + $0x1d50] sm:$0xf0]  ;;  %v19968_v3 = vld [vmem:[#allocation8 + $0x14c] sm:$0xf0] }
 0x1dc   : > { %v16145_v62 = vor.u32 %v20511_v51, %v16142_v52  ;;  %v20256_v48 = vld [vmem:[#allocation8 + $0xa54] sm:$0xf] }
 0x1dd   : > { %7281 = vmatpush.bf16.msrb.mxu2 %v14861_v63  ;;  %7294 = vmatpush.bf16.msrb.mxu3 %v16909_v0  ;;  %v7029_v63 = vpop.f32.mrf.mxu2  ;;  %v7042_v0 = vpop.f32.mrf.mxu3  ;;  %v17174_v51 = vld [vmem:[#allocation8 + $0x1b50] sm:$0xf0]  ;;  %v15129_v58 = vor.u32 %v20256_v48, %v15126_v49 }
 0x1de   : > { %7307 = vmatpush.bf16.msra.mxu0 %v14865_v6  ;;  %7320 = vmatpush.bf16.msra.mxu1 %v16913_v8  ;;  %v15636_v6 = vld [vmem:[#allocation8 + $0xe50] sm:$0xf]  ;;  %v17177_v59 = vor.u32 %v20768_v50, %v17174_v51  ;;  %v20192_v63 = vld [vmem:[#allocation8 + $0x854] sm:$0xf] }
 0x1df   : > { %v20416_v8 = vld [vmem:[#allocation8 + $0xf4c] sm:$0xf0]  ;;  %v14870_v0 = vld [vmem:[#allocation8 + $0x950] sm:$0xf0] }
 0x1e0   : > { %v14100_v51 = vld [vmem:[#allocation8 + $0x250] sm:$0xf] }
 0x1e1   : > { %7282 = vmatpush.bf16.msrb.mxu2 %v14605_v19  ;;  %7295 = vmatpush.bf16.msrb.mxu3 %v16653_v20  ;;  %v20896_v19 = vld [vmem:[#allocation8 + $0x1e54] sm:$0xf] }
 0x1e2   : > { %7308 = vmatpush.bf16.msra.mxu0 %v14609_v23  ;;  %7321 = vmatpush.bf16.msra.mxu1 %v16657_v24  ;;  %v17686_v20 = vld [vmem:[#allocation8 + $0x1f50] sm:$0xf0]  ;;  %v15637_v23 = vor.u32 %v20416_v8, %v15636_v6  ;;  %v17685_v24 = vor.u32 %v20928_v10, %v17684_v9  ;;  %v14612_v9 = vld [vmem:[#allocation8 + $0x650] sm:$0xf] }
 0x1e3   : > { %v17689_v30 = vor.u32 %v20896_v19, %v17686_v20  ;;  %v20160_v10 = vld [vmem:[#allocation8 + $0x74c] sm:$0xf0]  ;;  %v20128_v20 = vld [vmem:[#allocation8 + $0x654] sm:$0xf] }
 0x1e4   : > { %v20672_v19 = vld [vmem:[#allocation8 + $0x174c] sm:$0xf0]  ;;  %v14613_v26 = vor.u32 %v20160_v10, %v14612_v9 }
 0x1e5   : > { %7283 = vmatpush.bf16.msrb.mxu2 %v14349_v40  ;;  %7296 = vmatpush.bf16.msrb.mxu3 %v16397_v41  ;;  %v17429_v40 = vor.u32 %v20864_v27, %v17428_v31  ;;  %v15124_v41 = vld [vmem:[#allocation8 + $0xa50] sm:$0xf] }
 0x1e6   : > { %7309 = vmatpush.bf16.msra.mxu0 %v14353_v45  ;;  %7322 = vmatpush.bf16.msra.mxu1 %v16401_v46  ;;  %v17433_v45 = vor.u32 %v20832_v36, %v17430_v38  ;;  %v17172_v46 = vld [vmem:[#allocation8 + $0x1a50] sm:$0xf]  ;;  %v15125_v52 = vor.u32 %v20288_v43, %v15124_v41  ;;  %v14358_v43 = vld [vmem:[#allocation8 + $0x550] sm:$0xf0] }
 0x1e7   : > { %v17173_v53 = vor.u32 %v20800_v47, %v17172_v46  ;;  %v20096_v31 = vld [vmem:[#allocation8 + $0x54c] sm:$0xf0] }
 0x1e8   : > { %v16404_v38 = vld [vmem:[#allocation8 + $0x1450] sm:$0xf] }
 0x1e9   : > { %7284 = vmatpush.bf16.msrb.mxu2 %v14093_v54  ;;  %7297 = vmatpush.bf16.msrb.mxu3 %v16141_v55  ;;  %v1573_v54 = vperm.slane %v22131_v42, 3  ;;  %v14868_v55 = vld [vmem:[#allocation8 + $0x850] sm:$0xf] }
 0x1ea   : > { %7310 = vmatpush.bf16.msra.mxu0 %v14097_v60  ;;  %7323 = vmatpush.bf16.msra.mxu1 %v16145_v62  ;;  %v16916_v60 = vld [vmem:[#allocation8 + $0x1850] sm:$0xf]  ;;  %v14869_v6 = vor.u32 %v20224_v56, %v14868_v55 }
 0x1eb   : > { %v20736_v62 = vld [vmem:[#allocation8 + $0x194c] sm:$0xf0] }
 0x1ec   : > { %v16917_v8 = vor.u32 %v20736_v62, %v16916_v60  ;;  %v16148_v55 = vld [vmem:[#allocation8 + $0x1250] sm:$0xf]  ;;  %v20512_v60 = vld [vmem:[#allocation8 + $0x1254] sm:$0xf] }
 0x1ed   : > { %7285 = vmatpush.bf16.msrb.mxu2 %v13837_v12  ;;  %7298 = vmatpush.bf16.msrb.mxu3 %v15885_v13  ;;  %v14873_v13 = vor.u32 %v20192_v63, %v14870_v0  ;;  %v20544_v56 = vld [vmem:[#allocation8 + $0x134c] sm:$0xf0]  ;;  %v16150_v62 = vld [vmem:[#allocation8 + $0x1350] sm:$0xf0] }
 0x1ee   : > { %7311 = vmatpush.bf16.msra.mxu0 %v13841_v21  ;;  %7324 = vmatpush.bf16.msra.mxu1 %v15889_v22  ;;  %v14614_v21 = vld [vmem:[#allocation8 + $0x750] sm:$0xf0]  ;;  %v13844_v63 = vld [vmem:[#allocation8 + $0x50] sm:$0xf]  ;;  %v16149_v1 = vor.u32 %v20544_v56, %v16148_v55  ;;  %v17180_v56 = vld [vmem:[#allocation8 + $0x1a58] sm:$0xf] }
 0x1ef   : > { %v20640_v22 = vld [vmem:[#allocation8 + $0x1654] sm:$0xf]  ;;  %v14617_v27 = vor.u32 %v20128_v20, %v14614_v21  ;;  %v20417_v20 = vld [vmem:[#allocation8 + $0xf54] sm:$0xf0] }
 0x1f0   : > { %7286 = vmatmul.bf16.vlgmr.msrb.gmra.mxu2 %v22069_v2  ;;  %7299 = vmatmul.bf16.vlgmr.msrb.gmra.mxu3 %v22071_v7  ;;  %v7105_v4 = vpop.f32.mrf.mxu0  ;;  %v7118_v5 = vpop.f32.mrf.mxu1  ;;  %v17692_v21 = vld [vmem:[#allocation8 + $0x1e58] sm:$0xf] }
 0x1f1   : > { %7330 = vmatpush.bf16.msra.mxu2 %v15637_v23  ;;  %7343 = vmatpush.bf16.msra.mxu3 %v17685_v24  ;;  %v7106_v12 = vadd.f32 %v7105_v4, %v1573_v54  ;;  %v16662_v23 = vld [vmem:[#allocation8 + $0x1750] sm:$0xf0]  ;;  %v1572_v24 = vperm.slane %v22131_v42, 2  ;;  %v15892_v4 = vld [vmem:[#allocation8 + $0x1050] sm:$0xf] }
 0x1f2   : > { %7356 = vmatpush.bf16.msrb.mxu0 %v15641_v29  ;;  %7369 = vmatpush.bf16.msrb.mxu1 %v17689_v30  ;;  %v16661_v29 = vor.u32 %v20672_v19, %v16660_v11  ;;  %v14356_v30 = vld [vmem:[#allocation8 + $0x450] sm:$0xf]  ;;  %v16665_v32 = vor.u32 %v20640_v22, %v16662_v23  ;;  %v19936_v11 = vld [vmem:[#allocation8 + $0x54] sm:$0xf]  ;;  %v15644_v19 = vld [vmem:[#allocation8 + $0xe58] sm:$0xf] }
 0x1f3   : > { %7312 = vmatmul.bf16.vlgmr.msra.gmra.mxu0 %v22069_v2  ;;  %7325 = vmatmul.bf16.vlgmr.msra.gmra.mxu1 %v22071_v7  ;;  %v22149_v25 = vadd.f32 %v7118_v5, %v7106_v12  ;;  %v7079_v34 = vpop.f32.mrf.mxu2  ;;  %v7092_v36 = vpop.f32.mrf.mxu3  ;;  %v14357_v49 = vor.u32 %v20096_v31, %v14356_v30  ;;  %v20480_v5 = vld [vmem:[#allocation8 + $0x114c] sm:$0xf0]  ;;  %v13846_v12 = vld [vmem:[#allocation8 + $0x150] sm:$0xf0]  ;;  %v20929_v22 = vld [vmem:[#allocation8 + $0x1f54] sm:$0xf0] }
 0x1f4   : > { %v7080_v41 = vadd.f32 %v7079_v34, %v1572_v24  ;;  %v20385_v23 = vld [vmem:[#allocation8 + $0xe5c] sm:$0xf]  ;;  %v13845_v24 = vor.u32 %v19968_v3, %v13844_v63  ;;  %v15645_v34 = vor.u32 %v20417_v20, %v15644_v19  ;;  %v1575_v3 = vperm.slane %v22131_v42, 5 }
 0x1f5   : > { %7331 = vmatpush.bf16.msra.mxu2 %v15381_v39  ;;  %7344 = vmatpush.bf16.msra.mxu3 %v17429_v40  ;;  %v20608_v39 = vld [vmem:[#allocation8 + $0x154c] sm:$0xf0]  ;;  %v20064_v40 = vld [vmem:[#allocation8 + $0x454] sm:$0xf]  ;;  %v20897_v30 = vld [vmem:[#allocation8 + $0x1e5c] sm:$0xf] }
 0x1f6   : > { %7357 = vmatpush.bf16.msrb.mxu0 %v15385_v44  ;;  %7370 = vmatpush.bf16.msrb.mxu1 %v17433_v45  ;;  %v20576_v44 = vld [vmem:[#allocation8 + $0x1454] sm:$0xf]  ;;  %v22151_v46 = vadd.f32 %v7092_v36, %v7080_v41  ;;  %v16405_v50 = vor.u32 %v20608_v39, %v16404_v38  ;;  %v17694_v31 = vld [vmem:[#allocation8 + $0x1f58] sm:$0xf0]  ;;  %v17693_v36 = vor.u32 %v20929_v22, %v17692_v21  ;;  %v15388_v38 = vld [vmem:[#allocation8 + $0xc58] sm:$0xf] }
 0x1f7   : > { %v16406_v45 = vld [vmem:[#allocation8 + $0x1550] sm:$0xf0]  ;;  %v20353_v39 = vld [vmem:[#allocation8 + $0xd54] sm:$0xf0]  ;;  %v17697_v41 = vor.u32 %v20897_v30, %v17694_v31  ;;  %v17182_v63 = vld [vmem:[#allocation8 + $0x1b58] sm:$0xf0] }
 0x1f8   : > { %v7107_v47 = vpop.f32.mrf.mxu0  ;;  %v7120_v48 = vpop.f32.mrf.mxu1  ;;  %v16409_v54 = vor.u32 %v20576_v44, %v16406_v45  ;;  %v20865_v44 = vld [vmem:[#allocation8 + $0x1d54] sm:$0xf0]  ;;  %v20321_v45 = vld [vmem:[#allocation8 + $0xc5c] sm:$0xf] }
 0x1f9   : > { %7332 = vmatpush.bf16.msra.mxu2 %v15125_v52  ;;  %7345 = vmatpush.bf16.msra.mxu3 %v17173_v53  ;;  %v20032_v52 = vld [vmem:[#allocation8 + $0x34c] sm:$0xf0]  ;;  %v14361_v53 = vor.u32 %v20064_v40, %v14358_v43  ;;  %v17436_v43 = vld [vmem:[#allocation8 + $0x1c58] sm:$0xf]  ;;  %v15390_v47 = vld [vmem:[#allocation8 + $0xd58] sm:$0xf0] }
 0x1fa   : > { %7358 = vmatpush.bf16.msrb.mxu0 %v15129_v58  ;;  %7371 = vmatpush.bf16.msrb.mxu1 %v17177_v59  ;;  %v20000_v58 = vld [vmem:[#allocation8 + $0x254] sm:$0xf]  ;;  %v14101_v0 = vor.u32 %v20032_v52, %v14100_v51  ;;  %v20833_v48 = vld [vmem:[#allocation8 + $0x1c5c] sm:$0xf]  ;;  %v17437_v51 = vor.u32 %v20865_v44, %v17436_v43  ;;  %v15132_v52 = vld [vmem:[#allocation8 + $0xa58] sm:$0xf] }
 0x1fb   : > { %v14102_v59 = vld [vmem:[#allocation8 + $0x350] sm:$0xf0]  ;;  %v7081_v9 = vpop.f32.mrf.mxu2  ;;  %v7094_v10 = vpop.f32.mrf.mxu3  ;;  %v14364_v44 = vld [vmem:[#allocation8 + $0x458] sm:$0xf] }
 0x1fc   : > { %v16924_v9 = vld [vmem:[#allocation8 + $0x1858] sm:$0xf] }
 0x1fd   : > { %7333 = vmatpush.bf16.msra.mxu2 %v14869_v6  ;;  %7346 = vmatpush.bf16.msra.mxu3 %v16917_v8  ;;  %v14105_v6 = vor.u32 %v20000_v58, %v14102_v59  ;;  %v16153_v8 = vor.u32 %v20512_v60, %v16150_v62  ;;  %v20801_v58 = vld [vmem:[#allocation8 + $0x1b54] sm:$0xf0]  ;;  %v20257_v59 = vld [vmem:[#allocation8 + $0xa5c] sm:$0xf] }
 0x1fe   : > { %7359 = vmatpush.bf16.msrb.mxu0 %v14873_v13  ;;  %7372 = vmatpush.bf16.msrb.mxu1 %v16921_v16  ;;  %v20448_v13 = vld [vmem:[#allocation8 + $0x1054] sm:$0xf]  ;;  %v15134_v60 = vld [vmem:[#allocation8 + $0xb58] sm:$0xf0]  ;;  %v20737_v10 = vld [vmem:[#allocation8 + $0x1954] sm:$0xf0] }
 0x1ff   : > { %v15894_v16 = vld [vmem:[#allocation8 + $0x1150] sm:$0xf0]  ;;  %v20769_v62 = vld [vmem:[#allocation8 + $0x1a5c] sm:$0xf]  ;;  %v16925_v22 = vor.u32 %v20737_v10, %v16924_v9 }
 0x200   : > { %v20001_v9 = vld [vmem:[#allocation8 + $0x25c] sm:$0xf] }
 0x201   : > { %7334 = vmatpush.bf16.msra.mxu2 %v14613_v26  ;;  %7347 = vmatpush.bf16.msra.mxu3 %v16661_v29  ;;  %v15893_v26 = vor.u32 %v20480_v5, %v15892_v4  ;;  %v15646_v29 = vld [vmem:[#allocation8 + $0xf58] sm:$0xf0]  ;;  %v14876_v4 = vld [vmem:[#allocation8 + $0x858] sm:$0xf] }
 0x202   : > { %7360 = vmatpush.bf16.msrb.mxu0 %v14617_v27  ;;  %7373 = vmatpush.bf16.msrb.mxu1 %v16665_v32  ;;  %v13849_v27 = vor.u32 %v19936_v11, %v13846_v12  ;;  %v15897_v32 = vor.u32 %v20448_v13, %v15894_v16  ;;  %v15649_v40 = vor.u32 %v20385_v23, %v15646_v29  ;;  %v20225_v5 = vld [vmem:[#allocation8 + $0x954] sm:$0xf0]  ;;  %v20193_v11 = vld [vmem:[#allocation8 + $0x85c] sm:$0xf] }
 0x203   : > { %v14878_v12 = vld [vmem:[#allocation8 + $0x958] sm:$0xf0]  ;;  %v14877_v21 = vor.u32 %v20225_v5, %v14876_v4  ;;  %v14620_v23 = vld [vmem:[#allocation8 + $0x658] sm:$0xf] }
 0x204   : > { %v20705_v13 = vld [vmem:[#allocation8 + $0x185c] sm:$0xf]  ;;  %v14881_v30 = vor.u32 %v20193_v11, %v14878_v12 }
 0x205   : > { %7335 = vmatpush.bf16.msra.mxu2 %v14357_v49  ;;  %7348 = vmatpush.bf16.msra.mxu3 %v16405_v50  ;;  %v17438_v49 = vld [vmem:[#allocation8 + $0x1d58] sm:$0xf0]  ;;  %v15389_v50 = vor.u32 %v20353_v39, %v15388_v38  ;;  %v1574_v39 = vperm.slane %v22131_v42, 4 }
 0x206   : > { %7361 = vmatpush.bf16.msrb.mxu0 %v14361_v53  ;;  %7374 = vmatpush.bf16.msrb.mxu1 %v16409_v54  ;;  %v20289_v53 = vld [vmem:[#allocation8 + $0xb54] sm:$0xf0]  ;;  %v15393_v54 = vor.u32 %v20321_v45, %v15390_v47  ;;  %v17441_v55 = vor.u32 %v20833_v48, %v17438_v49  ;;  %v16926_v16 = vld [vmem:[#allocation8 + $0x1958] sm:$0xf0] }
 0x207   : > { %v16929_v31 = vor.u32 %v20705_v13, %v16926_v16  ;;  %v16670_v38 = vld [vmem:[#allocation8 + $0x1758] sm:$0xf0]  ;;  %v20097_v45 = vld [vmem:[#allocation8 + $0x554] sm:$0xf0] }
 0x208   : > { %v14110_v10 = vld [vmem:[#allocation8 + $0x358] sm:$0xf0]  ;;  %v13852_v13 = vld [vmem:[#allocation8 + $0x58] sm:$0xf] }
 0x209   : > { %7336 = vmatpush.bf16.msra.mxu2 %v14101_v0  ;;  %7349 = vmatpush.bf16.msra.mxu3 %v16149_v1  ;;  %v15133_v0 = vor.u32 %v20289_v53, %v15132_v52  ;;  %v17181_v1 = vor.u32 %v20801_v58, %v17180_v56  ;;  %v20609_v52 = vld [vmem:[#allocation8 + $0x1554] sm:$0xf0]  ;;  %v20065_v53 = vld [vmem:[#allocation8 + $0x45c] sm:$0xf] }
 0x20a   : > { %7362 = vmatpush.bf16.msrb.mxu0 %v14105_v6  ;;  %7375 = vmatpush.bf16.msrb.mxu1 %v16153_v8  ;;  %v15137_v6 = vor.u32 %v20257_v59, %v15134_v60  ;;  %v17185_v8 = vor.u32 %v20769_v62, %v17182_v63  ;;  %v20577_v56 = vld [vmem:[#allocation8 + $0x145c] sm:$0xf]  ;;  %v14365_v63 = vor.u32 %v20097_v45, %v14364_v44  ;;  %v15654_v45 = vld [vmem:[#allocation8 + $0xf60] sm:$0xf0] }
 0x20b   : > { %v16414_v58 = vld [vmem:[#allocation8 + $0x1558] sm:$0xf0] }
 0x20c   : > { %v16417_v5 = vor.u32 %v20577_v56, %v16414_v58  ;;  %v20513_v11 = vld [vmem:[#allocation8 + $0x125c] sm:$0xf]  ;;  %v17444_v58 = vld [vmem:[#allocation8 + $0x1c60] sm:$0xf] }
 0x20d   : > { %7337 = vmatpush.bf16.msra.mxu2 %v13845_v24  ;;  %7350 = vmatpush.bf16.msra.mxu3 %v15893_v26  ;;  %v20161_v24 = vld [vmem:[#allocation8 + $0x754] sm:$0xf0]  ;;  %v16158_v12 = vld [vmem:[#allocation8 + $0x1358] sm:$0xf0] }
 0x20e   : > { %7363 = vmatpush.bf16.msrb.mxu0 %v13849_v27  ;;  %7376 = vmatpush.bf16.msrb.mxu1 %v15897_v32  ;;  %v16668_v26 = vld [vmem:[#allocation8 + $0x1658] sm:$0xf]  ;;  %v20129_v32 = vld [vmem:[#allocation8 + $0x65c] sm:$0xf] }
 0x20f   : > { %v20673_v27 = vld [vmem:[#allocation8 + $0x1754] sm:$0xf0] }
 0x210   : > { %7338 = vmatmul.bf16.vlgmr.msra.gmra.mxu2 %v22069_v2  ;;  %7351 = vmatmul.bf16.vlgmr.msra.gmra.mxu3 %v22071_v7  ;;  %v7157_v19 = vpop.f32.mrf.mxu0  ;;  %v7170_v20 = vpop.f32.mrf.mxu1  ;;  %v16669_v43 = vor.u32 %v20673_v27, %v16668_v26  ;;  %v20449_v27 = vld [vmem:[#allocation8 + $0x105c] sm:$0xf] }
 0x211   : > { %7382 = vmatpush.bf16.msrb.mxu2 %v15645_v34  ;;  %7395 = vmatpush.bf16.msrb.mxu3 %v17693_v36  ;;  %v7158_v29 = vadd.f32 %v7157_v19, %v1575_v3  ;;  %v14622_v34 = vld [vmem:[#allocation8 + $0x758] sm:$0xf0]  ;;  %v20033_v3 = vld [vmem:[#allocation8 + $0x354] sm:$0xf0] }
 0x212   : > { %7408 = vmatpush.bf16.msra.mxu0 %v15649_v40  ;;  %7421 = vmatpush.bf16.msra.mxu1 %v17697_v41  ;;  %v20641_v36 = vld [vmem:[#allocation8 + $0x165c] sm:$0xf]  ;;  %v14621_v41 = vor.u32 %v20161_v24, %v14620_v23  ;;  %v14625_v47 = vor.u32 %v20129_v32, %v14622_v34  ;;  %v14113_v23 = vor.u32 %v20001_v9, %v14110_v10  ;;  %v15652_v34 = vld [vmem:[#allocation8 + $0xe60] sm:$0xf] }
 0x213   : > { %7364 = vmatmul.bf16.vlgmr.msrb.gmra.mxu0 %v22069_v2  ;;  %7377 = vmatmul.bf16.vlgmr.msrb.gmra.mxu1 %v22071_v7  ;;  %v22159_v40 = vadd.f32 %v7170_v20, %v7158_v29  ;;  %v16673_v48 = vor.u32 %v20641_v36, %v16670_v38  ;;  %v7131_v49 = vpop.f32.mrf.mxu2  ;;  %v19969_v20 = vld [vmem:[#allocation8 + $0x154] sm:$0xf0]  ;;  %v16161_v24 = vor.u32 %v20513_v11, %v16158_v12  ;;  %v15902_v32 = vld [vmem:[#allocation8 + $0x1158] sm:$0xf0]  ;;  %v20418_v36 = vld [vmem:[#allocation8 + $0xf5c] sm:$0xf0] }
 0x214   : > { %v17700_v38 = vld [vmem:[#allocation8 + $0x1e60] sm:$0xf]  ;;  %v20258_v12 = vld [vmem:[#allocation8 + $0xa64] sm:$0xf] }
 0x215   : > { %7383 = vmatpush.bf16.msrb.mxu2 %v15389_v50  ;;  %7396 = vmatpush.bf16.msrb.mxu3 %v17437_v51  ;;  %v7144_v50 = vpop.f32.mrf.mxu3  ;;  %v16412_v51 = vld [vmem:[#allocation8 + $0x1458] sm:$0xf]  ;;  %v17188_v10 = vld [vmem:[#allocation8 + $0x1a60] sm:$0xf] }
 0x216   : > { %7409 = vmatpush.bf16.msra.mxu0 %v15393_v54  ;;  %7422 = vmatpush.bf16.msra.mxu1 %v17441_v55  ;;  %v7132_v54 = vadd.f32 %v7131_v49, %v1574_v39  ;;  %v14366_v55 = vld [vmem:[#allocation8 + $0x558] sm:$0xf0]  ;;  %v20930_v39 = vld [vmem:[#allocation8 + $0x1f5c] sm:$0xf0] }
 0x217   : > { %v14369_v4 = vor.u32 %v20065_v53, %v14366_v55  ;;  %v15396_v53 = vld [vmem:[#allocation8 + $0xc60] sm:$0xf] }
 0x218   : > { %v22161_v59 = vadd.f32 %v7144_v50, %v7132_v54  ;;  %v7159_v60 = vpop.f32.mrf.mxu0  ;;  %v7172_v62 = vpop.f32.mrf.mxu1  ;;  %v15905_v50 = vor.u32 %v20449_v27, %v15902_v32  ;;  %v20354_v54 = vld [vmem:[#allocation8 + $0xd5c] sm:$0xf0]  ;;  %v20194_v27 = vld [vmem:[#allocation8 + $0x864] sm:$0xf] }
 0x219   : > { %7384 = vmatpush.bf16.msrb.mxu2 %v15133_v0  ;;  %7397 = vmatpush.bf16.msrb.mxu3 %v17181_v1  ;;  %v16413_v0 = vor.u32 %v20609_v52, %v16412_v51  ;;  %v14108_v1 = vld [vmem:[#allocation8 + $0x258] sm:$0xf]  ;;  %v15653_v51 = vor.u32 %v20418_v36, %v15652_v34  ;;  %v17701_v52 = vor.u32 %v20930_v39, %v17700_v38  ;;  %v20866_v60 = vld [vmem:[#allocation8 + $0x1d5c] sm:$0xf0]  ;;  %v20322_v62 = vld [vmem:[#allocation8 + $0xc64] sm:$0xf] }
 0x21a   : > { %7410 = vmatpush.bf16.msra.mxu0 %v15137_v6  ;;  %7423 = vmatpush.bf16.msra.mxu1 %v17185_v8  ;;  %v16156_v6 = vld [vmem:[#allocation8 + $0x1258] sm:$0xf]  ;;  %v14109_v16 = vor.u32 %v20033_v3, %v14108_v1  ;;  %v17446_v1 = vld [vmem:[#allocation8 + $0x1d60] sm:$0xf0]  ;;  %v15397_v3 = vor.u32 %v20354_v54, %v15396_v53  ;;  %v20802_v11 = vld [vmem:[#allocation8 + $0x1b5c] sm:$0xf0] }
 0x21b   : > { %v20545_v8 = vld [vmem:[#allocation8 + $0x1354] sm:$0xf0]  ;;  %v7133_v26 = vpop.f32.mrf.mxu2  ;;  %v14886_v32 = vld [vmem:[#allocation8 + $0x960] sm:$0xf0] }
 0x21c   : > { %v16157_v19 = vor.u32 %v20545_v8, %v16156_v6  ;;  %v20290_v6 = vld [vmem:[#allocation8 + $0xb5c] sm:$0xf0]  ;;  %v20706_v34 = vld [vmem:[#allocation8 + $0x1864] sm:$0xf] }
 0x21d   : > { %7385 = vmatpush.bf16.msrb.mxu2 %v14877_v21  ;;  %7398 = vmatpush.bf16.msrb.mxu3 %v16925_v22  ;;  %v15900_v21 = vld [vmem:[#allocation8 + $0x1058] sm:$0xf]  ;;  %v7146_v29 = vpop.f32.mrf.mxu3  ;;  %v16934_v36 = vld [vmem:[#allocation8 + $0x1960] sm:$0xf0] }
 0x21e   : > { %7411 = vmatpush.bf16.msra.mxu0 %v14881_v30  ;;  %7424 = vmatpush.bf16.msra.mxu1 %v16929_v31  ;;  %v20481_v22 = vld [vmem:[#allocation8 + $0x1154] sm:$0xf0]  ;;  %v19937_v30 = vld [vmem:[#allocation8 + $0x5c] sm:$0xf]  ;;  %v14630_v53 = vld [vmem:[#allocation8 + $0x760] sm:$0xf0] }
 0x21f   : > { %v13854_v31 = vld [vmem:[#allocation8 + $0x158] sm:$0xf0]  ;;  %v15901_v44 = vor.u32 %v20481_v22, %v15900_v21  ;;  %v17189_v21 = vor.u32 %v20802_v11, %v17188_v10  ;;  %v1577_v22 = vperm.slane %v22131_v42, 7  ;;  %v20642_v54 = vld [vmem:[#allocation8 + $0x1664] sm:$0xf] }
 0x220   : > { %v13857_v49 = vor.u32 %v19937_v30, %v13854_v31  ;;  %v16932_v30 = vld [vmem:[#allocation8 + $0x1860] sm:$0xf]  ;;  %v14374_v11 = vld [vmem:[#allocation8 + $0x560] sm:$0xf0] }
 0x221   : > { %7386 = vmatpush.bf16.msrb.mxu2 %v14621_v41  ;;  %7399 = vmatpush.bf16.msrb.mxu3 %v16669_v43  ;;  %v20386_v41 = vld [vmem:[#allocation8 + $0xe64] sm:$0xf]  ;;  %v13853_v43 = vor.u32 %v19969_v20, %v13852_v13  ;;  %v20738_v31 = vld [vmem:[#allocation8 + $0x195c] sm:$0xf0] }
 0x222   : > { %7412 = vmatpush.bf16.msra.mxu0 %v14625_v47  ;;  %7425 = vmatpush.bf16.msra.mxu1 %v16673_v48  ;;  %v20898_v47 = vld [vmem:[#allocation8 + $0x1e64] sm:$0xf]  ;;  %v15657_v55 = vor.u32 %v20386_v41, %v15654_v45  ;;  %v20162_v45 = vld [vmem:[#allocation8 + $0x75c] sm:$0xf0] }
 0x223   : > { %v17702_v48 = vld [vmem:[#allocation8 + $0x1f60] sm:$0xf0] }
 0x224   : > { %v17705_v56 = vor.u32 %v20898_v47, %v17702_v48  ;;  %v15142_v13 = vld [vmem:[#allocation8 + $0xb60] sm:$0xf0]  ;;  %v16676_v47 = vld [vmem:[#allocation8 + $0x1660] sm:$0xf] }
 0x225   : > { %7387 = vmatpush.bf16.msrb.mxu2 %v14365_v63  ;;  %7400 = vmatpush.bf16.msrb.mxu3 %v16413_v0  ;;  %v15398_v63 = vld [vmem:[#allocation8 + $0xd60] sm:$0xf0]  ;;  %v15145_v26 = vor.u32 %v20258_v12, %v15142_v13 }
 0x226   : > { %7413 = vmatpush.bf16.msra.mxu0 %v14369_v4  ;;  %7426 = vmatpush.bf16.msra.mxu1 %v16417_v5  ;;  %v20834_v0 = vld [vmem:[#allocation8 + $0x1c64] sm:$0xf]  ;;  %v17445_v4 = vor.u32 %v20866_v60, %v17444_v58  ;;  %v15140_v5 = vld [vmem:[#allocation8 + $0xa60] sm:$0xf]  ;;  %v15401_v8 = vor.u32 %v20322_v62, %v15398_v63 }
 0x227   : > { %v17449_v9 = vor.u32 %v20834_v0, %v17446_v1  ;;  %v15141_v20 = vor.u32 %v20290_v6, %v15140_v5  ;;  %v14372_v63 = vld [vmem:[#allocation8 + $0x460] sm:$0xf]  ;;  %v16422_v12 = vld [vmem:[#allocation8 + $0x1560] sm:$0xf0] }
 0x228   : > { %v20098_v0 = vld [vmem:[#allocation8 + $0x55c] sm:$0xf0] }
 0x229   : > { %7388 = vmatpush.bf16.msrb.mxu2 %v14109_v16  ;;  %7401 = vmatpush.bf16.msrb.mxu3 %v16157_v19  ;;  %v20770_v16 = vld [vmem:[#allocation8 + $0x1a64] sm:$0xf]  ;;  %v16420_v6 = vld [vmem:[#allocation8 + $0x1460] sm:$0xf] }
 0x22a   : > { %7414 = vmatpush.bf16.msra.mxu0 %v14113_v23  ;;  %7427 = vmatpush.bf16.msra.mxu1 %v16161_v24  ;;  %v17190_v19 = vld [vmem:[#allocation8 + $0x1b60] sm:$0xf0]  ;;  %v14884_v23 = vld [vmem:[#allocation8 + $0x860] sm:$0xf] }
 0x22b   : > { %v20226_v24 = vld [vmem:[#allocation8 + $0x95c] sm:$0xf0]  ;;  %v17193_v29 = vor.u32 %v20770_v16, %v17190_v19 }
 0x22c   : > { %v14885_v41 = vor.u32 %v20226_v24, %v14884_v23  ;;  %v20034_v23 = vld [vmem:[#allocation8 + $0x35c] sm:$0xf0] }
 0x22d   : > { %7389 = vmatpush.bf16.msrb.mxu2 %v13853_v43  ;;  %7402 = vmatpush.bf16.msrb.mxu3 %v15901_v44  ;;  %v16933_v43 = vor.u32 %v20738_v31, %v16932_v30  ;;  %v14628_v44 = vld [vmem:[#allocation8 + $0x660] sm:$0xf]  ;;  %v20002_v31 = vld [vmem:[#allocation8 + $0x264] sm:$0xf] }
 0x22e   : > { %7415 = vmatpush.bf16.msra.mxu0 %v13857_v49  ;;  %7428 = vmatpush.bf16.msra.mxu1 %v15905_v50  ;;  %v14889_v49 = vor.u32 %v20194_v27, %v14886_v32  ;;  %v16937_v50 = vor.u32 %v20706_v34, %v16934_v36  ;;  %v14629_v60 = vor.u32 %v20162_v45, %v14628_v44  ;;  %v20546_v30 = vld [vmem:[#allocation8 + $0x135c] sm:$0xf0]  ;;  %v14118_v27 = vld [vmem:[#allocation8 + $0x360] sm:$0xf0] }
 0x22f   : > { %v20514_v32 = vld [vmem:[#allocation8 + $0x1264] sm:$0xf]  ;;  %v13860_v36 = vld [vmem:[#allocation8 + $0x60] sm:$0xf]  ;;  %v14121_v45 = vor.u32 %v20002_v31, %v14118_v27  ;;  %v17196_v31 = vld [vmem:[#allocation8 + $0x1a68] sm:$0xf] }
 0x230   : > { %7390 = vmatmul.bf16.vlgmr.msrb.gmra.mxu2 %v22069_v2  ;;  %7403 = vmatmul.bf16.vlgmr.msrb.gmra.mxu3 %v22071_v7  ;;  %v7209_v38 = vpop.f32.mrf.mxu0  ;;  %v7222_v39 = vpop.f32.mrf.mxu1  ;;  %v16166_v34 = vld [vmem:[#allocation8 + $0x1360] sm:$0xf0]  ;;  %v20482_v44 = vld [vmem:[#allocation8 + $0x115c] sm:$0xf0] }
 0x231   : > { %7434 = vmatpush.bf16.msra.mxu2 %v15653_v51  ;;  %7447 = vmatpush.bf16.msra.mxu3 %v17701_v52  ;;  %v7210_v48 = vadd.f32 %v7209_v38, %v1577_v22  ;;  %v20674_v51 = vld [vmem:[#allocation8 + $0x175c] sm:$0xf0]  ;;  %v20130_v52 = vld [vmem:[#allocation8 + $0x664] sm:$0xf] }
 0x232   : > { %7460 = vmatpush.bf16.msrb.mxu0 %v15657_v55  ;;  %7473 = vmatpush.bf16.msrb.mxu1 %v17705_v56  ;;  %v16678_v55 = vld [vmem:[#allocation8 + $0x1760] sm:$0xf0]  ;;  %v1576_v56 = vperm.slane %v22131_v42, 6  ;;  %v16677_v62 = vor.u32 %v20674_v51, %v16676_v47  ;;  %v14633_v1 = vor.u32 %v20130_v52, %v14630_v53  ;;  %v14116_v22 = vld [vmem:[#allocation8 + $0x260] sm:$0xf]  ;;  %v16169_v47 = vor.u32 %v20514_v32, %v16166_v34 }
 0x233   : > { %7416 = vmatmul.bf16.vlgmr.msra.gmra.mxu0 %v22069_v2  ;;  %7429 = vmatmul.bf16.vlgmr.msra.gmra.mxu1 %v22071_v7  ;;  %v22169_v58 = vadd.f32 %v7222_v39, %v7210_v48  ;;  %v7196_v5 = vpop.f32.mrf.mxu3  ;;  %v20578_v42 = vld [vmem:[#allocation8 + $0x1464] sm:$0xf]  ;;  %v14117_v38 = vor.u32 %v20034_v23, %v14116_v22  ;;  %v20835_v22 = vld [vmem:[#allocation8 + $0x1c6c] sm:$0xf]  ;;  %v20803_v34 = vld [vmem:[#allocation8 + $0x1b64] sm:$0xf0] }
 0x234   : > { %v13862_v51 = vld [vmem:[#allocation8 + $0x160] sm:$0xf0]  ;;  %v17454_v23 = vld [vmem:[#allocation8 + $0x1d68] sm:$0xf0] }
 0x235   : > { %7435 = vmatpush.bf16.msra.mxu2 %v15397_v3  ;;  %7448 = vmatpush.bf16.msra.mxu3 %v17445_v4  ;;  %v16681_v3 = vor.u32 %v20642_v54, %v16678_v55  ;;  %v7183_v4 = vpop.f32.mrf.mxu2  ;;  %v20450_v52 = vld [vmem:[#allocation8 + $0x1064] sm:$0xf]  ;;  %v15660_v54 = vld [vmem:[#allocation8 + $0xe68] sm:$0xf]  ;;  %v17457_v32 = vor.u32 %v20835_v22, %v17454_v23 }
 0x236   : > { %7461 = vmatpush.bf16.msrb.mxu0 %v15401_v8  ;;  %7474 = vmatpush.bf16.msrb.mxu1 %v17449_v9  ;;  %v20610_v8 = vld [vmem:[#allocation8 + $0x155c] sm:$0xf0]  ;;  %v20066_v9 = vld [vmem:[#allocation8 + $0x464] sm:$0xf]  ;;  %v7184_v10 = vadd.f32 %v7183_v4, %v1576_v56  ;;  %v20419_v55 = vld [vmem:[#allocation8 + $0xf64] sm:$0xf0] }
 0x237   : > { %v14377_v24 = vor.u32 %v20066_v9, %v14374_v11  ;;  %v15910_v53 = vld [vmem:[#allocation8 + $0x1160] sm:$0xf0]  ;;  %v17708_v56 = vld [vmem:[#allocation8 + $0x1e68] sm:$0xf]  ;;  %v17710_v4 = vld [vmem:[#allocation8 + $0x1f68] sm:$0xf0] }
 0x238   : > { %v22171_v13 = vadd.f32 %v7196_v5, %v7184_v10  ;;  %v7211_v16 = vpop.f32.mrf.mxu0  ;;  %v7224_v19 = vpop.f32.mrf.mxu1  ;;  %v15404_v10 = vld [vmem:[#allocation8 + $0xc68] sm:$0xf] }
 0x239   : > { %7436 = vmatpush.bf16.msra.mxu2 %v15141_v20  ;;  %7449 = vmatpush.bf16.msra.mxu3 %v17189_v21  ;;  %v14373_v20 = vor.u32 %v20098_v0, %v14372_v63  ;;  %v16421_v21 = vor.u32 %v20610_v8, %v16420_v6  ;;  %v15913_v6 = vor.u32 %v20450_v52, %v15910_v53  ;;  %v20355_v11 = vld [vmem:[#allocation8 + $0xd64] sm:$0xf0] }
 0x23a   : > { %7462 = vmatpush.bf16.msrb.mxu0 %v15145_v26  ;;  %7475 = vmatpush.bf16.msrb.mxu1 %v17193_v29  ;;  %v16425_v26 = vor.u32 %v20578_v42, %v16422_v12  ;;  %v16164_v29 = vld [vmem:[#allocation8 + $0x1260] sm:$0xf]  ;;  %v15661_v8 = vor.u32 %v20419_v55, %v15660_v54  ;;  %v17452_v16 = vld [vmem:[#allocation8 + $0x1c68] sm:$0xf]  ;;  %v20195_v54 = vld [vmem:[#allocation8 + $0x86c] sm:$0xf] }
 0x23b   : > { %v16165_v39 = vor.u32 %v20546_v30, %v16164_v29  ;;  %v20867_v19 = vld [vmem:[#allocation8 + $0x1d64] sm:$0xf0]  ;;  %v14894_v55 = vld [vmem:[#allocation8 + $0x968] sm:$0xf0] }
 0x23c   : > { %v15148_v29 = vld [vmem:[#allocation8 + $0xa68] sm:$0xf] }
 0x23d   : > { %7437 = vmatpush.bf16.msra.mxu2 %v14885_v41  ;;  %7450 = vmatpush.bf16.msra.mxu3 %v16933_v43  ;;  %v19970_v41 = vld [vmem:[#allocation8 + $0x15c] sm:$0xf0]  ;;  %v7185_v48 = vpop.f32.mrf.mxu2  ;;  %v20291_v30 = vld [vmem:[#allocation8 + $0xb64] sm:$0xf0] }
 0x23e   : > { %7463 = vmatpush.bf16.msrb.mxu0 %v14889_v49  ;;  %7476 = vmatpush.bf16.msrb.mxu1 %v16937_v50  ;;  %v15908_v43 = vld [vmem:[#allocation8 + $0x1060] sm:$0xf]  ;;  %v7198_v49 = vpop.f32.mrf.mxu3  ;;  %v19938_v50 = vld [vmem:[#allocation8 + $0x64] sm:$0xf]  ;;  %v13861_v63 = vor.u32 %v19970_v41, %v13860_v36  ;;  %v20259_v36 = vld [vmem:[#allocation8 + $0xa6c] sm:$0xf] }
 0x23f   : > { %v15909_v0 = vor.u32 %v20482_v44, %v15908_v43  ;;  %v13865_v5 = vor.u32 %v19938_v50, %v13862_v51  ;;  %v20771_v41 = vld [vmem:[#allocation8 + $0x1a6c] sm:$0xf]  ;;  %v15149_v44 = vor.u32 %v20291_v30, %v15148_v29  ;;  %v14892_v48 = vld [vmem:[#allocation8 + $0x868] sm:$0xf] }
 0x240   : > { %v17198_v43 = vld [vmem:[#allocation8 + $0x1b68] sm:$0xf0]  ;;  %v20227_v49 = vld [vmem:[#allocation8 + $0x964] sm:$0xf0] }
 0x241   : > { %7438 = vmatpush.bf16.msra.mxu2 %v14629_v60  ;;  %7451 = vmatpush.bf16.msra.mxu3 %v16677_v62  ;;  %v20931_v60 = vld [vmem:[#allocation8 + $0x1f64] sm:$0xf0]  ;;  %v20387_v62 = vld [vmem:[#allocation8 + $0xe6c] sm:$0xf]  ;;  %v17201_v51 = vor.u32 %v20771_v41, %v17198_v43 }
 0x242   : > { %7464 = vmatpush.bf16.msrb.mxu0 %v14633_v1  ;;  %7477 = vmatpush.bf16.msrb.mxu1 %v16681_v3  ;;  %v15662_v1 = vld [vmem:[#allocation8 + $0xf68] sm:$0xf0]  ;;  %v17709_v9 = vor.u32 %v20931_v60, %v17708_v56  ;;  %v16940_v52 = vld [vmem:[#allocation8 + $0x1868] sm:$0xf] }
 0x243   : > { %v20899_v3 = vld [vmem:[#allocation8 + $0x1e6c] sm:$0xf]  ;;  %v15665_v42 = vor.u32 %v20387_v62, %v15662_v1  ;;  %v20739_v53 = vld [vmem:[#allocation8 + $0x1964] sm:$0xf0] }
 0x244   : > { %v17713_v12 = vor.u32 %v20899_v3, %v17710_v4  ;;  %v20707_v56 = vld [vmem:[#allocation8 + $0x186c] sm:$0xf]  ;;  %v16941_v1 = vor.u32 %v20739_v53, %v16940_v52  ;;  %v14636_v3 = vld [vmem:[#allocation8 + $0x668] sm:$0xf] }
 0x245   : > { %7439 = vmatpush.bf16.msra.mxu2 %v14373_v20  ;;  %7452 = vmatpush.bf16.msra.mxu3 %v16421_v21  ;;  %v20323_v20 = vld [vmem:[#allocation8 + $0xc6c] sm:$0xf]  ;;  %v20163_v4 = vld [vmem:[#allocation8 + $0x764] sm:$0xf0] }
 0x246   : > { %7465 = vmatpush.bf16.msrb.mxu0 %v14377_v24  ;;  %7478 = vmatpush.bf16.msrb.mxu1 %v16425_v26  ;;  %v15406_v21 = vld [vmem:[#allocation8 + $0xd68] sm:$0xf0]  ;;  %v15405_v24 = vor.u32 %v20355_v11, %v15404_v10  ;;  %v17453_v26 = vor.u32 %v20867_v19, %v17452_v16  ;;  %v20675_v10 = vld [vmem:[#allocation8 + $0x1764] sm:$0xf0] }
 0x247   : > { %v15409_v27 = vor.u32 %v20323_v20, %v15406_v21  ;;  %v16942_v60 = vld [vmem:[#allocation8 + $0x1968] sm:$0xf0]  ;;  %v14637_v21 = vor.u32 %v20163_v4, %v14636_v3  ;;  %v14380_v23 = vld [vmem:[#allocation8 + $0x468] sm:$0xf] }
 0x248   : > { %v20131_v11 = vld [vmem:[#allocation8 + $0x66c] sm:$0xf]  ;;  %v19971_v4 = vld [vmem:[#allocation8 + $0x164] sm:$0xf0] }
 0x249   : > { %7440 = vmatpush.bf16.msra.mxu2 %v14117_v38  ;;  %7453 = vmatpush.bf16.msra.mxu3 %v16165_v39  ;;  %v22173_v38 = vld [vmem:[#allocation10 + $0x10] sm:$0xff]  ;;  %v15150_v39 = vld [vmem:[#allocation8 + $0xb68] sm:$0xf0] }
 0x24a   : > { %7466 = vmatpush.bf16.msrb.mxu0 %v14121_v45  ;;  %7479 = vmatpush.bf16.msrb.mxu1 %v16169_v47  ;;  %v17197_v45 = vor.u32 %v20803_v34, %v17196_v31  ;;  %v1579_v47 = vperm.slane %v22173_v38, 1  ;;  %v15153_v50 = vor.u32 %v20259_v36, %v15150_v39  ;;  %v16686_v16 = vld [vmem:[#allocation8 + $0x1768] sm:$0xf0]  ;;  %v1578_v19 = vperm.slane %v22173_v38, 0 }
 0x24b   : > { %v20067_v34 = vld [vmem:[#allocation8 + $0x46c] sm:$0xf] }
 0x24c   : > { %v14382_v39 = vld [vmem:[#allocation8 + $0x568] sm:$0xf0] }
 0x24d   : > { %7441 = vmatpush.bf16.msra.mxu2 %v13861_v63  ;;  %7454 = vmatpush.bf16.msra.mxu3 %v15909_v0  ;;  %v14893_v0 = vor.u32 %v20227_v49, %v14892_v48  ;;  %v20579_v41 = vld [vmem:[#allocation8 + $0x146c] sm:$0xf]  ;;  %v14385_v52 = vor.u32 %v20067_v34, %v14382_v39 }
 0x24e   : > { %7467 = vmatpush.bf16.msrb.mxu0 %v13865_v5  ;;  %7480 = vmatpush.bf16.msrb.mxu1 %v15913_v6  ;;  %v16684_v5 = vld [vmem:[#allocation8 + $0x1668] sm:$0xf]  ;;  %v16430_v43 = vld [vmem:[#allocation8 + $0x1568] sm:$0xf0] }
 0x24f   : > { %v16685_v22 = vor.u32 %v20675_v10, %v16684_v5  ;;  %v16433_v53 = vor.u32 %v20579_v41, %v16430_v43  ;;  %v15916_v5 = vld [vmem:[#allocation8 + $0x1068] sm:$0xf]  ;;  %v15412_v43 = vld [vmem:[#allocation8 + $0xc70] sm:$0xf] }
 0x250   : > { %7442 = vmatmul.bf16.vlgmr.msra.gmra.mxu2 %v22069_v2  ;;  %7455 = vmatmul.bf16.vlgmr.msra.gmra.mxu3 %v22071_v7  ;;  %v7261_v62 = vpop.f32.mrf.mxu0  ;;  %v7274_v63 = vpop.f32.mrf.mxu1 }
 0x251   : > { %7486 = vmatpush.bf16.msrb.mxu2 %v15661_v8  ;;  %7499 = vmatpush.bf16.msrb.mxu3 %v17709_v9  ;;  %v7262_v6 = vadd.f32 %v7261_v62, %v1579_v47  ;;  %v14897_v8 = vor.u32 %v20195_v54, %v14894_v55  ;;  %v16945_v9 = vor.u32 %v20707_v56, %v16942_v60  ;;  %v16172_v54 = vld [vmem:[#allocation8 + $0x1268] sm:$0xf]  ;;  %v20003_v56 = vld [vmem:[#allocation8 + $0x26c] sm:$0xf] }
 0x252   : > { %7512 = vmatpush.bf16.msra.mxu0 %v15665_v42  ;;  %7525 = vmatpush.bf16.msra.mxu1 %v17713_v12  ;;  %v14638_v42 = vld [vmem:[#allocation8 + $0x768] sm:$0xf0]  ;;  %v20547_v55 = vld [vmem:[#allocation8 + $0x1364] sm:$0xf0] }
 0x253   : > { %7468 = vmatmul.bf16.vlgmr.msrb.gmra.mxu0 %v22069_v2  ;;  %7481 = vmatmul.bf16.vlgmr.msrb.gmra.mxu1 %v22071_v7  ;;  %v20643_v12 = vld [vmem:[#allocation8 + $0x166c] sm:$0xf]  ;;  %v22181_v20 = vadd.f32 %v7274_v63, %v7262_v6  ;;  %v7235_v30 = vpop.f32.mrf.mxu2  ;;  %v7248_v31 = vpop.f32.mrf.mxu3  ;;  %v16173_v3 = vor.u32 %v20547_v55, %v16172_v54  ;;  %v20483_v6 = vld [vmem:[#allocation8 + $0x1164] sm:$0xf0]  ;;  %v17462_v54 = vld [vmem:[#allocation8 + $0x1d70] sm:$0xf0] }
 0x254   : > { %v16689_v29 = vor.u32 %v20643_v12, %v16686_v16  ;;  %v7236_v36 = vadd.f32 %v7235_v30, %v1578_v19  ;;  %v14126_v60 = vld [vmem:[#allocation8 + $0x368] sm:$0xf0]  ;;  %v15917_v30 = vor.u32 %v20483_v6, %v15916_v5  ;;  %v15158_v5 = vld [vmem:[#allocation8 + $0xb70] sm:$0xf0] }
 0x255   : > { %7487 = vmatpush.bf16.msrb.mxu2 %v15405_v24  ;;  %7500 = vmatpush.bf16.msrb.mxu3 %v17453_v26  ;;  %v20099_v24 = vld [vmem:[#allocation8 + $0x564] sm:$0xf0]  ;;  %v14641_v26 = vor.u32 %v20131_v11, %v14638_v42  ;;  %v20515_v62 = vld [vmem:[#allocation8 + $0x126c] sm:$0xf]  ;;  %v20772_v6 = vld [vmem:[#allocation8 + $0x1a74] sm:$0xf] }
 0x256   : > { %7513 = vmatpush.bf16.msra.mxu0 %v15409_v27  ;;  %7526 = vmatpush.bf16.msra.mxu1 %v17457_v32  ;;  %v16428_v27 = vld [vmem:[#allocation8 + $0x1468] sm:$0xf]  ;;  %v14381_v48 = vor.u32 %v20099_v24, %v14380_v23  ;;  %v16174_v63 = vld [vmem:[#allocation8 + $0x1368] sm:$0xf0]  ;;  %v17716_v23 = vld [vmem:[#allocation8 + $0x1e70] sm:$0xf] }
 0x257   : > { %v20611_v32 = vld [vmem:[#allocation8 + $0x1564] sm:$0xf0]  ;;  %v19939_v42 = vld [vmem:[#allocation8 + $0x6c] sm:$0xf]  ;;  %v20932_v24 = vld [vmem:[#allocation8 + $0x1f6c] sm:$0xf0] }
 0x258   : > { %v7276_v47 = vpop.f32.mrf.mxu1  ;;  %v16429_v49 = vor.u32 %v20611_v32, %v16428_v27  ;;  %v13870_v12 = vld [vmem:[#allocation8 + $0x168] sm:$0xf0]  ;;  %v20900_v27 = vld [vmem:[#allocation8 + $0x1e74] sm:$0xf]  ;;  %v17717_v41 = vor.u32 %v20932_v24, %v17716_v23 }
 0x259   : > { %7488 = vmatpush.bf16.msrb.mxu2 %v15149_v44  ;;  %7501 = vmatpush.bf16.msrb.mxu3 %v17197_v45  ;;  %v22183_v44 = vadd.f32 %v7248_v31, %v7236_v36  ;;  %v7263_v45 = vpop.f32.mrf.mxu0  ;;  %v20451_v16 = vld [vmem:[#allocation8 + $0x106c] sm:$0xf]  ;;  %v15670_v31 = vld [vmem:[#allocation8 + $0xf70] sm:$0xf0]  ;;  %v13873_v34 = vor.u32 %v19939_v42, %v13870_v12  ;;  %v14900_v42 = vld [vmem:[#allocation8 + $0x870] sm:$0xf] }
 0x25a   : > { %7514 = vmatpush.bf16.msra.mxu0 %v15153_v50  ;;  %7527 = vmatpush.bf16.msra.mxu1 %v17201_v51  ;;  %v14124_v50 = vld [vmem:[#allocation8 + $0x268] sm:$0xf]  ;;  %v15918_v19 = vld [vmem:[#allocation8 + $0x1168] sm:$0xf0]  ;;  %v17718_v32 = vld [vmem:[#allocation8 + $0x1f70] sm:$0xf0] }
 0x25b   : > { %v20035_v51 = vld [vmem:[#allocation8 + $0x364] sm:$0xf0]  ;;  %v7237_v10 = vpop.f32.mrf.mxu2  ;;  %v7250_v11 = vpop.f32.mrf.mxu3  ;;  %v15921_v36 = vor.u32 %v20451_v16, %v15918_v19  ;;  %v20356_v45 = vld [vmem:[#allocation8 + $0xd6c] sm:$0xf0]  ;;  %v20196_v23 = vld [vmem:[#allocation8 + $0x874] sm:$0xf] }
 0x25c   : > { %v15413_v55 = vor.u32 %v20356_v45, %v15412_v43  ;;  %v1581_v11 = vperm.slane %v22173_v38, 3  ;;  %v20228_v12 = vld [vmem:[#allocation8 + $0x96c] sm:$0xf0]  ;;  %v14902_v24 = vld [vmem:[#allocation8 + $0x970] sm:$0xf0] }
 0x25d   : > { %7489 = vmatpush.bf16.msrb.mxu2 %v14893_v0  ;;  %7502 = vmatpush.bf16.msrb.mxu3 %v16941_v1  ;;  %v13868_v0 = vld [vmem:[#allocation8 + $0x68] sm:$0xf]  ;;  %v14125_v1 = vor.u32 %v20035_v51, %v14124_v50  ;;  %v20868_v50 = vld [vmem:[#allocation8 + $0x1d6c] sm:$0xf0]  ;;  %v20324_v51 = vld [vmem:[#allocation8 + $0xc74] sm:$0xf]  ;;  %v14905_v43 = vor.u32 %v20196_v23, %v14902_v24 }
 0x25e   : > { %7515 = vmatpush.bf16.msra.mxu0 %v14897_v8  ;;  %7528 = vmatpush.bf16.msra.mxu1 %v16945_v9  ;;  %v14129_v8 = vor.u32 %v20003_v56, %v14126_v60  ;;  %v16177_v9 = vor.u32 %v20515_v62, %v16174_v63  ;;  %v15156_v60 = vld [vmem:[#allocation8 + $0xa70] sm:$0xf] }
 0x25f   : > { %v20292_v62 = vld [vmem:[#allocation8 + $0xb6c] sm:$0xf0] }
 0x261   : > { %7490 = vmatpush.bf16.msrb.mxu2 %v14637_v21  ;;  %7503 = vmatpush.bf16.msrb.mxu3 %v16685_v22  ;;  %v15668_v21 = vld [vmem:[#allocation8 + $0xe70] sm:$0xf] }
 0x262   : > { %7516 = vmatpush.bf16.msra.mxu0 %v14641_v26  ;;  %7529 = vmatpush.bf16.msra.mxu1 %v16689_v29  ;;  %v20420_v22 = vld [vmem:[#allocation8 + $0xf6c] sm:$0xf0]  ;;  %v20388_v26 = vld [vmem:[#allocation8 + $0xe74] sm:$0xf]  ;;  %v13869_v29 = vor.u32 %v19971_v4, %v13868_v0 }
 0x263   : > { %v15669_v39 = vor.u32 %v20420_v22, %v15668_v21  ;;  %v15673_v47 = vor.u32 %v20388_v26, %v15670_v31  ;;  %v20260_v4 = vld [vmem:[#allocation8 + $0xa74] sm:$0xf]  ;;  %v16948_v21 = vld [vmem:[#allocation8 + $0x1870] sm:$0xf] }
 0x264   : > { %v15161_v16 = vor.u32 %v20260_v4, %v15158_v5  ;;  %v20740_v22 = vld [vmem:[#allocation8 + $0x196c] sm:$0xf0]  ;;  %v20708_v26 = vld [vmem:[#allocation8 + $0x1874] sm:$0xf] }
 0x265   : > { %7491 = vmatpush.bf16.msrb.mxu2 %v14381_v48  ;;  %7504 = vmatpush.bf16.msrb.mxu3 %v16429_v49  ;;  %v17721_v48 = vor.u32 %v20900_v27, %v17718_v32  ;;  %v17460_v49 = vld [vmem:[#allocation8 + $0x1c70] sm:$0xf]  ;;  %v14901_v27 = vor.u32 %v20228_v12, %v14900_v42  ;;  %v16949_v32 = vor.u32 %v20740_v22, %v16948_v21  ;;  %v20068_v5 = vld [vmem:[#allocation8 + $0x474] sm:$0xf] }
 0x266   : > { %7517 = vmatpush.bf16.msra.mxu0 %v14385_v52  ;;  %7530 = vmatpush.bf16.msra.mxu1 %v16433_v53  ;;  %v15414_v52 = vld [vmem:[#allocation8 + $0xd70] sm:$0xf0]  ;;  %v17461_v56 = vor.u32 %v20868_v50, %v17460_v49  ;;  %v20612_v4 = vld [vmem:[#allocation8 + $0x156c] sm:$0xf0] }
 0x267   : > { %v20836_v53 = vld [vmem:[#allocation8 + $0x1c74] sm:$0xf]  ;;  %v15417_v63 = vor.u32 %v20324_v51, %v15414_v52  ;;  %v1580_v52 = vperm.slane %v22173_v38, 2  ;;  %v14132_v21 = vld [vmem:[#allocation8 + $0x270] sm:$0xf] }
 0x268   : > { %v17465_v0 = vor.u32 %v20836_v53, %v17462_v54  ;;  %v14646_v49 = vld [vmem:[#allocation8 + $0x770] sm:$0xf0]  ;;  %v20036_v22 = vld [vmem:[#allocation8 + $0x36c] sm:$0xf0] }
 0x269   : > { %7492 = vmatpush.bf16.msrb.mxu2 %v14125_v1  ;;  %7505 = vmatpush.bf16.msrb.mxu3 %v16173_v3  ;;  %v17204_v1 = vld [vmem:[#allocation8 + $0x1a70] sm:$0xf]  ;;  %v20644_v50 = vld [vmem:[#allocation8 + $0x1674] sm:$0xf] }
 0x26a   : > { %7518 = vmatpush.bf16.msra.mxu0 %v14129_v8  ;;  %7531 = vmatpush.bf16.msra.mxu1 %v16177_v9  ;;  %v20804_v3 = vld [vmem:[#allocation8 + $0x1b6c] sm:$0xf0]  ;;  %v17206_v8 = vld [vmem:[#allocation8 + $0x1b70] sm:$0xf0]  ;;  %v15157_v9 = vor.u32 %v20292_v62, %v15156_v60 }
 0x26b   : > { %v17205_v10 = vor.u32 %v20804_v3, %v17204_v1  ;;  %v17209_v19 = vor.u32 %v20772_v6, %v17206_v8  ;;  %v16694_v51 = vld [vmem:[#allocation8 + $0x1770] sm:$0xf0]  ;;  %v20100_v60 = vld [vmem:[#allocation8 + $0x56c] sm:$0xf0] }
 0x26c   : > { %v16436_v3 = vld [vmem:[#allocation8 + $0x1470] sm:$0xf]  ;;  %v14390_v8 = vld [vmem:[#allocation8 + $0x570] sm:$0xf0] }
 0x26d   : > { %7493 = vmatpush.bf16.msrb.mxu2 %v13869_v29  ;;  %7506 = vmatpush.bf16.msrb.mxu3 %v15917_v30  ;;  %v16950_v29 = vld [vmem:[#allocation8 + $0x1970] sm:$0xf0]  ;;  %v14393_v23 = vor.u32 %v20068_v5, %v14390_v8  ;;  %v20901_v5 = vld [vmem:[#allocation8 + $0x1e7c] sm:$0xf] }
 0x26e   : > { %7519 = vmatpush.bf16.msra.mxu0 %v13873_v34  ;;  %7532 = vmatpush.bf16.msra.mxu1 %v15921_v36  ;;  %v14644_v34 = vld [vmem:[#allocation8 + $0x670] sm:$0xf]  ;;  %v16953_v45 = vor.u32 %v20708_v26, %v16950_v29 }
 0x26f   : > { %v20164_v36 = vld [vmem:[#allocation8 + $0x76c] sm:$0xf0] }
 0x270   : > { %7494 = vmatmul.bf16.vlgmr.msrb.gmra.mxu2 %v22069_v2  ;;  %7507 = vmatmul.bf16.vlgmr.msrb.gmra.mxu3 %v22071_v7  ;;  %v7313_v30 = vpop.f32.mrf.mxu0  ;;  %v7326_v31 = vpop.f32.mrf.mxu1  ;;  %v14645_v54 = vor.u32 %v20164_v36, %v14644_v34  ;;  %v16180_v26 = vld [vmem:[#allocation8 + $0x1270] sm:$0xf]  ;;  %v14133_v36 = vor.u32 %v20036_v22, %v14132_v21  ;;  %v17468_v22 = vld [vmem:[#allocation8 + $0x1c78] sm:$0xf] }
 0x271   : > { %7538 = vmatpush.bf16.msra.mxu2 %v15669_v39  ;;  %7551 = vmatpush.bf16.msra.mxu3 %v17717_v41  ;;  %v16692_v39 = vld [vmem:[#allocation8 + $0x1670] sm:$0xf]  ;;  %v7314_v41 = vadd.f32 %v7313_v30, %v1581_v11  ;;  %v20004_v30 = vld [vmem:[#allocation8 + $0x274] sm:$0xf] }
 0x272   : > { %7564 = vmatpush.bf16.msrb.mxu0 %v15673_v47  ;;  %7577 = vmatpush.bf16.msrb.mxu1 %v17721_v48  ;;  %v20676_v47 = vld [vmem:[#allocation8 + $0x176c] sm:$0xf0]  ;;  %v20132_v48 = vld [vmem:[#allocation8 + $0x674] sm:$0xf] }
 0x273   : > { %7520 = vmatmul.bf16.vlgmr.msra.gmra.mxu0 %v22069_v2  ;;  %7533 = vmatmul.bf16.vlgmr.msra.gmra.mxu1 %v22071_v7  ;;  %v22191_v53 = vadd.f32 %v7326_v31, %v7314_v41  ;;  %v14649_v62 = vor.u32 %v20132_v48, %v14646_v49  ;;  %v7300_v1 = vpop.f32.mrf.mxu3  ;;  %v20548_v29 = vld [vmem:[#allocation8 + $0x136c] sm:$0xf0]  ;;  %v14134_v31 = vld [vmem:[#allocation8 + $0x370] sm:$0xf0] }
 0x274   : > { %v13876_v34 = vld [vmem:[#allocation8 + $0x70] sm:$0xf] }
 0x275   : > { %7539 = vmatpush.bf16.msra.mxu2 %v15413_v55  ;;  %7552 = vmatpush.bf16.msra.mxu3 %v17461_v56  ;;  %v16693_v55 = vor.u32 %v20676_v47, %v16692_v39  ;;  %v14388_v56 = vld [vmem:[#allocation8 + $0x470] sm:$0xf]  ;;  %v16181_v39 = vor.u32 %v20548_v29, %v16180_v26  ;;  %v14137_v47 = vor.u32 %v20004_v30, %v14134_v31  ;;  %v15422_v26 = vld [vmem:[#allocation8 + $0xd78] sm:$0xf0] }
 0x276   : > { %7565 = vmatpush.bf16.msrb.mxu0 %v15417_v63  ;;  %7578 = vmatpush.bf16.msrb.mxu1 %v17465_v0  ;;  %v16697_v63 = vor.u32 %v20644_v50, %v16694_v51  ;;  %v7287_v0 = vpop.f32.mrf.mxu2  ;;  %v19972_v41 = vld [vmem:[#allocation8 + $0x16c] sm:$0xf0]  ;;  %v19940_v51 = vld [vmem:[#allocation8 + $0x74] sm:$0xf]  ;;  %v20837_v29 = vld [vmem:[#allocation8 + $0x1c7c] sm:$0xf] }
 0x277   : > { %v7288_v6 = vadd.f32 %v7287_v0, %v1580_v52  ;;  %v13878_v52 = vld [vmem:[#allocation8 + $0x170] sm:$0xf0]  ;;  %v20389_v0 = vld [vmem:[#allocation8 + $0xe7c] sm:$0xf] }
 0x278   : > { %v7315_v42 = vpop.f32.mrf.mxu0  ;;  %v7328_v12 = vpop.f32.mrf.mxu1  ;;  %v13881_v8 = vor.u32 %v19940_v51, %v13878_v52  ;;  %v17470_v30 = vld [vmem:[#allocation8 + $0x1d78] sm:$0xf0]  ;;  %v1583_v52 = vperm.slane %v22173_v38, 5 }
 0x279   : > { %7540 = vmatpush.bf16.msra.mxu2 %v15157_v9  ;;  %7553 = vmatpush.bf16.msra.mxu3 %v17205_v10  ;;  %v20580_v9 = vld [vmem:[#allocation8 + $0x1474] sm:$0xf]  ;;  %v22193_v11 = vadd.f32 %v7300_v1, %v7288_v6  ;;  %v13877_v1 = vor.u32 %v19972_v41, %v13876_v34  ;;  %v17726_v6 = vld [vmem:[#allocation8 + $0x1f78] sm:$0xf0]  ;;  %v15420_v12 = vld [vmem:[#allocation8 + $0xc78] sm:$0xf] }
 0x27a   : > { %7566 = vmatpush.bf16.msrb.mxu0 %v15161_v16  ;;  %7579 = vmatpush.bf16.msrb.mxu1 %v17209_v19  ;;  %v16438_v10 = vld [vmem:[#allocation8 + $0x1570] sm:$0xf0]  ;;  %v14389_v16 = vor.u32 %v20100_v60, %v14388_v56  ;;  %v16437_v19 = vor.u32 %v20612_v4, %v16436_v3  ;;  %v15676_v56 = vld [vmem:[#allocation8 + $0xe78] sm:$0xf]  ;;  %v15678_v4 = vld [vmem:[#allocation8 + $0xf78] sm:$0xf0]  ;;  %v17729_v21 = vor.u32 %v20901_v5, %v17726_v6 }
 0x27b   : > { %v16441_v24 = vor.u32 %v20580_v9, %v16438_v10  ;;  %v7302_v50 = vpop.f32.mrf.mxu3  ;;  %v20421_v60 = vld [vmem:[#allocation8 + $0xf74] sm:$0xf0] }
 0x27c   : > { %v15677_v10 = vor.u32 %v20421_v60, %v15676_v56  ;;  %v20293_v34 = vld [vmem:[#allocation8 + $0xb74] sm:$0xf0] }
 0x27d   : > { %7541 = vmatpush.bf16.msra.mxu2 %v14901_v27  ;;  %7554 = vmatpush.bf16.msra.mxu3 %v16949_v32  ;;  %v20516_v27 = vld [vmem:[#allocation8 + $0x1274] sm:$0xf]  ;;  %v17212_v41 = vld [vmem:[#allocation8 + $0x1a78] sm:$0xf] }
 0x27e   : > { %7567 = vmatpush.bf16.msrb.mxu0 %v14905_v43  ;;  %7580 = vmatpush.bf16.msrb.mxu1 %v16953_v45  ;;  %v16182_v32 = vld [vmem:[#allocation8 + $0x1370] sm:$0xf0]  ;;  %v15924_v43 = vld [vmem:[#allocation8 + $0x1070] sm:$0xf]  ;;  %v7289_v49 = vpop.f32.mrf.mxu2 }
 0x27f   : > { %v20484_v45 = vld [vmem:[#allocation8 + $0x116c] sm:$0xf0]  ;;  %v16185_v48 = vor.u32 %v20516_v27, %v16182_v32  ;;  %v15164_v32 = vld [vmem:[#allocation8 + $0xa78] sm:$0xf]  ;;  %v17214_v49 = vld [vmem:[#allocation8 + $0x1b78] sm:$0xf0] }
 0x280   : > { %v15925_v3 = vor.u32 %v20484_v45, %v15924_v43  ;;  %v20805_v43 = vld [vmem:[#allocation8 + $0x1b74] sm:$0xf0]  ;;  %v20261_v45 = vld [vmem:[#allocation8 + $0xa7c] sm:$0xf]  ;;  %v15165_v50 = vor.u32 %v20293_v34, %v15164_v32 }
 0x281   : > { %7542 = vmatpush.bf16.msra.mxu2 %v14645_v54  ;;  %7555 = vmatpush.bf16.msra.mxu3 %v16693_v55  ;;  %v20452_v54 = vld [vmem:[#allocation8 + $0x1074] sm:$0xf]  ;;  %v17213_v51 = vor.u32 %v20805_v43, %v17212_v41  ;;  %v14396_v34 = vld [vmem:[#allocation8 + $0x478] sm:$0xf] }
 0x282   : > { %7568 = vmatpush.bf16.msrb.mxu0 %v14649_v62  ;;  %7581 = vmatpush.bf16.msrb.mxu1 %v16697_v63  ;;  %v15926_v55 = vld [vmem:[#allocation8 + $0x1170] sm:$0xf0]  ;;  %v17724_v62 = vld [vmem:[#allocation8 + $0x1e78] sm:$0xf] }
 0x283   : > { %v20933_v63 = vld [vmem:[#allocation8 + $0x1f74] sm:$0xf0]  ;;  %v15929_v9 = vor.u32 %v20452_v54, %v15926_v55 }
 0x284   : > { %v17725_v42 = vor.u32 %v20933_v63, %v17724_v62  ;;  %v14908_v54 = vld [vmem:[#allocation8 + $0x878] sm:$0xf] }
 0x285   : > { %7543 = vmatpush.bf16.msra.mxu2 %v14389_v16  ;;  %7556 = vmatpush.bf16.msra.mxu3 %v16437_v19  ;;  %v20357_v16 = vld [vmem:[#allocation8 + $0xd74] sm:$0xf0]  ;;  %v15681_v19 = vor.u32 %v20389_v0, %v15678_v4  ;;  %v20197_v0 = vld [vmem:[#allocation8 + $0x87c] sm:$0xf] }
 0x286   : > { %7569 = vmatpush.bf16.msrb.mxu0 %v14393_v23  ;;  %7582 = vmatpush.bf16.msrb.mxu1 %v16441_v24  ;;  %v20869_v23 = vld [vmem:[#allocation8 + $0x1d74] sm:$0xf0]  ;;  %v20325_v24 = vld [vmem:[#allocation8 + $0xc7c] sm:$0xf]  ;;  %v15421_v31 = vor.u32 %v20357_v16, %v15420_v12 }
 0x287   : > { %v17469_v27 = vor.u32 %v20869_v23, %v17468_v22  ;;  %v20229_v55 = vld [vmem:[#allocation8 + $0x974] sm:$0xf0]  ;;  %v16958_v4 = vld [vmem:[#allocation8 + $0x1978] sm:$0xf0] }
 0x288   : > { %v16956_v62 = vld [vmem:[#allocation8 + $0x1878] sm:$0xf]  ;;  %v20133_v23 = vld [vmem:[#allocation8 + $0x67c] sm:$0xf] }
 0x289   : > { %7544 = vmatpush.bf16.msra.mxu2 %v14133_v36  ;;  %7557 = vmatpush.bf16.msra.mxu3 %v16181_v39  ;;  %v15425_v36 = vor.u32 %v20325_v24, %v15422_v26  ;;  %v17473_v39 = vor.u32 %v20837_v29, %v17470_v30  ;;  %v20741_v63 = vld [vmem:[#allocation8 + $0x1974] sm:$0xf0]  ;;  %v14654_v24 = vld [vmem:[#allocation8 + $0x778] sm:$0xf0]  ;;  %v1582_v30 = vperm.slane %v22173_v38, 4 }
 0x28a   : > { %7570 = vmatpush.bf16.msrb.mxu0 %v14137_v47  ;;  %7583 = vmatpush.bf16.msrb.mxu1 %v16185_v48  ;;  %v15166_v47 = vld [vmem:[#allocation8 + $0xb78] sm:$0xf0]  ;;  %v16700_v12 = vld [vmem:[#allocation8 + $0x1678] sm:$0xf] }
 0x28b   : > { %v20773_v48 = vld [vmem:[#allocation8 + $0x1a7c] sm:$0xf]  ;;  %v15169_v56 = vor.u32 %v20261_v45, %v15166_v47  ;;  %v20677_v22 = vld [vmem:[#allocation8 + $0x1774] sm:$0xf0] }
 0x28c   : > { %v17217_v60 = vor.u32 %v20773_v48, %v17214_v49  ;;  %v20645_v26 = vld [vmem:[#allocation8 + $0x167c] sm:$0xf]  ;;  %v16701_v32 = vor.u32 %v20677_v22, %v16700_v12  ;;  %v16444_v47 = vld [vmem:[#allocation8 + $0x1478] sm:$0xf] }
 0x28d   : > { %7545 = vmatpush.bf16.msra.mxu2 %v13877_v1  ;;  %7558 = vmatpush.bf16.msra.mxu3 %v15925_v3  ;;  %v14910_v1 = vld [vmem:[#allocation8 + $0x978] sm:$0xf0]  ;;  %v20613_v48 = vld [vmem:[#allocation8 + $0x1574] sm:$0xf0] }
 0x28e   : > { %7571 = vmatpush.bf16.msrb.mxu0 %v13881_v8  ;;  %7584 = vmatpush.bf16.msrb.mxu1 %v15929_v9  ;;  %v20709_v3 = vld [vmem:[#allocation8 + $0x187c] sm:$0xf]  ;;  %v14909_v8 = vor.u32 %v20229_v55, %v14908_v54  ;;  %v16957_v9 = vor.u32 %v20741_v63, %v16956_v62  ;;  %v16445_v63 = vor.u32 %v20613_v48, %v16444_v47  ;;  %v13884_v12 = vld [vmem:[#allocation8 + $0x78] sm:$0xf]  ;;  %v20390_v47 = vld [vmem:[#allocation8 + $0xe84] sm:$0xf] }
 0x28f   : > { %v16702_v29 = vld [vmem:[#allocation8 + $0x1778] sm:$0xf0]  ;;  %v15932_v22 = vld [vmem:[#allocation8 + $0x1078] sm:$0xf] }
 0x290   : > { %7546 = vmatmul.bf16.vlgmr.msra.gmra.mxu2 %v22069_v2  ;;  %7559 = vmatmul.bf16.vlgmr.msra.gmra.mxu3 %v22071_v7  ;;  %v7365_v5 = vpop.f32.mrf.mxu0  ;;  %v7378_v6 = vpop.f32.mrf.mxu1  ;;  %v16705_v41 = vor.u32 %v20645_v26, %v16702_v29  ;;  %v20069_v49 = vld [vmem:[#allocation8 + $0x47c] sm:$0xf] }
 0x291   : > { %7590 = vmatpush.bf16.msrb.mxu2 %v15677_v10  ;;  %7603 = vmatpush.bf16.msrb.mxu3 %v17725_v42  ;;  %v14652_v10 = vld [vmem:[#allocation8 + $0x678] sm:$0xf]  ;;  %v7366_v16 = vadd.f32 %v7365_v5, %v1583_v52  ;;  %v20581_v52 = vld [vmem:[#allocation8 + $0x147c] sm:$0xf] }
 0x292   : > { %7616 = vmatpush.bf16.msra.mxu0 %v15681_v19  ;;  %7629 = vmatpush.bf16.msra.mxu1 %v17729_v21  ;;  %v20165_v42 = vld [vmem:[#allocation8 + $0x774] sm:$0xf0]  ;;  %v14913_v19 = vor.u32 %v20197_v0, %v14910_v1  ;;  %v16961_v21 = vor.u32 %v20709_v3, %v16958_v4  ;;  %v16446_v54 = vld [vmem:[#allocation8 + $0x1578] sm:$0xf0] }
 0x293   : > { %7572 = vmatmul.bf16.vlgmr.msrb.gmra.mxu0 %v22069_v2  ;;  %7585 = vmatmul.bf16.vlgmr.msrb.gmra.mxu1 %v22071_v7  ;;  %v7339_v43 = vpop.f32.mrf.mxu2  ;;  %v7352_v45 = vpop.f32.mrf.mxu3  ;;  %v14140_v0 = vld [vmem:[#allocation8 + $0x278] sm:$0xf]  ;;  %v16449_v4 = vor.u32 %v20581_v52, %v16446_v54  ;;  %v17734_v52 = vld [vmem:[#allocation8 + $0x1f80] sm:$0xf0] }
 0x294   : > { %v20037_v1 = vld [vmem:[#allocation8 + $0x374] sm:$0xf0] }
 0x295   : > { %7591 = vmatpush.bf16.msrb.mxu2 %v15421_v31  ;;  %7604 = vmatpush.bf16.msrb.mxu3 %v17469_v27  ;;  %v22201_v31 = vadd.f32 %v7378_v6, %v7366_v16  ;;  %v14653_v27 = vor.u32 %v20165_v42, %v14652_v10  ;;  %v16188_v5 = vld [vmem:[#allocation8 + $0x1278] sm:$0xf]  ;;  %v20517_v10 = vld [vmem:[#allocation8 + $0x127c] sm:$0xf]  ;;  %v14141_v16 = vor.u32 %v20037_v1, %v14140_v0  ;;  %v20358_v0 = vld [vmem:[#allocation8 + $0xd7c] sm:$0xf0] }
 0x296   : > { %7617 = vmatpush.bf16.msra.mxu0 %v15425_v36  ;;  %7630 = vmatpush.bf16.msra.mxu1 %v17473_v39  ;;  %v20101_v36 = vld [vmem:[#allocation8 + $0x574] sm:$0xf0]  ;;  %v14657_v39 = vor.u32 %v20133_v23, %v14654_v24  ;;  %v16190_v42 = vld [vmem:[#allocation8 + $0x1378] sm:$0xf0] }
 0x297   : > { %v14397_v62 = vor.u32 %v20101_v36, %v14396_v34  ;;  %v20549_v6 = vld [vmem:[#allocation8 + $0x1374] sm:$0xf0]  ;;  %v16193_v26 = vor.u32 %v20517_v10, %v16190_v42  ;;  %v20453_v34 = vld [vmem:[#allocation8 + $0x107c] sm:$0xf]  ;;  %v17478_v10 = vld [vmem:[#allocation8 + $0x1d80] sm:$0xf0] }
 0x298   : > { %v20485_v23 = vld [vmem:[#allocation8 + $0x1174] sm:$0xf0]  ;;  %v15934_v36 = vld [vmem:[#allocation8 + $0x1178] sm:$0xf0] }
 0x299   : > { %7592 = vmatpush.bf16.msrb.mxu2 %v15165_v50  ;;  %7605 = vmatpush.bf16.msrb.mxu3 %v17213_v51  ;;  %v7340_v50 = vadd.f32 %v7339_v43, %v1582_v30  ;;  %v14398_v51 = vld [vmem:[#allocation8 + $0x578] sm:$0xf0]  ;;  %v17732_v43 = vld [vmem:[#allocation8 + $0x1e80] sm:$0xf] }
 0x29a   : > { %7618 = vmatpush.bf16.msra.mxu0 %v15169_v56  ;;  %7631 = vmatpush.bf16.msra.mxu1 %v17217_v60  ;;  %v7367_v56 = vpop.f32.mrf.mxu0  ;;  %v7380_v60 = vpop.f32.mrf.mxu1  ;;  %v14401_v3 = vor.u32 %v20069_v49, %v14398_v51  ;;  %v15933_v49 = vor.u32 %v20485_v23, %v15932_v22  ;;  %v20902_v51 = vld [vmem:[#allocation8 + $0x1e84] sm:$0xf]  ;;  %v17220_v23 = vld [vmem:[#allocation8 + $0x1a80] sm:$0xf] }
 0x29b   : > { %v22203_v55 = vadd.f32 %v7352_v45, %v7340_v50  ;;  %v7341_v29 = vpop.f32.mrf.mxu2  ;;  %v7354_v30 = vpop.f32.mrf.mxu3  ;;  %v20934_v45 = vld [vmem:[#allocation8 + $0x1f7c] sm:$0xf0]  ;;  %v15686_v50 = vld [vmem:[#allocation8 + $0xf80] sm:$0xf0]  ;;  %v15937_v56 = vor.u32 %v20453_v34, %v15934_v36  ;;  %v1585_v36 = vperm.slane %v22173_v38, 7 }
 0x29c   : > { %v15689_v1 = vor.u32 %v20390_v47, %v15686_v50  ;;  %v15174_v29 = vld [vmem:[#allocation8 + $0xb80] sm:$0xf0]  ;;  %v16964_v47 = vld [vmem:[#allocation8 + $0x1880] sm:$0xf] }
 0x29d   : > { %7593 = vmatpush.bf16.msrb.mxu2 %v14909_v8  ;;  %7606 = vmatpush.bf16.msrb.mxu3 %v16957_v9  ;;  %v20005_v8 = vld [vmem:[#allocation8 + $0x27c] sm:$0xf]  ;;  %v20774_v30 = vld [vmem:[#allocation8 + $0x1a84] sm:$0xf] }
 0x29e   : > { %7619 = vmatpush.bf16.msra.mxu0 %v14913_v19  ;;  %7632 = vmatpush.bf16.msra.mxu1 %v16961_v21  ;;  %v14142_v9 = vld [vmem:[#allocation8 + $0x378] sm:$0xf0]  ;;  %v16189_v19 = vor.u32 %v20549_v6, %v16188_v5  ;;  %v19973_v21 = vld [vmem:[#allocation8 + $0x174] sm:$0xf0]  ;;  %v20870_v5 = vld [vmem:[#allocation8 + $0x1d7c] sm:$0xf0] }
 0x29f   : > { %v14145_v24 = vor.u32 %v20005_v8, %v14142_v9  ;;  %v13885_v48 = vor.u32 %v19973_v21, %v13884_v12  ;;  %v20326_v6 = vld [vmem:[#allocation8 + $0xc84] sm:$0xf] }
 0x2a0   : > { %v15430_v8 = vld [vmem:[#allocation8 + $0xd80] sm:$0xf0] }
 0x2a1   : > { %7594 = vmatpush.bf16.msrb.mxu2 %v14653_v27  ;;  %7607 = vmatpush.bf16.msrb.mxu3 %v16701_v32  ;;  %v19941_v27 = vld [vmem:[#allocation8 + $0x7c] sm:$0xf]  ;;  %v20838_v9 = vld [vmem:[#allocation8 + $0x1c84] sm:$0xf]  ;;  %v15433_v21 = vor.u32 %v20326_v6, %v15430_v8  ;;  %v20678_v6 = vld [vmem:[#allocation8 + $0x177c] sm:$0xf0] }
 0x2a2   : > { %7620 = vmatpush.bf16.msra.mxu0 %v14657_v39  ;;  %7633 = vmatpush.bf16.msra.mxu1 %v16705_v41  ;;  %v13886_v32 = vld [vmem:[#allocation8 + $0x178] sm:$0xf0]  ;;  %v15684_v39 = vld [vmem:[#allocation8 + $0xe80] sm:$0xf]  ;;  %v17481_v22 = vor.u32 %v20838_v9, %v17478_v10  ;;  %v14918_v50 = vld [vmem:[#allocation8 + $0x980] sm:$0xf0] }
 0x2a3   : > { %v20422_v41 = vld [vmem:[#allocation8 + $0xf7c] sm:$0xf0]  ;;  %v13889_v54 = vor.u32 %v19941_v27, %v13886_v32  ;;  %v17222_v27 = vld [vmem:[#allocation8 + $0x1b80] sm:$0xf0] }
 0x2a4   : > { %v15685_v60 = vor.u32 %v20422_v41, %v15684_v39  ;;  %v14916_v39 = vld [vmem:[#allocation8 + $0x880] sm:$0xf]  ;;  %v20134_v8 = vld [vmem:[#allocation8 + $0x684] sm:$0xf] }
 0x2a5   : > { %7595 = vmatpush.bf16.msrb.mxu2 %v14397_v62  ;;  %7608 = vmatpush.bf16.msrb.mxu3 %v16445_v63  ;;  %v17733_v62 = vor.u32 %v20934_v45, %v17732_v43  ;;  %v15428_v63 = vld [vmem:[#allocation8 + $0xc80] sm:$0xf]  ;;  %v17225_v45 = vor.u32 %v20774_v30, %v17222_v27  ;;  %v14662_v9 = vld [vmem:[#allocation8 + $0x780] sm:$0xf0] }
 0x2a6   : > { %7621 = vmatpush.bf16.msra.mxu0 %v14401_v3  ;;  %7634 = vmatpush.bf16.msra.mxu1 %v16449_v4  ;;  %v17737_v3 = vor.u32 %v20902_v51, %v17734_v52  ;;  %v17476_v4 = vld [vmem:[#allocation8 + $0x1c80] sm:$0xf]  ;;  %v15429_v42 = vor.u32 %v20358_v0, %v15428_v63  ;;  %v20710_v51 = vld [vmem:[#allocation8 + $0x1884] sm:$0xf] }
 0x2a7   : > { %v17477_v12 = vor.u32 %v20870_v5, %v17476_v4  ;;  %v20230_v41 = vld [vmem:[#allocation8 + $0x97c] sm:$0xf0]  ;;  %v16966_v52 = vld [vmem:[#allocation8 + $0x1980] sm:$0xf0] }
 0x2a8   : > { %v14660_v63 = vld [vmem:[#allocation8 + $0x680] sm:$0xf]  ;;  %v16969_v5 = vor.u32 %v20710_v51, %v16966_v52  ;;  %v20646_v10 = vld [vmem:[#allocation8 + $0x1684] sm:$0xf] }
 0x2a9   : > { %7596 = vmatpush.bf16.msrb.mxu2 %v14141_v16  ;;  %7609 = vmatpush.bf16.msrb.mxu3 %v16189_v19  ;;  %v15172_v16 = vld [vmem:[#allocation8 + $0xa80] sm:$0xf] }
 0x2aa   : > { %7622 = vmatpush.bf16.msra.mxu0 %v14145_v24  ;;  %7635 = vmatpush.bf16.msra.mxu1 %v16193_v26  ;;  %v20294_v19 = vld [vmem:[#allocation8 + $0xb7c] sm:$0xf0]  ;;  %v20262_v26 = vld [vmem:[#allocation8 + $0xa84] sm:$0xf] }
 0x2ab   : > { %v20806_v24 = vld [vmem:[#allocation8 + $0x1b7c] sm:$0xf0]  ;;  %v15173_v32 = vor.u32 %v20294_v19, %v15172_v16  ;;  %v15177_v43 = vor.u32 %v20262_v26, %v15174_v29 }
 0x2ac   : > { %v17221_v34 = vor.u32 %v20806_v24, %v17220_v23  ;;  %v20166_v0 = vld [vmem:[#allocation8 + $0x77c] sm:$0xf0]  ;;  %v14665_v24 = vor.u32 %v20134_v8, %v14662_v9 }
 0x2ad   : > { %7597 = vmatpush.bf16.msrb.mxu2 %v13885_v48  ;;  %7610 = vmatpush.bf16.msrb.mxu3 %v15933_v49  ;;  %v20742_v48 = vld [vmem:[#allocation8 + $0x197c] sm:$0xf0]  ;;  %v20198_v49 = vld [vmem:[#allocation8 + $0x884] sm:$0xf]  ;;  %v14661_v19 = vor.u32 %v20166_v0, %v14660_v63 }
 0x2ae   : > { %7623 = vmatpush.bf16.msra.mxu0 %v13889_v54  ;;  %7636 = vmatpush.bf16.msra.mxu1 %v15937_v56  ;;  %v14921_v4 = vor.u32 %v20198_v49, %v14918_v50  ;;  %v20102_v23 = vld [vmem:[#allocation8 + $0x57c] sm:$0xf0]  ;;  %v14150_v63 = vld [vmem:[#allocation8 + $0x380] sm:$0xf0] }
 0x2af   : > { %v16452_v27 = vld [vmem:[#allocation8 + $0x1480] sm:$0xf]  ;;  %v20518_v0 = vld [vmem:[#allocation8 + $0x1284] sm:$0xf] }
 0x2b0   : > { %7598 = vmatmul.bf16.vlgmr.msrb.gmra.mxu2 %v22069_v2  ;;  %7611 = vmatmul.bf16.vlgmr.msrb.gmra.mxu3 %v22071_v7  ;;  %v7417_v54 = vpop.f32.mrf.mxu0  ;;  %v7430_v56 = vpop.f32.mrf.mxu1  ;;  %v14148_v50 = vld [vmem:[#allocation8 + $0x280] sm:$0xf] }
 0x2b1   : > { %7642 = vmatpush.bf16.msra.mxu2 %v15685_v60  ;;  %7655 = vmatpush.bf16.msra.mxu3 %v17733_v62  ;;  %v14917_v60 = vor.u32 %v20230_v41, %v14916_v39  ;;  %v16965_v62 = vor.u32 %v20742_v48, %v16964_v47  ;;  %v14406_v39 = vld [vmem:[#allocation8 + $0x580] sm:$0xf0]  ;;  %v20038_v51 = vld [vmem:[#allocation8 + $0x37c] sm:$0xf0] }
 0x2b2   : > { %7668 = vmatpush.bf16.msrb.mxu0 %v15689_v1  ;;  %7681 = vmatpush.bf16.msrb.mxu1 %v17737_v3  ;;  %v16708_v1 = vld [vmem:[#allocation8 + $0x1680] sm:$0xf]  ;;  %v7418_v3 = vadd.f32 %v7417_v54, %v1585_v36  ;;  %v16454_v41 = vld [vmem:[#allocation8 + $0x1580] sm:$0xf0] }
 0x2b3   : > { %7624 = vmatmul.bf16.vlgmr.msra.gmra.mxu0 %v22069_v2  ;;  %7637 = vmatmul.bf16.vlgmr.msra.gmra.mxu1 %v22071_v7  ;;  %v7391_v29 = vpop.f32.mrf.mxu2  ;;  %v7404_v30 = vpop.f32.mrf.mxu3  ;;  %v15940_v8 = vld [vmem:[#allocation8 + $0x1080] sm:$0xf] }
 0x2b4   : > { %v22211_v16 = vadd.f32 %v7430_v56, %v7418_v3  ;;  %v16196_v56 = vld [vmem:[#allocation8 + $0x1280] sm:$0xf] }
 0x2b5   : > { %7643 = vmatpush.bf16.msra.mxu2 %v15429_v42  ;;  %7656 = vmatpush.bf16.msra.mxu3 %v17477_v12  ;;  %v16710_v42 = vld [vmem:[#allocation8 + $0x1780] sm:$0xf0]  ;;  %v1584_v12 = vperm.slane %v22173_v38, 6  ;;  %v13892_v3 = vld [vmem:[#allocation8 + $0x80] sm:$0xf] }
 0x2b6   : > { %7669 = vmatpush.bf16.msrb.mxu0 %v15433_v21  ;;  %7682 = vmatpush.bf16.msrb.mxu1 %v17481_v22  ;;  %v16709_v21 = vor.u32 %v20678_v6, %v16708_v1  ;;  %v14404_v22 = vld [vmem:[#allocation8 + $0x480] sm:$0xf]  ;;  %v16713_v26 = vor.u32 %v20646_v10, %v16710_v42  ;;  %v20582_v38 = vld [vmem:[#allocation8 + $0x1484] sm:$0xf] }
 0x2b7   : > { %v7392_v36 = vadd.f32 %v7391_v29, %v1584_v12  ;;  %v14405_v48 = vor.u32 %v20102_v23, %v14404_v22  ;;  %v16457_v54 = vor.u32 %v20582_v38, %v16454_v41  ;;  %v16198_v1 = vld [vmem:[#allocation8 + $0x1380] sm:$0xf0]  ;;  %v19974_v6 = vld [vmem:[#allocation8 + $0x17c] sm:$0xf0]  ;;  %v20423_v29 = vld [vmem:[#allocation8 + $0xf84] sm:$0xf0] }
 0x2b8   : > { %v7432_v47 = vpop.f32.mrf.mxu1  ;;  %v20486_v9 = vld [vmem:[#allocation8 + $0x117c] sm:$0xf0]  ;;  %v16201_v42 = vor.u32 %v20518_v0, %v16198_v1  ;;  %v13894_v22 = vld [vmem:[#allocation8 + $0x180] sm:$0xf0]  ;;  %v20903_v38 = vld [vmem:[#allocation8 + $0x1e8c] sm:$0xf] }
 0x2b9   : > { %7644 = vmatpush.bf16.msra.mxu2 %v15173_v32  ;;  %7657 = vmatpush.bf16.msra.mxu3 %v17221_v34  ;;  %v20614_v32 = vld [vmem:[#allocation8 + $0x157c] sm:$0xf0]  ;;  %v20070_v34 = vld [vmem:[#allocation8 + $0x484] sm:$0xf]  ;;  %v17742_v41 = vld [vmem:[#allocation8 + $0x1f88] sm:$0xf0] }
 0x2ba   : > { %7670 = vmatpush.bf16.msrb.mxu0 %v15177_v43  ;;  %7683 = vmatpush.bf16.msrb.mxu1 %v17225_v45  ;;  %v22213_v43 = vadd.f32 %v7404_v30, %v7392_v36  ;;  %v7419_v45 = vpop.f32.mrf.mxu0  ;;  %v16453_v49 = vor.u32 %v20614_v32, %v16452_v27  ;;  %v14409_v52 = vor.u32 %v20070_v34, %v14406_v39  ;;  %v20454_v23 = vld [vmem:[#allocation8 + $0x1084] sm:$0xf]  ;;  %v17740_v30 = vld [vmem:[#allocation8 + $0x1e88] sm:$0xf]  ;;  %v20391_v32 = vld [vmem:[#allocation8 + $0xe8c] sm:$0xf] }
 0x2bb   : > { %v7393_v12 = vpop.f32.mrf.mxu2  ;;  %v20935_v27 = vld [vmem:[#allocation8 + $0x1f84] sm:$0xf0]  ;;  %v13893_v34 = vor.u32 %v19974_v6, %v13892_v3  ;;  %v15941_v36 = vor.u32 %v20486_v9, %v15940_v8  ;;  %v15694_v39 = vld [vmem:[#allocation8 + $0xf88] sm:$0xf0] }
 0x2bc   : > { %v20839_v0 = vld [vmem:[#allocation8 + $0x1c8c] sm:$0xf]  ;;  %v20295_v6 = vld [vmem:[#allocation8 + $0xb84] sm:$0xf0] }
 0x2bd   : > { %7645 = vmatpush.bf16.msra.mxu2 %v14917_v60  ;;  %7658 = vmatpush.bf16.msra.mxu3 %v16965_v62  ;;  %v20550_v60 = vld [vmem:[#allocation8 + $0x137c] sm:$0xf0]  ;;  %v20006_v62 = vld [vmem:[#allocation8 + $0x284] sm:$0xf]  ;;  %v17486_v1 = vld [vmem:[#allocation8 + $0x1d88] sm:$0xf0] }
 0x2be   : > { %7671 = vmatpush.bf16.msrb.mxu0 %v14921_v4  ;;  %7684 = vmatpush.bf16.msrb.mxu1 %v16969_v5  ;;  %v14149_v4 = vor.u32 %v20038_v51, %v14148_v50  ;;  %v16197_v5 = vor.u32 %v20550_v60, %v16196_v56  ;;  %v14153_v10 = vor.u32 %v20006_v62, %v14150_v63  ;;  %v15436_v50 = vld [vmem:[#allocation8 + $0xc88] sm:$0xf]  ;;  %v20327_v62 = vld [vmem:[#allocation8 + $0xc8c] sm:$0xf] }
 0x2bf   : > { %v20359_v51 = vld [vmem:[#allocation8 + $0xd84] sm:$0xf0]  ;;  %v15438_v63 = vld [vmem:[#allocation8 + $0xd88] sm:$0xf0] }
 0x2c0   : > { %v17484_v56 = vld [vmem:[#allocation8 + $0x1c88] sm:$0xf]  ;;  %v15437_v3 = vor.u32 %v20359_v51, %v15436_v50  ;;  %v15441_v9 = vor.u32 %v20327_v62, %v15438_v63  ;;  %v20263_v12 = vld [vmem:[#allocation8 + $0xa8c] sm:$0xf] }
 0x2c1   : > { %7646 = vmatpush.bf16.msra.mxu2 %v14661_v19  ;;  %7659 = vmatpush.bf16.msra.mxu3 %v16709_v21  ;;  %v7406_v19 = vpop.f32.mrf.mxu3  ;;  %v19942_v21 = vld [vmem:[#allocation8 + $0x84] sm:$0xf]  ;;  %v20871_v60 = vld [vmem:[#allocation8 + $0x1d84] sm:$0xf0] }
 0x2c2   : > { %7672 = vmatpush.bf16.msrb.mxu0 %v14665_v24  ;;  %7685 = vmatpush.bf16.msrb.mxu1 %v16713_v26  ;;  %v15942_v24 = vld [vmem:[#allocation8 + $0x1180] sm:$0xf0]  ;;  %v15692_v26 = vld [vmem:[#allocation8 + $0xe88] sm:$0xf]  ;;  %v13897_v45 = vor.u32 %v19942_v21, %v13894_v22  ;;  %v22215_v19 = vld [vmem:[#allocation10 + $0x18] sm:$0xff] }
 0x2c3   : > { %v15945_v47 = vor.u32 %v20454_v23, %v15942_v24  ;;  %v17228_v8 = vld [vmem:[#allocation8 + $0x1a88] sm:$0xf]  ;;  %v15182_v21 = vld [vmem:[#allocation8 + $0xb88] sm:$0xf0] }
 0x2c4   : > { %v20775_v22 = vld [vmem:[#allocation8 + $0x1a8c] sm:$0xf] }
 0x2c5   : > { %7647 = vmatpush.bf16.msra.mxu2 %v14405_v48  ;;  %7660 = vmatpush.bf16.msra.mxu3 %v16453_v49  ;;  %v15693_v48 = vor.u32 %v20423_v29, %v15692_v26  ;;  %v17741_v49 = vor.u32 %v20935_v27, %v17740_v30  ;;  %v17230_v23 = vld [vmem:[#allocation8 + $0x1b88] sm:$0xf0]  ;;  %v1587_v29 = vperm.slane %v22215_v19, 1  ;;  %v14924_v30 = vld [vmem:[#allocation8 + $0x888] sm:$0xf] }
 0x2c6   : > { %7673 = vmatpush.bf16.msrb.mxu0 %v14409_v52  ;;  %7686 = vmatpush.bf16.msrb.mxu1 %v16457_v54  ;;  %v15697_v52 = vor.u32 %v20391_v32, %v15694_v39  ;;  %v17745_v54 = vor.u32 %v20903_v38, %v17742_v41  ;;  %v20231_v27 = vld [vmem:[#allocation8 + $0x984] sm:$0xf0]  ;;  %v15185_v32 = vor.u32 %v20263_v12, %v15182_v21  ;;  %v20199_v38 = vld [vmem:[#allocation8 + $0x88c] sm:$0xf] }
 0x2c7   : > { %v20743_v39 = vld [vmem:[#allocation8 + $0x1984] sm:$0xf0]  ;;  %v14926_v41 = vld [vmem:[#allocation8 + $0x988] sm:$0xf0]  ;;  %v14925_v50 = vor.u32 %v20231_v27, %v14924_v30 }
 0x2c8   : > { %v14929_v62 = vor.u32 %v20199_v38, %v14926_v41  ;;  %v20103_v12 = vld [vmem:[#allocation8 + $0x584] sm:$0xf0]  ;;  %v20071_v30 = vld [vmem:[#allocation8 + $0x48c] sm:$0xf] }
 0x2c9   : > { %7648 = vmatpush.bf16.msra.mxu2 %v14149_v4  ;;  %7661 = vmatpush.bf16.msra.mxu3 %v16197_v5  ;;  %v17485_v4 = vor.u32 %v20871_v60, %v17484_v56  ;;  %v15180_v5 = vld [vmem:[#allocation8 + $0xa88] sm:$0xf] }
 0x2ca   : > { %7674 = vmatpush.bf16.msrb.mxu0 %v14153_v10  ;;  %7687 = vmatpush.bf16.msrb.mxu1 %v16201_v42  ;;  %v17489_v10 = vor.u32 %v20839_v0, %v17486_v1  ;;  %v20807_v42 = vld [vmem:[#allocation8 + $0x1b84] sm:$0xf0]  ;;  %v15181_v24 = vor.u32 %v20295_v6, %v15180_v5  ;;  %v20135_v1 = vld [vmem:[#allocation8 + $0x68c] sm:$0xf]  ;;  %v1586_v6 = vperm.slane %v22215_v19, 0 }
 0x2cb   : > { %v17229_v26 = vor.u32 %v20807_v42, %v17228_v8  ;;  %v16716_v56 = vld [vmem:[#allocation8 + $0x1688] sm:$0xf]  ;;  %v16718_v5 = vld [vmem:[#allocation8 + $0x1788] sm:$0xf0] }
 0x2cc   : > { %v20679_v0 = vld [vmem:[#allocation8 + $0x1784] sm:$0xf0] }
 0x2cd   : > { %7649 = vmatpush.bf16.msra.mxu2 %v13893_v34  ;;  %7662 = vmatpush.bf16.msra.mxu3 %v15941_v36  ;;  %v17233_v34 = vor.u32 %v20775_v22, %v17230_v23  ;;  %v16972_v36 = vld [vmem:[#allocation8 + $0x1888] sm:$0xf] }
 0x2ce   : > { %7675 = vmatpush.bf16.msrb.mxu0 %v13897_v45  ;;  %7688 = vmatpush.bf16.msrb.mxu1 %v15945_v47  ;;  %v20711_v45 = vld [vmem:[#allocation8 + $0x188c] sm:$0xf]  ;;  %v16973_v51 = vor.u32 %v20743_v39, %v16972_v36  ;;  %v14412_v42 = vld [vmem:[#allocation8 + $0x488] sm:$0xf] }
 0x2cf   : > { %v16974_v47 = vld [vmem:[#allocation8 + $0x1988] sm:$0xf0] }
 0x2d0   : > { %7650 = vmatmul.bf16.vlgmr.msra.gmra.mxu2 %v22069_v2  ;;  %7663 = vmatmul.bf16.vlgmr.msra.gmra.mxu3 %v22071_v7  ;;  %v16977_v63 = vor.u32 %v20711_v45, %v16974_v47  ;;  %v16462_v36 = vld [vmem:[#allocation8 + $0x1588] sm:$0xf0]  ;;  %v14413_v45 = vor.u32 %v20103_v12, %v14412_v42 }
 0x2d1   : > { %7694 = vmatpush.bf16.msrb.mxu2 %v15693_v48  ;;  %7707 = vmatpush.bf16.msrb.mxu3 %v17741_v49  ;;  %v7469_v48 = vpop.f32.mrf.mxu0  ;;  %v7482_v49 = vpop.f32.mrf.mxu1 }
 0x2d2   : > { %7720 = vmatpush.bf16.msra.mxu0 %v15697_v52  ;;  %7733 = vmatpush.bf16.msra.mxu1 %v17745_v54  ;;  %v14668_v52 = vld [vmem:[#allocation8 + $0x688] sm:$0xf]  ;;  %v7470_v60 = vadd.f32 %v7469_v48, %v1587_v29 }
 0x2d3   : > { %7676 = vmatmul.bf16.vlgmr.msrb.gmra.mxu0 %v22069_v2  ;;  %7689 = vmatmul.bf16.vlgmr.msrb.gmra.mxu1 %v22071_v7  ;;  %v20167_v54 = vld [vmem:[#allocation8 + $0x784] sm:$0xf0]  ;;  %v7443_v23 = vpop.f32.mrf.mxu2 }
 0x2d4   : > { %v22223_v8 = vadd.f32 %v7482_v49, %v7470_v60  ;;  %v20615_v29 = vld [vmem:[#allocation8 + $0x1584] sm:$0xf0]  ;;  %v7444_v27 = vadd.f32 %v7443_v23, %v1586_v6  ;;  %v14158_v60 = vld [vmem:[#allocation8 + $0x388] sm:$0xf0] }
 0x2d5   : > { %7695 = vmatpush.bf16.msrb.mxu2 %v15437_v3  ;;  %7708 = vmatpush.bf16.msrb.mxu3 %v17485_v4  ;;  %v14670_v3 = vld [vmem:[#allocation8 + $0x788] sm:$0xf0]  ;;  %v14156_v48 = vld [vmem:[#allocation8 + $0x288] sm:$0xf] }
 0x2d6   : > { %7721 = vmatpush.bf16.msra.mxu0 %v15441_v9  ;;  %7734 = vmatpush.bf16.msra.mxu1 %v17489_v10  ;;  %v20647_v4 = vld [vmem:[#allocation8 + $0x168c] sm:$0xf]  ;;  %v14669_v9 = vor.u32 %v20167_v54, %v14668_v52  ;;  %v16717_v10 = vor.u32 %v20679_v0, %v16716_v56  ;;  %v14673_v21 = vor.u32 %v20135_v1, %v14670_v3  ;;  %v20039_v49 = vld [vmem:[#allocation8 + $0x384] sm:$0xf0] }
 0x2d7   : > { %v16721_v22 = vor.u32 %v20647_v4, %v16718_v5  ;;  %v16204_v52 = vld [vmem:[#allocation8 + $0x1288] sm:$0xf]  ;;  %v20007_v56 = vld [vmem:[#allocation8 + $0x28c] sm:$0xf]  ;;  %v14157_v1 = vor.u32 %v20039_v49, %v14156_v48 }
 0x2d8   : > { %v20551_v54 = vld [vmem:[#allocation8 + $0x1384] sm:$0xf0]  ;;  %v20455_v23 = vld [vmem:[#allocation8 + $0x108c] sm:$0xf] }
 0x2d9   : > { %7696 = vmatpush.bf16.msrb.mxu2 %v15181_v24  ;;  %7709 = vmatpush.bf16.msrb.mxu3 %v17229_v26  ;;  %v7456_v24 = vpop.f32.mrf.mxu3  ;;  %v16460_v26 = vld [vmem:[#allocation8 + $0x1488] sm:$0xf]  ;;  %v7471_v38 = vpop.f32.mrf.mxu0  ;;  %v16205_v3 = vor.u32 %v20551_v54, %v16204_v52  ;;  %v20360_v52 = vld [vmem:[#allocation8 + $0xd8c] sm:$0xf0] }
 0x2da   : > { %7722 = vmatpush.bf16.msra.mxu0 %v15185_v32  ;;  %7735 = vmatpush.bf16.msra.mxu1 %v17233_v34  ;;  %v14414_v32 = vld [vmem:[#allocation8 + $0x588] sm:$0xf0]  ;;  %v22225_v39 = vadd.f32 %v7456_v24, %v7444_v27  ;;  %v7484_v41 = vpop.f32.mrf.mxu1  ;;  %v16461_v47 = vor.u32 %v20615_v29, %v16460_v26  ;;  %v13900_v0 = vld [vmem:[#allocation8 + $0x88] sm:$0xf]  ;;  %v15700_v26 = vld [vmem:[#allocation8 + $0xe90] sm:$0xf] }
 0x2db   : > { %v20583_v34 = vld [vmem:[#allocation8 + $0x148c] sm:$0xf]  ;;  %v19975_v4 = vld [vmem:[#allocation8 + $0x184] sm:$0xf0]  ;;  %v7445_v42 = vpop.f32.mrf.mxu2  ;;  %v20424_v29 = vld [vmem:[#allocation8 + $0xf8c] sm:$0xf0] }
 0x2dc   : > { %v15948_v5 = vld [vmem:[#allocation8 + $0x1088] sm:$0xf]  ;;  %v15950_v24 = vld [vmem:[#allocation8 + $0x1188] sm:$0xf0]  ;;  %v20936_v27 = vld [vmem:[#allocation8 + $0x1f8c] sm:$0xf0]  ;;  %v15701_v49 = vor.u32 %v20424_v29, %v15700_v26 }
 0x2dd   : > { %7697 = vmatpush.bf16.msrb.mxu2 %v14925_v50  ;;  %7710 = vmatpush.bf16.msrb.mxu3 %v16973_v51  ;;  %v14417_v50 = vor.u32 %v20071_v30, %v14414_v32  ;;  %v16465_v51 = vor.u32 %v20583_v34, %v16462_v36  ;;  %v20487_v6 = vld [vmem:[#allocation8 + $0x1184] sm:$0xf0]  ;;  %v17748_v30 = vld [vmem:[#allocation8 + $0x1e90] sm:$0xf]  ;;  %v20392_v32 = vld [vmem:[#allocation8 + $0xe94] sm:$0xf]  ;;  %v13901_v34 = vor.u32 %v19975_v4, %v13900_v0 }
 0x2de   : > { %7723 = vmatpush.bf16.msra.mxu0 %v14929_v62  ;;  %7736 = vmatpush.bf16.msra.mxu1 %v16977_v63  ;;  %v20519_v62 = vld [vmem:[#allocation8 + $0x128c] sm:$0xf]  ;;  %v15949_v36 = vor.u32 %v20487_v6, %v15948_v5  ;;  %v15702_v38 = vld [vmem:[#allocation8 + $0xf90] sm:$0xf0]  ;;  %v15953_v48 = vor.u32 %v20455_v23, %v15950_v24  ;;  %v15188_v6 = vld [vmem:[#allocation8 + $0xa90] sm:$0xf] }
 0x2df   : > { %v16206_v63 = vld [vmem:[#allocation8 + $0x1388] sm:$0xf0]  ;;  %v20904_v41 = vld [vmem:[#allocation8 + $0x1e94] sm:$0xf]  ;;  %v15705_v54 = vor.u32 %v20392_v32, %v15702_v38  ;;  %v14932_v32 = vld [vmem:[#allocation8 + $0x890] sm:$0xf] }
 0x2e0   : > { %v15446_v0 = vld [vmem:[#allocation8 + $0xd90] sm:$0xf0] }
 0x2e1   : > { %7698 = vmatpush.bf16.msrb.mxu2 %v14669_v9  ;;  %7711 = vmatpush.bf16.msrb.mxu3 %v16717_v10  ;;  %v14161_v9 = vor.u32 %v20007_v56, %v14158_v60  ;;  %v16209_v10 = vor.u32 %v20519_v62, %v16206_v63  ;;  %v7458_v12 = vpop.f32.mrf.mxu3  ;;  %v17492_v60 = vld [vmem:[#allocation8 + $0x1c90] sm:$0xf]  ;;  %v20328_v63 = vld [vmem:[#allocation8 + $0xc94] sm:$0xf] }
 0x2e2   : > { %7724 = vmatpush.bf16.msra.mxu0 %v14673_v21  ;;  %7737 = vmatpush.bf16.msra.mxu1 %v16721_v22  ;;  %v19943_v21 = vld [vmem:[#allocation8 + $0x8c] sm:$0xf]  ;;  %v20872_v62 = vld [vmem:[#allocation8 + $0x1d8c] sm:$0xf0]  ;;  %v15190_v23 = vld [vmem:[#allocation8 + $0xb90] sm:$0xf0] }
 0x2e3   : > { %v13902_v22 = vld [vmem:[#allocation8 + $0x188] sm:$0xf0]  ;;  %v17493_v5 = vor.u32 %v20872_v62, %v17492_v60  ;;  %v17236_v12 = vld [vmem:[#allocation8 + $0x1a90] sm:$0xf]  ;;  %v20776_v24 = vld [vmem:[#allocation8 + $0x1a94] sm:$0xf] }
 0x2e4   : > { %v17238_v26 = vld [vmem:[#allocation8 + $0x1b90] sm:$0xf0]  ;;  %v14676_v60 = vld [vmem:[#allocation8 + $0x690] sm:$0xf] }
 0x2e5   : > { %7699 = vmatpush.bf16.msrb.mxu2 %v14413_v45  ;;  %7712 = vmatpush.bf16.msrb.mxu3 %v16461_v47  ;;  %v17750_v45 = vld [vmem:[#allocation8 + $0x1f90] sm:$0xf0]  ;;  %v13905_v47 = vor.u32 %v19943_v21, %v13902_v22  ;;  %v20808_v21 = vld [vmem:[#allocation8 + $0x1b8c] sm:$0xf0]  ;;  %v17241_v38 = vor.u32 %v20776_v24, %v17238_v26 }
 0x2e6   : > { %7725 = vmatpush.bf16.msra.mxu0 %v14417_v50  ;;  %7738 = vmatpush.bf16.msra.mxu1 %v16465_v51  ;;  %v17749_v50 = vor.u32 %v20936_v27, %v17748_v30  ;;  %v15444_v51 = vld [vmem:[#allocation8 + $0xc90] sm:$0xf]  ;;  %v17753_v56 = vor.u32 %v20904_v41, %v17750_v45  ;;  %v20264_v22 = vld [vmem:[#allocation8 + $0xa94] sm:$0xf]  ;;  %v17237_v30 = vor.u32 %v20808_v21, %v17236_v12  ;;  %v1589_v27 = vperm.slane %v22215_v19, 3 }
 0x2e7   : > { %v15445_v4 = vor.u32 %v20360_v52, %v15444_v51  ;;  %v16980_v41 = vld [vmem:[#allocation8 + $0x1890] sm:$0xf] }
 0x2e8   : > { %v20744_v45 = vld [vmem:[#allocation8 + $0x198c] sm:$0xf0] }
 0x2e9   : > { %7700 = vmatpush.bf16.msrb.mxu2 %v14157_v1  ;;  %7713 = vmatpush.bf16.msrb.mxu3 %v16205_v3  ;;  %v20840_v1 = vld [vmem:[#allocation8 + $0x1c94] sm:$0xf]  ;;  %v20168_v62 = vld [vmem:[#allocation8 + $0x78c] sm:$0xf0] }
 0x2ea   : > { %7726 = vmatpush.bf16.msra.mxu0 %v14161_v9  ;;  %7739 = vmatpush.bf16.msra.mxu1 %v16209_v10  ;;  %v17494_v3 = vld [vmem:[#allocation8 + $0x1d90] sm:$0xf0]  ;;  %v20296_v9 = vld [vmem:[#allocation8 + $0xb8c] sm:$0xf0]  ;;  %v15449_v10 = vor.u32 %v20328_v63, %v15446_v0  ;;  %v14677_v21 = vor.u32 %v20168_v62, %v14676_v60 }
 0x2eb   : > { %v17497_v42 = vor.u32 %v20840_v1, %v17494_v3  ;;  %v15189_v29 = vor.u32 %v20296_v9, %v15188_v6  ;;  %v16724_v63 = vld [vmem:[#allocation8 + $0x1690] sm:$0xf]  ;;  %v14678_v6 = vld [vmem:[#allocation8 + $0x790] sm:$0xf0] }
 0x2ec   : > { %v20648_v9 = vld [vmem:[#allocation8 + $0x1694] sm:$0xf]  ;;  %v20104_v24 = vld [vmem:[#allocation8 + $0x58c] sm:$0xf0] }
 0x2ed   : > { %7701 = vmatpush.bf16.msrb.mxu2 %v13901_v34  ;;  %7714 = vmatpush.bf16.msrb.mxu3 %v15949_v36  ;;  %v20232_v34 = vld [vmem:[#allocation8 + $0x98c] sm:$0xf0]  ;;  %v15193_v36 = vor.u32 %v20264_v22, %v15190_v23 }
 0x2ee   : > { %7727 = vmatpush.bf16.msra.mxu0 %v13905_v47  ;;  %7740 = vmatpush.bf16.msra.mxu1 %v15953_v48  ;;  %v20200_v47 = vld [vmem:[#allocation8 + $0x894] sm:$0xf]  ;;  %v14420_v23 = vld [vmem:[#allocation8 + $0x490] sm:$0xf] }
 0x2ef   : > { %v14934_v48 = vld [vmem:[#allocation8 + $0x990] sm:$0xf0] }
 0x2f0   : > { %7702 = vmatmul.bf16.vlgmr.msrb.gmra.mxu2 %v22069_v2  ;;  %7715 = vmatmul.bf16.vlgmr.msrb.gmra.mxu3 %v22071_v7  ;;  %v7521_v51 = vpop.f32.mrf.mxu0  ;;  %v7534_v52 = vpop.f32.mrf.mxu1  ;;  %v14937_v1 = vor.u32 %v20200_v47, %v14934_v48  ;;  %v16470_v47 = vld [vmem:[#allocation8 + $0x1590] sm:$0xf0] }
 0x2f1   : > { %7746 = vmatpush.bf16.msra.mxu2 %v15701_v49  ;;  %7759 = vmatpush.bf16.msra.mxu3 %v17749_v50  ;;  %v20712_v49 = vld [vmem:[#allocation8 + $0x1894] sm:$0xf]  ;;  %v7522_v0 = vadd.f32 %v7521_v51, %v1589_v27  ;;  %v14421_v51 = vor.u32 %v20104_v24, %v14420_v23 }
 0x2f2   : > { %7772 = vmatpush.bf16.msrb.mxu0 %v15705_v54  ;;  %7785 = vmatpush.bf16.msrb.mxu1 %v17753_v56  ;;  %v16982_v50 = vld [vmem:[#allocation8 + $0x1990] sm:$0xf0]  ;;  %v14933_v54 = vor.u32 %v20232_v34, %v14932_v32  ;;  %v16981_v56 = vor.u32 %v20744_v45, %v16980_v41  ;;  %v16468_v32 = vld [vmem:[#allocation8 + $0x1490] sm:$0xf] }
 0x2f3   : > { %7728 = vmatmul.bf16.vlgmr.msra.gmra.mxu0 %v22069_v2  ;;  %7741 = vmatmul.bf16.vlgmr.msra.gmra.mxu1 %v22071_v7  ;;  %v16985_v3 = vor.u32 %v20712_v49, %v16982_v50  ;;  %v22233_v12 = vadd.f32 %v7534_v52, %v7522_v0  ;;  %v7508_v27 = vpop.f32.mrf.mxu3  ;;  %v20616_v34 = vld [vmem:[#allocation8 + $0x158c] sm:$0xf0]  ;;  %v14422_v41 = vld [vmem:[#allocation8 + $0x590] sm:$0xf0] }
 0x2f4   : > { %v20584_v45 = vld [vmem:[#allocation8 + $0x1494] sm:$0xf]  ;;  %v16469_v52 = vor.u32 %v20616_v34, %v16468_v32  ;;  %v20552_v0 = vld [vmem:[#allocation8 + $0x138c] sm:$0xf0] }
 0x2f5   : > { %7747 = vmatpush.bf16.msra.mxu2 %v15445_v4  ;;  %7760 = vmatpush.bf16.msra.mxu3 %v17493_v5  ;;  %v20680_v4 = vld [vmem:[#allocation8 + $0x178c] sm:$0xf0]  ;;  %v20136_v5 = vld [vmem:[#allocation8 + $0x694] sm:$0xf]  ;;  %v16473_v62 = vor.u32 %v20584_v45, %v16470_v47  ;;  %v20937_v45 = vld [vmem:[#allocation8 + $0x1f94] sm:$0xf0] }
 0x2f6   : > { %7773 = vmatpush.bf16.msrb.mxu0 %v15449_v10  ;;  %7786 = vmatpush.bf16.msrb.mxu1 %v17497_v42  ;;  %v16726_v10 = vld [vmem:[#allocation8 + $0x1790] sm:$0xf0]  ;;  %v1588_v42 = vperm.slane %v22215_v19, 2  ;;  %v16725_v22 = vor.u32 %v20680_v4, %v16724_v63  ;;  %v14681_v26 = vor.u32 %v20136_v5, %v14678_v6  ;;  %v16212_v63 = vld [vmem:[#allocation8 + $0x1290] sm:$0xf] }
 0x2f7   : > { %v20520_v4 = vld [vmem:[#allocation8 + $0x1294] sm:$0xf]  ;;  %v13908_v6 = vld [vmem:[#allocation8 + $0x90] sm:$0xf]  ;;  %v20393_v47 = vld [vmem:[#allocation8 + $0xe9c] sm:$0xf] }
 0x2f8   : > { %v7523_v49 = vpop.f32.mrf.mxu0  ;;  %v7536_v50 = vpop.f32.mrf.mxu1  ;;  %v16214_v5 = vld [vmem:[#allocation8 + $0x1390] sm:$0xf0] }
 0x2f9   : > { %7748 = vmatpush.bf16.msra.mxu2 %v15189_v29  ;;  %7761 = vmatpush.bf16.msra.mxu3 %v17237_v30  ;;  %v16729_v29 = vor.u32 %v20648_v9, %v16726_v10  ;;  %v7495_v30 = vpop.f32.mrf.mxu2  ;;  %v16213_v10 = vor.u32 %v20552_v0, %v16212_v63  ;;  %v16217_v24 = vor.u32 %v20520_v4, %v16214_v5  ;;  %v20456_v32 = vld [vmem:[#allocation8 + $0x1094] sm:$0xf]  ;;  %v15452_v0 = vld [vmem:[#allocation8 + $0xc98] sm:$0xf] }
 0x2fa   : > { %7774 = vmatpush.bf16.msrb.mxu0 %v15193_v36  ;;  %7787 = vmatpush.bf16.msrb.mxu1 %v17241_v38  ;;  %v20072_v36 = vld [vmem:[#allocation8 + $0x494] sm:$0xf]  ;;  %v7496_v38 = vadd.f32 %v7495_v30, %v1588_v42  ;;  %v19976_v42 = vld [vmem:[#allocation8 + $0x18c] sm:$0xf0]  ;;  %v17500_v5 = vld [vmem:[#allocation8 + $0x1c98] sm:$0xf] }
 0x2fb   : > { %v14425_v60 = vor.u32 %v20072_v36, %v14422_v41  ;;  %v19944_v30 = vld [vmem:[#allocation8 + $0x94] sm:$0xf]  ;;  %v15708_v36 = vld [vmem:[#allocation8 + $0xe98] sm:$0xf]  ;;  %v13909_v49 = vor.u32 %v19976_v42, %v13908_v6  ;;  %v15454_v6 = vld [vmem:[#allocation8 + $0xd98] sm:$0xf0] }
 0x2fc   : > { %v22235_v48 = vadd.f32 %v7508_v27, %v7496_v38  ;;  %v13910_v27 = vld [vmem:[#allocation8 + $0x190] sm:$0xf0]  ;;  %v20425_v38 = vld [vmem:[#allocation8 + $0xf94] sm:$0xf0] }
 0x2fd   : > { %7749 = vmatpush.bf16.msra.mxu2 %v14933_v54  ;;  %7762 = vmatpush.bf16.msra.mxu3 %v16981_v56  ;;  %v14164_v54 = vld [vmem:[#allocation8 + $0x290] sm:$0xf]  ;;  %v15958_v34 = vld [vmem:[#allocation8 + $0x1190] sm:$0xf0]  ;;  %v17756_v41 = vld [vmem:[#allocation8 + $0x1e98] sm:$0xf] }
 0x2fe   : > { %7775 = vmatpush.bf16.msrb.mxu0 %v14937_v1  ;;  %7788 = vmatpush.bf16.msrb.mxu1 %v16985_v3  ;;  %v20040_v56 = vld [vmem:[#allocation8 + $0x38c] sm:$0xf0]  ;;  %v20008_v1 = vld [vmem:[#allocation8 + $0x294] sm:$0xf]  ;;  %v17757_v63 = vor.u32 %v20937_v45, %v17756_v41  ;;  %v17246_v41 = vld [vmem:[#allocation8 + $0x1b98] sm:$0xf0] }
 0x2ff   : > { %v14166_v3 = vld [vmem:[#allocation8 + $0x390] sm:$0xf0]  ;;  %v14165_v9 = vor.u32 %v20040_v56, %v14164_v54  ;;  %v17758_v54 = vld [vmem:[#allocation8 + $0x1f98] sm:$0xf0]  ;;  %v13913_v56 = vor.u32 %v19944_v30, %v13910_v27  ;;  %v17244_v27 = vld [vmem:[#allocation8 + $0x1a98] sm:$0xf] }
 0x300   : > { %v14169_v23 = vor.u32 %v20008_v1, %v14166_v3  ;;  %v20361_v1 = vld [vmem:[#allocation8 + $0xd94] sm:$0xf0] }
 0x301   : > { %7750 = vmatpush.bf16.msra.mxu2 %v14677_v21  ;;  %7763 = vmatpush.bf16.msra.mxu3 %v16725_v22  ;;  %v15956_v21 = vld [vmem:[#allocation8 + $0x1090] sm:$0xf]  ;;  %v15453_v42 = vor.u32 %v20361_v1, %v15452_v0  ;;  %v20713_v0 = vld [vmem:[#allocation8 + $0x189c] sm:$0xf] }
 0x302   : > { %7776 = vmatpush.bf16.msrb.mxu0 %v14681_v26  ;;  %7789 = vmatpush.bf16.msrb.mxu1 %v16729_v29  ;;  %v20488_v22 = vld [vmem:[#allocation8 + $0x118c] sm:$0xf0]  ;;  %v7497_v26 = vpop.f32.mrf.mxu2  ;;  %v7510_v29 = vpop.f32.mrf.mxu3  ;;  %v16990_v1 = vld [vmem:[#allocation8 + $0x1998] sm:$0xf0] }
 0x303   : > { %v15957_v50 = vor.u32 %v20488_v22, %v15956_v21  ;;  %v20873_v26 = vld [vmem:[#allocation8 + $0x1d94] sm:$0xf0]  ;;  %v20329_v29 = vld [vmem:[#allocation8 + $0xc9c] sm:$0xf] }
 0x304   : > { %v17501_v21 = vor.u32 %v20873_v26, %v17500_v5  ;;  %v15196_v22 = vld [vmem:[#allocation8 + $0xa98] sm:$0xf] }
 0x305   : > { %7751 = vmatpush.bf16.msra.mxu2 %v14421_v51  ;;  %7764 = vmatpush.bf16.msra.mxu3 %v16469_v52  ;;  %v15710_v51 = vld [vmem:[#allocation8 + $0xf98] sm:$0xf0] }
 0x306   : > { %7777 = vmatpush.bf16.msrb.mxu0 %v14425_v60  ;;  %7790 = vmatpush.bf16.msrb.mxu1 %v16473_v62  ;;  %v20905_v52 = vld [vmem:[#allocation8 + $0x1e9c] sm:$0xf]  ;;  %v15961_v60 = vor.u32 %v20456_v32, %v15958_v34  ;;  %v15709_v62 = vor.u32 %v20425_v38, %v15708_v36  ;;  %v15713_v3 = vor.u32 %v20393_v47, %v15710_v51  ;;  %v20809_v32 = vld [vmem:[#allocation8 + $0x1b94] sm:$0xf0] }
 0x307   : > { %v17761_v4 = vor.u32 %v20905_v52, %v17758_v54  ;;  %v20265_v34 = vld [vmem:[#allocation8 + $0xa9c] sm:$0xf]  ;;  %v17245_v47 = vor.u32 %v20809_v32, %v17244_v27  ;;  %v20233_v51 = vld [vmem:[#allocation8 + $0x994] sm:$0xf0]  ;;  %v1590_v32 = vperm.slane %v22215_v19, 4 }
 0x308   : > { %v15198_v36 = vld [vmem:[#allocation8 + $0xb98] sm:$0xf0] }
 0x309   : > { %7752 = vmatpush.bf16.msra.mxu2 %v14165_v9  ;;  %7765 = vmatpush.bf16.msra.mxu3 %v16213_v10  ;;  %v20841_v9 = vld [vmem:[#allocation8 + $0x1c9c] sm:$0xf]  ;;  %v15201_v52 = vor.u32 %v20265_v34, %v15198_v36 }
 0x30a   : > { %7778 = vmatpush.bf16.msrb.mxu0 %v14169_v23  ;;  %7791 = vmatpush.bf16.msrb.mxu1 %v16217_v24  ;;  %v17502_v10 = vld [vmem:[#allocation8 + $0x1d98] sm:$0xf0]  ;;  %v20297_v23 = vld [vmem:[#allocation8 + $0xb94] sm:$0xf0]  ;;  %v15457_v24 = vor.u32 %v20329_v29, %v15454_v6 }
 0x30b   : > { %v17505_v30 = vor.u32 %v20841_v9, %v17502_v10  ;;  %v20777_v38 = vld [vmem:[#allocation8 + $0x1a9c] sm:$0xf]  ;;  %v15197_v45 = vor.u32 %v20297_v23, %v15196_v22  ;;  %v14684_v29 = vld [vmem:[#allocation8 + $0x698] sm:$0xf] }
 0x30c   : > { %v17249_v54 = vor.u32 %v20777_v38, %v17246_v41  ;;  %v20169_v6 = vld [vmem:[#allocation8 + $0x794] sm:$0xf0]  ;;  %v20137_v23 = vld [vmem:[#allocation8 + $0x69c] sm:$0xf] }
 0x30d   : > { %7753 = vmatpush.bf16.msra.mxu2 %v13909_v49  ;;  %7766 = vmatpush.bf16.msra.mxu3 %v15957_v50  ;;  %v1591_v49 = vperm.slane %v22215_v19, 5  ;;  %v14940_v50 = vld [vmem:[#allocation8 + $0x898] sm:$0xf]  ;;  %v16734_v27 = vld [vmem:[#allocation8 + $0x1798] sm:$0xf0]  ;;  %v14685_v36 = vor.u32 %v20169_v6, %v14684_v29 }
 0x30e   : > { %7779 = vmatpush.bf16.msrb.mxu0 %v13913_v56  ;;  %7792 = vmatpush.bf16.msrb.mxu1 %v15961_v60  ;;  %v16988_v56 = vld [vmem:[#allocation8 + $0x1898] sm:$0xf]  ;;  %v14941_v5 = vor.u32 %v20233_v51, %v14940_v50 }
 0x30f   : > { %v20745_v60 = vld [vmem:[#allocation8 + $0x1994] sm:$0xf0] }
 0x310   : > { %7754 = vmatmul.bf16.vlgmr.msra.gmra.mxu2 %v22069_v2  ;;  %7767 = vmatmul.bf16.vlgmr.msra.gmra.mxu3 %v22071_v7  ;;  %v16989_v26 = vor.u32 %v20745_v60, %v16988_v56  ;;  %v16732_v9 = vld [vmem:[#allocation8 + $0x1698] sm:$0xf]  ;;  %v20073_v56 = vld [vmem:[#allocation8 + $0x49c] sm:$0xf] }
 0x311   : > { %7798 = vmatpush.bf16.msrb.mxu2 %v15709_v62  ;;  %7811 = vmatpush.bf16.msrb.mxu3 %v17757_v63  ;;  %v20201_v62 = vld [vmem:[#allocation8 + $0x89c] sm:$0xf]  ;;  %v20681_v22 = vld [vmem:[#allocation8 + $0x1794] sm:$0xf0] }
 0x312   : > { %7824 = vmatpush.bf16.msra.mxu0 %v15713_v3  ;;  %7837 = vmatpush.bf16.msra.mxu1 %v17761_v4  ;;  %v14942_v63 = vld [vmem:[#allocation8 + $0x998] sm:$0xf0]  ;;  %v7573_v3 = vpop.f32.mrf.mxu0  ;;  %v7586_v4 = vpop.f32.mrf.mxu1  ;;  %v16733_v38 = vor.u32 %v20681_v22, %v16732_v9  ;;  %v14428_v41 = vld [vmem:[#allocation8 + $0x498] sm:$0xf] }
 0x313   : > { %7780 = vmatmul.bf16.vlgmr.msrb.gmra.mxu0 %v22069_v2  ;;  %7793 = vmatmul.bf16.vlgmr.msrb.gmra.mxu1 %v22071_v7  ;;  %v7574_v10 = vadd.f32 %v7573_v3, %v1591_v49  ;;  %v7547_v50 = vpop.f32.mrf.mxu2  ;;  %v7560_v51 = vpop.f32.mrf.mxu3  ;;  %v14172_v29 = vld [vmem:[#allocation8 + $0x298] sm:$0xf]  ;;  %v20009_v22 = vld [vmem:[#allocation8 + $0x29c] sm:$0xf] }
 0x314   : > { %v7548_v60 = vadd.f32 %v7547_v50, %v1590_v32  ;;  %v20041_v6 = vld [vmem:[#allocation8 + $0x394] sm:$0xf0] }
 0x315   : > { %7799 = vmatpush.bf16.msrb.mxu2 %v15453_v42  ;;  %7812 = vmatpush.bf16.msrb.mxu3 %v17501_v21  ;;  %v14945_v42 = vor.u32 %v20201_v62, %v14942_v63  ;;  %v16993_v21 = vor.u32 %v20713_v0, %v16990_v1  ;;  %v22243_v34 = vadd.f32 %v7586_v4, %v7574_v10  ;;  %v14430_v62 = vld [vmem:[#allocation8 + $0x598] sm:$0xf0] }
 0x316   : > { %7825 = vmatpush.bf16.msra.mxu0 %v15457_v24  ;;  %7838 = vmatpush.bf16.msra.mxu1 %v17505_v30  ;;  %v14686_v24 = vld [vmem:[#allocation8 + $0x798] sm:$0xf0]  ;;  %v22245_v1 = vadd.f32 %v7560_v51, %v7548_v60  ;;  %v14433_v9 = vor.u32 %v20073_v56, %v14430_v62  ;;  %v14173_v32 = vor.u32 %v20041_v6, %v14172_v29  ;;  %v15716_v62 = vld [vmem:[#allocation8 + $0xea0] sm:$0xf]  ;;  %v15718_v29 = vld [vmem:[#allocation8 + $0xfa0] sm:$0xf0] }
 0x317   : > { %v20649_v30 = vld [vmem:[#allocation8 + $0x169c] sm:$0xf]  ;;  %22556 = vst [vmem:[#allocation20_spill] sm:$0xff] %v22243_v34  ;;  %v20906_v6 = vld [vmem:[#allocation8 + $0x1ea4] sm:$0xf] }
 0x318   : > { %v16737_v49 = vor.u32 %v20649_v30, %v16734_v27  ;;  %v20585_v63 = vld [vmem:[#allocation8 + $0x149c] sm:$0xf]  ;;  %22557 = vst [vmem:[#allocation21_spill] sm:$0xff] %v22245_v1  ;;  %v13916_v27 = vld [vmem:[#allocation8 + $0x98] sm:$0xf] }
 0x319   : > { %7800 = vmatpush.bf16.msrb.mxu2 %v15197_v45  ;;  %7813 = vmatpush.bf16.msrb.mxu3 %v17245_v47  ;;  %v20105_v45 = vld [vmem:[#allocation8 + $0x594] sm:$0xf0]  ;;  %v14689_v47 = vor.u32 %v20137_v23, %v14686_v24  ;;  %v16478_v0 = vld [vmem:[#allocation8 + $0x1598] sm:$0xf0]  ;;  %v20874_v1 = vld [vmem:[#allocation8 + $0x1d9c] sm:$0xf0] }
 0x31a   : > { %7826 = vmatpush.bf16.msra.mxu0 %v15201_v52  ;;  %7839 = vmatpush.bf16.msra.mxu1 %v17249_v54  ;;  %v16476_v52 = vld [vmem:[#allocation8 + $0x1498] sm:$0xf]  ;;  %v7575_v3 = vpop.f32.mrf.mxu0  ;;  %v7588_v4 = vpop.f32.mrf.mxu1  ;;  %v16481_v10 = vor.u32 %v20585_v63, %v16478_v0  ;;  %v14174_v23 = vld [vmem:[#allocation8 + $0x398] sm:$0xf0]  ;;  %v20426_v63 = vld [vmem:[#allocation8 + $0xf9c] sm:$0xf0] }
 0x31b   : > { %v20617_v54 = vld [vmem:[#allocation8 + $0x1594] sm:$0xf0]  ;;  %v20521_v24 = vld [vmem:[#allocation8 + $0x129c] sm:$0xf]  ;;  %v7549_v50 = vpop.f32.mrf.mxu2  ;;  %v7562_v51 = vpop.f32.mrf.mxu3  ;;  %v17764_v0 = vld [vmem:[#allocation8 + $0x1ea0] sm:$0xf] }
 0x31c   : > { %v16222_v30 = vld [vmem:[#allocation8 + $0x1398] sm:$0xf0]  ;;  %v20938_v3 = vld [vmem:[#allocation8 + $0x1f9c] sm:$0xf0]  ;;  %v20394_v4 = vld [vmem:[#allocation8 + $0xea4] sm:$0xf] }
 0x31d   : > { %7801 = vmatpush.bf16.msrb.mxu2 %v14941_v5  ;;  %7814 = vmatpush.bf16.msrb.mxu3 %v16989_v26  ;;  %v14429_v5 = vor.u32 %v20105_v45, %v14428_v41  ;;  %v16477_v26 = vor.u32 %v20617_v54, %v16476_v52  ;;  %v15964_v41 = vld [vmem:[#allocation8 + $0x1098] sm:$0xf]  ;;  %v19945_v52 = vld [vmem:[#allocation8 + $0x9c] sm:$0xf]  ;;  %v17508_v51 = vld [vmem:[#allocation8 + $0x1ca0] sm:$0xf] }
 0x31e   : > { %7827 = vmatpush.bf16.msra.mxu0 %v14945_v42  ;;  %7840 = vmatpush.bf16.msra.mxu1 %v16993_v21  ;;  %v16220_v42 = vld [vmem:[#allocation8 + $0x1298] sm:$0xf]  ;;  %v13918_v54 = vld [vmem:[#allocation8 + $0x198] sm:$0xf0]  ;;  %v20330_v34 = vld [vmem:[#allocation8 + $0xca4] sm:$0xf] }
 0x31f   : > { %v20553_v21 = vld [vmem:[#allocation8 + $0x1394] sm:$0xf0]  ;;  %v20457_v56 = vld [vmem:[#allocation8 + $0x109c] sm:$0xf] }
 0x320   : > { %v20489_v45 = vld [vmem:[#allocation8 + $0x1194] sm:$0xf0]  ;;  %v15966_v60 = vld [vmem:[#allocation8 + $0x1198] sm:$0xf0] }
 0x321   : > { %7802 = vmatpush.bf16.msrb.mxu2 %v14685_v36  ;;  %7815 = vmatpush.bf16.msrb.mxu3 %v16733_v38  ;;  %v16221_v36 = vor.u32 %v20553_v21, %v16220_v42  ;;  %v19977_v38 = vld [vmem:[#allocation8 + $0x194] sm:$0xf0]  ;;  %v15969_v42 = vor.u32 %v20457_v56, %v15966_v60  ;;  %v15717_v21 = vor.u32 %v20426_v63, %v15716_v62  ;;  %v20810_v56 = vld [vmem:[#allocation8 + $0x1b9c] sm:$0xf0]  ;;  %v20266_v60 = vld [vmem:[#allocation8 + $0xaa4] sm:$0xf] }
 0x322   : > { %7828 = vmatpush.bf16.msra.mxu0 %v14689_v47  ;;  %7841 = vmatpush.bf16.msra.mxu1 %v16737_v49  ;;  %v14177_v47 = vor.u32 %v20009_v22, %v14174_v23  ;;  %v16225_v49 = vor.u32 %v20521_v24, %v16222_v30  ;;  %v17765_v22 = vor.u32 %v20938_v3, %v17764_v0  ;;  %v15460_v23 = vld [vmem:[#allocation8 + $0xca0] sm:$0xf]  ;;  %v15206_v62 = vld [vmem:[#allocation8 + $0xba0] sm:$0xf0] }
 0x323   : > { %v20362_v24 = vld [vmem:[#allocation8 + $0xd9c] sm:$0xf0]  ;;  %v15721_v30 = vor.u32 %v20394_v4, %v15718_v29  ;;  %v20778_v63 = vld [vmem:[#allocation8 + $0x1aa4] sm:$0xf] }
 0x324   : > { %v17254_v0 = vld [vmem:[#allocation8 + $0x1ba0] sm:$0xf0]  ;;  %v14948_v4 = vld [vmem:[#allocation8 + $0x8a0] sm:$0xf] }
 0x325   : > { %7803 = vmatpush.bf16.msrb.mxu2 %v14429_v5  ;;  %7816 = vmatpush.bf16.msrb.mxu3 %v16477_v26  ;;  %v13917_v5 = vor.u32 %v19977_v38, %v13916_v27  ;;  %v15965_v26 = vor.u32 %v20489_v45, %v15964_v41  ;;  %v15462_v27 = vld [vmem:[#allocation8 + $0xda0] sm:$0xf0]  ;;  %v15461_v38 = vor.u32 %v20362_v24, %v15460_v23  ;;  %v15204_v45 = vld [vmem:[#allocation8 + $0xaa0] sm:$0xf] }
 0x326   : > { %7829 = vmatpush.bf16.msra.mxu0 %v14433_v9  ;;  %7842 = vmatpush.bf16.msra.mxu1 %v16481_v10  ;;  %v17766_v9 = vld [vmem:[#allocation8 + $0x1fa0] sm:$0xf0]  ;;  %v13921_v10 = vor.u32 %v19945_v52, %v13918_v54  ;;  %v17509_v41 = vor.u32 %v20874_v1, %v17508_v51  ;;  %v17252_v54 = vld [vmem:[#allocation8 + $0x1aa0] sm:$0xf]  ;;  %v17257_v29 = vor.u32 %v20778_v63, %v17254_v0 }
 0x327   : > { %v17769_v50 = vor.u32 %v20906_v6, %v17766_v9  ;;  %v17253_v3 = vor.u32 %v20810_v56, %v17252_v54  ;;  %v16996_v6 = vld [vmem:[#allocation8 + $0x18a0] sm:$0xf]  ;;  %v16742_v54 = vld [vmem:[#allocation8 + $0x17a0] sm:$0xf0]  ;;  %v1592_v56 = vperm.slane %v22215_v19, 6 }
 0x328   : > { %v20746_v9 = vld [vmem:[#allocation8 + $0x199c] sm:$0xf0] }
 0x329   : > { %7804 = vmatpush.bf16.msrb.mxu2 %v14173_v32  ;;  %7817 = vmatpush.bf16.msrb.mxu3 %v16221_v36  ;;  %v20842_v32 = vld [vmem:[#allocation8 + $0x1ca4] sm:$0xf]  ;;  %v14692_v51 = vld [vmem:[#allocation8 + $0x6a0] sm:$0xf] }
 0x32a   : > { %7830 = vmatpush.bf16.msra.mxu0 %v14177_v47  ;;  %7843 = vmatpush.bf16.msra.mxu1 %v16225_v49  ;;  %v17510_v36 = vld [vmem:[#allocation8 + $0x1da0] sm:$0xf0]  ;;  %v20298_v47 = vld [vmem:[#allocation8 + $0xb9c] sm:$0xf0]  ;;  %v15465_v49 = vor.u32 %v20330_v34, %v15462_v27  ;;  %v1593_v34 = vperm.slane %v22215_v19, 7 }
 0x32b   : > { %v17513_v52 = vor.u32 %v20842_v32, %v17510_v36  ;;  %v15205_v1 = vor.u32 %v20298_v47, %v15204_v45  ;;  %v20170_v27 = vld [vmem:[#allocation8 + $0x79c] sm:$0xf0]  ;;  %v20138_v47 = vld [vmem:[#allocation8 + $0x6a4] sm:$0xf] }
 0x32c   : > { %v16740_v32 = vld [vmem:[#allocation8 + $0x16a0] sm:$0xf]  ;;  %v20586_v19 = vld [vmem:[#allocation8 + $0x14a4] sm:$0xf] }
 0x32d   : > { %7805 = vmatpush.bf16.msrb.mxu2 %v13917_v5  ;;  %7818 = vmatpush.bf16.msrb.mxu3 %v15965_v26  ;;  %v20234_v5 = vld [vmem:[#allocation8 + $0x99c] sm:$0xf0]  ;;  %v15209_v26 = vor.u32 %v20266_v60, %v15206_v62  ;;  %v14693_v62 = vor.u32 %v20170_v27, %v14692_v51 }
 0x32e   : > { %7831 = vmatpush.bf16.msra.mxu0 %v13921_v10  ;;  %7844 = vmatpush.bf16.msra.mxu1 %v15969_v42  ;;  %v20202_v10 = vld [vmem:[#allocation8 + $0x8a4] sm:$0xf]  ;;  %v20682_v45 = vld [vmem:[#allocation8 + $0x179c] sm:$0xf0] }
 0x32f   : > { %v14950_v42 = vld [vmem:[#allocation8 + $0x9a0] sm:$0xf0]  ;;  %v16741_v63 = vor.u32 %v20682_v45, %v16740_v32  ;;  %v14436_v0 = vld [vmem:[#allocation8 + $0x4a0] sm:$0xf] }
 0x330   : > { %7806 = vmatmul.bf16.vlgmr.msrb.gmra.mxu2 %v22069_v2  ;;  %7819 = vmatmul.bf16.vlgmr.msrb.gmra.mxu3 %v22071_v7  ;;  %v7625_v23 = vpop.f32.mrf.mxu0  ;;  %v7638_v24 = vpop.f32.mrf.mxu1  ;;  %v20042_v51 = vld [vmem:[#allocation8 + $0x39c] sm:$0xf0]  ;;  %v14182_v45 = vld [vmem:[#allocation8 + $0x3a0] sm:$0xf0] }
 0x331   : > { %7850 = vmatpush.bf16.msra.mxu2 %v15717_v21  ;;  %7863 = vmatpush.bf16.msra.mxu3 %v17765_v22  ;;  %v20714_v21 = vld [vmem:[#allocation8 + $0x18a4] sm:$0xf]  ;;  %v7626_v36 = vadd.f32 %v7625_v23, %v1593_v34 }
 0x332   : > { %7876 = vmatpush.bf16.msrb.mxu0 %v15721_v30  ;;  %7889 = vmatpush.bf16.msrb.mxu1 %v17769_v50  ;;  %v16998_v22 = vld [vmem:[#allocation8 + $0x19a0] sm:$0xf0]  ;;  %v14949_v30 = vor.u32 %v20234_v5, %v14948_v4  ;;  %v16997_v50 = vor.u32 %v20746_v9, %v16996_v6 }
 0x333   : > { %7832 = vmatmul.bf16.vlgmr.msra.gmra.mxu0 %v22069_v2  ;;  %7845 = vmatmul.bf16.vlgmr.msra.gmra.mxu1 %v22071_v7  ;;  %v22253_v60 = vadd.f32 %v7638_v24, %v7626_v36  ;;  %v7599_v4 = vpop.f32.mrf.mxu2  ;;  %v7612_v5 = vpop.f32.mrf.mxu3  ;;  %v20074_v6 = vld [vmem:[#allocation8 + $0x4a4] sm:$0xf]  ;;  %v16228_v36 = vld [vmem:[#allocation8 + $0x12a0] sm:$0xf] }
 0x334   : > { %v7600_v9 = vadd.f32 %v7599_v4, %v1592_v56 }
 0x335   : > { %7851 = vmatpush.bf16.msra.mxu2 %v15461_v38  ;;  %7864 = vmatpush.bf16.msra.mxu3 %v17509_v41  ;;  %v14953_v38 = vor.u32 %v20202_v10, %v14950_v42  ;;  %v17001_v41 = vor.u32 %v20714_v21, %v16998_v22  ;;  %22558 = vst [vmem:[#allocation22_spill] sm:$0xff] %v22253_v60  ;;  %v14438_v10 = vld [vmem:[#allocation8 + $0x5a0] sm:$0xf0]  ;;  %v20332_v60 = vld [vmem:[#allocation8 + $0xcb4] sm:$0xf] }
 0x336   : > { %7877 = vmatpush.bf16.msrb.mxu0 %v15465_v49  ;;  %7890 = vmatpush.bf16.msrb.mxu1 %v17513_v52  ;;  %v14694_v49 = vld [vmem:[#allocation8 + $0x7a0] sm:$0xf0]  ;;  %v22255_v21 = vadd.f32 %v7612_v5, %v7600_v9  ;;  %v14441_v27 = vor.u32 %v20074_v6, %v14438_v10  ;;  %v15724_v9 = vld [vmem:[#allocation8 + $0xea8] sm:$0xf] }
 0x337   : > { %v20650_v52 = vld [vmem:[#allocation8 + $0x16a4] sm:$0xf]  ;;  %v20427_v10 = vld [vmem:[#allocation8 + $0xfa4] sm:$0xf0] }
 0x338   : > { %v16745_v34 = vor.u32 %v20650_v52, %v16742_v54  ;;  %v16486_v42 = vld [vmem:[#allocation8 + $0x15a0] sm:$0xf0]  ;;  %22559 = vst [vmem:[#allocation23_spill] sm:$0xff] %v22255_v21  ;;  %v7627_v22 = vpop.f32.mrf.mxu0  ;;  %v7640_v23 = vpop.f32.mrf.mxu1  ;;  %v13924_v52 = vld [vmem:[#allocation8 + $0xa0] sm:$0xf] }
 0x339   : > { %7852 = vmatpush.bf16.msra.mxu2 %v15205_v1  ;;  %7865 = vmatpush.bf16.msra.mxu3 %v17253_v3  ;;  %v20106_v1 = vld [vmem:[#allocation8 + $0x59c] sm:$0xf0]  ;;  %v14697_v3 = vor.u32 %v20138_v47, %v14694_v49  ;;  %v16489_v32 = vor.u32 %v20586_v19, %v16486_v42  ;;  %v20522_v47 = vld [vmem:[#allocation8 + $0x12a4] sm:$0xf]  ;;  %v17772_v19 = vld [vmem:[#allocation8 + $0x1ea8] sm:$0xf] }
 0x33a   : > { %7878 = vmatpush.bf16.msrb.mxu0 %v15209_v26  ;;  %7891 = vmatpush.bf16.msrb.mxu1 %v17257_v29  ;;  %v16484_v26 = vld [vmem:[#allocation8 + $0x14a0] sm:$0xf]  ;;  %v14437_v24 = vor.u32 %v20106_v1, %v14436_v0  ;;  %v16230_v49 = vld [vmem:[#allocation8 + $0x13a0] sm:$0xf0]  ;;  %v20939_v42 = vld [vmem:[#allocation8 + $0x1fa4] sm:$0xf0] }
 0x33b   : > { %v20618_v29 = vld [vmem:[#allocation8 + $0x159c] sm:$0xf0]  ;;  %v7614_v4 = vpop.f32.mrf.mxu3  ;;  %v19946_v5 = vld [vmem:[#allocation8 + $0xa4] sm:$0xf]  ;;  %v20395_v22 = vld [vmem:[#allocation8 + $0xeac] sm:$0xf] }
 0x33c   : > { %v20490_v0 = vld [vmem:[#allocation8 + $0x119c] sm:$0xf0]  ;;  %v15974_v6 = vld [vmem:[#allocation8 + $0x11a0] sm:$0xf0]  ;;  %v20875_v4 = vld [vmem:[#allocation8 + $0x1da4] sm:$0xf0] }
 0x33d   : > { %7853 = vmatpush.bf16.msra.mxu2 %v14949_v30  ;;  %7866 = vmatpush.bf16.msra.mxu3 %v16997_v50  ;;  %v16485_v30 = vor.u32 %v20618_v29, %v16484_v26  ;;  %v14180_v50 = vld [vmem:[#allocation8 + $0x2a0] sm:$0xf]  ;;  %v13926_v26 = vld [vmem:[#allocation8 + $0x1a0] sm:$0xf0]  ;;  %v20331_v21 = vld [vmem:[#allocation8 + $0xcac] sm:$0xf] }
 0x33e   : > { %7879 = vmatpush.bf16.msrb.mxu0 %v14953_v38  ;;  %7892 = vmatpush.bf16.msrb.mxu1 %v17001_v41  ;;  %v20554_v38 = vld [vmem:[#allocation8 + $0x139c] sm:$0xf0]  ;;  %v20010_v41 = vld [vmem:[#allocation8 + $0x2a4] sm:$0xf]  ;;  %v14181_v54 = vor.u32 %v20042_v51, %v14180_v50  ;;  %v20907_v50 = vld [vmem:[#allocation8 + $0x1eac] sm:$0xf] }
 0x33f   : > { %v16229_v56 = vor.u32 %v20554_v38, %v16228_v36  ;;  %v14185_v1 = vor.u32 %v20010_v41, %v14182_v45  ;;  %v20458_v29 = vld [vmem:[#allocation8 + $0x10a4] sm:$0xf]  ;;  %v17774_v51 = vld [vmem:[#allocation8 + $0x1fa8] sm:$0xf0]  ;;  %v15725_v36 = vor.u32 %v20427_v10, %v15724_v9  ;;  %v17773_v38 = vor.u32 %v20939_v42, %v17772_v19  ;;  %v15468_v41 = vld [vmem:[#allocation8 + $0xca8] sm:$0xf] }
 0x340   : > { %v20363_v45 = vld [vmem:[#allocation8 + $0xda4] sm:$0xf0]  ;;  %v22257_v9 = vld [vmem:[#allocation10 + $0x20] sm:$0xff]  ;;  %v15214_v10 = vld [vmem:[#allocation8 + $0xba8] sm:$0xf0] }
 0x341   : > { %7854 = vmatpush.bf16.msra.mxu2 %v14693_v62  ;;  %7867 = vmatpush.bf16.msra.mxu3 %v16741_v63  ;;  %v19978_v62 = vld [vmem:[#allocation8 + $0x19c] sm:$0xf0]  ;;  %v20779_v19 = vld [vmem:[#allocation8 + $0x1aac] sm:$0xf] }
 0x342   : > { %7880 = vmatpush.bf16.msrb.mxu0 %v14697_v3  ;;  %7893 = vmatpush.bf16.msrb.mxu1 %v16745_v34  ;;  %v15972_v63 = vld [vmem:[#allocation8 + $0x10a0] sm:$0xf]  ;;  %v16233_v3 = vor.u32 %v20522_v47, %v16230_v49  ;;  %v7601_v34 = vpop.f32.mrf.mxu2  ;;  %v13925_v23 = vor.u32 %v19978_v62, %v13924_v52  ;;  %v17777_v49 = vor.u32 %v20907_v50, %v17774_v51  ;;  %v15470_v52 = vld [vmem:[#allocation8 + $0xda8] sm:$0xf0] }
 0x343   : > { %v17516_v34 = vld [vmem:[#allocation8 + $0x1ca8] sm:$0xf]  ;;  %v15469_v62 = vor.u32 %v20363_v45, %v15468_v41  ;;  %v17262_v42 = vld [vmem:[#allocation8 + $0x1ba8] sm:$0xf0] }
 0x344   : > { %v17265_v51 = vor.u32 %v20779_v19, %v17262_v42  ;;  %v20715_v41 = vld [vmem:[#allocation8 + $0x18ac] sm:$0xf] }
 0x345   : > { %7855 = vmatpush.bf16.msra.mxu2 %v14437_v24  ;;  %7868 = vmatpush.bf16.msra.mxu3 %v16485_v30  ;;  %v15973_v24 = vor.u32 %v20490_v0, %v15972_v63  ;;  %v15726_v30 = vld [vmem:[#allocation8 + $0xfa8] sm:$0xf0]  ;;  %v17517_v63 = vor.u32 %v20875_v4, %v17516_v34  ;;  %v15212_v0 = vld [vmem:[#allocation8 + $0xaa8] sm:$0xf] }
 0x346   : > { %7881 = vmatpush.bf16.msrb.mxu0 %v14441_v27  ;;  %7894 = vmatpush.bf16.msrb.mxu1 %v16489_v32  ;;  %v13929_v27 = vor.u32 %v19946_v5, %v13926_v26  ;;  %v15977_v32 = vor.u32 %v20458_v29, %v15974_v6  ;;  %v15729_v47 = vor.u32 %v20395_v22, %v15726_v30  ;;  %v20811_v29 = vld [vmem:[#allocation8 + $0x1ba4] sm:$0xf0]  ;;  %v20267_v6 = vld [vmem:[#allocation8 + $0xaac] sm:$0xf] }
 0x347   : > { %v15473_v5 = vor.u32 %v20331_v21, %v15470_v52  ;;  %v20235_v30 = vld [vmem:[#allocation8 + $0x9a4] sm:$0xf0]  ;;  %v15217_v50 = vor.u32 %v20267_v6, %v15214_v10  ;;  %v17006_v45 = vld [vmem:[#allocation8 + $0x19a8] sm:$0xf0]  ;;  %v1594_v6 = vperm.slane %v22257_v9, 0 }
 0x348   : > { %v14700_v52 = vld [vmem:[#allocation8 + $0x6a8] sm:$0xf] }
 0x349   : > { %7856 = vmatpush.bf16.msra.mxu2 %v14181_v54  ;;  %7869 = vmatpush.bf16.msra.mxu3 %v16229_v56  ;;  %v20843_v54 = vld [vmem:[#allocation8 + $0x1cac] sm:$0xf] }
 0x34a   : > { %7882 = vmatpush.bf16.msrb.mxu0 %v14185_v1  ;;  %7895 = vmatpush.bf16.msrb.mxu1 %v16233_v3  ;;  %v17518_v56 = vld [vmem:[#allocation8 + $0x1da8] sm:$0xf0]  ;;  %v20299_v1 = vld [vmem:[#allocation8 + $0xba4] sm:$0xf0] }
 0x34b   : > { %v17260_v3 = vld [vmem:[#allocation8 + $0x1aa8] sm:$0xf]  ;;  %v17521_v26 = vor.u32 %v20843_v54, %v17518_v56  ;;  %v15213_v22 = vor.u32 %v20299_v1, %v15212_v0  ;;  %v17009_v0 = vor.u32 %v20715_v41, %v17006_v45  ;;  %v20587_v41 = vld [vmem:[#allocation8 + $0x14ac] sm:$0xf] }
 0x34c   : > { %v17261_v21 = vor.u32 %v20811_v29, %v17260_v3  ;;  %v20171_v54 = vld [vmem:[#allocation8 + $0x7a4] sm:$0xf0]  ;;  %v20139_v3 = vld [vmem:[#allocation8 + $0x6ac] sm:$0xf] }
 0x34d   : > { %7857 = vmatpush.bf16.msra.mxu2 %v13925_v23  ;;  %7870 = vmatpush.bf16.msra.mxu3 %v15973_v24  ;;  %v1595_v23 = vperm.slane %v22257_v9, 1  ;;  %v14956_v24 = vld [vmem:[#allocation8 + $0x8a8] sm:$0xf]  ;;  %v16750_v29 = vld [vmem:[#allocation8 + $0x17a8] sm:$0xf0]  ;;  %v14701_v19 = vor.u32 %v20171_v54, %v14700_v52 }
 0x34e   : > { %7883 = vmatpush.bf16.msrb.mxu0 %v13929_v27  ;;  %7896 = vmatpush.bf16.msrb.mxu1 %v15977_v32  ;;  %v17004_v27 = vld [vmem:[#allocation8 + $0x18a8] sm:$0xf]  ;;  %v14957_v34 = vor.u32 %v20235_v30, %v14956_v24  ;;  %v16494_v45 = vld [vmem:[#allocation8 + $0x15a8] sm:$0xf0] }
 0x34f   : > { %v20747_v32 = vld [vmem:[#allocation8 + $0x19a4] sm:$0xf0] }
 0x350   : > { %7858 = vmatmul.bf16.vlgmr.msra.gmra.mxu2 %v22069_v2  ;;  %7871 = vmatmul.bf16.vlgmr.msra.gmra.mxu3 %v22071_v7  ;;  %v17005_v4 = vor.u32 %v20747_v32, %v17004_v27  ;;  %v16748_v56 = vld [vmem:[#allocation8 + $0x16a8] sm:$0xf]  ;;  %v20075_v32 = vld [vmem:[#allocation8 + $0x4ac] sm:$0xf] }
 0x351   : > { %7902 = vmatpush.bf16.msrb.mxu2 %v15725_v36  ;;  %7915 = vmatpush.bf16.msrb.mxu3 %v17773_v38  ;;  %v20203_v36 = vld [vmem:[#allocation8 + $0x8ac] sm:$0xf]  ;;  %v20683_v1 = vld [vmem:[#allocation8 + $0x17a4] sm:$0xf0] }
 0x352   : > { %7928 = vmatpush.bf16.msra.mxu0 %v15729_v47  ;;  %7941 = vmatpush.bf16.msra.mxu1 %v17777_v49  ;;  %v14958_v38 = vld [vmem:[#allocation8 + $0x9a8] sm:$0xf0]  ;;  %v7677_v47 = vpop.f32.mrf.mxu0  ;;  %v7690_v49 = vpop.f32.mrf.mxu1  ;;  %v16749_v42 = vor.u32 %v20683_v1, %v16748_v56  ;;  %v20619_v27 = vld [vmem:[#allocation8 + $0x15a4] sm:$0xf0] }
 0x353   : > { %7884 = vmatmul.bf16.vlgmr.msrb.gmra.mxu0 %v22069_v2  ;;  %7897 = vmatmul.bf16.vlgmr.msrb.gmra.mxu1 %v22071_v7  ;;  %v7651_v30 = vpop.f32.mrf.mxu2  ;;  %v14188_v54 = vld [vmem:[#allocation8 + $0x2a8] sm:$0xf] }
 0x354   : > { %v20043_v56 = vld [vmem:[#allocation8 + $0x3a4] sm:$0xf0] }
 0x355   : > { %7903 = vmatpush.bf16.msrb.mxu2 %v15469_v62  ;;  %7916 = vmatpush.bf16.msrb.mxu3 %v17517_v63  ;;  %v7678_v62 = vadd.f32 %v7677_v47, %v1595_v23  ;;  %v14961_v63 = vor.u32 %v20203_v36, %v14958_v38  ;;  %v7652_v36 = vadd.f32 %v7651_v30, %v1594_v6  ;;  %v14446_v38 = vld [vmem:[#allocation8 + $0x5a8] sm:$0xf0]  ;;  %v20555_v1 = vld [vmem:[#allocation8 + $0x13a4] sm:$0xf0] }
 0x356   : > { %7929 = vmatpush.bf16.msra.mxu0 %v15473_v5  ;;  %7942 = vmatpush.bf16.msra.mxu1 %v17521_v26  ;;  %v14702_v5 = vld [vmem:[#allocation8 + $0x7a8] sm:$0xf0]  ;;  %v13932_v6 = vld [vmem:[#allocation8 + $0xa8] sm:$0xf] }
 0x357   : > { %v20651_v26 = vld [vmem:[#allocation8 + $0x16ac] sm:$0xf]  ;;  %v22265_v10 = vadd.f32 %v7690_v49, %v7678_v62  ;;  %v14705_v23 = vor.u32 %v20139_v3, %v14702_v5  ;;  %v14449_v62 = vor.u32 %v20075_v32, %v14446_v38  ;;  %v19979_v30 = vld [vmem:[#allocation8 + $0x1a4] sm:$0xf0] }
 0x358   : > { %v16753_v24 = vor.u32 %v20651_v26, %v16750_v29  ;;  %v20011_v3 = vld [vmem:[#allocation8 + $0x2ac] sm:$0xf] }
 0x359   : > { %7904 = vmatpush.bf16.msrb.mxu2 %v15213_v22  ;;  %7917 = vmatpush.bf16.msrb.mxu3 %v17261_v21  ;;  %22560 = vst [vmem:[#allocation24_spill] sm:$0xff] %v22265_v10  ;;  %v14444_v22 = vld [vmem:[#allocation8 + $0x4a8] sm:$0xf]  ;;  %v14190_v5 = vld [vmem:[#allocation8 + $0x3a8] sm:$0xf0] }
 0x35a   : > { %7930 = vmatpush.bf16.msra.mxu0 %v15217_v50  ;;  %7943 = vmatpush.bf16.msra.mxu1 %v17265_v51  ;;  %v20107_v21 = vld [vmem:[#allocation8 + $0x5a4] sm:$0xf0]  ;;  %v7664_v50 = vpop.f32.mrf.mxu3  ;;  %v7679_v49 = vpop.f32.mrf.mxu0  ;;  %v20523_v26 = vld [vmem:[#allocation8 + $0x12ac] sm:$0xf]  ;;  %v20876_v10 = vld [vmem:[#allocation8 + $0x1dac] sm:$0xf0] }
 0x35b   : > { %v16492_v51 = vld [vmem:[#allocation8 + $0x14a8] sm:$0xf]  ;;  %v22267_v47 = vadd.f32 %v7664_v50, %v7652_v36  ;;  %v16238_v29 = vld [vmem:[#allocation8 + $0x13a8] sm:$0xf0]  ;;  %v7653_v50 = vpop.f32.mrf.mxu2  ;;  %v17780_v49 = vld [vmem:[#allocation8 + $0x1eb0] sm:$0xf] }
 0x35c   : > { %v16493_v52 = vor.u32 %v20619_v27, %v16492_v51  ;;  %v19947_v27 = vld [vmem:[#allocation8 + $0xac] sm:$0xf] }
 0x35d   : > { %7905 = vmatpush.bf16.msrb.mxu2 %v14957_v34  ;;  %7918 = vmatpush.bf16.msrb.mxu3 %v17005_v4  ;;  %22561 = vst [vmem:[#allocation25_spill] sm:$0xff] %v22267_v47  ;;  %v7692_v34 = vpop.f32.mrf.mxu1  ;;  %v14445_v4 = vor.u32 %v20107_v21, %v14444_v22  ;;  %v15980_v22 = vld [vmem:[#allocation8 + $0x10a8] sm:$0xf]  ;;  %v13934_v32 = vld [vmem:[#allocation8 + $0x1a8] sm:$0xf0] }
 0x35e   : > { %7931 = vmatpush.bf16.msra.mxu0 %v14961_v63  ;;  %7944 = vmatpush.bf16.msra.mxu1 %v17009_v0  ;;  %v16497_v63 = vor.u32 %v20587_v41, %v16494_v45  ;;  %v16236_v0 = vld [vmem:[#allocation8 + $0x12a8] sm:$0xf]  ;;  %v20459_v36 = vld [vmem:[#allocation8 + $0x10ac] sm:$0xf]  ;;  %v15732_v41 = vld [vmem:[#allocation8 + $0xeb0] sm:$0xf] }
 0x35f   : > { %v20491_v21 = vld [vmem:[#allocation8 + $0x11a4] sm:$0xf0]  ;;  %v15982_v38 = vld [vmem:[#allocation8 + $0x11a8] sm:$0xf0]  ;;  %v20428_v45 = vld [vmem:[#allocation8 + $0xfac] sm:$0xf0] }
 0x360   : > { %v20940_v34 = vld [vmem:[#allocation8 + $0x1fac] sm:$0xf0] }
 0x361   : > { %7906 = vmatpush.bf16.msrb.mxu2 %v14701_v19  ;;  %7919 = vmatpush.bf16.msrb.mxu3 %v16749_v42  ;;  %v14189_v19 = vor.u32 %v20043_v56, %v14188_v54  ;;  %v16237_v42 = vor.u32 %v20555_v1, %v16236_v0  ;;  %v15981_v54 = vor.u32 %v20491_v21, %v15980_v22  ;;  %v15734_v56 = vld [vmem:[#allocation8 + $0xfb0] sm:$0xf0]  ;;  %v17524_v47 = vld [vmem:[#allocation8 + $0x1cb0] sm:$0xf] }
 0x362   : > { %7932 = vmatpush.bf16.msra.mxu0 %v14705_v23  ;;  %7945 = vmatpush.bf16.msra.mxu1 %v16753_v24  ;;  %v14193_v23 = vor.u32 %v20011_v3, %v14190_v5  ;;  %v16241_v24 = vor.u32 %v20523_v26, %v16238_v29  ;;  %v7666_v51 = vpop.f32.mrf.mxu3  ;;  %v13937_v0 = vor.u32 %v19947_v27, %v13934_v32  ;;  %v15476_v26 = vld [vmem:[#allocation8 + $0xcb0] sm:$0xf] }
 0x363   : > { %v15985_v1 = vor.u32 %v20459_v36, %v15982_v38  ;;  %v15733_v3 = vor.u32 %v20428_v45, %v15732_v41  ;;  %v17781_v5 = vor.u32 %v20940_v34, %v17780_v49  ;;  %v20364_v29 = vld [vmem:[#allocation8 + $0xdac] sm:$0xf0]  ;;  %v17525_v22 = vor.u32 %v20876_v10, %v17524_v47  ;;  %v20268_v38 = vld [vmem:[#allocation8 + $0xab4] sm:$0xf] }
 0x364   : > { %v15220_v21 = vld [vmem:[#allocation8 + $0xab0] sm:$0xf]  ;;  %v15222_v41 = vld [vmem:[#allocation8 + $0xbb0] sm:$0xf0] }
 0x365   : > { %7907 = vmatpush.bf16.msrb.mxu2 %v14445_v4  ;;  %7920 = vmatpush.bf16.msrb.mxu3 %v16493_v52  ;;  %v20396_v4 = vld [vmem:[#allocation8 + $0xeb4] sm:$0xf]  ;;  %v13933_v52 = vor.u32 %v19979_v30, %v13932_v6  ;;  %v15477_v30 = vor.u32 %v20364_v29, %v15476_v26  ;;  %v17268_v32 = vld [vmem:[#allocation8 + $0x1ab0] sm:$0xf] }
 0x366   : > { %7933 = vmatpush.bf16.msra.mxu0 %v14449_v62  ;;  %7946 = vmatpush.bf16.msra.mxu1 %v16497_v63  ;;  %v20908_v62 = vld [vmem:[#allocation8 + $0x1eb4] sm:$0xf]  ;;  %v15737_v50 = vor.u32 %v20396_v4, %v15734_v56  ;;  %v20812_v36 = vld [vmem:[#allocation8 + $0x1bac] sm:$0xf0] }
 0x367   : > { %v17782_v63 = vld [vmem:[#allocation8 + $0x1fb0] sm:$0xf0]  ;;  %v17269_v47 = vor.u32 %v20812_v36, %v17268_v32  ;;  %v14964_v34 = vld [vmem:[#allocation8 + $0x8b0] sm:$0xf]  ;;  %v1596_v36 = vperm.slane %v22257_v9, 2 }
 0x368   : > { %v17785_v51 = vor.u32 %v20908_v62, %v17782_v63  ;;  %v15478_v6 = vld [vmem:[#allocation8 + $0xdb0] sm:$0xf0]  ;;  %v20236_v4 = vld [vmem:[#allocation8 + $0x9ac] sm:$0xf0] }
 0x369   : > { %7908 = vmatpush.bf16.msrb.mxu2 %v14189_v19  ;;  %7921 = vmatpush.bf16.msrb.mxu3 %v16237_v42  ;;  %v20844_v19 = vld [vmem:[#allocation8 + $0x1cb4] sm:$0xf]  ;;  %v17012_v56 = vld [vmem:[#allocation8 + $0x18b0] sm:$0xf]  ;;  %v14965_v29 = vor.u32 %v20236_v4, %v14964_v34 }
 0x36a   : > { %7934 = vmatpush.bf16.msra.mxu0 %v14193_v23  ;;  %7947 = vmatpush.bf16.msra.mxu1 %v16241_v24  ;;  %v17526_v42 = vld [vmem:[#allocation8 + $0x1db0] sm:$0xf0]  ;;  %v20300_v23 = vld [vmem:[#allocation8 + $0xbac] sm:$0xf0]  ;;  %v15481_v24 = vor.u32 %v20332_v60, %v15478_v6  ;;  %v1597_v60 = vperm.slane %v22257_v9, 3 }
 0x36b   : > { %v17529_v27 = vor.u32 %v20844_v19, %v17526_v42  ;;  %v20780_v45 = vld [vmem:[#allocation8 + $0x1ab4] sm:$0xf]  ;;  %v15221_v10 = vor.u32 %v20300_v23, %v15220_v21  ;;  %v20748_v62 = vld [vmem:[#allocation8 + $0x19ac] sm:$0xf0] }
 0x36c   : > { %v17270_v49 = vld [vmem:[#allocation8 + $0x1bb0] sm:$0xf0]  ;;  %v20172_v6 = vld [vmem:[#allocation8 + $0x7ac] sm:$0xf0] }
 0x36d   : > { %7909 = vmatpush.bf16.msrb.mxu2 %v13933_v52  ;;  %7922 = vmatpush.bf16.msrb.mxu3 %v15981_v54  ;;  %v15225_v52 = vor.u32 %v20268_v38, %v15222_v41  ;;  %v17273_v54 = vor.u32 %v20780_v45, %v17270_v49  ;;  %v20204_v63 = vld [vmem:[#allocation8 + $0x8b4] sm:$0xf]  ;;  %v16756_v19 = vld [vmem:[#allocation8 + $0x16b0] sm:$0xf] }
 0x36e   : > { %7935 = vmatpush.bf16.msra.mxu0 %v13937_v0  ;;  %7948 = vmatpush.bf16.msra.mxu1 %v15985_v1  ;;  %v14966_v0 = vld [vmem:[#allocation8 + $0x9b0] sm:$0xf0]  ;;  %v20684_v21 = vld [vmem:[#allocation8 + $0x17ac] sm:$0xf0] }
 0x36f   : > { %v20716_v1 = vld [vmem:[#allocation8 + $0x18b4] sm:$0xf]  ;;  %v16757_v45 = vor.u32 %v20684_v21, %v16756_v19  ;;  %v14452_v49 = vld [vmem:[#allocation8 + $0x4b0] sm:$0xf] }
 0x370   : > { %7910 = vmatmul.bf16.vlgmr.msrb.gmra.mxu2 %v22069_v2  ;;  %7923 = vmatmul.bf16.vlgmr.msrb.gmra.mxu3 %v22071_v7  ;;  %v7742_v26 = vpop.f32.mrf.mxu1  ;;  %v20140_v23 = vld [vmem:[#allocation8 + $0x6b4] sm:$0xf] }
 0x371   : > { %7954 = vmatpush.bf16.msra.mxu2 %v15733_v3  ;;  %7967 = vmatpush.bf16.msra.mxu3 %v17781_v5  ;;  %v17014_v3 = vld [vmem:[#allocation8 + $0x19b0] sm:$0xf0]  ;;  %v7729_v5 = vpop.f32.mrf.mxu0 }
 0x372   : > { %7980 = vmatpush.bf16.msrb.mxu0 %v15737_v50  ;;  %7993 = vmatpush.bf16.msrb.mxu1 %v17785_v51  ;;  %v17013_v50 = vor.u32 %v20748_v62, %v17012_v56  ;;  %v14708_v51 = vld [vmem:[#allocation8 + $0x6b0] sm:$0xf]  ;;  %v7730_v42 = vadd.f32 %v7729_v5, %v1597_v60  ;;  %v16758_v32 = vld [vmem:[#allocation8 + $0x17b0] sm:$0xf0] }
 0x373   : > { %7936 = vmatmul.bf16.vlgmr.msra.gmra.mxu0 %v22069_v2  ;;  %7949 = vmatmul.bf16.vlgmr.msra.gmra.mxu1 %v22071_v7  ;;  %v14709_v41 = vor.u32 %v20172_v6, %v14708_v51  ;;  %v7703_v34 = vpop.f32.mrf.mxu2  ;;  %v7716_v4 = vpop.f32.mrf.mxu3  ;;  %v20076_v56 = vld [vmem:[#allocation8 + $0x4b4] sm:$0xf]  ;;  %v14196_v51 = vld [vmem:[#allocation8 + $0x2b0] sm:$0xf] }
 0x374   : > { %v22275_v38 = vadd.f32 %v7742_v26, %v7730_v42  ;;  %v7704_v62 = vadd.f32 %v7703_v34, %v1596_v36  ;;  %v20044_v6 = vld [vmem:[#allocation8 + $0x3ac] sm:$0xf0]  ;;  %v20012_v21 = vld [vmem:[#allocation8 + $0x2b4] sm:$0xf] }
 0x375   : > { %7955 = vmatpush.bf16.msra.mxu2 %v15477_v30  ;;  %7968 = vmatpush.bf16.msra.mxu3 %v17525_v22  ;;  %v14969_v30 = vor.u32 %v20204_v63, %v14966_v0  ;;  %v17017_v22 = vor.u32 %v20716_v1, %v17014_v3  ;;  %v14454_v63 = vld [vmem:[#allocation8 + $0x5b0] sm:$0xf0]  ;;  %v14197_v36 = vor.u32 %v20044_v6, %v14196_v51  ;;  %v15742_v51 = vld [vmem:[#allocation8 + $0xfb8] sm:$0xf0] }
 0x376   : > { %7981 = vmatpush.bf16.msrb.mxu0 %v15481_v24  ;;  %7994 = vmatpush.bf16.msrb.mxu1 %v17529_v27  ;;  %v14710_v24 = vld [vmem:[#allocation8 + $0x7b0] sm:$0xf0]  ;;  %22562 = vst [vmem:[#allocation26_spill] sm:$0xff] %v22275_v38  ;;  %v22277_v3 = vadd.f32 %v7716_v4, %v7704_v62  ;;  %v14457_v19 = vor.u32 %v20076_v56, %v14454_v63  ;;  %v15740_v63 = vld [vmem:[#allocation8 + $0xeb8] sm:$0xf] }
 0x377   : > { %v20652_v27 = vld [vmem:[#allocation8 + $0x16b4] sm:$0xf]  ;;  %v20909_v6 = vld [vmem:[#allocation8 + $0x1ebc] sm:$0xf] }
 0x378   : > { %v16761_v60 = vor.u32 %v20652_v27, %v16758_v32  ;;  %v20588_v0 = vld [vmem:[#allocation8 + $0x14b4] sm:$0xf]  ;;  %22563 = vst [vmem:[#allocation27_spill] sm:$0xff] %v22277_v3  ;;  %v7744_v26 = vpop.f32.mrf.mxu1  ;;  %v13940_v32 = vld [vmem:[#allocation8 + $0xb0] sm:$0xf] }
 0x379   : > { %7956 = vmatpush.bf16.msra.mxu2 %v15221_v10  ;;  %7969 = vmatpush.bf16.msra.mxu3 %v17269_v47  ;;  %v20108_v10 = vld [vmem:[#allocation8 + $0x5ac] sm:$0xf0]  ;;  %v14713_v47 = vor.u32 %v20140_v23, %v14710_v24  ;;  %v16502_v1 = vld [vmem:[#allocation8 + $0x15b0] sm:$0xf0]  ;;  %v7731_v5 = vpop.f32.mrf.mxu0  ;;  %v20397_v26 = vld [vmem:[#allocation8 + $0xebc] sm:$0xf] }
 0x37a   : > { %7982 = vmatpush.bf16.msrb.mxu0 %v15225_v52  ;;  %7995 = vmatpush.bf16.msrb.mxu1 %v17273_v54  ;;  %v16500_v52 = vld [vmem:[#allocation8 + $0x14b0] sm:$0xf]  ;;  %v16505_v42 = vor.u32 %v20588_v0, %v16502_v1  ;;  %v14198_v23 = vld [vmem:[#allocation8 + $0x3b0] sm:$0xf0]  ;;  %v20429_v0 = vld [vmem:[#allocation8 + $0xfb4] sm:$0xf0] }
 0x37b   : > { %v20620_v54 = vld [vmem:[#allocation8 + $0x15ac] sm:$0xf0]  ;;  %v20524_v24 = vld [vmem:[#allocation8 + $0x12b4] sm:$0xf]  ;;  %v7705_v34 = vpop.f32.mrf.mxu2  ;;  %v7718_v4 = vpop.f32.mrf.mxu3  ;;  %v17788_v1 = vld [vmem:[#allocation8 + $0x1eb8] sm:$0xf] }
 0x37c   : > { %v16246_v27 = vld [vmem:[#allocation8 + $0x13b0] sm:$0xf0]  ;;  %v20941_v5 = vld [vmem:[#allocation8 + $0x1fb4] sm:$0xf0]  ;;  %v20333_v38 = vld [vmem:[#allocation8 + $0xcbc] sm:$0xf] }
 0x37d   : > { %7957 = vmatpush.bf16.msra.mxu2 %v14965_v29  ;;  %7970 = vmatpush.bf16.msra.mxu3 %v17013_v50  ;;  %v14453_v29 = vor.u32 %v20108_v10, %v14452_v49  ;;  %v16501_v50 = vor.u32 %v20620_v54, %v16500_v52  ;;  %v15988_v49 = vld [vmem:[#allocation8 + $0x10b0] sm:$0xf]  ;;  %v19948_v52 = vld [vmem:[#allocation8 + $0xb4] sm:$0xf]  ;;  %v17532_v4 = vld [vmem:[#allocation8 + $0x1cb8] sm:$0xf] }
 0x37e   : > { %7983 = vmatpush.bf16.msrb.mxu0 %v14969_v30  ;;  %7996 = vmatpush.bf16.msrb.mxu1 %v17017_v22  ;;  %v16244_v30 = vld [vmem:[#allocation8 + $0x12b0] sm:$0xf]  ;;  %v13942_v54 = vld [vmem:[#allocation8 + $0x1b0] sm:$0xf0]  ;;  %v20877_v3 = vld [vmem:[#allocation8 + $0x1db4] sm:$0xf0] }
 0x37f   : > { %v20556_v22 = vld [vmem:[#allocation8 + $0x13ac] sm:$0xf0]  ;;  %v20460_v56 = vld [vmem:[#allocation8 + $0x10b4] sm:$0xf] }
 0x380   : > { %v20492_v10 = vld [vmem:[#allocation8 + $0x11ac] sm:$0xf0]  ;;  %v15990_v62 = vld [vmem:[#allocation8 + $0x11b0] sm:$0xf0] }
 0x381   : > { %7958 = vmatpush.bf16.msra.mxu2 %v14709_v41  ;;  %7971 = vmatpush.bf16.msra.mxu3 %v16757_v45  ;;  %v16245_v41 = vor.u32 %v20556_v22, %v16244_v30  ;;  %v19980_v45 = vld [vmem:[#allocation8 + $0x1ac] sm:$0xf0]  ;;  %v15993_v30 = vor.u32 %v20460_v56, %v15990_v62  ;;  %v15741_v22 = vor.u32 %v20429_v0, %v15740_v63  ;;  %v20813_v56 = vld [vmem:[#allocation8 + $0x1bb4] sm:$0xf0]  ;;  %v20269_v62 = vld [vmem:[#allocation8 + $0xabc] sm:$0xf] }
 0x382   : > { %7984 = vmatpush.bf16.msrb.mxu0 %v14713_v47  ;;  %7997 = vmatpush.bf16.msrb.mxu1 %v16761_v60  ;;  %v14201_v47 = vor.u32 %v20012_v21, %v14198_v23  ;;  %v16249_v60 = vor.u32 %v20524_v24, %v16246_v27  ;;  %v17789_v21 = vor.u32 %v20941_v5, %v17788_v1  ;;  %v15484_v23 = vld [vmem:[#allocation8 + $0xcb8] sm:$0xf]  ;;  %v15230_v63 = vld [vmem:[#allocation8 + $0xbb8] sm:$0xf0] }
 0x383   : > { %v20365_v24 = vld [vmem:[#allocation8 + $0xdb4] sm:$0xf0]  ;;  %v15745_v27 = vor.u32 %v20397_v26, %v15742_v51  ;;  %v20781_v0 = vld [vmem:[#allocation8 + $0x1abc] sm:$0xf] }
 0x384   : > { %v17278_v1 = vld [vmem:[#allocation8 + $0x1bb8] sm:$0xf0]  ;;  %v14972_v26 = vld [vmem:[#allocation8 + $0x8b8] sm:$0xf] }
 0x385   : > { %7959 = vmatpush.bf16.msra.mxu2 %v14453_v29  ;;  %7972 = vmatpush.bf16.msra.mxu3 %v16501_v50  ;;  %v13941_v29 = vor.u32 %v19980_v45, %v13940_v32  ;;  %v15989_v50 = vor.u32 %v20492_v10, %v15988_v49  ;;  %v15486_v32 = vld [vmem:[#allocation8 + $0xdb8] sm:$0xf0]  ;;  %v15485_v45 = vor.u32 %v20365_v24, %v15484_v23  ;;  %v15228_v10 = vld [vmem:[#allocation8 + $0xab8] sm:$0xf] }
 0x386   : > { %7985 = vmatpush.bf16.msrb.mxu0 %v14457_v19  ;;  %7998 = vmatpush.bf16.msrb.mxu1 %v16505_v42  ;;  %v17790_v19 = vld [vmem:[#allocation8 + $0x1fb8] sm:$0xf0]  ;;  %v13945_v42 = vor.u32 %v19948_v52, %v13942_v54  ;;  %v17533_v49 = vor.u32 %v20877_v3, %v17532_v4  ;;  %v17276_v54 = vld [vmem:[#allocation8 + $0x1ab8] sm:$0xf]  ;;  %v17281_v51 = vor.u32 %v20781_v0, %v17278_v1 }
 0x387   : > { %v17793_v34 = vor.u32 %v20909_v6, %v17790_v19  ;;  %v17277_v5 = vor.u32 %v20813_v56, %v17276_v54  ;;  %v17020_v6 = vld [vmem:[#allocation8 + $0x18b8] sm:$0xf]  ;;  %v16766_v54 = vld [vmem:[#allocation8 + $0x17b8] sm:$0xf0]  ;;  %v1598_v56 = vperm.slane %v22257_v9, 4 }
 0x388   : > { %v20749_v19 = vld [vmem:[#allocation8 + $0x19b4] sm:$0xf0] }
 0x389   : > { %7960 = vmatpush.bf16.msra.mxu2 %v14197_v36  ;;  %7973 = vmatpush.bf16.msra.mxu3 %v16245_v41  ;;  %v20845_v36 = vld [vmem:[#allocation8 + $0x1cbc] sm:$0xf]  ;;  %v14716_v4 = vld [vmem:[#allocation8 + $0x6b8] sm:$0xf] }
 0x38a   : > { %7986 = vmatpush.bf16.msrb.mxu0 %v14201_v47  ;;  %7999 = vmatpush.bf16.msrb.mxu1 %v16249_v60  ;;  %v17534_v41 = vld [vmem:[#allocation8 + $0x1db8] sm:$0xf0]  ;;  %v20301_v47 = vld [vmem:[#allocation8 + $0xbb4] sm:$0xf0]  ;;  %v15489_v60 = vor.u32 %v20333_v38, %v15486_v32  ;;  %v1599_v38 = vperm.slane %v22257_v9, 5 }
 0x38b   : > { %v17537_v52 = vor.u32 %v20845_v36, %v17534_v41  ;;  %v15229_v3 = vor.u32 %v20301_v47, %v15228_v10  ;;  %v20173_v32 = vld [vmem:[#allocation8 + $0x7b4] sm:$0xf0]  ;;  %v20141_v47 = vld [vmem:[#allocation8 + $0x6bc] sm:$0xf] }
 0x38c   : > { %v16764_v36 = vld [vmem:[#allocation8 + $0x16b8] sm:$0xf] }
 0x38d   : > { %7961 = vmatpush.bf16.msra.mxu2 %v13941_v29  ;;  %7974 = vmatpush.bf16.msra.mxu3 %v15989_v50  ;;  %v20237_v29 = vld [vmem:[#allocation8 + $0x9b4] sm:$0xf0]  ;;  %v15233_v50 = vor.u32 %v20269_v62, %v15230_v63  ;;  %v14717_v63 = vor.u32 %v20173_v32, %v14716_v4 }
 0x38e   : > { %7987 = vmatpush.bf16.msrb.mxu0 %v13945_v42  ;;  %8000 = vmatpush.bf16.msrb.mxu1 %v15993_v30  ;;  %v20205_v42 = vld [vmem:[#allocation8 + $0x8bc] sm:$0xf]  ;;  %v20685_v10 = vld [vmem:[#allocation8 + $0x17b4] sm:$0xf0] }
 0x38f   : > { %v14974_v30 = vld [vmem:[#allocation8 + $0x9b8] sm:$0xf0]  ;;  %v16765_v0 = vor.u32 %v20685_v10, %v16764_v36  ;;  %v14460_v1 = vld [vmem:[#allocation8 + $0x4b8] sm:$0xf] }
 0x390   : > { %7962 = vmatmul.bf16.vlgmr.msra.gmra.mxu2 %v22069_v2  ;;  %7975 = vmatmul.bf16.vlgmr.msra.gmra.mxu3 %v22071_v7  ;;  %v7781_v23 = vpop.f32.mrf.mxu0  ;;  %v7794_v24 = vpop.f32.mrf.mxu1  ;;  %v14204_v4 = vld [vmem:[#allocation8 + $0x2b8] sm:$0xf]  ;;  %v20013_v10 = vld [vmem:[#allocation8 + $0x2bc] sm:$0xf] }
 0x391   : > { %8006 = vmatpush.bf16.msrb.mxu2 %v15741_v22  ;;  %8019 = vmatpush.bf16.msrb.mxu3 %v17789_v21  ;;  %v20717_v22 = vld [vmem:[#allocation8 + $0x18bc] sm:$0xf]  ;;  %v7782_v41 = vadd.f32 %v7781_v23, %v1599_v38  ;;  %v20045_v32 = vld [vmem:[#allocation8 + $0x3b4] sm:$0xf0] }
 0x392   : > { %8032 = vmatpush.bf16.msra.mxu0 %v15745_v27  ;;  %8045 = vmatpush.bf16.msra.mxu1 %v17793_v34  ;;  %v17022_v21 = vld [vmem:[#allocation8 + $0x19b8] sm:$0xf0]  ;;  %v14973_v27 = vor.u32 %v20237_v29, %v14972_v26  ;;  %v17021_v34 = vor.u32 %v20749_v19, %v17020_v6 }
 0x393   : > { %7988 = vmatmul.bf16.vlgmr.msrb.gmra.mxu0 %v22069_v2  ;;  %8001 = vmatmul.bf16.vlgmr.msrb.gmra.mxu1 %v22071_v7  ;;  %v22285_v62 = vadd.f32 %v7794_v24, %v7782_v41  ;;  %v7755_v26 = vpop.f32.mrf.mxu2  ;;  %v7768_v29 = vpop.f32.mrf.mxu3  ;;  %v20077_v6 = vld [vmem:[#allocation8 + $0x4bc] sm:$0xf] }
 0x394   : > { %v7756_v19 = vadd.f32 %v7755_v26, %v1598_v56  ;;  %v14205_v56 = vor.u32 %v20045_v32, %v14204_v4  ;;  %v15750_v4 = vld [vmem:[#allocation8 + $0xfc0] sm:$0xf0] }
 0x395   : > { %8007 = vmatpush.bf16.msrb.mxu2 %v15485_v45  ;;  %8020 = vmatpush.bf16.msrb.mxu3 %v17533_v49  ;;  %v14977_v45 = vor.u32 %v20205_v42, %v14974_v30  ;;  %v17025_v49 = vor.u32 %v20717_v22, %v17022_v21  ;;  %22564 = vst [vmem:[#allocation28_spill] sm:$0xff] %v22285_v62  ;;  %v14462_v42 = vld [vmem:[#allocation8 + $0x5b8] sm:$0xf0]  ;;  %v20910_v32 = vld [vmem:[#allocation8 + $0x1ec4] sm:$0xf] }
 0x396   : > { %8033 = vmatpush.bf16.msra.mxu0 %v15489_v60  ;;  %8046 = vmatpush.bf16.msra.mxu1 %v17537_v52  ;;  %v14718_v60 = vld [vmem:[#allocation8 + $0x7b8] sm:$0xf0]  ;;  %v22287_v21 = vadd.f32 %v7768_v29, %v7756_v19  ;;  %v14465_v36 = vor.u32 %v20077_v6, %v14462_v42  ;;  %v15748_v42 = vld [vmem:[#allocation8 + $0xec0] sm:$0xf]  ;;  %v20334_v62 = vld [vmem:[#allocation8 + $0xcc4] sm:$0xf] }
 0x397   : > { %v20653_v52 = vld [vmem:[#allocation8 + $0x16bc] sm:$0xf] }
 0x398   : > { %v16769_v38 = vor.u32 %v20653_v52, %v16766_v54  ;;  %v20589_v30 = vld [vmem:[#allocation8 + $0x14bc] sm:$0xf]  ;;  %22565 = vst [vmem:[#allocation29_spill] sm:$0xff] %v22287_v21  ;;  %v7783_v23 = vpop.f32.mrf.mxu0  ;;  %v7796_v24 = vpop.f32.mrf.mxu1  ;;  %v13948_v54 = vld [vmem:[#allocation8 + $0xb8] sm:$0xf] }
 0x399   : > { %8008 = vmatpush.bf16.msrb.mxu2 %v15229_v3  ;;  %8021 = vmatpush.bf16.msrb.mxu3 %v17277_v5  ;;  %v20109_v3 = vld [vmem:[#allocation8 + $0x5b4] sm:$0xf0]  ;;  %v14721_v5 = vor.u32 %v20141_v47, %v14718_v60  ;;  %v16510_v22 = vld [vmem:[#allocation8 + $0x15b8] sm:$0xf0]  ;;  %v20942_v23 = vld [vmem:[#allocation8 + $0x1fbc] sm:$0xf0] }
 0x39a   : > { %8034 = vmatpush.bf16.msra.mxu0 %v15233_v50  ;;  %8047 = vmatpush.bf16.msra.mxu1 %v17281_v51  ;;  %v16508_v50 = vld [vmem:[#allocation8 + $0x14b8] sm:$0xf]  ;;  %v16513_v41 = vor.u32 %v20589_v30, %v16510_v22  ;;  %v14206_v47 = vld [vmem:[#allocation8 + $0x3b8] sm:$0xf0]  ;;  %v20430_v30 = vld [vmem:[#allocation8 + $0xfbc] sm:$0xf0] }
 0x39b   : > { %v20621_v51 = vld [vmem:[#allocation8 + $0x15b4] sm:$0xf0]  ;;  %v20525_v60 = vld [vmem:[#allocation8 + $0x12bc] sm:$0xf]  ;;  %v7757_v26 = vpop.f32.mrf.mxu2  ;;  %v7770_v29 = vpop.f32.mrf.mxu3  ;;  %v17796_v22 = vld [vmem:[#allocation8 + $0x1ec0] sm:$0xf] }
 0x39c   : > { %v16254_v52 = vld [vmem:[#allocation8 + $0x13b8] sm:$0xf0]  ;;  %v20398_v24 = vld [vmem:[#allocation8 + $0xec4] sm:$0xf]  ;;  %v17540_v29 = vld [vmem:[#allocation8 + $0x1cc0] sm:$0xf] }
 0x39d   : > { %8009 = vmatpush.bf16.msrb.mxu2 %v14973_v27  ;;  %8022 = vmatpush.bf16.msrb.mxu3 %v17021_v34  ;;  %v14461_v27 = vor.u32 %v20109_v3, %v14460_v1  ;;  %v16509_v34 = vor.u32 %v20621_v51, %v16508_v50  ;;  %v15996_v1 = vld [vmem:[#allocation8 + $0x10b8] sm:$0xf]  ;;  %v19949_v50 = vld [vmem:[#allocation8 + $0xbc] sm:$0xf]  ;;  %v20878_v21 = vld [vmem:[#allocation8 + $0x1dbc] sm:$0xf0] }
 0x39e   : > { %8035 = vmatpush.bf16.msra.mxu0 %v14977_v45  ;;  %8048 = vmatpush.bf16.msra.mxu1 %v17025_v49  ;;  %v16252_v45 = vld [vmem:[#allocation8 + $0x12b8] sm:$0xf]  ;;  %v13950_v51 = vld [vmem:[#allocation8 + $0x1b8] sm:$0xf0] }
 0x39f   : > { %v20557_v49 = vld [vmem:[#allocation8 + $0x13b4] sm:$0xf0]  ;;  %v20461_v6 = vld [vmem:[#allocation8 + $0x10bc] sm:$0xf] }
 0x3a0   : > { %v20493_v3 = vld [vmem:[#allocation8 + $0x11b4] sm:$0xf0]  ;;  %v15998_v19 = vld [vmem:[#allocation8 + $0x11b8] sm:$0xf0] }
 0x3a1   : > { %8010 = vmatpush.bf16.msrb.mxu2 %v14717_v63  ;;  %8023 = vmatpush.bf16.msrb.mxu3 %v16765_v0  ;;  %v16253_v63 = vor.u32 %v20557_v49, %v16252_v45  ;;  %v19981_v0 = vld [vmem:[#allocation8 + $0x1b4] sm:$0xf0]  ;;  %v16001_v45 = vor.u32 %v20461_v6, %v15998_v19  ;;  %v15749_v49 = vor.u32 %v20430_v30, %v15748_v42  ;;  %v20814_v6 = vld [vmem:[#allocation8 + $0x1bbc] sm:$0xf0]  ;;  %v20270_v19 = vld [vmem:[#allocation8 + $0xac4] sm:$0xf] }
 0x3a2   : > { %8036 = vmatpush.bf16.msra.mxu0 %v14721_v5  ;;  %8049 = vmatpush.bf16.msra.mxu1 %v16769_v38  ;;  %v14209_v5 = vor.u32 %v20013_v10, %v14206_v47  ;;  %v16257_v38 = vor.u32 %v20525_v60, %v16254_v52  ;;  %v17797_v10 = vor.u32 %v20942_v23, %v17796_v22  ;;  %v15492_v47 = vld [vmem:[#allocation8 + $0xcc0] sm:$0xf]  ;;  %v15238_v42 = vld [vmem:[#allocation8 + $0xbc0] sm:$0xf0] }
 0x3a3   : > { %v20366_v60 = vld [vmem:[#allocation8 + $0xdbc] sm:$0xf0]  ;;  %v15753_v52 = vor.u32 %v20398_v24, %v15750_v4  ;;  %v20782_v30 = vld [vmem:[#allocation8 + $0x1ac4] sm:$0xf] }
 0x3a4   : > { %v17286_v22 = vld [vmem:[#allocation8 + $0x1bc0] sm:$0xf0]  ;;  %v14980_v24 = vld [vmem:[#allocation8 + $0x8c0] sm:$0xf] }
 0x3a5   : > { %8011 = vmatpush.bf16.msrb.mxu2 %v14461_v27  ;;  %8024 = vmatpush.bf16.msrb.mxu3 %v16509_v34  ;;  %v13949_v27 = vor.u32 %v19981_v0, %v13948_v54  ;;  %v15997_v34 = vor.u32 %v20493_v3, %v15996_v1  ;;  %v15494_v54 = vld [vmem:[#allocation8 + $0xdc0] sm:$0xf0]  ;;  %v15493_v0 = vor.u32 %v20366_v60, %v15492_v47  ;;  %v15236_v3 = vld [vmem:[#allocation8 + $0xac0] sm:$0xf] }
 0x3a6   : > { %8037 = vmatpush.bf16.msra.mxu0 %v14465_v36  ;;  %8050 = vmatpush.bf16.msra.mxu1 %v16513_v41  ;;  %v17798_v36 = vld [vmem:[#allocation8 + $0x1fc0] sm:$0xf0]  ;;  %v13953_v41 = vor.u32 %v19949_v50, %v13950_v51  ;;  %v17541_v1 = vor.u32 %v20878_v21, %v17540_v29  ;;  %v17284_v51 = vld [vmem:[#allocation8 + $0x1ac0] sm:$0xf]  ;;  %v17289_v4 = vor.u32 %v20782_v30, %v17286_v22 }
 0x3a7   : > { %v17801_v26 = vor.u32 %v20910_v32, %v17798_v36  ;;  %v17285_v23 = vor.u32 %v20814_v6, %v17284_v51  ;;  %v17028_v32 = vld [vmem:[#allocation8 + $0x18c0] sm:$0xf]  ;;  %v16774_v51 = vld [vmem:[#allocation8 + $0x17c0] sm:$0xf0]  ;;  %v1600_v6 = vperm.slane %v22257_v9, 6 }
 0x3a8   : > { %v20750_v36 = vld [vmem:[#allocation8 + $0x19bc] sm:$0xf0] }
 0x3a9   : > { %8012 = vmatpush.bf16.msrb.mxu2 %v14205_v56  ;;  %8025 = vmatpush.bf16.msrb.mxu3 %v16253_v63  ;;  %v20846_v56 = vld [vmem:[#allocation8 + $0x1cc4] sm:$0xf]  ;;  %v14724_v29 = vld [vmem:[#allocation8 + $0x6c0] sm:$0xf] }
 0x3aa   : > { %8038 = vmatpush.bf16.msra.mxu0 %v14209_v5  ;;  %8051 = vmatpush.bf16.msra.mxu1 %v16257_v38  ;;  %v17542_v63 = vld [vmem:[#allocation8 + $0x1dc0] sm:$0xf0]  ;;  %v20302_v5 = vld [vmem:[#allocation8 + $0xbbc] sm:$0xf0]  ;;  %v15497_v38 = vor.u32 %v20334_v62, %v15494_v54  ;;  %v1601_v62 = vperm.slane %v22257_v9, 7 }
 0x3ab   : > { %v17545_v50 = vor.u32 %v20846_v56, %v17542_v63  ;;  %v15237_v21 = vor.u32 %v20302_v5, %v15236_v3  ;;  %v20174_v54 = vld [vmem:[#allocation8 + $0x7bc] sm:$0xf0]  ;;  %v20142_v5 = vld [vmem:[#allocation8 + $0x6c4] sm:$0xf] }
 0x3ac   : > { %v16772_v56 = vld [vmem:[#allocation8 + $0x16c0] sm:$0xf]  ;;  %v20590_v9 = vld [vmem:[#allocation8 + $0x14c4] sm:$0xf] }
 0x3ad   : > { %8013 = vmatpush.bf16.msrb.mxu2 %v13949_v27  ;;  %8026 = vmatpush.bf16.msrb.mxu3 %v15997_v34  ;;  %v20238_v27 = vld [vmem:[#allocation8 + $0x9bc] sm:$0xf0]  ;;  %v15241_v34 = vor.u32 %v20270_v19, %v15238_v42  ;;  %v14725_v42 = vor.u32 %v20174_v54, %v14724_v29 }
 0x3ae   : > { %8039 = vmatpush.bf16.msra.mxu0 %v13953_v41  ;;  %8052 = vmatpush.bf16.msra.mxu1 %v16001_v45  ;;  %v20206_v41 = vld [vmem:[#allocation8 + $0x8c4] sm:$0xf]  ;;  %v20686_v3 = vld [vmem:[#allocation8 + $0x17bc] sm:$0xf0] }
 0x3af   : > { %v14982_v45 = vld [vmem:[#allocation8 + $0x9c0] sm:$0xf0]  ;;  %v16773_v30 = vor.u32 %v20686_v3, %v16772_v56  ;;  %v14468_v22 = vld [vmem:[#allocation8 + $0x4c0] sm:$0xf] }
 0x3b0   : > { %8014 = vmatmul.bf16.vlgmr.msrb.gmra.mxu2 %v22069_v2  ;;  %8027 = vmatmul.bf16.vlgmr.msrb.gmra.mxu3 %v22071_v7  ;;  %v7833_v47 = vpop.f32.mrf.mxu0  ;;  %v7846_v60 = vpop.f32.mrf.mxu1  ;;  %v20046_v29 = vld [vmem:[#allocation8 + $0x3bc] sm:$0xf0]  ;;  %v14214_v3 = vld [vmem:[#allocation8 + $0x3c0] sm:$0xf0] }
 0x3b1   : > { %8058 = vmatpush.bf16.msra.mxu2 %v15749_v49  ;;  %8071 = vmatpush.bf16.msra.mxu3 %v17797_v10  ;;  %v20718_v49 = vld [vmem:[#allocation8 + $0x18c4] sm:$0xf]  ;;  %v7834_v63 = vadd.f32 %v7833_v47, %v1601_v62 }
 0x3b2   : > { %8084 = vmatpush.bf16.msrb.mxu0 %v15753_v52  ;;  %8097 = vmatpush.bf16.msrb.mxu1 %v17801_v26  ;;  %v17030_v10 = vld [vmem:[#allocation8 + $0x19c0] sm:$0xf0]  ;;  %v14981_v52 = vor.u32 %v20238_v27, %v14980_v24  ;;  %v17029_v26 = vor.u32 %v20750_v36, %v17028_v32 }
 0x3b3   : > { %8040 = vmatmul.bf16.vlgmr.msra.gmra.mxu0 %v22069_v2  ;;  %8053 = vmatmul.bf16.vlgmr.msra.gmra.mxu1 %v22071_v7  ;;  %v22295_v19 = vadd.f32 %v7846_v60, %v7834_v63  ;;  %v7807_v24 = vpop.f32.mrf.mxu2  ;;  %v7820_v27 = vpop.f32.mrf.mxu3  ;;  %v20078_v32 = vld [vmem:[#allocation8 + $0x4c4] sm:$0xf]  ;;  %v16260_v63 = vld [vmem:[#allocation8 + $0x12c0] sm:$0xf] }
 0x3b4   : > { %v7808_v36 = vadd.f32 %v7807_v24, %v1600_v6 }
 0x3b5   : > { %8059 = vmatpush.bf16.msra.mxu2 %v15493_v0  ;;  %8072 = vmatpush.bf16.msra.mxu3 %v17541_v1  ;;  %v14985_v0 = vor.u32 %v20206_v41, %v14982_v45  ;;  %v17033_v1 = vor.u32 %v20718_v49, %v17030_v10  ;;  %22566 = vst [vmem:[#allocation30_spill] sm:$0xff] %v22295_v19  ;;  %v14470_v41 = vld [vmem:[#allocation8 + $0x5c0] sm:$0xf0]  ;;  %v20336_v19 = vld [vmem:[#allocation8 + $0xcd4] sm:$0xf] }
 0x3b6   : > { %8085 = vmatpush.bf16.msrb.mxu0 %v15497_v38  ;;  %8098 = vmatpush.bf16.msrb.mxu1 %v17545_v50  ;;  %v14726_v38 = vld [vmem:[#allocation8 + $0x7c0] sm:$0xf0]  ;;  %v22297_v49 = vadd.f32 %v7820_v27, %v7808_v36  ;;  %v14473_v54 = vor.u32 %v20078_v32, %v14470_v41  ;;  %v15756_v36 = vld [vmem:[#allocation8 + $0xec8] sm:$0xf] }
 0x3b7   : > { %v20654_v50 = vld [vmem:[#allocation8 + $0x16c4] sm:$0xf]  ;;  %v20431_v41 = vld [vmem:[#allocation8 + $0xfc4] sm:$0xf0] }
 0x3b8   : > { %v16777_v62 = vor.u32 %v20654_v50, %v16774_v51  ;;  %v16518_v45 = vld [vmem:[#allocation8 + $0x15c0] sm:$0xf0]  ;;  %22567 = vst [vmem:[#allocation31_spill] sm:$0xff] %v22297_v49  ;;  %v7835_v10 = vpop.f32.mrf.mxu0  ;;  %v7848_v47 = vpop.f32.mrf.mxu1  ;;  %v13956_v50 = vld [vmem:[#allocation8 + $0xc0] sm:$0xf] }
 0x3b9   : > { %8060 = vmatpush.bf16.msra.mxu2 %v15237_v21  ;;  %8073 = vmatpush.bf16.msra.mxu3 %v17285_v23  ;;  %v20110_v21 = vld [vmem:[#allocation8 + $0x5bc] sm:$0xf0]  ;;  %v14729_v23 = vor.u32 %v20142_v5, %v14726_v38  ;;  %v16521_v56 = vor.u32 %v20590_v9, %v16518_v45  ;;  %v20526_v5 = vld [vmem:[#allocation8 + $0x12c4] sm:$0xf]  ;;  %v17804_v9 = vld [vmem:[#allocation8 + $0x1ec8] sm:$0xf] }
 0x3ba   : > { %8086 = vmatpush.bf16.msrb.mxu0 %v15241_v34  ;;  %8099 = vmatpush.bf16.msrb.mxu1 %v17289_v4  ;;  %v16516_v34 = vld [vmem:[#allocation8 + $0x14c0] sm:$0xf]  ;;  %v14469_v60 = vor.u32 %v20110_v21, %v14468_v22  ;;  %v16262_v38 = vld [vmem:[#allocation8 + $0x13c0] sm:$0xf0]  ;;  %v20943_v45 = vld [vmem:[#allocation8 + $0x1fc4] sm:$0xf0] }
 0x3bb   : > { %v20622_v4 = vld [vmem:[#allocation8 + $0x15bc] sm:$0xf0]  ;;  %v7822_v24 = vpop.f32.mrf.mxu3  ;;  %v19950_v27 = vld [vmem:[#allocation8 + $0xc4] sm:$0xf]  ;;  %v20399_v10 = vld [vmem:[#allocation8 + $0xecc] sm:$0xf] }
 0x3bc   : > { %v20494_v22 = vld [vmem:[#allocation8 + $0x11bc] sm:$0xf0]  ;;  %v16006_v32 = vld [vmem:[#allocation8 + $0x11c0] sm:$0xf0]  ;;  %v20879_v24 = vld [vmem:[#allocation8 + $0x1dc4] sm:$0xf0] }
 0x3bd   : > { %8061 = vmatpush.bf16.msra.mxu2 %v14981_v52  ;;  %8074 = vmatpush.bf16.msra.mxu3 %v17029_v26  ;;  %v16517_v52 = vor.u32 %v20622_v4, %v16516_v34  ;;  %v14212_v26 = vld [vmem:[#allocation8 + $0x2c0] sm:$0xf]  ;;  %v13958_v34 = vld [vmem:[#allocation8 + $0x1c0] sm:$0xf0]  ;;  %v20335_v49 = vld [vmem:[#allocation8 + $0xccc] sm:$0xf] }
 0x3be   : > { %8087 = vmatpush.bf16.msrb.mxu0 %v14985_v0  ;;  %8100 = vmatpush.bf16.msrb.mxu1 %v17033_v1  ;;  %v20558_v0 = vld [vmem:[#allocation8 + $0x13bc] sm:$0xf0]  ;;  %v20014_v1 = vld [vmem:[#allocation8 + $0x2c4] sm:$0xf]  ;;  %v14213_v51 = vor.u32 %v20046_v29, %v14212_v26  ;;  %v20911_v26 = vld [vmem:[#allocation8 + $0x1ecc] sm:$0xf] }
 0x3bf   : > { %v16261_v6 = vor.u32 %v20558_v0, %v16260_v63  ;;  %v14217_v21 = vor.u32 %v20014_v1, %v14214_v3  ;;  %v20462_v4 = vld [vmem:[#allocation8 + $0x10c4] sm:$0xf]  ;;  %v17806_v29 = vld [vmem:[#allocation8 + $0x1fc8] sm:$0xf0]  ;;  %v15757_v63 = vor.u32 %v20431_v41, %v15756_v36  ;;  %v17805_v0 = vor.u32 %v20943_v45, %v17804_v9  ;;  %v15500_v1 = vld [vmem:[#allocation8 + $0xcc8] sm:$0xf] }
 0x3c0   : > { %v20367_v3 = vld [vmem:[#allocation8 + $0xdc4] sm:$0xf0]  ;;  %v15246_v41 = vld [vmem:[#allocation8 + $0xbc8] sm:$0xf0] }
 0x3c1   : > { %8062 = vmatpush.bf16.msra.mxu2 %v14725_v42  ;;  %8075 = vmatpush.bf16.msra.mxu3 %v16773_v30  ;;  %v19982_v42 = vld [vmem:[#allocation8 + $0x1bc] sm:$0xf0]  ;;  %v22299_v36 = vld [vmem:[#allocation10 + $0x28] sm:$0xff] }
 0x3c2   : > { %8088 = vmatpush.bf16.msrb.mxu0 %v14729_v23  ;;  %8101 = vmatpush.bf16.msrb.mxu1 %v16777_v62  ;;  %v16004_v30 = vld [vmem:[#allocation8 + $0x10c0] sm:$0xf]  ;;  %v16265_v23 = vor.u32 %v20526_v5, %v16262_v38  ;;  %v7809_v62 = vpop.f32.mrf.mxu2  ;;  %v13957_v47 = vor.u32 %v19982_v42, %v13956_v50  ;;  %v17809_v38 = vor.u32 %v20911_v26, %v17806_v29  ;;  %v15502_v50 = vld [vmem:[#allocation8 + $0xdc8] sm:$0xf0] }
 0x3c3   : > { %v17548_v62 = vld [vmem:[#allocation8 + $0x1cc8] sm:$0xf]  ;;  %v15501_v42 = vor.u32 %v20367_v3, %v15500_v1  ;;  %v20783_v9 = vld [vmem:[#allocation8 + $0x1acc] sm:$0xf] }
 0x3c4   : > { %v17294_v45 = vld [vmem:[#allocation8 + $0x1bc8] sm:$0xf0] }
 0x3c5   : > { %8063 = vmatpush.bf16.msra.mxu2 %v14469_v60  ;;  %8076 = vmatpush.bf16.msra.mxu3 %v16517_v52  ;;  %v16005_v60 = vor.u32 %v20494_v22, %v16004_v30  ;;  %v15758_v52 = vld [vmem:[#allocation8 + $0xfc8] sm:$0xf0]  ;;  %v17549_v30 = vor.u32 %v20879_v24, %v17548_v62  ;;  %v15244_v22 = vld [vmem:[#allocation8 + $0xac8] sm:$0xf]  ;;  %v17297_v29 = vor.u32 %v20783_v9, %v17294_v45 }
 0x3c6   : > { %8089 = vmatpush.bf16.msrb.mxu0 %v14473_v54  ;;  %8102 = vmatpush.bf16.msrb.mxu1 %v16521_v56  ;;  %v13961_v54 = vor.u32 %v19950_v27, %v13958_v34  ;;  %v16009_v56 = vor.u32 %v20462_v4, %v16006_v32  ;;  %v15761_v5 = vor.u32 %v20399_v10, %v15758_v52  ;;  %v20815_v4 = vld [vmem:[#allocation8 + $0x1bc4] sm:$0xf0]  ;;  %v20271_v32 = vld [vmem:[#allocation8 + $0xacc] sm:$0xf] }
 0x3c7   : > { %v15505_v27 = vor.u32 %v20335_v49, %v15502_v50  ;;  %v20239_v52 = vld [vmem:[#allocation8 + $0x9c4] sm:$0xf0]  ;;  %v15249_v26 = vor.u32 %v20271_v32, %v15246_v41  ;;  %v20719_v1 = vld [vmem:[#allocation8 + $0x18cc] sm:$0xf]  ;;  %v1602_v32 = vperm.slane %v22299_v36, 0 }
 0x3c8   : > { %v17038_v3 = vld [vmem:[#allocation8 + $0x19c8] sm:$0xf0]  ;;  %v14732_v50 = vld [vmem:[#allocation8 + $0x6c8] sm:$0xf] }
 0x3c9   : > { %8064 = vmatpush.bf16.msra.mxu2 %v14213_v51  ;;  %8077 = vmatpush.bf16.msra.mxu3 %v16261_v6  ;;  %v20847_v51 = vld [vmem:[#allocation8 + $0x1ccc] sm:$0xf] }
 0x3ca   : > { %8090 = vmatpush.bf16.msrb.mxu0 %v14217_v21  ;;  %8103 = vmatpush.bf16.msrb.mxu1 %v16265_v23  ;;  %v17550_v6 = vld [vmem:[#allocation8 + $0x1dc8] sm:$0xf0]  ;;  %v20303_v21 = vld [vmem:[#allocation8 + $0xbc4] sm:$0xf0] }
 0x3cb   : > { %v17292_v23 = vld [vmem:[#allocation8 + $0x1ac8] sm:$0xf]  ;;  %v17553_v34 = vor.u32 %v20847_v51, %v17550_v6  ;;  %v15245_v10 = vor.u32 %v20303_v21, %v15244_v22  ;;  %v17041_v22 = vor.u32 %v20719_v1, %v17038_v3  ;;  %v20591_v1 = vld [vmem:[#allocation8 + $0x14cc] sm:$0xf] }
 0x3cc   : > { %v17293_v49 = vor.u32 %v20815_v4, %v17292_v23  ;;  %v20175_v51 = vld [vmem:[#allocation8 + $0x7c4] sm:$0xf0]  ;;  %v20143_v23 = vld [vmem:[#allocation8 + $0x6cc] sm:$0xf] }
 0x3cd   : > { %8065 = vmatpush.bf16.msra.mxu2 %v13957_v47  ;;  %8078 = vmatpush.bf16.msra.mxu3 %v16005_v60  ;;  %v1603_v47 = vperm.slane %v22299_v36, 1  ;;  %v14988_v60 = vld [vmem:[#allocation8 + $0x8c8] sm:$0xf]  ;;  %v16782_v4 = vld [vmem:[#allocation8 + $0x17c8] sm:$0xf0]  ;;  %v14733_v9 = vor.u32 %v20175_v51, %v14732_v50 }
 0x3ce   : > { %8091 = vmatpush.bf16.msrb.mxu0 %v13961_v54  ;;  %8104 = vmatpush.bf16.msrb.mxu1 %v16009_v56  ;;  %v17036_v54 = vld [vmem:[#allocation8 + $0x18c8] sm:$0xf]  ;;  %v14989_v62 = vor.u32 %v20239_v52, %v14988_v60  ;;  %v16526_v3 = vld [vmem:[#allocation8 + $0x15c8] sm:$0xf0] }
 0x3cf   : > { %v20751_v56 = vld [vmem:[#allocation8 + $0x19c4] sm:$0xf0] }
 0x3d0   : > { %8066 = vmatmul.bf16.vlgmr.msra.gmra.mxu2 %v22069_v2  ;;  %8079 = vmatmul.bf16.vlgmr.msra.gmra.mxu3 %v22071_v7  ;;  %v17037_v24 = vor.u32 %v20751_v56, %v17036_v54  ;;  %v16780_v6 = vld [vmem:[#allocation8 + $0x16c8] sm:$0xf]  ;;  %v20079_v56 = vld [vmem:[#allocation8 + $0x4cc] sm:$0xf] }
 0x3d1   : > { %8110 = vmatpush.bf16.msrb.mxu2 %v15757_v63  ;;  %8123 = vmatpush.bf16.msrb.mxu3 %v17805_v0  ;;  %v20207_v63 = vld [vmem:[#allocation8 + $0x8cc] sm:$0xf]  ;;  %v20687_v21 = vld [vmem:[#allocation8 + $0x17c4] sm:$0xf0] }
 0x3d2   : > { %8136 = vmatpush.bf16.msra.mxu0 %v15761_v5  ;;  %8149 = vmatpush.bf16.msra.mxu1 %v17809_v38  ;;  %v14990_v0 = vld [vmem:[#allocation8 + $0x9c8] sm:$0xf0]  ;;  %v7885_v5 = vpop.f32.mrf.mxu0  ;;  %v7898_v38 = vpop.f32.mrf.mxu1  ;;  %v16781_v45 = vor.u32 %v20687_v21, %v16780_v6  ;;  %v20623_v54 = vld [vmem:[#allocation8 + $0x15c4] sm:$0xf0] }
 0x3d3   : > { %8092 = vmatmul.bf16.vlgmr.msrb.gmra.mxu0 %v22069_v2  ;;  %8105 = vmatmul.bf16.vlgmr.msrb.gmra.mxu1 %v22071_v7  ;;  %v7859_v52 = vpop.f32.mrf.mxu2  ;;  %v14220_v51 = vld [vmem:[#allocation8 + $0x2c8] sm:$0xf] }
 0x3d4   : > { %v20047_v6 = vld [vmem:[#allocation8 + $0x3c4] sm:$0xf0] }
 0x3d5   : > { %8111 = vmatpush.bf16.msrb.mxu2 %v15501_v42  ;;  %8124 = vmatpush.bf16.msrb.mxu3 %v17549_v30  ;;  %v7886_v42 = vadd.f32 %v7885_v5, %v1603_v47  ;;  %v14993_v30 = vor.u32 %v20207_v63, %v14990_v0  ;;  %v7860_v63 = vadd.f32 %v7859_v52, %v1602_v32  ;;  %v14478_v0 = vld [vmem:[#allocation8 + $0x5c8] sm:$0xf0]  ;;  %v20559_v21 = vld [vmem:[#allocation8 + $0x13c4] sm:$0xf0] }
 0x3d6   : > { %8137 = vmatpush.bf16.msra.mxu0 %v15505_v27  ;;  %8150 = vmatpush.bf16.msra.mxu1 %v17553_v34  ;;  %v14734_v27 = vld [vmem:[#allocation8 + $0x7c8] sm:$0xf0]  ;;  %v13964_v32 = vld [vmem:[#allocation8 + $0xc8] sm:$0xf] }
 0x3d7   : > { %v20655_v34 = vld [vmem:[#allocation8 + $0x16cc] sm:$0xf]  ;;  %v22307_v41 = vadd.f32 %v7898_v38, %v7886_v42  ;;  %v14737_v47 = vor.u32 %v20143_v23, %v14734_v27  ;;  %v14481_v42 = vor.u32 %v20079_v56, %v14478_v0  ;;  %v19983_v52 = vld [vmem:[#allocation8 + $0x1c4] sm:$0xf0] }
 0x3d8   : > { %v16785_v60 = vor.u32 %v20655_v34, %v16782_v4  ;;  %v20015_v23 = vld [vmem:[#allocation8 + $0x2cc] sm:$0xf] }
 0x3d9   : > { %8112 = vmatpush.bf16.msrb.mxu2 %v15245_v10  ;;  %8125 = vmatpush.bf16.msrb.mxu3 %v17293_v49  ;;  %22568 = vst [vmem:[#allocation32_spill] sm:$0xff] %v22307_v41  ;;  %v14476_v10 = vld [vmem:[#allocation8 + $0x4c8] sm:$0xf]  ;;  %v14222_v27 = vld [vmem:[#allocation8 + $0x3c8] sm:$0xf0] }
 0x3da   : > { %8138 = vmatpush.bf16.msra.mxu0 %v15249_v26  ;;  %8151 = vmatpush.bf16.msra.mxu1 %v17297_v29  ;;  %v20111_v49 = vld [vmem:[#allocation8 + $0x5c4] sm:$0xf0]  ;;  %v7872_v26 = vpop.f32.mrf.mxu3  ;;  %v7887_v38 = vpop.f32.mrf.mxu0  ;;  %v20527_v34 = vld [vmem:[#allocation8 + $0x12cc] sm:$0xf]  ;;  %v20880_v41 = vld [vmem:[#allocation8 + $0x1dcc] sm:$0xf0] }
 0x3db   : > { %v16524_v29 = vld [vmem:[#allocation8 + $0x14c8] sm:$0xf]  ;;  %v22309_v5 = vadd.f32 %v7872_v26, %v7860_v63  ;;  %v16270_v4 = vld [vmem:[#allocation8 + $0x13c8] sm:$0xf0]  ;;  %v7861_v26 = vpop.f32.mrf.mxu2  ;;  %v17812_v38 = vld [vmem:[#allocation8 + $0x1ed0] sm:$0xf] }
 0x3dc   : > { %v16525_v50 = vor.u32 %v20623_v54, %v16524_v29  ;;  %v19951_v54 = vld [vmem:[#allocation8 + $0xcc] sm:$0xf] }
 0x3dd   : > { %8113 = vmatpush.bf16.msrb.mxu2 %v14989_v62  ;;  %8126 = vmatpush.bf16.msrb.mxu3 %v17037_v24  ;;  %22569 = vst [vmem:[#allocation33_spill] sm:$0xff] %v22309_v5  ;;  %v7900_v62 = vpop.f32.mrf.mxu1  ;;  %v14477_v24 = vor.u32 %v20111_v49, %v14476_v10  ;;  %v16012_v10 = vld [vmem:[#allocation8 + $0x10c8] sm:$0xf]  ;;  %v13966_v56 = vld [vmem:[#allocation8 + $0x1c8] sm:$0xf0] }
 0x3de   : > { %8139 = vmatpush.bf16.msra.mxu0 %v14993_v30  ;;  %8152 = vmatpush.bf16.msra.mxu1 %v17041_v22  ;;  %v16529_v30 = vor.u32 %v20591_v1, %v16526_v3  ;;  %v16268_v22 = vld [vmem:[#allocation8 + $0x12c8] sm:$0xf]  ;;  %v20463_v63 = vld [vmem:[#allocation8 + $0x10cc] sm:$0xf]  ;;  %v15764_v1 = vld [vmem:[#allocation8 + $0xed0] sm:$0xf] }
 0x3df   : > { %v20495_v49 = vld [vmem:[#allocation8 + $0x11c4] sm:$0xf0]  ;;  %v16014_v0 = vld [vmem:[#allocation8 + $0x11c8] sm:$0xf0]  ;;  %v20432_v3 = vld [vmem:[#allocation8 + $0xfcc] sm:$0xf0] }
 0x3e0   : > { %v20944_v62 = vld [vmem:[#allocation8 + $0x1fcc] sm:$0xf0] }
 0x3e1   : > { %8114 = vmatpush.bf16.msrb.mxu2 %v14733_v9  ;;  %8127 = vmatpush.bf16.msrb.mxu3 %v16781_v45  ;;  %v14221_v9 = vor.u32 %v20047_v6, %v14220_v51  ;;  %v16269_v45 = vor.u32 %v20559_v21, %v16268_v22  ;;  %v16013_v51 = vor.u32 %v20495_v49, %v16012_v10  ;;  %v15766_v6 = vld [vmem:[#allocation8 + $0xfd0] sm:$0xf0]  ;;  %v17556_v5 = vld [vmem:[#allocation8 + $0x1cd0] sm:$0xf] }
 0x3e2   : > { %8140 = vmatpush.bf16.msra.mxu0 %v14737_v47  ;;  %8153 = vmatpush.bf16.msra.mxu1 %v16785_v60  ;;  %v14225_v47 = vor.u32 %v20015_v23, %v14222_v27  ;;  %v16273_v60 = vor.u32 %v20527_v34, %v16270_v4  ;;  %v7874_v29 = vpop.f32.mrf.mxu3  ;;  %v13969_v22 = vor.u32 %v19951_v54, %v13966_v56  ;;  %v15508_v34 = vld [vmem:[#allocation8 + $0xcd0] sm:$0xf] }
 0x3e3   : > { %v16017_v21 = vor.u32 %v20463_v63, %v16014_v0  ;;  %v15765_v23 = vor.u32 %v20432_v3, %v15764_v1  ;;  %v17813_v27 = vor.u32 %v20944_v62, %v17812_v38  ;;  %v20368_v4 = vld [vmem:[#allocation8 + $0xdcc] sm:$0xf0]  ;;  %v17557_v10 = vor.u32 %v20880_v41, %v17556_v5  ;;  %v20272_v0 = vld [vmem:[#allocation8 + $0xad4] sm:$0xf] }
 0x3e4   : > { %v15252_v49 = vld [vmem:[#allocation8 + $0xad0] sm:$0xf]  ;;  %v15254_v1 = vld [vmem:[#allocation8 + $0xbd0] sm:$0xf0] }
 0x3e5   : > { %8115 = vmatpush.bf16.msrb.mxu2 %v14477_v24  ;;  %8128 = vmatpush.bf16.msrb.mxu3 %v16525_v50  ;;  %v20400_v24 = vld [vmem:[#allocation8 + $0xed4] sm:$0xf]  ;;  %v13965_v50 = vor.u32 %v19983_v52, %v13964_v32  ;;  %v15509_v52 = vor.u32 %v20368_v4, %v15508_v34  ;;  %v17300_v56 = vld [vmem:[#allocation8 + $0x1ad0] sm:$0xf] }
 0x3e6   : > { %8141 = vmatpush.bf16.msra.mxu0 %v14481_v42  ;;  %8154 = vmatpush.bf16.msra.mxu1 %v16529_v30  ;;  %v20912_v42 = vld [vmem:[#allocation8 + $0x1ed4] sm:$0xf]  ;;  %v15769_v26 = vor.u32 %v20400_v24, %v15766_v6  ;;  %v20816_v63 = vld [vmem:[#allocation8 + $0x1bcc] sm:$0xf0] }
 0x3e7   : > { %v17814_v30 = vld [vmem:[#allocation8 + $0x1fd0] sm:$0xf0]  ;;  %v17301_v5 = vor.u32 %v20816_v63, %v17300_v56  ;;  %v14996_v62 = vld [vmem:[#allocation8 + $0x8d0] sm:$0xf]  ;;  %v1604_v63 = vperm.slane %v22299_v36, 2 }
 0x3e8   : > { %v17817_v29 = vor.u32 %v20912_v42, %v17814_v30  ;;  %v15510_v32 = vld [vmem:[#allocation8 + $0xdd0] sm:$0xf0]  ;;  %v20240_v24 = vld [vmem:[#allocation8 + $0x9cc] sm:$0xf0] }
 0x3e9   : > { %8116 = vmatpush.bf16.msrb.mxu2 %v14221_v9  ;;  %8129 = vmatpush.bf16.msrb.mxu3 %v16269_v45  ;;  %v20848_v9 = vld [vmem:[#allocation8 + $0x1cd4] sm:$0xf]  ;;  %v17044_v6 = vld [vmem:[#allocation8 + $0x18d0] sm:$0xf]  ;;  %v14997_v4 = vor.u32 %v20240_v24, %v14996_v62 }
 0x3ea   : > { %8142 = vmatpush.bf16.msra.mxu0 %v14225_v47  ;;  %8155 = vmatpush.bf16.msra.mxu1 %v16273_v60  ;;  %v17558_v45 = vld [vmem:[#allocation8 + $0x1dd0] sm:$0xf0]  ;;  %v20304_v47 = vld [vmem:[#allocation8 + $0xbcc] sm:$0xf0]  ;;  %v15513_v60 = vor.u32 %v20336_v19, %v15510_v32  ;;  %v1605_v19 = vperm.slane %v22299_v36, 3 }
 0x3eb   : > { %v17561_v54 = vor.u32 %v20848_v9, %v17558_v45  ;;  %v20784_v3 = vld [vmem:[#allocation8 + $0x1ad4] sm:$0xf]  ;;  %v15253_v41 = vor.u32 %v20304_v47, %v15252_v49  ;;  %v20752_v42 = vld [vmem:[#allocation8 + $0x19cc] sm:$0xf0] }
 0x3ec   : > { %v17302_v38 = vld [vmem:[#allocation8 + $0x1bd0] sm:$0xf0]  ;;  %v20176_v32 = vld [vmem:[#allocation8 + $0x7cc] sm:$0xf0] }
 0x3ed   : > { %8117 = vmatpush.bf16.msrb.mxu2 %v13965_v50  ;;  %8130 = vmatpush.bf16.msrb.mxu3 %v16013_v51  ;;  %v15257_v50 = vor.u32 %v20272_v0, %v15254_v1  ;;  %v17305_v51 = vor.u32 %v20784_v3, %v17302_v38  ;;  %v20208_v30 = vld [vmem:[#allocation8 + $0x8d4] sm:$0xf]  ;;  %v16788_v9 = vld [vmem:[#allocation8 + $0x16d0] sm:$0xf] }
 0x3ee   : > { %8143 = vmatpush.bf16.msra.mxu0 %v13969_v22  ;;  %8156 = vmatpush.bf16.msra.mxu1 %v16017_v21  ;;  %v14998_v22 = vld [vmem:[#allocation8 + $0x9d0] sm:$0xf0]  ;;  %v20688_v49 = vld [vmem:[#allocation8 + $0x17cc] sm:$0xf0] }
 0x3ef   : > { %v20720_v21 = vld [vmem:[#allocation8 + $0x18d4] sm:$0xf]  ;;  %v16789_v3 = vor.u32 %v20688_v49, %v16788_v9  ;;  %v14484_v38 = vld [vmem:[#allocation8 + $0x4d0] sm:$0xf] }
 0x3f0   : > { %8118 = vmatmul.bf16.vlgmr.msrb.gmra.mxu2 %v22069_v2  ;;  %8131 = vmatmul.bf16.vlgmr.msrb.gmra.mxu3 %v22071_v7  ;;  %v7950_v34 = vpop.f32.mrf.mxu1  ;;  %v20144_v47 = vld [vmem:[#allocation8 + $0x6d4] sm:$0xf] }
 0x3f1   : > { %8162 = vmatpush.bf16.msra.mxu2 %v15765_v23  ;;  %8175 = vmatpush.bf16.msra.mxu3 %v17813_v27  ;;  %v17046_v23 = vld [vmem:[#allocation8 + $0x19d0] sm:$0xf0]  ;;  %v7937_v27 = vpop.f32.mrf.mxu0 }
 0x3f2   : > { %8188 = vmatpush.bf16.msrb.mxu0 %v15769_v26  ;;  %8201 = vmatpush.bf16.msrb.mxu1 %v17817_v29  ;;  %v17045_v26 = vor.u32 %v20752_v42, %v17044_v6  ;;  %v14740_v29 = vld [vmem:[#allocation8 + $0x6d0] sm:$0xf]  ;;  %v7938_v45 = vadd.f32 %v7937_v27, %v1605_v19  ;;  %v16790_v56 = vld [vmem:[#allocation8 + $0x17d0] sm:$0xf0] }
 0x3f3   : > { %8144 = vmatmul.bf16.vlgmr.msra.gmra.mxu0 %v22069_v2  ;;  %8157 = vmatmul.bf16.vlgmr.msra.gmra.mxu1 %v22071_v7  ;;  %v14741_v1 = vor.u32 %v20176_v32, %v14740_v29  ;;  %v7911_v62 = vpop.f32.mrf.mxu2  ;;  %v7924_v24 = vpop.f32.mrf.mxu3  ;;  %v20080_v6 = vld [vmem:[#allocation8 + $0x4d4] sm:$0xf]  ;;  %v14228_v29 = vld [vmem:[#allocation8 + $0x2d0] sm:$0xf] }
 0x3f4   : > { %v22317_v0 = vadd.f32 %v7950_v34, %v7938_v45  ;;  %v7912_v42 = vadd.f32 %v7911_v62, %v1604_v63  ;;  %v20048_v32 = vld [vmem:[#allocation8 + $0x3cc] sm:$0xf0]  ;;  %v20016_v49 = vld [vmem:[#allocation8 + $0x2d4] sm:$0xf] }
 0x3f5   : > { %8163 = vmatpush.bf16.msra.mxu2 %v15509_v52  ;;  %8176 = vmatpush.bf16.msra.mxu3 %v17557_v10  ;;  %v15001_v52 = vor.u32 %v20208_v30, %v14998_v22  ;;  %v17049_v10 = vor.u32 %v20720_v21, %v17046_v23  ;;  %v14486_v30 = vld [vmem:[#allocation8 + $0x5d0] sm:$0xf0]  ;;  %v14229_v63 = vor.u32 %v20048_v32, %v14228_v29  ;;  %v15774_v29 = vld [vmem:[#allocation8 + $0xfd8] sm:$0xf0] }
 0x3f6   : > { %8189 = vmatpush.bf16.msrb.mxu0 %v15513_v60  ;;  %8202 = vmatpush.bf16.msrb.mxu1 %v17561_v54  ;;  %v14742_v60 = vld [vmem:[#allocation8 + $0x7d0] sm:$0xf0]  ;;  %22570 = vst [vmem:[#allocation34_spill] sm:$0xff] %v22317_v0  ;;  %v22319_v23 = vadd.f32 %v7924_v24, %v7912_v42  ;;  %v14489_v9 = vor.u32 %v20080_v6, %v14486_v30  ;;  %v15772_v30 = vld [vmem:[#allocation8 + $0xed8] sm:$0xf] }
 0x3f7   : > { %v20656_v54 = vld [vmem:[#allocation8 + $0x16d4] sm:$0xf]  ;;  %v20913_v32 = vld [vmem:[#allocation8 + $0x1edc] sm:$0xf] }
 0x3f8   : > { %v16793_v19 = vor.u32 %v20656_v54, %v16790_v56  ;;  %v20592_v22 = vld [vmem:[#allocation8 + $0x14d4] sm:$0xf]  ;;  %22571 = vst [vmem:[#allocation35_spill] sm:$0xff] %v22319_v23  ;;  %v7952_v34 = vpop.f32.mrf.mxu1  ;;  %v13972_v56 = vld [vmem:[#allocation8 + $0xd0] sm:$0xf] }
 0x3f9   : > { %8164 = vmatpush.bf16.msra.mxu2 %v15253_v41  ;;  %8177 = vmatpush.bf16.msra.mxu3 %v17301_v5  ;;  %v20112_v41 = vld [vmem:[#allocation8 + $0x5cc] sm:$0xf0]  ;;  %v14745_v5 = vor.u32 %v20144_v47, %v14742_v60  ;;  %v16534_v21 = vld [vmem:[#allocation8 + $0x15d0] sm:$0xf0]  ;;  %v7939_v27 = vpop.f32.mrf.mxu0  ;;  %v20401_v34 = vld [vmem:[#allocation8 + $0xedc] sm:$0xf] }
 0x3fa   : > { %8190 = vmatpush.bf16.msrb.mxu0 %v15257_v50  ;;  %8203 = vmatpush.bf16.msrb.mxu1 %v17305_v51  ;;  %v16532_v50 = vld [vmem:[#allocation8 + $0x14d0] sm:$0xf]  ;;  %v16537_v45 = vor.u32 %v20592_v22, %v16534_v21  ;;  %v14230_v47 = vld [vmem:[#allocation8 + $0x3d0] sm:$0xf0]  ;;  %v20433_v22 = vld [vmem:[#allocation8 + $0xfd4] sm:$0xf0] }
 0x3fb   : > { %v20624_v51 = vld [vmem:[#allocation8 + $0x15cc] sm:$0xf0]  ;;  %v20528_v60 = vld [vmem:[#allocation8 + $0x12d4] sm:$0xf]  ;;  %v7913_v62 = vpop.f32.mrf.mxu2  ;;  %v7926_v24 = vpop.f32.mrf.mxu3  ;;  %v17820_v21 = vld [vmem:[#allocation8 + $0x1ed8] sm:$0xf] }
 0x3fc   : > { %v16278_v54 = vld [vmem:[#allocation8 + $0x13d0] sm:$0xf0]  ;;  %v20945_v27 = vld [vmem:[#allocation8 + $0x1fd4] sm:$0xf0]  ;;  %v20337_v0 = vld [vmem:[#allocation8 + $0xcdc] sm:$0xf] }
 0x3fd   : > { %8165 = vmatpush.bf16.msra.mxu2 %v14997_v4  ;;  %8178 = vmatpush.bf16.msra.mxu3 %v17045_v26  ;;  %v14485_v4 = vor.u32 %v20112_v41, %v14484_v38  ;;  %v16533_v26 = vor.u32 %v20624_v51, %v16532_v50  ;;  %v16020_v38 = vld [vmem:[#allocation8 + $0x10d0] sm:$0xf]  ;;  %v19952_v50 = vld [vmem:[#allocation8 + $0xd4] sm:$0xf]  ;;  %v17564_v24 = vld [vmem:[#allocation8 + $0x1cd8] sm:$0xf] }
 0x3fe   : > { %8191 = vmatpush.bf16.msrb.mxu0 %v15001_v52  ;;  %8204 = vmatpush.bf16.msrb.mxu1 %v17049_v10  ;;  %v16276_v52 = vld [vmem:[#allocation8 + $0x12d0] sm:$0xf]  ;;  %v13974_v51 = vld [vmem:[#allocation8 + $0x1d0] sm:$0xf0]  ;;  %v20881_v23 = vld [vmem:[#allocation8 + $0x1dd4] sm:$0xf0] }
 0x3ff   : > { %v20560_v10 = vld [vmem:[#allocation8 + $0x13cc] sm:$0xf0]  ;;  %v20464_v6 = vld [vmem:[#allocation8 + $0x10d4] sm:$0xf] }
 0x400   : > { %v20496_v41 = vld [vmem:[#allocation8 + $0x11cc] sm:$0xf0]  ;;  %v16022_v42 = vld [vmem:[#allocation8 + $0x11d0] sm:$0xf0] }
 0x401   : > { %8166 = vmatpush.bf16.msra.mxu2 %v14741_v1  ;;  %8179 = vmatpush.bf16.msra.mxu3 %v16789_v3  ;;  %v16277_v1 = vor.u32 %v20560_v10, %v16276_v52  ;;  %v19984_v3 = vld [vmem:[#allocation8 + $0x1cc] sm:$0xf0]  ;;  %v16025_v52 = vor.u32 %v20464_v6, %v16022_v42  ;;  %v15773_v10 = vor.u32 %v20433_v22, %v15772_v30  ;;  %v20817_v6 = vld [vmem:[#allocation8 + $0x1bd4] sm:$0xf0]  ;;  %v20273_v42 = vld [vmem:[#allocation8 + $0xadc] sm:$0xf] }
 0x402   : > { %8192 = vmatpush.bf16.msrb.mxu0 %v14745_v5  ;;  %8205 = vmatpush.bf16.msrb.mxu1 %v16793_v19  ;;  %v14233_v5 = vor.u32 %v20016_v49, %v14230_v47  ;;  %v16281_v19 = vor.u32 %v20528_v60, %v16278_v54  ;;  %v17821_v49 = vor.u32 %v20945_v27, %v17820_v21  ;;  %v15516_v47 = vld [vmem:[#allocation8 + $0xcd8] sm:$0xf]  ;;  %v15262_v30 = vld [vmem:[#allocation8 + $0xbd8] sm:$0xf0] }
 0x403   : > { %v20369_v60 = vld [vmem:[#allocation8 + $0xdd4] sm:$0xf0]  ;;  %v15777_v54 = vor.u32 %v20401_v34, %v15774_v29  ;;  %v20785_v22 = vld [vmem:[#allocation8 + $0x1adc] sm:$0xf] }
 0x404   : > { %v17310_v21 = vld [vmem:[#allocation8 + $0x1bd8] sm:$0xf0]  ;;  %v15004_v34 = vld [vmem:[#allocation8 + $0x8d8] sm:$0xf] }
 0x405   : > { %8167 = vmatpush.bf16.msra.mxu2 %v14485_v4  ;;  %8180 = vmatpush.bf16.msra.mxu3 %v16533_v26  ;;  %v13973_v4 = vor.u32 %v19984_v3, %v13972_v56  ;;  %v16021_v26 = vor.u32 %v20496_v41, %v16020_v38  ;;  %v15518_v56 = vld [vmem:[#allocation8 + $0xdd8] sm:$0xf0]  ;;  %v15517_v3 = vor.u32 %v20369_v60, %v15516_v47  ;;  %v15260_v41 = vld [vmem:[#allocation8 + $0xad8] sm:$0xf] }
 0x406   : > { %8193 = vmatpush.bf16.msrb.mxu0 %v14489_v9  ;;  %8206 = vmatpush.bf16.msrb.mxu1 %v16537_v45  ;;  %v17822_v9 = vld [vmem:[#allocation8 + $0x1fd8] sm:$0xf0]  ;;  %v13977_v45 = vor.u32 %v19952_v50, %v13974_v51  ;;  %v17565_v38 = vor.u32 %v20881_v23, %v17564_v24  ;;  %v17308_v51 = vld [vmem:[#allocation8 + $0x1ad8] sm:$0xf]  ;;  %v17313_v29 = vor.u32 %v20785_v22, %v17310_v21 }
 0x407   : > { %v17825_v62 = vor.u32 %v20913_v32, %v17822_v9  ;;  %v17309_v27 = vor.u32 %v20817_v6, %v17308_v51  ;;  %v17052_v32 = vld [vmem:[#allocation8 + $0x18d8] sm:$0xf]  ;;  %v16798_v51 = vld [vmem:[#allocation8 + $0x17d8] sm:$0xf0]  ;;  %v1606_v6 = vperm.slane %v22299_v36, 4 }
 0x408   : > { %v20753_v9 = vld [vmem:[#allocation8 + $0x19d4] sm:$0xf0] }
 0x409   : > { %8168 = vmatpush.bf16.msra.mxu2 %v14229_v63  ;;  %8181 = vmatpush.bf16.msra.mxu3 %v16277_v1  ;;  %v20849_v63 = vld [vmem:[#allocation8 + $0x1cdc] sm:$0xf]  ;;  %v14748_v24 = vld [vmem:[#allocation8 + $0x6d8] sm:$0xf] }
 0x40a   : > { %8194 = vmatpush.bf16.msrb.mxu0 %v14233_v5  ;;  %8207 = vmatpush.bf16.msrb.mxu1 %v16281_v19  ;;  %v17566_v1 = vld [vmem:[#allocation8 + $0x1dd8] sm:$0xf0]  ;;  %v20305_v5 = vld [vmem:[#allocation8 + $0xbd4] sm:$0xf0]  ;;  %v15521_v19 = vor.u32 %v20337_v0, %v15518_v56  ;;  %v1607_v0 = vperm.slane %v22299_v36, 5 }
 0x40b   : > { %v17569_v50 = vor.u32 %v20849_v63, %v17566_v1  ;;  %v15261_v23 = vor.u32 %v20305_v5, %v15260_v41  ;;  %v20177_v56 = vld [vmem:[#allocation8 + $0x7d4] sm:$0xf0]  ;;  %v20145_v5 = vld [vmem:[#allocation8 + $0x6dc] sm:$0xf] }
 0x40c   : > { %v16796_v63 = vld [vmem:[#allocation8 + $0x16d8] sm:$0xf] }
 0x40d   : > { %8169 = vmatpush.bf16.msra.mxu2 %v13973_v4  ;;  %8182 = vmatpush.bf16.msra.mxu3 %v16021_v26  ;;  %v20241_v4 = vld [vmem:[#allocation8 + $0x9d4] sm:$0xf0]  ;;  %v15265_v26 = vor.u32 %v20273_v42, %v15262_v30  ;;  %v14749_v30 = vor.u32 %v20177_v56, %v14748_v24 }
 0x40e   : > { %8195 = vmatpush.bf16.msrb.mxu0 %v13977_v45  ;;  %8208 = vmatpush.bf16.msrb.mxu1 %v16025_v52  ;;  %v20209_v45 = vld [vmem:[#allocation8 + $0x8dc] sm:$0xf]  ;;  %v20689_v41 = vld [vmem:[#allocation8 + $0x17d4] sm:$0xf0] }
 0x40f   : > { %v15006_v52 = vld [vmem:[#allocation8 + $0x9d8] sm:$0xf0]  ;;  %v16797_v22 = vor.u32 %v20689_v41, %v16796_v63  ;;  %v14492_v21 = vld [vmem:[#allocation8 + $0x4d8] sm:$0xf] }
 0x410   : > { %8170 = vmatmul.bf16.vlgmr.msra.gmra.mxu2 %v22069_v2  ;;  %8183 = vmatmul.bf16.vlgmr.msra.gmra.mxu3 %v22071_v7  ;;  %v7989_v47 = vpop.f32.mrf.mxu0  ;;  %v8002_v60 = vpop.f32.mrf.mxu1  ;;  %v14236_v24 = vld [vmem:[#allocation8 + $0x2d8] sm:$0xf]  ;;  %v20017_v41 = vld [vmem:[#allocation8 + $0x2dc] sm:$0xf] }
 0x411   : > { %8214 = vmatpush.bf16.msrb.mxu2 %v15773_v10  ;;  %8227 = vmatpush.bf16.msrb.mxu3 %v17821_v49  ;;  %v20721_v10 = vld [vmem:[#allocation8 + $0x18dc] sm:$0xf]  ;;  %v7990_v1 = vadd.f32 %v7989_v47, %v1607_v0  ;;  %v20049_v56 = vld [vmem:[#allocation8 + $0x3d4] sm:$0xf0] }
 0x412   : > { %8240 = vmatpush.bf16.msra.mxu0 %v15777_v54  ;;  %8253 = vmatpush.bf16.msra.mxu1 %v17825_v62  ;;  %v17054_v49 = vld [vmem:[#allocation8 + $0x19d8] sm:$0xf0]  ;;  %v15005_v54 = vor.u32 %v20241_v4, %v15004_v34  ;;  %v17053_v62 = vor.u32 %v20753_v9, %v17052_v32 }
 0x413   : > { %8196 = vmatmul.bf16.vlgmr.msrb.gmra.mxu0 %v22069_v2  ;;  %8209 = vmatmul.bf16.vlgmr.msrb.gmra.mxu1 %v22071_v7  ;;  %v22327_v42 = vadd.f32 %v8002_v60, %v7990_v1  ;;  %v7963_v34 = vpop.f32.mrf.mxu2  ;;  %v7976_v4 = vpop.f32.mrf.mxu3  ;;  %v20081_v32 = vld [vmem:[#allocation8 + $0x4dc] sm:$0xf] }
 0x414   : > { %v7964_v9 = vadd.f32 %v7963_v34, %v1606_v6  ;;  %v14237_v6 = vor.u32 %v20049_v56, %v14236_v24  ;;  %v15782_v24 = vld [vmem:[#allocation8 + $0xfe0] sm:$0xf0] }
 0x415   : > { %8215 = vmatpush.bf16.msrb.mxu2 %v15517_v3  ;;  %8228 = vmatpush.bf16.msrb.mxu3 %v17565_v38  ;;  %v15009_v3 = vor.u32 %v20209_v45, %v15006_v52  ;;  %v17057_v38 = vor.u32 %v20721_v10, %v17054_v49  ;;  %22572 = vst [vmem:[#allocation36_spill] sm:$0xff] %v22327_v42  ;;  %v14494_v45 = vld [vmem:[#allocation8 + $0x5d8] sm:$0xf0]  ;;  %v20914_v56 = vld [vmem:[#allocation8 + $0x1ee4] sm:$0xf] }
 0x416   : > { %8241 = vmatpush.bf16.msra.mxu0 %v15521_v19  ;;  %8254 = vmatpush.bf16.msra.mxu1 %v17569_v50  ;;  %v14750_v19 = vld [vmem:[#allocation8 + $0x7d8] sm:$0xf0]  ;;  %v22329_v49 = vadd.f32 %v7976_v4, %v7964_v9  ;;  %v14497_v63 = vor.u32 %v20081_v32, %v14494_v45  ;;  %v15780_v45 = vld [vmem:[#allocation8 + $0xee0] sm:$0xf]  ;;  %v20338_v42 = vld [vmem:[#allocation8 + $0xce4] sm:$0xf] }
 0x417   : > { %v20657_v50 = vld [vmem:[#allocation8 + $0x16dc] sm:$0xf] }
 0x418   : > { %v16801_v0 = vor.u32 %v20657_v50, %v16798_v51  ;;  %v20593_v52 = vld [vmem:[#allocation8 + $0x14dc] sm:$0xf]  ;;  %22573 = vst [vmem:[#allocation37_spill] sm:$0xff] %v22329_v49  ;;  %v7991_v47 = vpop.f32.mrf.mxu0  ;;  %v8004_v60 = vpop.f32.mrf.mxu1  ;;  %v13980_v51 = vld [vmem:[#allocation8 + $0xd8] sm:$0xf] }
 0x419   : > { %8216 = vmatpush.bf16.msrb.mxu2 %v15261_v23  ;;  %8229 = vmatpush.bf16.msrb.mxu3 %v17309_v27  ;;  %v20113_v23 = vld [vmem:[#allocation8 + $0x5d4] sm:$0xf0]  ;;  %v14753_v27 = vor.u32 %v20145_v5, %v14750_v19  ;;  %v16542_v10 = vld [vmem:[#allocation8 + $0x15d8] sm:$0xf0]  ;;  %v20946_v47 = vld [vmem:[#allocation8 + $0x1fdc] sm:$0xf0] }
 0x41a   : > { %8242 = vmatpush.bf16.msra.mxu0 %v15265_v26  ;;  %8255 = vmatpush.bf16.msra.mxu1 %v17313_v29  ;;  %v16540_v26 = vld [vmem:[#allocation8 + $0x14d8] sm:$0xf]  ;;  %v16545_v1 = vor.u32 %v20593_v52, %v16542_v10  ;;  %v14238_v5 = vld [vmem:[#allocation8 + $0x3d8] sm:$0xf0]  ;;  %v20434_v52 = vld [vmem:[#allocation8 + $0xfdc] sm:$0xf0] }
 0x41b   : > { %v20625_v29 = vld [vmem:[#allocation8 + $0x15d4] sm:$0xf0]  ;;  %v20529_v19 = vld [vmem:[#allocation8 + $0x12dc] sm:$0xf]  ;;  %v7965_v34 = vpop.f32.mrf.mxu2  ;;  %v7978_v4 = vpop.f32.mrf.mxu3  ;;  %v17828_v10 = vld [vmem:[#allocation8 + $0x1ee0] sm:$0xf] }
 0x41c   : > { %v16286_v50 = vld [vmem:[#allocation8 + $0x13d8] sm:$0xf0]  ;;  %v20402_v60 = vld [vmem:[#allocation8 + $0xee4] sm:$0xf]  ;;  %v17572_v4 = vld [vmem:[#allocation8 + $0x1ce0] sm:$0xf] }
 0x41d   : > { %8217 = vmatpush.bf16.msrb.mxu2 %v15005_v54  ;;  %8230 = vmatpush.bf16.msrb.mxu3 %v17053_v62  ;;  %v14493_v54 = vor.u32 %v20113_v23, %v14492_v21  ;;  %v16541_v62 = vor.u32 %v20625_v29, %v16540_v26  ;;  %v16028_v21 = vld [vmem:[#allocation8 + $0x10d8] sm:$0xf]  ;;  %v19953_v26 = vld [vmem:[#allocation8 + $0xdc] sm:$0xf]  ;;  %v20882_v49 = vld [vmem:[#allocation8 + $0x1ddc] sm:$0xf0] }
 0x41e   : > { %8243 = vmatpush.bf16.msra.mxu0 %v15009_v3  ;;  %8256 = vmatpush.bf16.msra.mxu1 %v17057_v38  ;;  %v16284_v3 = vld [vmem:[#allocation8 + $0x12d8] sm:$0xf]  ;;  %v13982_v29 = vld [vmem:[#allocation8 + $0x1d8] sm:$0xf0] }
 0x41f   : > { %v20561_v38 = vld [vmem:[#allocation8 + $0x13d4] sm:$0xf0]  ;;  %v20465_v32 = vld [vmem:[#allocation8 + $0x10dc] sm:$0xf] }
 0x420   : > { %v20497_v23 = vld [vmem:[#allocation8 + $0x11d4] sm:$0xf0]  ;;  %v16030_v9 = vld [vmem:[#allocation8 + $0x11d8] sm:$0xf0] }
 0x421   : > { %8218 = vmatpush.bf16.msrb.mxu2 %v14749_v30  ;;  %8231 = vmatpush.bf16.msrb.mxu3 %v16797_v22  ;;  %v16285_v30 = vor.u32 %v20561_v38, %v16284_v3  ;;  %v19985_v22 = vld [vmem:[#allocation8 + $0x1d4] sm:$0xf0]  ;;  %v16033_v3 = vor.u32 %v20465_v32, %v16030_v9  ;;  %v15781_v38 = vor.u32 %v20434_v52, %v15780_v45  ;;  %v20818_v32 = vld [vmem:[#allocation8 + $0x1bdc] sm:$0xf0]  ;;  %v20274_v9 = vld [vmem:[#allocation8 + $0xae4] sm:$0xf] }
 0x422   : > { %8244 = vmatpush.bf16.msra.mxu0 %v14753_v27  ;;  %8257 = vmatpush.bf16.msra.mxu1 %v16801_v0  ;;  %v14241_v27 = vor.u32 %v20017_v41, %v14238_v5  ;;  %v16289_v0 = vor.u32 %v20529_v19, %v16286_v50  ;;  %v17829_v41 = vor.u32 %v20946_v47, %v17828_v10  ;;  %v15524_v5 = vld [vmem:[#allocation8 + $0xce0] sm:$0xf]  ;;  %v15270_v45 = vld [vmem:[#allocation8 + $0xbe0] sm:$0xf0] }
 0x423   : > { %v20370_v19 = vld [vmem:[#allocation8 + $0xddc] sm:$0xf0]  ;;  %v15785_v50 = vor.u32 %v20402_v60, %v15782_v24  ;;  %v20786_v52 = vld [vmem:[#allocation8 + $0x1ae4] sm:$0xf] }
 0x424   : > { %v17318_v10 = vld [vmem:[#allocation8 + $0x1be0] sm:$0xf0]  ;;  %v15012_v60 = vld [vmem:[#allocation8 + $0x8e0] sm:$0xf] }
 0x425   : > { %8219 = vmatpush.bf16.msrb.mxu2 %v14493_v54  ;;  %8232 = vmatpush.bf16.msrb.mxu3 %v16541_v62  ;;  %v13981_v54 = vor.u32 %v19985_v22, %v13980_v51  ;;  %v16029_v62 = vor.u32 %v20497_v23, %v16028_v21  ;;  %v15526_v51 = vld [vmem:[#allocation8 + $0xde0] sm:$0xf0]  ;;  %v15525_v22 = vor.u32 %v20370_v19, %v15524_v5  ;;  %v15268_v23 = vld [vmem:[#allocation8 + $0xae0] sm:$0xf] }
 0x426   : > { %8245 = vmatpush.bf16.msra.mxu0 %v14497_v63  ;;  %8258 = vmatpush.bf16.msra.mxu1 %v16545_v1  ;;  %v17830_v63 = vld [vmem:[#allocation8 + $0x1fe0] sm:$0xf0]  ;;  %v13985_v1 = vor.u32 %v19953_v26, %v13982_v29  ;;  %v17573_v21 = vor.u32 %v20882_v49, %v17572_v4  ;;  %v17316_v29 = vld [vmem:[#allocation8 + $0x1ae0] sm:$0xf]  ;;  %v17321_v24 = vor.u32 %v20786_v52, %v17318_v10 }
 0x427   : > { %v17833_v34 = vor.u32 %v20914_v56, %v17830_v63  ;;  %v17317_v47 = vor.u32 %v20818_v32, %v17316_v29  ;;  %v17060_v56 = vld [vmem:[#allocation8 + $0x18e0] sm:$0xf]  ;;  %v16806_v29 = vld [vmem:[#allocation8 + $0x17e0] sm:$0xf0]  ;;  %v1608_v32 = vperm.slane %v22299_v36, 6 }
 0x428   : > { %v20754_v63 = vld [vmem:[#allocation8 + $0x19dc] sm:$0xf0] }
 0x429   : > { %8220 = vmatpush.bf16.msrb.mxu2 %v14237_v6  ;;  %8233 = vmatpush.bf16.msrb.mxu3 %v16285_v30  ;;  %v20850_v6 = vld [vmem:[#allocation8 + $0x1ce4] sm:$0xf]  ;;  %v14756_v4 = vld [vmem:[#allocation8 + $0x6e0] sm:$0xf] }
 0x42a   : > { %8246 = vmatpush.bf16.msra.mxu0 %v14241_v27  ;;  %8259 = vmatpush.bf16.msra.mxu1 %v16289_v0  ;;  %v17574_v30 = vld [vmem:[#allocation8 + $0x1de0] sm:$0xf0]  ;;  %v20306_v27 = vld [vmem:[#allocation8 + $0xbdc] sm:$0xf0]  ;;  %v15529_v0 = vor.u32 %v20338_v42, %v15526_v51  ;;  %v1609_v42 = vperm.slane %v22299_v36, 7 }
 0x42b   : > { %v17577_v26 = vor.u32 %v20850_v6, %v17574_v30  ;;  %v15269_v49 = vor.u32 %v20306_v27, %v15268_v23  ;;  %v20178_v51 = vld [vmem:[#allocation8 + $0x7dc] sm:$0xf0]  ;;  %v20146_v27 = vld [vmem:[#allocation8 + $0x6e4] sm:$0xf] }
 0x42c   : > { %v16804_v6 = vld [vmem:[#allocation8 + $0x16e0] sm:$0xf]  ;;  %v20594_v36 = vld [vmem:[#allocation8 + $0x14e4] sm:$0xf] }
 0x42d   : > { %8221 = vmatpush.bf16.msrb.mxu2 %v13981_v54  ;;  %8234 = vmatpush.bf16.msrb.mxu3 %v16029_v62  ;;  %v20242_v54 = vld [vmem:[#allocation8 + $0x9dc] sm:$0xf0]  ;;  %v15273_v62 = vor.u32 %v20274_v9, %v15270_v45  ;;  %v14757_v45 = vor.u32 %v20178_v51, %v14756_v4 }
 0x42e   : > { %8247 = vmatpush.bf16.msra.mxu0 %v13985_v1  ;;  %8260 = vmatpush.bf16.msra.mxu1 %v16033_v3  ;;  %v20210_v1 = vld [vmem:[#allocation8 + $0x8e4] sm:$0xf]  ;;  %v20690_v23 = vld [vmem:[#allocation8 + $0x17dc] sm:$0xf0] }
 0x42f   : > { %v15014_v3 = vld [vmem:[#allocation8 + $0x9e0] sm:$0xf0]  ;;  %v16805_v52 = vor.u32 %v20690_v23, %v16804_v6  ;;  %v14500_v10 = vld [vmem:[#allocation8 + $0x4e0] sm:$0xf] }
 0x430   : > { %8222 = vmatmul.bf16.vlgmr.msrb.gmra.mxu2 %v22069_v2  ;;  %8235 = vmatmul.bf16.vlgmr.msrb.gmra.mxu3 %v22071_v7  ;;  %v8041_v5 = vpop.f32.mrf.mxu0  ;;  %v8054_v19 = vpop.f32.mrf.mxu1  ;;  %v20050_v4 = vld [vmem:[#allocation8 + $0x3dc] sm:$0xf0]  ;;  %v14246_v23 = vld [vmem:[#allocation8 + $0x3e0] sm:$0xf0] }
 0x431   : > { %8266 = vmatpush.bf16.msra.mxu2 %v15781_v38  ;;  %8279 = vmatpush.bf16.msra.mxu3 %v17829_v41  ;;  %v20722_v38 = vld [vmem:[#allocation8 + $0x18e4] sm:$0xf]  ;;  %v8042_v30 = vadd.f32 %v8041_v5, %v1609_v42 }
 0x432   : > { %8292 = vmatpush.bf16.msrb.mxu0 %v15785_v50  ;;  %8305 = vmatpush.bf16.msrb.mxu1 %v17833_v34  ;;  %v17062_v41 = vld [vmem:[#allocation8 + $0x19e0] sm:$0xf0]  ;;  %v15013_v50 = vor.u32 %v20242_v54, %v15012_v60  ;;  %v17061_v34 = vor.u32 %v20754_v63, %v17060_v56 }
 0x433   : > { %8248 = vmatmul.bf16.vlgmr.msra.gmra.mxu0 %v22069_v2  ;;  %8261 = vmatmul.bf16.vlgmr.msra.gmra.mxu1 %v22071_v7  ;;  %v22337_v9 = vadd.f32 %v8054_v19, %v8042_v30  ;;  %v8015_v60 = vpop.f32.mrf.mxu2  ;;  %v8028_v54 = vpop.f32.mrf.mxu3  ;;  %v20082_v56 = vld [vmem:[#allocation8 + $0x4e4] sm:$0xf]  ;;  %v16292_v30 = vld [vmem:[#allocation8 + $0x12e0] sm:$0xf] }
 0x434   : > { %v8016_v63 = vadd.f32 %v8015_v60, %v1608_v32 }
 0x435   : > { %8267 = vmatpush.bf16.msra.mxu2 %v15525_v22  ;;  %8280 = vmatpush.bf16.msra.mxu3 %v17573_v21  ;;  %v15017_v22 = vor.u32 %v20210_v1, %v15014_v3  ;;  %v17065_v21 = vor.u32 %v20722_v38, %v17062_v41  ;;  %22574 = vst [vmem:[#allocation38_spill] sm:$0xff] %v22337_v9  ;;  %v14502_v1 = vld [vmem:[#allocation8 + $0x5e0] sm:$0xf0]  ;;  %v20340_v9 = vld [vmem:[#allocation8 + $0xcf4] sm:$0xf] }
 0x436   : > { %8293 = vmatpush.bf16.msrb.mxu0 %v15529_v0  ;;  %8306 = vmatpush.bf16.msrb.mxu1 %v17577_v26  ;;  %v14758_v0 = vld [vmem:[#allocation8 + $0x7e0] sm:$0xf0]  ;;  %v22339_v38 = vadd.f32 %v8028_v54, %v8016_v63  ;;  %v14505_v51 = vor.u32 %v20082_v56, %v14502_v1  ;;  %v15788_v63 = vld [vmem:[#allocation8 + $0xee8] sm:$0xf] }
 0x437   : > { %v20658_v26 = vld [vmem:[#allocation8 + $0x16e4] sm:$0xf]  ;;  %v20435_v1 = vld [vmem:[#allocation8 + $0xfe4] sm:$0xf0] }
 0x438   : > { %v16809_v42 = vor.u32 %v20658_v26, %v16806_v29  ;;  %v16550_v3 = vld [vmem:[#allocation8 + $0x15e0] sm:$0xf0]  ;;  %22575 = vst [vmem:[#allocation39_spill] sm:$0xff] %v22339_v38  ;;  %v8043_v41 = vpop.f32.mrf.mxu0  ;;  %v8056_v5 = vpop.f32.mrf.mxu1  ;;  %v13988_v26 = vld [vmem:[#allocation8 + $0xe0] sm:$0xf] }
 0x439   : > { %8268 = vmatpush.bf16.msra.mxu2 %v15269_v49  ;;  %8281 = vmatpush.bf16.msra.mxu3 %v17317_v47  ;;  %v20114_v49 = vld [vmem:[#allocation8 + $0x5dc] sm:$0xf0]  ;;  %v14761_v47 = vor.u32 %v20146_v27, %v14758_v0  ;;  %v16553_v6 = vor.u32 %v20594_v36, %v16550_v3  ;;  %v20530_v27 = vld [vmem:[#allocation8 + $0x12e4] sm:$0xf]  ;;  %v17836_v36 = vld [vmem:[#allocation8 + $0x1ee8] sm:$0xf] }
 0x43a   : > { %8294 = vmatpush.bf16.msrb.mxu0 %v15273_v62  ;;  %8307 = vmatpush.bf16.msrb.mxu1 %v17321_v24  ;;  %v16548_v62 = vld [vmem:[#allocation8 + $0x14e0] sm:$0xf]  ;;  %v14501_v19 = vor.u32 %v20114_v49, %v14500_v10  ;;  %v16294_v0 = vld [vmem:[#allocation8 + $0x13e0] sm:$0xf0]  ;;  %v20947_v3 = vld [vmem:[#allocation8 + $0x1fe4] sm:$0xf0] }
 0x43b   : > { %v20626_v24 = vld [vmem:[#allocation8 + $0x15dc] sm:$0xf0]  ;;  %v8030_v60 = vpop.f32.mrf.mxu3  ;;  %v19954_v54 = vld [vmem:[#allocation8 + $0xe4] sm:$0xf]  ;;  %v20403_v41 = vld [vmem:[#allocation8 + $0xeec] sm:$0xf] }
 0x43c   : > { %v20498_v10 = vld [vmem:[#allocation8 + $0x11dc] sm:$0xf0]  ;;  %v16038_v56 = vld [vmem:[#allocation8 + $0x11e0] sm:$0xf0]  ;;  %v20883_v60 = vld [vmem:[#allocation8 + $0x1de4] sm:$0xf0] }
 0x43d   : > { %8269 = vmatpush.bf16.msra.mxu2 %v15013_v50  ;;  %8282 = vmatpush.bf16.msra.mxu3 %v17061_v34  ;;  %v16549_v50 = vor.u32 %v20626_v24, %v16548_v62  ;;  %v14244_v34 = vld [vmem:[#allocation8 + $0x2e0] sm:$0xf]  ;;  %v13990_v62 = vld [vmem:[#allocation8 + $0x1e0] sm:$0xf0]  ;;  %v20339_v38 = vld [vmem:[#allocation8 + $0xcec] sm:$0xf] }
 0x43e   : > { %8295 = vmatpush.bf16.msrb.mxu0 %v15017_v22  ;;  %8308 = vmatpush.bf16.msrb.mxu1 %v17065_v21  ;;  %v20562_v22 = vld [vmem:[#allocation8 + $0x13dc] sm:$0xf0]  ;;  %v20018_v21 = vld [vmem:[#allocation8 + $0x2e4] sm:$0xf]  ;;  %v14245_v29 = vor.u32 %v20050_v4, %v14244_v34  ;;  %v20915_v34 = vld [vmem:[#allocation8 + $0x1eec] sm:$0xf] }
 0x43f   : > { %v16293_v32 = vor.u32 %v20562_v22, %v16292_v30  ;;  %v14249_v49 = vor.u32 %v20018_v21, %v14246_v23  ;;  %v20466_v24 = vld [vmem:[#allocation8 + $0x10e4] sm:$0xf]  ;;  %v17838_v4 = vld [vmem:[#allocation8 + $0x1fe8] sm:$0xf0]  ;;  %v15789_v30 = vor.u32 %v20435_v1, %v15788_v63  ;;  %v17837_v22 = vor.u32 %v20947_v3, %v17836_v36  ;;  %v15532_v21 = vld [vmem:[#allocation8 + $0xce8] sm:$0xf] }
 0x440   : > { %v20371_v23 = vld [vmem:[#allocation8 + $0xde4] sm:$0xf0]  ;;  %v22341_v63 = vld [vmem:[#allocation10 + $0x30] sm:$0xff]  ;;  %v15278_v1 = vld [vmem:[#allocation8 + $0xbe8] sm:$0xf0] }
 0x441   : > { %8270 = vmatpush.bf16.msra.mxu2 %v14757_v45  ;;  %8283 = vmatpush.bf16.msra.mxu3 %v16805_v52  ;;  %v19986_v45 = vld [vmem:[#allocation8 + $0x1dc] sm:$0xf0]  ;;  %v20787_v36 = vld [vmem:[#allocation8 + $0x1aec] sm:$0xf] }
 0x442   : > { %8296 = vmatpush.bf16.msrb.mxu0 %v14761_v47  ;;  %8309 = vmatpush.bf16.msrb.mxu1 %v16809_v42  ;;  %v16036_v52 = vld [vmem:[#allocation8 + $0x10e0] sm:$0xf]  ;;  %v16297_v47 = vor.u32 %v20530_v27, %v16294_v0  ;;  %v8017_v42 = vpop.f32.mrf.mxu2  ;;  %v13989_v5 = vor.u32 %v19986_v45, %v13988_v26  ;;  %v17841_v0 = vor.u32 %v20915_v34, %v17838_v4  ;;  %v15534_v26 = vld [vmem:[#allocation8 + $0xde8] sm:$0xf0] }
 0x443   : > { %v17580_v42 = vld [vmem:[#allocation8 + $0x1ce8] sm:$0xf]  ;;  %v15533_v45 = vor.u32 %v20371_v23, %v15532_v21  ;;  %v17326_v3 = vld [vmem:[#allocation8 + $0x1be8] sm:$0xf0] }
 0x444   : > { %v17329_v4 = vor.u32 %v20787_v36, %v17326_v3  ;;  %v20723_v21 = vld [vmem:[#allocation8 + $0x18ec] sm:$0xf] }
 0x445   : > { %8271 = vmatpush.bf16.msra.mxu2 %v14501_v19  ;;  %8284 = vmatpush.bf16.msra.mxu3 %v16549_v50  ;;  %v16037_v19 = vor.u32 %v20498_v10, %v16036_v52  ;;  %v15790_v50 = vld [vmem:[#allocation8 + $0xfe8] sm:$0xf0]  ;;  %v17581_v52 = vor.u32 %v20883_v60, %v17580_v42  ;;  %v15276_v10 = vld [vmem:[#allocation8 + $0xae8] sm:$0xf] }
 0x446   : > { %8297 = vmatpush.bf16.msrb.mxu0 %v14505_v51  ;;  %8310 = vmatpush.bf16.msrb.mxu1 %v16553_v6  ;;  %v13993_v51 = vor.u32 %v19954_v54, %v13990_v62  ;;  %v16041_v6 = vor.u32 %v20466_v24, %v16038_v56  ;;  %v15793_v27 = vor.u32 %v20403_v41, %v15790_v50  ;;  %v20819_v24 = vld [vmem:[#allocation8 + $0x1be4] sm:$0xf0]  ;;  %v20275_v56 = vld [vmem:[#allocation8 + $0xaec] sm:$0xf] }
 0x447   : > { %v15537_v54 = vor.u32 %v20339_v38, %v15534_v26  ;;  %v20243_v50 = vld [vmem:[#allocation8 + $0x9e4] sm:$0xf0]  ;;  %v15281_v34 = vor.u32 %v20275_v56, %v15278_v1  ;;  %v17070_v23 = vld [vmem:[#allocation8 + $0x19e8] sm:$0xf0]  ;;  %v1610_v56 = vperm.slane %v22341_v63, 0 }
 0x448   : > { %v14764_v26 = vld [vmem:[#allocation8 + $0x6e8] sm:$0xf] }
 0x449   : > { %8272 = vmatpush.bf16.msra.mxu2 %v14245_v29  ;;  %8285 = vmatpush.bf16.msra.mxu3 %v16293_v32  ;;  %v20851_v29 = vld [vmem:[#allocation8 + $0x1cec] sm:$0xf] }
 0x44a   : > { %8298 = vmatpush.bf16.msrb.mxu0 %v14249_v49  ;;  %8311 = vmatpush.bf16.msrb.mxu1 %v16297_v47  ;;  %v17582_v32 = vld [vmem:[#allocation8 + $0x1de8] sm:$0xf0]  ;;  %v20307_v49 = vld [vmem:[#allocation8 + $0xbe4] sm:$0xf0] }
 0x44b   : > { %v17324_v47 = vld [vmem:[#allocation8 + $0x1ae8] sm:$0xf]  ;;  %v17585_v62 = vor.u32 %v20851_v29, %v17582_v32  ;;  %v15277_v41 = vor.u32 %v20307_v49, %v15276_v10  ;;  %v17073_v10 = vor.u32 %v20723_v21, %v17070_v23  ;;  %v20595_v21 = vld [vmem:[#allocation8 + $0x14ec] sm:$0xf] }
 0x44c   : > { %v17325_v38 = vor.u32 %v20819_v24, %v17324_v47  ;;  %v20179_v29 = vld [vmem:[#allocation8 + $0x7e4] sm:$0xf0]  ;;  %v20147_v47 = vld [vmem:[#allocation8 + $0x6ec] sm:$0xf] }
 0x44d   : > { %8273 = vmatpush.bf16.msra.mxu2 %v13989_v5  ;;  %8286 = vmatpush.bf16.msra.mxu3 %v16037_v19  ;;  %v1611_v5 = vperm.slane %v22341_v63, 1  ;;  %v15020_v19 = vld [vmem:[#allocation8 + $0x8e8] sm:$0xf]  ;;  %v16814_v24 = vld [vmem:[#allocation8 + $0x17e8] sm:$0xf0]  ;;  %v14765_v36 = vor.u32 %v20179_v29, %v14764_v26 }
 0x44e   : > { %8299 = vmatpush.bf16.msrb.mxu0 %v13993_v51  ;;  %8312 = vmatpush.bf16.msrb.mxu1 %v16041_v6  ;;  %v17068_v51 = vld [vmem:[#allocation8 + $0x18e8] sm:$0xf]  ;;  %v15021_v42 = vor.u32 %v20243_v50, %v15020_v19  ;;  %v16558_v23 = vld [vmem:[#allocation8 + $0x15e8] sm:$0xf0] }
 0x44f   : > { %v20755_v6 = vld [vmem:[#allocation8 + $0x19e4] sm:$0xf0] }
 0x450   : > { %8274 = vmatmul.bf16.vlgmr.msra.gmra.mxu2 %v22069_v2  ;;  %8287 = vmatmul.bf16.vlgmr.msra.gmra.mxu3 %v22071_v7  ;;  %v17069_v60 = vor.u32 %v20755_v6, %v17068_v51  ;;  %v16812_v32 = vld [vmem:[#allocation8 + $0x16e8] sm:$0xf]  ;;  %v20083_v6 = vld [vmem:[#allocation8 + $0x4ec] sm:$0xf] }
 0x451   : > { %8318 = vmatpush.bf16.msrb.mxu2 %v15789_v30  ;;  %8331 = vmatpush.bf16.msrb.mxu3 %v17837_v22  ;;  %v20211_v30 = vld [vmem:[#allocation8 + $0x8ec] sm:$0xf]  ;;  %v20691_v49 = vld [vmem:[#allocation8 + $0x17e4] sm:$0xf0] }
 0x452   : > { %8344 = vmatpush.bf16.msra.mxu0 %v15793_v27  ;;  %8357 = vmatpush.bf16.msra.mxu1 %v17841_v0  ;;  %v15022_v22 = vld [vmem:[#allocation8 + $0x9e8] sm:$0xf0]  ;;  %v8093_v27 = vpop.f32.mrf.mxu0  ;;  %v8106_v0 = vpop.f32.mrf.mxu1  ;;  %v16813_v3 = vor.u32 %v20691_v49, %v16812_v32  ;;  %v20627_v51 = vld [vmem:[#allocation8 + $0x15e4] sm:$0xf0] }
 0x453   : > { %8300 = vmatmul.bf16.vlgmr.msrb.gmra.mxu0 %v22069_v2  ;;  %8313 = vmatmul.bf16.vlgmr.msrb.gmra.mxu1 %v22071_v7  ;;  %v8067_v50 = vpop.f32.mrf.mxu2  ;;  %v14252_v29 = vld [vmem:[#allocation8 + $0x2e8] sm:$0xf] }
 0x454   : > { %v20051_v32 = vld [vmem:[#allocation8 + $0x3e4] sm:$0xf0] }
 0x455   : > { %8319 = vmatpush.bf16.msrb.mxu2 %v15533_v45  ;;  %8332 = vmatpush.bf16.msrb.mxu3 %v17581_v52  ;;  %v8094_v45 = vadd.f32 %v8093_v27, %v1611_v5  ;;  %v15025_v52 = vor.u32 %v20211_v30, %v15022_v22  ;;  %v8068_v30 = vadd.f32 %v8067_v50, %v1610_v56  ;;  %v14510_v22 = vld [vmem:[#allocation8 + $0x5e8] sm:$0xf0]  ;;  %v20563_v49 = vld [vmem:[#allocation8 + $0x13e4] sm:$0xf0] }
 0x456   : > { %8345 = vmatpush.bf16.msra.mxu0 %v15537_v54  ;;  %8358 = vmatpush.bf16.msra.mxu1 %v17585_v62  ;;  %v14766_v54 = vld [vmem:[#allocation8 + $0x7e8] sm:$0xf0]  ;;  %v13996_v56 = vld [vmem:[#allocation8 + $0xe8] sm:$0xf] }
 0x457   : > { %v20659_v62 = vld [vmem:[#allocation8 + $0x16ec] sm:$0xf]  ;;  %v22349_v1 = vadd.f32 %v8106_v0, %v8094_v45  ;;  %v14769_v5 = vor.u32 %v20147_v47, %v14766_v54  ;;  %v14513_v45 = vor.u32 %v20083_v6, %v14510_v22  ;;  %v19987_v50 = vld [vmem:[#allocation8 + $0x1e4] sm:$0xf0] }
 0x458   : > { %v16817_v19 = vor.u32 %v20659_v62, %v16814_v24  ;;  %v20019_v47 = vld [vmem:[#allocation8 + $0x2ec] sm:$0xf] }
 0x459   : > { %8320 = vmatpush.bf16.msrb.mxu2 %v15277_v41  ;;  %8333 = vmatpush.bf16.msrb.mxu3 %v17325_v38  ;;  %22576 = vst [vmem:[#allocation40_spill] sm:$0xff] %v22349_v1  ;;  %v14508_v41 = vld [vmem:[#allocation8 + $0x4e8] sm:$0xf]  ;;  %v14254_v54 = vld [vmem:[#allocation8 + $0x3e8] sm:$0xf0] }
 0x45a   : > { %8346 = vmatpush.bf16.msra.mxu0 %v15281_v34  ;;  %8359 = vmatpush.bf16.msra.mxu1 %v17329_v4  ;;  %v20115_v38 = vld [vmem:[#allocation8 + $0x5e4] sm:$0xf0]  ;;  %v8080_v34 = vpop.f32.mrf.mxu3  ;;  %v8095_v0 = vpop.f32.mrf.mxu0  ;;  %v20531_v62 = vld [vmem:[#allocation8 + $0x12ec] sm:$0xf]  ;;  %v20884_v1 = vld [vmem:[#allocation8 + $0x1dec] sm:$0xf0] }
 0x45b   : > { %v16556_v4 = vld [vmem:[#allocation8 + $0x14e8] sm:$0xf]  ;;  %v22351_v27 = vadd.f32 %v8080_v34, %v8068_v30  ;;  %v16302_v24 = vld [vmem:[#allocation8 + $0x13e8] sm:$0xf0]  ;;  %v8069_v34 = vpop.f32.mrf.mxu2  ;;  %v17844_v0 = vld [vmem:[#allocation8 + $0x1ef0] sm:$0xf] }
 0x45c   : > { %v16557_v26 = vor.u32 %v20627_v51, %v16556_v4  ;;  %v19955_v51 = vld [vmem:[#allocation8 + $0xec] sm:$0xf] }
 0x45d   : > { %8321 = vmatpush.bf16.msrb.mxu2 %v15021_v42  ;;  %8334 = vmatpush.bf16.msrb.mxu3 %v17069_v60  ;;  %22577 = vst [vmem:[#allocation41_spill] sm:$0xff] %v22351_v27  ;;  %v8108_v42 = vpop.f32.mrf.mxu1  ;;  %v14509_v60 = vor.u32 %v20115_v38, %v14508_v41  ;;  %v16044_v41 = vld [vmem:[#allocation8 + $0x10e8] sm:$0xf]  ;;  %v13998_v6 = vld [vmem:[#allocation8 + $0x1e8] sm:$0xf0] }
 0x45e   : > { %8347 = vmatpush.bf16.msra.mxu0 %v15025_v52  ;;  %8360 = vmatpush.bf16.msra.mxu1 %v17073_v10  ;;  %v16561_v52 = vor.u32 %v20595_v21, %v16558_v23  ;;  %v16300_v10 = vld [vmem:[#allocation8 + $0x12e8] sm:$0xf]  ;;  %v20467_v30 = vld [vmem:[#allocation8 + $0x10ec] sm:$0xf]  ;;  %v15796_v21 = vld [vmem:[#allocation8 + $0xef0] sm:$0xf] }
 0x45f   : > { %v20499_v38 = vld [vmem:[#allocation8 + $0x11e4] sm:$0xf0]  ;;  %v16046_v22 = vld [vmem:[#allocation8 + $0x11e8] sm:$0xf0]  ;;  %v20436_v23 = vld [vmem:[#allocation8 + $0xfec] sm:$0xf0] }
 0x460   : > { %v20948_v42 = vld [vmem:[#allocation8 + $0x1fec] sm:$0xf0] }
 0x461   : > { %8322 = vmatpush.bf16.msrb.mxu2 %v14765_v36  ;;  %8335 = vmatpush.bf16.msrb.mxu3 %v16813_v3  ;;  %v14253_v36 = vor.u32 %v20051_v32, %v14252_v29  ;;  %v16301_v3 = vor.u32 %v20563_v49, %v16300_v10  ;;  %v16045_v29 = vor.u32 %v20499_v38, %v16044_v41  ;;  %v15798_v32 = vld [vmem:[#allocation8 + $0xff0] sm:$0xf0]  ;;  %v17588_v27 = vld [vmem:[#allocation8 + $0x1cf0] sm:$0xf] }
 0x462   : > { %8348 = vmatpush.bf16.msra.mxu0 %v14769_v5  ;;  %8361 = vmatpush.bf16.msra.mxu1 %v16817_v19  ;;  %v14257_v5 = vor.u32 %v20019_v47, %v14254_v54  ;;  %v16305_v19 = vor.u32 %v20531_v62, %v16302_v24  ;;  %v8082_v4 = vpop.f32.mrf.mxu3  ;;  %v14001_v10 = vor.u32 %v19955_v51, %v13998_v6  ;;  %v15540_v62 = vld [vmem:[#allocation8 + $0xcf0] sm:$0xf] }
 0x463   : > { %v16049_v49 = vor.u32 %v20467_v30, %v16046_v22  ;;  %v15797_v47 = vor.u32 %v20436_v23, %v15796_v21  ;;  %v17845_v54 = vor.u32 %v20948_v42, %v17844_v0  ;;  %v20372_v24 = vld [vmem:[#allocation8 + $0xdec] sm:$0xf0]  ;;  %v17589_v41 = vor.u32 %v20884_v1, %v17588_v27  ;;  %v20276_v22 = vld [vmem:[#allocation8 + $0xaf4] sm:$0xf] }
 0x464   : > { %v15284_v38 = vld [vmem:[#allocation8 + $0xaf0] sm:$0xf]  ;;  %v15286_v21 = vld [vmem:[#allocation8 + $0xbf0] sm:$0xf0] }
 0x465   : > { %8323 = vmatpush.bf16.msrb.mxu2 %v14509_v60  ;;  %8336 = vmatpush.bf16.msrb.mxu3 %v16557_v26  ;;  %v20404_v60 = vld [vmem:[#allocation8 + $0xef4] sm:$0xf]  ;;  %v13997_v26 = vor.u32 %v19987_v50, %v13996_v56  ;;  %v15541_v50 = vor.u32 %v20372_v24, %v15540_v62  ;;  %v17332_v6 = vld [vmem:[#allocation8 + $0x1af0] sm:$0xf] }
 0x466   : > { %8349 = vmatpush.bf16.msra.mxu0 %v14513_v45  ;;  %8362 = vmatpush.bf16.msra.mxu1 %v16561_v52  ;;  %v20916_v45 = vld [vmem:[#allocation8 + $0x1ef4] sm:$0xf]  ;;  %v15801_v34 = vor.u32 %v20404_v60, %v15798_v32  ;;  %v20820_v30 = vld [vmem:[#allocation8 + $0x1bec] sm:$0xf0] }
 0x467   : > { %v17846_v52 = vld [vmem:[#allocation8 + $0x1ff0] sm:$0xf0]  ;;  %v17333_v27 = vor.u32 %v20820_v30, %v17332_v6  ;;  %v15028_v42 = vld [vmem:[#allocation8 + $0x8f0] sm:$0xf]  ;;  %v1612_v30 = vperm.slane %v22341_v63, 2 }
 0x468   : > { %v17849_v4 = vor.u32 %v20916_v45, %v17846_v52  ;;  %v15542_v56 = vld [vmem:[#allocation8 + $0xdf0] sm:$0xf0]  ;;  %v20244_v60 = vld [vmem:[#allocation8 + $0x9ec] sm:$0xf0] }
 0x469   : > { %8324 = vmatpush.bf16.msrb.mxu2 %v14253_v36  ;;  %8337 = vmatpush.bf16.msrb.mxu3 %v16301_v3  ;;  %v20852_v36 = vld [vmem:[#allocation8 + $0x1cf4] sm:$0xf]  ;;  %v17076_v32 = vld [vmem:[#allocation8 + $0x18f0] sm:$0xf]  ;;  %v15029_v24 = vor.u32 %v20244_v60, %v15028_v42 }
 0x46a   : > { %8350 = vmatpush.bf16.msra.mxu0 %v14257_v5  ;;  %8363 = vmatpush.bf16.msra.mxu1 %v16305_v19  ;;  %v17590_v3 = vld [vmem:[#allocation8 + $0x1df0] sm:$0xf0]  ;;  %v20308_v5 = vld [vmem:[#allocation8 + $0xbec] sm:$0xf0]  ;;  %v15545_v19 = vor.u32 %v20340_v9, %v15542_v56  ;;  %v1613_v9 = vperm.slane %v22341_v63, 3 }
 0x46b   : > { %v17593_v51 = vor.u32 %v20852_v36, %v17590_v3  ;;  %v20788_v23 = vld [vmem:[#allocation8 + $0x1af4] sm:$0xf]  ;;  %v15285_v1 = vor.u32 %v20308_v5, %v15284_v38  ;;  %v20756_v45 = vld [vmem:[#allocation8 + $0x19ec] sm:$0xf0] }
 0x46c   : > { %v17334_v0 = vld [vmem:[#allocation8 + $0x1bf0] sm:$0xf0]  ;;  %v20180_v56 = vld [vmem:[#allocation8 + $0x7ec] sm:$0xf0] }
 0x46d   : > { %8325 = vmatpush.bf16.msrb.mxu2 %v13997_v26  ;;  %8338 = vmatpush.bf16.msrb.mxu3 %v16045_v29  ;;  %v15289_v26 = vor.u32 %v20276_v22, %v15286_v21  ;;  %v17337_v29 = vor.u32 %v20788_v23, %v17334_v0  ;;  %v20212_v52 = vld [vmem:[#allocation8 + $0x8f4] sm:$0xf]  ;;  %v16820_v36 = vld [vmem:[#allocation8 + $0x16f0] sm:$0xf] }
 0x46e   : > { %8351 = vmatpush.bf16.msra.mxu0 %v14001_v10  ;;  %8364 = vmatpush.bf16.msra.mxu1 %v16049_v49  ;;  %v15030_v10 = vld [vmem:[#allocation8 + $0x9f0] sm:$0xf0]  ;;  %v20692_v38 = vld [vmem:[#allocation8 + $0x17ec] sm:$0xf0] }
 0x46f   : > { %v20724_v49 = vld [vmem:[#allocation8 + $0x18f4] sm:$0xf]  ;;  %v16821_v23 = vor.u32 %v20692_v38, %v16820_v36  ;;  %v14516_v0 = vld [vmem:[#allocation8 + $0x4f0] sm:$0xf] }
 0x470   : > { %8326 = vmatmul.bf16.vlgmr.msrb.gmra.mxu2 %v22069_v2  ;;  %8339 = vmatmul.bf16.vlgmr.msrb.gmra.mxu3 %v22071_v7  ;;  %v8158_v62 = vpop.f32.mrf.mxu1  ;;  %v20148_v5 = vld [vmem:[#allocation8 + $0x6f4] sm:$0xf] }
 0x471   : > { %8370 = vmatpush.bf16.msra.mxu2 %v15797_v47  ;;  %8383 = vmatpush.bf16.msra.mxu3 %v17845_v54  ;;  %v17078_v47 = vld [vmem:[#allocation8 + $0x19f0] sm:$0xf0]  ;;  %v8145_v54 = vpop.f32.mrf.mxu0 }
 0x472   : > { %8396 = vmatpush.bf16.msrb.mxu0 %v15801_v34  ;;  %8409 = vmatpush.bf16.msrb.mxu1 %v17849_v4  ;;  %v17077_v34 = vor.u32 %v20756_v45, %v17076_v32  ;;  %v14772_v4 = vld [vmem:[#allocation8 + $0x6f0] sm:$0xf]  ;;  %v8146_v3 = vadd.f32 %v8145_v54, %v1613_v9  ;;  %v16822_v6 = vld [vmem:[#allocation8 + $0x17f0] sm:$0xf0] }
 0x473   : > { %8352 = vmatmul.bf16.vlgmr.msra.gmra.mxu0 %v22069_v2  ;;  %8365 = vmatmul.bf16.vlgmr.msra.gmra.mxu1 %v22071_v7  ;;  %v14773_v21 = vor.u32 %v20180_v56, %v14772_v4  ;;  %v8119_v42 = vpop.f32.mrf.mxu2  ;;  %v8132_v60 = vpop.f32.mrf.mxu3  ;;  %v20084_v32 = vld [vmem:[#allocation8 + $0x4f4] sm:$0xf]  ;;  %v14260_v4 = vld [vmem:[#allocation8 + $0x2f0] sm:$0xf] }
 0x474   : > { %v22359_v22 = vadd.f32 %v8158_v62, %v8146_v3  ;;  %v8120_v45 = vadd.f32 %v8119_v42, %v1612_v30  ;;  %v20052_v56 = vld [vmem:[#allocation8 + $0x3ec] sm:$0xf0]  ;;  %v20020_v38 = vld [vmem:[#allocation8 + $0x2f4] sm:$0xf] }
 0x475   : > { %8371 = vmatpush.bf16.msra.mxu2 %v15541_v50  ;;  %8384 = vmatpush.bf16.msra.mxu3 %v17589_v41  ;;  %v15033_v50 = vor.u32 %v20212_v52, %v15030_v10  ;;  %v17081_v41 = vor.u32 %v20724_v49, %v17078_v47  ;;  %v14518_v52 = vld [vmem:[#allocation8 + $0x5f0] sm:$0xf0]  ;;  %v14261_v30 = vor.u32 %v20052_v56, %v14260_v4  ;;  %v15806_v4 = vld [vmem:[#allocation8 + $0xff8] sm:$0xf0] }
 0x476   : > { %8397 = vmatpush.bf16.msrb.mxu0 %v15545_v19  ;;  %8410 = vmatpush.bf16.msrb.mxu1 %v17593_v51  ;;  %v14774_v19 = vld [vmem:[#allocation8 + $0x7f0] sm:$0xf0]  ;;  %22578 = vst [vmem:[#allocation42_spill] sm:$0xff] %v22359_v22  ;;  %v22361_v47 = vadd.f32 %v8132_v60, %v8120_v45  ;;  %v14521_v36 = vor.u32 %v20084_v32, %v14518_v52  ;;  %v15804_v52 = vld [vmem:[#allocation8 + $0xef8] sm:$0xf] }
 0x477   : > { %v20660_v51 = vld [vmem:[#allocation8 + $0x16f4] sm:$0xf]  ;;  %v20917_v56 = vld [vmem:[#allocation8 + $0x1efc] sm:$0xf] }
 0x478   : > { %v16825_v9 = vor.u32 %v20660_v51, %v16822_v6  ;;  %v20596_v10 = vld [vmem:[#allocation8 + $0x14f4] sm:$0xf]  ;;  %22579 = vst [vmem:[#allocation43_spill] sm:$0xff] %v22361_v47  ;;  %v8160_v62 = vpop.f32.mrf.mxu1  ;;  %v14004_v6 = vld [vmem:[#allocation8 + $0xf0] sm:$0xf] }
 0x479   : > { %8372 = vmatpush.bf16.msra.mxu2 %v15285_v1  ;;  %8385 = vmatpush.bf16.msra.mxu3 %v17333_v27  ;;  %v20116_v1 = vld [vmem:[#allocation8 + $0x5ec] sm:$0xf0]  ;;  %v14777_v27 = vor.u32 %v20148_v5, %v14774_v19  ;;  %v16566_v49 = vld [vmem:[#allocation8 + $0x15f0] sm:$0xf0]  ;;  %v8147_v54 = vpop.f32.mrf.mxu0  ;;  %v20405_v62 = vld [vmem:[#allocation8 + $0xefc] sm:$0xf] }
 0x47a   : > { %8398 = vmatpush.bf16.msrb.mxu0 %v15289_v26  ;;  %8411 = vmatpush.bf16.msrb.mxu1 %v17337_v29  ;;  %v16564_v26 = vld [vmem:[#allocation8 + $0x14f0] sm:$0xf]  ;;  %v16569_v3 = vor.u32 %v20596_v10, %v16566_v49  ;;  %v14262_v5 = vld [vmem:[#allocation8 + $0x3f0] sm:$0xf0]  ;;  %v20437_v10 = vld [vmem:[#allocation8 + $0xff4] sm:$0xf0] }
 0x47b   : > { %v20628_v29 = vld [vmem:[#allocation8 + $0x15ec] sm:$0xf0]  ;;  %v20532_v19 = vld [vmem:[#allocation8 + $0x12f4] sm:$0xf]  ;;  %v8121_v42 = vpop.f32.mrf.mxu2  ;;  %v8134_v60 = vpop.f32.mrf.mxu3  ;;  %v17852_v49 = vld [vmem:[#allocation8 + $0x1ef8] sm:$0xf] }
 0x47c   : > { %v16310_v51 = vld [vmem:[#allocation8 + $0x13f0] sm:$0xf0]  ;;  %v20949_v54 = vld [vmem:[#allocation8 + $0x1ff4] sm:$0xf0]  ;;  %v20341_v22 = vld [vmem:[#allocation8 + $0xcfc] sm:$0xf] }
 0x47d   : > { %8373 = vmatpush.bf16.msra.mxu2 %v15029_v24  ;;  %8386 = vmatpush.bf16.msra.mxu3 %v17077_v34  ;;  %v14517_v24 = vor.u32 %v20116_v1, %v14516_v0  ;;  %v16565_v34 = vor.u32 %v20628_v29, %v16564_v26  ;;  %v16052_v0 = vld [vmem:[#allocation8 + $0x10f0] sm:$0xf]  ;;  %v19956_v26 = vld [vmem:[#allocation8 + $0xf4] sm:$0xf]  ;;  %v17596_v60 = vld [vmem:[#allocation8 + $0x1cf8] sm:$0xf] }
 0x47e   : > { %8399 = vmatpush.bf16.msrb.mxu0 %v15033_v50  ;;  %8412 = vmatpush.bf16.msrb.mxu1 %v17081_v41  ;;  %v16308_v50 = vld [vmem:[#allocation8 + $0x12f0] sm:$0xf]  ;;  %v14006_v29 = vld [vmem:[#allocation8 + $0x1f0] sm:$0xf0]  ;;  %v20885_v47 = vld [vmem:[#allocation8 + $0x1df4] sm:$0xf0] }
 0x47f   : > { %v20564_v41 = vld [vmem:[#allocation8 + $0x13ec] sm:$0xf0]  ;;  %v20468_v32 = vld [vmem:[#allocation8 + $0x10f4] sm:$0xf] }
 0x480   : > { %v20500_v1 = vld [vmem:[#allocation8 + $0x11ec] sm:$0xf0]  ;;  %v16054_v45 = vld [vmem:[#allocation8 + $0x11f0] sm:$0xf0] }
 0x481   : > { %8374 = vmatpush.bf16.msra.mxu2 %v14773_v21  ;;  %8387 = vmatpush.bf16.msra.mxu3 %v16821_v23  ;;  %v16309_v21 = vor.u32 %v20564_v41, %v16308_v50  ;;  %v19988_v23 = vld [vmem:[#allocation8 + $0x1ec] sm:$0xf0]  ;;  %v16057_v50 = vor.u32 %v20468_v32, %v16054_v45  ;;  %v15805_v41 = vor.u32 %v20437_v10, %v15804_v52  ;;  %v20821_v32 = vld [vmem:[#allocation8 + $0x1bf4] sm:$0xf0]  ;;  %v20277_v45 = vld [vmem:[#allocation8 + $0xafc] sm:$0xf] }
 0x482   : > { %8400 = vmatpush.bf16.msrb.mxu0 %v14777_v27  ;;  %8413 = vmatpush.bf16.msrb.mxu1 %v16825_v9  ;;  %v14265_v27 = vor.u32 %v20020_v38, %v14262_v5  ;;  %v16313_v9 = vor.u32 %v20532_v19, %v16310_v51  ;;  %v17853_v38 = vor.u32 %v20949_v54, %v17852_v49  ;;  %v15548_v5 = vld [vmem:[#allocation8 + $0xcf8] sm:$0xf]  ;;  %v15294_v52 = vld [vmem:[#allocation8 + $0xbf8] sm:$0xf0] }
 0x483   : > { %v20373_v19 = vld [vmem:[#allocation8 + $0xdf4] sm:$0xf0]  ;;  %v15809_v51 = vor.u32 %v20405_v62, %v15806_v4  ;;  %v20789_v10 = vld [vmem:[#allocation8 + $0x1afc] sm:$0xf] }
 0x484   : > { %v17342_v49 = vld [vmem:[#allocation8 + $0x1bf8] sm:$0xf0]  ;;  %v15036_v62 = vld [vmem:[#allocation8 + $0x8f8] sm:$0xf] }
 0x485   : > { %8375 = vmatpush.bf16.msra.mxu2 %v14517_v24  ;;  %8388 = vmatpush.bf16.msra.mxu3 %v16565_v34  ;;  %v14005_v24 = vor.u32 %v19988_v23, %v14004_v6  ;;  %v16053_v34 = vor.u32 %v20500_v1, %v16052_v0  ;;  %v15550_v6 = vld [vmem:[#allocation8 + $0xdf8] sm:$0xf0]  ;;  %v15549_v23 = vor.u32 %v20373_v19, %v15548_v5  ;;  %v15292_v1 = vld [vmem:[#allocation8 + $0xaf8] sm:$0xf] }
 0x486   : > { %8401 = vmatpush.bf16.msrb.mxu0 %v14521_v36  ;;  %8414 = vmatpush.bf16.msrb.mxu1 %v16569_v3  ;;  %v17854_v36 = vld [vmem:[#allocation8 + $0x1ff8] sm:$0xf0]  ;;  %v14009_v3 = vor.u32 %v19956_v26, %v14006_v29  ;;  %v17597_v0 = vor.u32 %v20885_v47, %v17596_v60  ;;  %v17340_v29 = vld [vmem:[#allocation8 + $0x1af8] sm:$0xf]  ;;  %v17345_v4 = vor.u32 %v20789_v10, %v17342_v49 }
 0x487   : > { %v17857_v42 = vor.u32 %v20917_v56, %v17854_v36  ;;  %v17341_v54 = vor.u32 %v20821_v32, %v17340_v29  ;;  %v17084_v56 = vld [vmem:[#allocation8 + $0x18f8] sm:$0xf]  ;;  %v16830_v29 = vld [vmem:[#allocation8 + $0x17f8] sm:$0xf0]  ;;  %v1614_v32 = vperm.slane %v22341_v63, 4 }
 0x488   : > { %v20757_v36 = vld [vmem:[#allocation8 + $0x19f4] sm:$0xf0] }
 0x489   : > { %8376 = vmatpush.bf16.msra.mxu2 %v14261_v30  ;;  %8389 = vmatpush.bf16.msra.mxu3 %v16309_v21  ;;  %v20853_v30 = vld [vmem:[#allocation8 + $0x1cfc] sm:$0xf]  ;;  %v14780_v60 = vld [vmem:[#allocation8 + $0x6f8] sm:$0xf] }
 0x48a   : > { %8402 = vmatpush.bf16.msrb.mxu0 %v14265_v27  ;;  %8415 = vmatpush.bf16.msrb.mxu1 %v16313_v9  ;;  %v17598_v21 = vld [vmem:[#allocation8 + $0x1df8] sm:$0xf0]  ;;  %v20309_v27 = vld [vmem:[#allocation8 + $0xbf4] sm:$0xf0]  ;;  %v15553_v9 = vor.u32 %v20341_v22, %v15550_v6  ;;  %v1615_v22 = vperm.slane %v22341_v63, 5 }
 0x48b   : > { %v17601_v26 = vor.u32 %v20853_v30, %v17598_v21  ;;  %v15293_v47 = vor.u32 %v20309_v27, %v15292_v1  ;;  %v20181_v6 = vld [vmem:[#allocation8 + $0x7f4] sm:$0xf0]  ;;  %v20149_v27 = vld [vmem:[#allocation8 + $0x6fc] sm:$0xf] }
 0x48c   : > { %v16828_v30 = vld [vmem:[#allocation8 + $0x16f8] sm:$0xf] }
 0x48d   : > { %8377 = vmatpush.bf16.msra.mxu2 %v14005_v24  ;;  %8390 = vmatpush.bf16.msra.mxu3 %v16053_v34  ;;  %v20245_v24 = vld [vmem:[#allocation8 + $0x9f4] sm:$0xf0]  ;;  %v15297_v34 = vor.u32 %v20277_v45, %v15294_v52  ;;  %v14781_v52 = vor.u32 %v20181_v6, %v14780_v60 }
 0x48e   : > { %8403 = vmatpush.bf16.msrb.mxu0 %v14009_v3  ;;  %8416 = vmatpush.bf16.msrb.mxu1 %v16057_v50  ;;  %v20213_v3 = vld [vmem:[#allocation8 + $0x8fc] sm:$0xf]  ;;  %v20693_v1 = vld [vmem:[#allocation8 + $0x17f4] sm:$0xf0] }
 0x48f   : > { %v15038_v50 = vld [vmem:[#allocation8 + $0x9f8] sm:$0xf0]  ;;  %v16829_v10 = vor.u32 %v20693_v1, %v16828_v30  ;;  %v14524_v49 = vld [vmem:[#allocation8 + $0x4f8] sm:$0xf] }
 0x490   : > { %8378 = vmatmul.bf16.vlgmr.msra.gmra.mxu2 %v22069_v2  ;;  %8391 = vmatmul.bf16.vlgmr.msra.gmra.mxu3 %v22071_v7  ;;  %v8197_v5 = vpop.f32.mrf.mxu0  ;;  %v8210_v19 = vpop.f32.mrf.mxu1  ;;  %v14268_v60 = vld [vmem:[#allocation8 + $0x2f8] sm:$0xf]  ;;  %v20021_v1 = vld [vmem:[#allocation8 + $0x2fc] sm:$0xf] }
 0x491   : > { %8422 = vmatpush.bf16.msrb.mxu2 %v15805_v41  ;;  %8435 = vmatpush.bf16.msrb.mxu3 %v17853_v38  ;;  %v20725_v41 = vld [vmem:[#allocation8 + $0x18fc] sm:$0xf]  ;;  %v8198_v21 = vadd.f32 %v8197_v5, %v1615_v22  ;;  %v20053_v6 = vld [vmem:[#allocation8 + $0x3f4] sm:$0xf0] }
 0x492   : > { %8448 = vmatpush.bf16.msra.mxu0 %v15809_v51  ;;  %8461 = vmatpush.bf16.msra.mxu1 %v17857_v42  ;;  %v17086_v38 = vld [vmem:[#allocation8 + $0x19f8] sm:$0xf0]  ;;  %v15037_v51 = vor.u32 %v20245_v24, %v15036_v62  ;;  %v17085_v42 = vor.u32 %v20757_v36, %v17084_v56 }
 0x493   : > { %8404 = vmatmul.bf16.vlgmr.msrb.gmra.mxu0 %v22069_v2  ;;  %8417 = vmatmul.bf16.vlgmr.msrb.gmra.mxu1 %v22071_v7  ;;  %v22369_v45 = vadd.f32 %v8210_v19, %v8198_v21  ;;  %v8171_v62 = vpop.f32.mrf.mxu2  ;;  %v8184_v24 = vpop.f32.mrf.mxu3  ;;  %v20085_v56 = vld [vmem:[#allocation8 + $0x4fc] sm:$0xf] }
 0x494   : > { %v8172_v36 = vadd.f32 %v8171_v62, %v1614_v32  ;;  %v16060_v62 = vld [vmem:[#allocation8 + $0x10f8] sm:$0xf] }
 0x495   : > { %8423 = vmatpush.bf16.msrb.mxu2 %v15549_v23  ;;  %8436 = vmatpush.bf16.msrb.mxu3 %v17597_v0  ;;  %v15041_v23 = vor.u32 %v20213_v3, %v15038_v50  ;;  %v17089_v0 = vor.u32 %v20725_v41, %v17086_v38  ;;  %v14526_v3 = vld [vmem:[#allocation8 + $0x5f8] sm:$0xf0] }
 0x496   : > { %8449 = vmatpush.bf16.msra.mxu0 %v15553_v9  ;;  %8462 = vmatpush.bf16.msra.mxu1 %v17601_v26  ;;  %v14782_v9 = vld [vmem:[#allocation8 + $0x7f8] sm:$0xf0]  ;;  %v22371_v38 = vadd.f32 %v8184_v24, %v8172_v36  ;;  %v14529_v30 = vor.u32 %v20085_v56, %v14526_v3  ;;  %v20501_v24 = vld [vmem:[#allocation8 + $0x11f4] sm:$0xf0] }
 0x497   : > { %v20661_v26 = vld [vmem:[#allocation8 + $0x16fc] sm:$0xf] }
 0x498   : > { %v16833_v22 = vor.u32 %v20661_v26, %v16830_v29  ;;  %v20597_v50 = vld [vmem:[#allocation8 + $0x14fc] sm:$0xf]  ;;  %v8199_v5 = vpop.f32.mrf.mxu0  ;;  %v8212_v19 = vpop.f32.mrf.mxu1  ;;  %v14269_v29 = vor.u32 %v20053_v6, %v14268_v60  ;;  %v20956_v6 = vld [vmem:[#allocation11 + $0x30] sm:$0xff] }
 0x499   : > { %8424 = vmatpush.bf16.msrb.mxu2 %v15293_v47  ;;  %8437 = vmatpush.bf16.msrb.mxu3 %v17341_v54  ;;  %v20117_v47 = vld [vmem:[#allocation8 + $0x5f4] sm:$0xf0]  ;;  %v14785_v54 = vor.u32 %v20149_v27, %v14782_v9  ;;  %v16574_v41 = vld [vmem:[#allocation8 + $0x15f8] sm:$0xf0] }
 0x49a   : > { %8450 = vmatpush.bf16.msra.mxu0 %v15297_v34  ;;  %8463 = vmatpush.bf16.msra.mxu1 %v17345_v4  ;;  %v16572_v34 = vld [vmem:[#allocation8 + $0x14f8] sm:$0xf]  ;;  %v16577_v21 = vor.u32 %v20597_v50, %v16574_v41  ;;  %v14270_v27 = vld [vmem:[#allocation8 + $0x3f8] sm:$0xf0]  ;;  %v16061_v50 = vor.u32 %v20501_v24, %v16060_v62 }
 0x49b   : > { %v20629_v4 = vld [vmem:[#allocation8 + $0x15f4] sm:$0xf0]  ;;  %v20533_v9 = vld [vmem:[#allocation8 + $0x12fc] sm:$0xf] }
 0x49c   : > { %v16318_v26 = vld [vmem:[#allocation8 + $0x13f8] sm:$0xf0] }
 0x49d   : > { %8425 = vmatpush.bf16.msrb.mxu2 %v15037_v51  ;;  %8438 = vmatpush.bf16.msrb.mxu3 %v17085_v42  ;;  %v14525_v51 = vor.u32 %v20117_v47, %v14524_v49  ;;  %v16573_v42 = vor.u32 %v20629_v4, %v16572_v34  ;;  %v14273_v49 = vor.u32 %v20021_v1, %v14270_v27  ;;  %v19957_v34 = vld [vmem:[#allocation8 + $0xfc] sm:$0xf]  ;;  %v20963_v1 = vld [vmem:[#allocation11 + $0x68] sm:$0xff] }
 0x49e   : > { %8451 = vmatpush.bf16.msra.mxu0 %v15041_v23  ;;  %8464 = vmatpush.bf16.msra.mxu1 %v17089_v0  ;;  %v16316_v23 = vld [vmem:[#allocation8 + $0x12f8] sm:$0xf]  ;;  %v16321_v47 = vor.u32 %v20533_v9, %v16318_v26  ;;  %v14014_v4 = vld [vmem:[#allocation8 + $0x1f8] sm:$0xf0]  ;;  %v20971_v27 = vld [vmem:[#allocation11 + $0xa8] sm:$0xff]  ;;  %v1617_v26 = vperm.slane %v22341_v63, 7 }
 0x49f   : > { %v20565_v0 = vld [vmem:[#allocation8 + $0x13f4] sm:$0xf0]  ;;  %v20469_v56 = vld [vmem:[#allocation8 + $0x10fc] sm:$0xf]  ;;  %v14017_v41 = vor.u32 %v19957_v34, %v14014_v4  ;;  %v20979_v9 = vld [vmem:[#allocation11 + $0xe8] sm:$0xff] }
 0x4a0   : > { %v16317_v32 = vor.u32 %v20565_v0, %v16316_v23  ;;  %v16062_v36 = vld [vmem:[#allocation8 + $0x11f8] sm:$0xf0]  ;;  %v20980_v23 = vld [vmem:[#allocation11 + $0xf0] sm:$0xff]  ;;  %v20955_v0 = vld [vmem:[#allocation11 + $0x28] sm:$0xff] }
 0x4a1   : > { %8426 = vmatpush.bf16.msrb.mxu2 %v14781_v52  ;;  %8439 = vmatpush.bf16.msrb.mxu3 %v16829_v10  ;;  %v14012_v52 = vld [vmem:[#allocation8 + $0xf8] sm:$0xf]  ;;  %v16065_v5 = vor.u32 %v20469_v56, %v16062_v36 }
 0x4a2   : > { %8452 = vmatpush.bf16.msra.mxu0 %v14785_v54  ;;  %8465 = vmatpush.bf16.msra.mxu1 %v16833_v22  ;;  %v19989_v10 = vld [vmem:[#allocation8 + $0x1f4] sm:$0xf0]  ;;  %v8173_v54 = vpop.f32.mrf.mxu2  ;;  %v8186_v22 = vpop.f32.mrf.mxu3 }
 0x4a3   : > { %v14013_v3 = vor.u32 %v19989_v10, %v14012_v52  ;;  %v20957_v19 = vld [vmem:[#allocation11 + $0x38] sm:$0xff]  ;;  %v20954_v52 = vld [vmem:[#allocation11 + $0x20] sm:$0xff] }
 0x4a4   : > { %v20981_v60 = vld [vmem:[#allocation11 + $0xf8] sm:$0xff]  ;;  %v20962_v10 = vld [vmem:[#allocation11 + $0x60] sm:$0xff] }
 0x4a5   : > { %8427 = vmatpush.bf16.msrb.mxu2 %v14525_v51  ;;  %8440 = vmatpush.bf16.msrb.mxu3 %v16573_v42  ;;  %v20965_v51 = vld [vmem:[#allocation11 + $0x78] sm:$0xff] }
 0x4a6   : > { %8453 = vmatpush.bf16.msra.mxu0 %v14529_v30  ;;  %8466 = vmatpush.bf16.msra.mxu1 %v16577_v21  ;;  %v20973_v42 = vld [vmem:[#allocation11 + $0xb8] sm:$0xff]  ;;  %v20964_v30 = vld [vmem:[#allocation11 + $0x70] sm:$0xff] }
 0x4a7   : > { %v20972_v21 = vld [vmem:[#allocation11 + $0xb0] sm:$0xff]  ;;  %v20953_v22 = vld [vmem:[#allocation11 + $0x18] sm:$0xff] }
 0x4a8   : > { %v20961_v62 = vld [vmem:[#allocation11 + $0x58] sm:$0xff] }
 0x4a9   : > { %8428 = vmatpush.bf16.msrb.mxu2 %v14269_v29  ;;  %8441 = vmatpush.bf16.msrb.mxu3 %v16317_v32  ;;  %v20969_v24 = vld [vmem:[#allocation11 + $0x98] sm:$0xff] }
 0x4aa   : > { %8454 = vmatpush.bf16.msra.mxu0 %v14273_v49  ;;  %8467 = vmatpush.bf16.msra.mxu1 %v16321_v47  ;;  %v20978_v49 = vld [vmem:[#allocation11 + $0xe0] sm:$0xff]  ;;  %v1616_v47 = vperm.slane %v22341_v63, 6  ;;  %v20977_v34 = vld [vmem:[#allocation11 + $0xd8] sm:$0xff]  ;;  %v20952_v63 = vld [vmem:[#allocation11 + $0x10] sm:$0xff] }
 0x4ad   : > { %8429 = vmatpush.bf16.msrb.mxu2 %v14013_v3  ;;  %8442 = vmatpush.bf16.msrb.mxu3 %v16061_v50 }
 0x4ae   : > { %8455 = vmatpush.bf16.msra.mxu0 %v14017_v41  ;;  %8468 = vmatpush.bf16.msra.mxu1 %v16065_v5  ;;  %v20960_v5 = vld [vmem:[#allocation11 + $0x50] sm:$0xff] }
 0x4b0   : > { %8430 = vmatmul.bf16.vlgmr.msrb.gmra.mxu2 %v22069_v2  ;;  %8443 = vmatmul.bf16.vlgmr.msrb.gmra.mxu3 %v22071_v7  ;;  %v8249_v29 = vpop.f32.mrf.mxu0  ;;  %v8262_v32 = vpop.f32.mrf.mxu1 }
 0x4b1   : > { %12702 = vmatpush.bf16.msra.mxu2 %v20957_v19  ;;  %12715 = vmatpush.bf16.msra.mxu3 %v20965_v51  ;;  %v20968_v19 = vld [vmem:[#allocation11 + $0x90] sm:$0xff] }
 0x4b2   : > { %12728 = vmatpush.bf16.msrb.mxu0 %v20973_v42  ;;  %12741 = vmatpush.bf16.msrb.mxu1 %v20981_v60  ;;  %v20976_v51 = vld [vmem:[#allocation11 + $0xd0] sm:$0xff]  ;;  %v20951_v42 = vld [vmem:[#allocation11 + $0x8] sm:$0xff] }
 0x4b3   : > { %8456 = vmatmul.bf16.vlgmr.msra.gmra.mxu0 %v22069_v2  ;;  %8469 = vmatmul.bf16.vlgmr.msra.gmra.mxu1 %v22071_v7  ;;  %v8250_v2 = vadd.f32 %v8249_v29, %v1617_v26  ;;  %v20970_v7 = vld [vmem:[#allocation11 + $0xa0] sm:$0xff]  ;;  %v8223_v4 = vpop.f32.mrf.mxu2  ;;  %v8236_v56 = vpop.f32.mrf.mxu3  ;;  %v20959_v60 = vld [vmem:[#allocation11 + $0x48] sm:$0xff]  ;;  %v8475_v26 = vmax.f32 %v22100_v57, 0.0  ;;  %v8474_v29 = vmax.f32 %v22103_v15, 0.0  ;;  %v20996_v57 = vld [vmem:[#allocation11 + $0x170] sm:$0xff] }
 0x4b4   : > { %v8224_v36 = vadd.f32 %v8223_v4, %v1616_v47  ;;  %v20987_v4 = vld [vmem:[#allocation11 + $0x128] sm:$0xff] }
 0x4b5   : > { %12703 = vmatpush.bf16.msra.mxu2 %v20956_v6  ;;  %12716 = vmatpush.bf16.msra.mxu3 %v20964_v30  ;;  %v22379_v54 = vadd.f32 %v8262_v32, %v8250_v2  ;;  %v20967_v6 = vld [vmem:[#allocation11 + $0x88] sm:$0xff]  ;;  %v20989_v32 = vld [vmem:[#allocation11 + $0x138] sm:$0xff]  ;;  %v8476_v2 = vmax.f32 %v22109_v28, 0.0  ;;  %v8539_v47 = vpack.c.bf16 %v8475_v26, %v8475_v26 }
 0x4b6   : > { %12729 = vmatpush.bf16.msrb.mxu0 %v20972_v21  ;;  %12742 = vmatpush.bf16.msrb.mxu1 %v20980_v23  ;;  %v22381_v3 = vadd.f32 %v8236_v56, %v8224_v36  ;;  %v20975_v30 = vld [vmem:[#allocation11 + $0xc8] sm:$0xff]  ;;  %v22387_v28 = vld [vmem:[#allocation10 + $0x38] sm:$0xff] }
 0x4b7   : > { %v8540_v15 = vpack.c.bf16 %v8476_v2, %v8476_v2  ;;  %v20995_v56 = vld [vmem:[#allocation11 + $0x168] sm:$0xff]  ;;  %v20984_v2 = vld [vmem:[#allocation11 + $0x110] sm:$0xff] }
 0x4b8   : > { %v8251_v50 = vpop.f32.mrf.mxu0  ;;  %v8264_v41 = vpop.f32.mrf.mxu1  ;;  %v21003_v36 = vld [vmem:[#allocation11 + $0x1a8] sm:$0xff] }
 0x4b9   : > { %12704 = vmatpush.bf16.msra.mxu2 %v20955_v0  ;;  %12717 = vmatpush.bf16.msra.mxu3 %v20963_v1  ;;  %v20950_v0 = vld [vmem:[#allocation11] sm:$0xff]  ;;  %v21011_v50 = vld [vmem:[#allocation11 + $0x1e8] sm:$0xff]  ;;  %v1619_v41 = vperm.slane %v22387_v28, 1 }
 0x4ba   : > { %12730 = vmatpush.bf16.msrb.mxu0 %v20971_v27  ;;  %12743 = vmatpush.bf16.msrb.mxu1 %v20979_v9  ;;  %v20958_v1 = vld [vmem:[#allocation11 + $0x40] sm:$0xff] }
 0x4bb   : > { %v8225_v21 = vpop.f32.mrf.mxu2  ;;  %v8238_v23 = vpop.f32.mrf.mxu3  ;;  %v20966_v27 = vld [vmem:[#allocation11 + $0x80] sm:$0xff] }
 0x4bc   : > { %v20974_v9 = vld [vmem:[#allocation11 + $0xc0] sm:$0xff]  ;;  %v20985_v23 = vld [vmem:[#allocation11 + $0x118] sm:$0xff] }
 0x4bd   : > { %12705 = vmatpush.bf16.msra.mxu2 %v20954_v52  ;;  %12718 = vmatpush.bf16.msra.mxu3 %v20962_v10  ;;  %v20997_v52 = vld [vmem:[#allocation11 + $0x178] sm:$0xff]  ;;  %v8477_v10 = vmax.f32 %v22106_v61, 0.0  ;;  %v21012_v61 = vld [vmem:[#allocation11 + $0x1f0] sm:$0xff] }
 0x4be   : > { %12731 = vmatpush.bf16.msrb.mxu0 %v20970_v7  ;;  %12744 = vmatpush.bf16.msrb.mxu1 %v20978_v49  ;;  %v21005_v7 = vld [vmem:[#allocation11 + $0x1b8] sm:$0xff] }
 0x4bf   : > { %v21013_v49 = vld [vmem:[#allocation11 + $0x1f8] sm:$0xff] }
 0x4c1   : > { %12706 = vmatpush.bf16.msra.mxu2 %v20953_v22  ;;  %12719 = vmatpush.bf16.msra.mxu3 %v20961_v62  ;;  %v8538_v22 = vpack.c.bf16 %v8474_v29, %v8474_v29  ;;  %v20988_v62 = vld [vmem:[#allocation11 + $0x130] sm:$0xff] }
 0x4c2   : > { %12732 = vmatpush.bf16.msrb.mxu0 %v20969_v24  ;;  %12745 = vmatpush.bf16.msrb.mxu1 %v20977_v34  ;;  %v8541_v24 = vpack.c.bf16 %v8477_v10, %v8477_v10  ;;  %v21004_v34 = vld [vmem:[#allocation11 + $0x1b0] sm:$0xff] }
 0x4c5   : > { %12707 = vmatpush.bf16.msra.mxu2 %v20952_v63  ;;  %12720 = vmatpush.bf16.msra.mxu3 %v20960_v5 }
 0x4c6   : > { %12733 = vmatpush.bf16.msrb.mxu0 %v20968_v19  ;;  %12746 = vmatpush.bf16.msrb.mxu1 %v20976_v51  ;;  %v20986_v19 = vld [vmem:[#allocation11 + $0x120] sm:$0xff] }
 0x4c7   : > { %v20994_v51 = vld [vmem:[#allocation11 + $0x160] sm:$0xff] }
 0x4c9   : > { %12708 = vmatpush.bf16.msra.mxu2 %v20951_v42  ;;  %12721 = vmatpush.bf16.msra.mxu3 %v20959_v60  ;;  %v21002_v60 = vld [vmem:[#allocation11 + $0x1a0] sm:$0xff] }
 0x4ca   : > { %12734 = vmatpush.bf16.msrb.mxu0 %v20967_v6  ;;  %12747 = vmatpush.bf16.msrb.mxu1 %v20975_v30  ;;  %v21010_v6 = vld [vmem:[#allocation11 + $0x1e0] sm:$0xff]  ;;  %v1618_v30 = vperm.slane %v22387_v28, 0 }
 0x4cd   : > { %12709 = vmatpush.bf16.msra.mxu2 %v20950_v0  ;;  %12722 = vmatpush.bf16.msra.mxu3 %v20958_v1  ;;  %v20993_v0 = vld [vmem:[#allocation11 + $0x158] sm:$0xff] }
 0x4ce   : > { %12735 = vmatpush.bf16.msrb.mxu0 %v20966_v27  ;;  %12748 = vmatpush.bf16.msrb.mxu1 %v20974_v9  ;;  %v21001_v1 = vld [vmem:[#allocation11 + $0x198] sm:$0xff] }
 0x4cf   : > { %v21009_v27 = vld [vmem:[#allocation11 + $0x1d8] sm:$0xff] }
 0x4d0   : > { %12710 = vmatmul.bf16.vlgmr.msra.gmra.mxu2 %v8538_v22  ;;  %12723 = vmatmul.bf16.vlgmr.msra.gmra.mxu3 %v8539_v47  ;;  %v8301_v63 = vpop.f32.mrf.mxu0  ;;  %v8314_v5 = vpop.f32.mrf.mxu1  ;;  %v21008_v47 = vld [vmem:[#allocation11 + $0x1d0] sm:$0xff]  ;;  %v20983_v22 = vld [vmem:[#allocation11 + $0x108] sm:$0xff] }
 0x4d1   : > { %12754 = vmatpush.bf16.msrb.mxu2 %v20989_v32  ;;  %12767 = vmatpush.bf16.msrb.mxu3 %v20997_v52  ;;  %v8302_v42 = vadd.f32 %v8301_v63, %v1619_v41  ;;  %v8478_v41 = vmax.f32 %v22119_v35, 0.0  ;;  %v21021_v63 = vld [vmem:[#allocation11 + $0x238] sm:$0xff] }
 0x4d2   : > { %12780 = vmatpush.bf16.msra.mxu0 %v21005_v7  ;;  %12793 = vmatpush.bf16.msra.mxu1 %v21013_v49  ;;  %v20992_v7 = vld [vmem:[#allocation11 + $0x150] sm:$0xff] }
 0x4d3   : > { %12736 = vmatmul.bf16.vlgmr.msrb.gmra.mxu0 %v8540_v15  ;;  %12749 = vmatmul.bf16.vlgmr.msrb.gmra.mxu1 %v8541_v24  ;;  %v22391_v21 = vadd.f32 %v8314_v5, %v8302_v42  ;;  %v8275_v9 = vpop.f32.mrf.mxu2  ;;  %v8288_v26 = vpop.f32.mrf.mxu3  ;;  %v21000_v49 = vld [vmem:[#allocation11 + $0x190] sm:$0xff]  ;;  %v21007_v24 = vld [vmem:[#allocation11 + $0x1c8] sm:$0xff]  ;;  %v21029_v5 = vld [vmem:[#allocation11 + $0x278] sm:$0xff] }
 0x4d4   : > { %v8276_v29 = vadd.f32 %v8275_v9, %v1618_v30  ;;  %v21037_v42 = vld [vmem:[#allocation11 + $0x2b8] sm:$0xff]  ;;  %v8542_v30 = vpack.c.bf16 %v8478_v41, %v8478_v41  ;;  %v21035_v9 = vld [vmem:[#allocation11 + $0x2a8] sm:$0xff] }
 0x4d5   : > { %12755 = vmatpush.bf16.msrb.mxu2 %v20988_v62  ;;  %12768 = vmatpush.bf16.msrb.mxu3 %v20996_v57  ;;  %v20991_v62 = vld [vmem:[#allocation11 + $0x148] sm:$0xff] }
 0x4d6   : > { %12781 = vmatpush.bf16.msra.mxu0 %v21004_v34  ;;  %12794 = vmatpush.bf16.msra.mxu1 %v21012_v61  ;;  %v22393_v32 = vadd.f32 %v8288_v26, %v8276_v29  ;;  %v20999_v57 = vld [vmem:[#allocation11 + $0x188] sm:$0xff]  ;;  %v20982_v61 = vld [vmem:[#allocation11 + $0x100] sm:$0xff]  ;;  %v1621_v29 = vperm.slane %v22387_v28, 3 }
 0x4d7   : > { %v21043_v26 = vld [vmem:[#allocation11 + $0x2e8] sm:$0xff] }
 0x4d8   : > { %v8303_v52 = vpop.f32.mrf.mxu0  ;;  %v8316_v10 = vpop.f32.mrf.mxu1 }
 0x4d9   : > { %12756 = vmatpush.bf16.msrb.mxu2 %v20987_v4  ;;  %12769 = vmatpush.bf16.msrb.mxu3 %v20995_v56  ;;  %v20990_v4 = vld [vmem:[#allocation11 + $0x140] sm:$0xff] }
 0x4da   : > { %12782 = vmatpush.bf16.msra.mxu0 %v21003_v36  ;;  %12795 = vmatpush.bf16.msra.mxu1 %v21011_v50  ;;  %v20998_v56 = vld [vmem:[#allocation11 + $0x180] sm:$0xff]  ;;  %v8479_v50 = vmax.f32 %v22117_v17, 0.0  ;;  %v21028_v17 = vld [vmem:[#allocation11 + $0x270] sm:$0xff] }
 0x4db   : > { %v8277_v15 = vpop.f32.mrf.mxu2  ;;  %v8290_v34 = vpop.f32.mrf.mxu3  ;;  %v21006_v36 = vld [vmem:[#allocation11 + $0x1c0] sm:$0xff] }
 0x4dc   : > { %v21025_v15 = vld [vmem:[#allocation11 + $0x258] sm:$0xff] }
 0x4dd   : > { %12757 = vmatpush.bf16.msrb.mxu2 %v20986_v19  ;;  %12770 = vmatpush.bf16.msrb.mxu3 %v20994_v51  ;;  %v8481_v19 = vmax.f32 %v22127_v14, 0.0  ;;  %v8480_v51 = vmax.f32 %v22129_v33, 0.0  ;;  %v21044_v14 = vld [vmem:[#allocation11 + $0x2f0] sm:$0xff]  ;;  %v21019_v33 = vld [vmem:[#allocation11 + $0x228] sm:$0xff]  ;;  %v21033_v34 = vld [vmem:[#allocation11 + $0x298] sm:$0xff] }
 0x4de   : > { %12783 = vmatpush.bf16.msra.mxu0 %v21002_v60  ;;  %12796 = vmatpush.bf16.msra.mxu1 %v21010_v6  ;;  %v21045_v60 = vld [vmem:[#allocation11 + $0x2f8] sm:$0xff]  ;;  %v8543_v6 = vpack.c.bf16 %v8479_v50, %v8479_v50 }
 0x4df   : > { %v8544_v35 = vpack.c.bf16 %v8480_v51, %v8480_v51  ;;  %v21032_v51 = vld [vmem:[#allocation11 + $0x290] sm:$0xff] }
 0x4e1   : > { %12758 = vmatpush.bf16.msrb.mxu2 %v20985_v23  ;;  %12771 = vmatpush.bf16.msrb.mxu3 %v20993_v0  ;;  %v21020_v23 = vld [vmem:[#allocation11 + $0x230] sm:$0xff]  ;;  %v8545_v0 = vpack.c.bf16 %v8481_v19, %v8481_v19 }
 0x4e2   : > { %12784 = vmatpush.bf16.msra.mxu0 %v21001_v1  ;;  %12797 = vmatpush.bf16.msra.mxu1 %v21009_v27  ;;  %v21036_v1 = vld [vmem:[#allocation11 + $0x2b0] sm:$0xff]  ;;  %v21027_v27 = vld [vmem:[#allocation11 + $0x268] sm:$0xff] }
 0x4e3   : > { %v21024_v19 = vld [vmem:[#allocation11 + $0x250] sm:$0xff] }
 0x4e5   : > { %12759 = vmatpush.bf16.msrb.mxu2 %v20984_v2  ;;  %12772 = vmatpush.bf16.msrb.mxu3 %v20992_v7  ;;  %v21018_v2 = vld [vmem:[#allocation11 + $0x220] sm:$0xff] }
 0x4e6   : > { %12785 = vmatpush.bf16.msra.mxu0 %v21000_v49  ;;  %12798 = vmatpush.bf16.msra.mxu1 %v21008_v47  ;;  %v21026_v7 = vld [vmem:[#allocation11 + $0x260] sm:$0xff] }
 0x4e7   : > { %v21034_v47 = vld [vmem:[#allocation11 + $0x2a0] sm:$0xff] }
 0x4e9   : > { %12760 = vmatpush.bf16.msrb.mxu2 %v20983_v22  ;;  %12773 = vmatpush.bf16.msrb.mxu3 %v20991_v62  ;;  %v21042_v22 = vld [vmem:[#allocation11 + $0x2e0] sm:$0xff]  ;;  %v1620_v62 = vperm.slane %v22387_v28, 2 }
 0x4ea   : > { %12786 = vmatpush.bf16.msra.mxu0 %v20999_v57  ;;  %12799 = vmatpush.bf16.msra.mxu1 %v21007_v24  ;;  %v21017_v24 = vld [vmem:[#allocation11 + $0x218] sm:$0xff] }
 0x4ed   : > { %12761 = vmatpush.bf16.msrb.mxu2 %v20982_v61  ;;  %12774 = vmatpush.bf16.msrb.mxu3 %v20990_v4  ;;  %v21041_v61 = vld [vmem:[#allocation11 + $0x2d8] sm:$0xff] }
 0x4ee   : > { %12787 = vmatpush.bf16.msra.mxu0 %v20998_v56  ;;  %12800 = vmatpush.bf16.msra.mxu1 %v21006_v36 }
 0x4f0   : > { %12762 = vmatmul.bf16.vlgmr.msrb.gmra.mxu2 %v8542_v30  ;;  %12775 = vmatmul.bf16.vlgmr.msrb.gmra.mxu3 %v8543_v6  ;;  %v8353_v52 = vpop.f32.mrf.mxu0  ;;  %v8366_v10 = vpop.f32.mrf.mxu1  ;;  %v21023_v6 = vld [vmem:[#allocation11 + $0x248] sm:$0xff] }
 0x4f1   : > { %12806 = vmatpush.bf16.msra.mxu2 %v21021_v63  ;;  %12819 = vmatpush.bf16.msra.mxu3 %v21029_v5  ;;  %v8354_v49 = vadd.f32 %v8353_v52, %v1621_v29  ;;  %v21016_v5 = vld [vmem:[#allocation11 + $0x210] sm:$0xff]  ;;  %v21031_v30 = vld [vmem:[#allocation11 + $0x288] sm:$0xff]  ;;  %v21061_v29 = vld [vmem:[#allocation11 + $0x378] sm:$0xff]  ;;  %v8485_v52 = vmax.f32 %v22149_v25, 0.0 }
 0x4f2   : > { %12832 = vmatpush.bf16.msrb.mxu0 %v21037_v42  ;;  %12845 = vmatpush.bf16.msrb.mxu1 %v21045_v60  ;;  %v21040_v42 = vld [vmem:[#allocation11 + $0x2d0] sm:$0xff]  ;;  %v21015_v60 = vld [vmem:[#allocation11 + $0x208] sm:$0xff] }
 0x4f3   : > { %12788 = vmatmul.bf16.vlgmr.msra.gmra.mxu0 %v8544_v35  ;;  %12801 = vmatmul.bf16.vlgmr.msra.gmra.mxu1 %v8545_v0  ;;  %v22401_v57 = vadd.f32 %v8366_v10, %v8354_v49  ;;  %v8327_v4 = vpop.f32.mrf.mxu2  ;;  %v8340_v56 = vpop.f32.mrf.mxu3  ;;  %v21014_v35 = vld [vmem:[#allocation11 + $0x200] sm:$0xff]  ;;  %v8484_v10 = vmax.f32 %v22151_v46, 0.0  ;;  %v21076_v25 = vld [vmem:[#allocation11 + $0x3f0] sm:$0xff]  ;;  %v21051_v46 = vld [vmem:[#allocation11 + $0x328] sm:$0xff] }
 0x4f4   : > { %v8328_v36 = vadd.f32 %v8327_v4, %v1620_v62  ;;  %v8549_v62 = vpack.c.bf16 %v8485_v52, %v8485_v52  ;;  %v1623_v4 = vperm.slane %v22387_v28, 5  ;;  %v21072_v52 = vld [vmem:[#allocation11 + $0x3d0] sm:$0xff] }
 0x4f5   : > { %12807 = vmatpush.bf16.msra.mxu2 %v21020_v23  ;;  %12820 = vmatpush.bf16.msra.mxu3 %v21028_v17  ;;  %v21039_v23 = vld [vmem:[#allocation11 + $0x2c8] sm:$0xff] }
 0x4f6   : > { %12833 = vmatpush.bf16.msrb.mxu0 %v21036_v1  ;;  %12846 = vmatpush.bf16.msrb.mxu1 %v21044_v14  ;;  %v22403_v50 = vadd.f32 %v8340_v56, %v8328_v36  ;;  %v21022_v1 = vld [vmem:[#allocation11 + $0x240] sm:$0xff] }
 0x4f7   : > { %v21030_v14 = vld [vmem:[#allocation11 + $0x280] sm:$0xff] }
 0x4f8   : > { %v8355_v41 = vpop.f32.mrf.mxu0  ;;  %v8368_v63 = vpop.f32.mrf.mxu1 }
 0x4f9   : > { %12808 = vmatpush.bf16.msra.mxu2 %v21019_v33  ;;  %12821 = vmatpush.bf16.msra.mxu3 %v21027_v27  ;;  %v21038_v33 = vld [vmem:[#allocation11 + $0x2c0] sm:$0xff]  ;;  %v8483_v27 = vmax.f32 %v22139_v18, 0.0  ;;  %v21060_v18 = vld [vmem:[#allocation11 + $0x370] sm:$0xff] }
 0x4fa   : > { %12834 = vmatpush.bf16.msrb.mxu0 %v21035_v9  ;;  %12847 = vmatpush.bf16.msrb.mxu1 %v21043_v26  ;;  %v8482_v9 = vmax.f32 %v22141_v37, 0.0  ;;  %v21053_v26 = vld [vmem:[#allocation11 + $0x338] sm:$0xff]  ;;  %v8548_v37 = vpack.c.bf16 %v8484_v10, %v8484_v10  ;;  %v21050_v41 = vld [vmem:[#allocation11 + $0x320] sm:$0xff]  ;;  %v21047_v10 = vld [vmem:[#allocation11 + $0x308] sm:$0xff] }
 0x4fb   : > { %v8329_v17 = vpop.f32.mrf.mxu2  ;;  %v8342_v0 = vpop.f32.mrf.mxu3  ;;  %v8547_v49 = vpack.c.bf16 %v8483_v27, %v8483_v27  ;;  %v21058_v63 = vld [vmem:[#allocation11 + $0x360] sm:$0xff] }
 0x4fc   : > { %v21073_v17 = vld [vmem:[#allocation11 + $0x3d8] sm:$0xff] }
 0x4fd   : > { %12809 = vmatpush.bf16.msra.mxu2 %v21018_v2  ;;  %12822 = vmatpush.bf16.msra.mxu3 %v21026_v7  ;;  %v21069_v2 = vld [vmem:[#allocation11 + $0x3b8] sm:$0xff] }
 0x4fe   : > { %12835 = vmatpush.bf16.msrb.mxu0 %v21034_v47  ;;  %12848 = vmatpush.bf16.msrb.mxu1 %v21042_v22  ;;  %v21077_v7 = vld [vmem:[#allocation11 + $0x3f8] sm:$0xff]  ;;  %v8546_v47 = vpack.c.bf16 %v8482_v9, %v8482_v9  ;;  %v21052_v22 = vld [vmem:[#allocation11 + $0x330] sm:$0xff] }
 0x4ff   : > { %v21048_v9 = vld [vmem:[#allocation11 + $0x310] sm:$0xff] }
 0x501   : > { %12810 = vmatpush.bf16.msra.mxu2 %v21017_v24  ;;  %12823 = vmatpush.bf16.msra.mxu3 %v21025_v15  ;;  %v21068_v24 = vld [vmem:[#allocation11 + $0x3b0] sm:$0xff]  ;;  %v21059_v15 = vld [vmem:[#allocation11 + $0x368] sm:$0xff] }
 0x502   : > { %12836 = vmatpush.bf16.msrb.mxu0 %v21033_v34  ;;  %12849 = vmatpush.bf16.msrb.mxu1 %v21041_v61  ;;  %v21067_v34 = vld [vmem:[#allocation11 + $0x3a8] sm:$0xff] }
 0x503   : > { %v21075_v61 = vld [vmem:[#allocation11 + $0x3e8] sm:$0xff] }
 0x505   : > { %12811 = vmatpush.bf16.msra.mxu2 %v21016_v5  ;;  %12824 = vmatpush.bf16.msra.mxu3 %v21024_v19  ;;  %v21066_v19 = vld [vmem:[#allocation11 + $0x3a0] sm:$0xff] }
 0x506   : > { %12837 = vmatpush.bf16.msrb.mxu0 %v21032_v51  ;;  %12850 = vmatpush.bf16.msrb.mxu1 %v21040_v42  ;;  %v21074_v51 = vld [vmem:[#allocation11 + $0x3e0] sm:$0xff]  ;;  %v1622_v42 = vperm.slane %v22387_v28, 4 }
 0x509   : > { %12812 = vmatpush.bf16.msra.mxu2 %v21015_v60  ;;  %12825 = vmatpush.bf16.msra.mxu3 %v21023_v6  ;;  %v21049_v6 = vld [vmem:[#allocation11 + $0x318] sm:$0xff] }
 0x50a   : > { %12838 = vmatpush.bf16.msrb.mxu0 %v21031_v30  ;;  %12851 = vmatpush.bf16.msrb.mxu1 %v21039_v23  ;;  %v21057_v30 = vld [vmem:[#allocation11 + $0x358] sm:$0xff] }
 0x50b   : > { %v21065_v23 = vld [vmem:[#allocation11 + $0x398] sm:$0xff] }
 0x50d   : > { %12813 = vmatpush.bf16.msra.mxu2 %v21014_v35  ;;  %12826 = vmatpush.bf16.msra.mxu3 %v21022_v1 }
 0x50e   : > { %12839 = vmatpush.bf16.msrb.mxu0 %v21030_v14  ;;  %12852 = vmatpush.bf16.msrb.mxu1 %v21038_v33 }
 0x510   : > { %12814 = vmatmul.bf16.vlgmr.msra.gmra.mxu2 %v8546_v47  ;;  %12827 = vmatmul.bf16.vlgmr.msra.gmra.mxu3 %v8547_v49  ;;  %v8405_v56 = vpop.f32.mrf.mxu0  ;;  %v8418_v36 = vpop.f32.mrf.mxu1  ;;  %v21071_v49 = vld [vmem:[#allocation11 + $0x3c8] sm:$0xff] }
 0x511   : > { %12858 = vmatpush.bf16.msrb.mxu2 %v21053_v26  ;;  %12871 = vmatpush.bf16.msrb.mxu3 %v21061_v29  ;;  %v8406_v5 = vadd.f32 %v8405_v56, %v1623_v4  ;;  %v21056_v26 = vld [vmem:[#allocation11 + $0x350] sm:$0xff]  ;;  %v8488_v4 = vmax.f32 %v22171_v13, 0.0  ;;  %v21101_v56 = vld [vmem:[#allocation11 + $0x4b8] sm:$0xff]  ;;  %v21083_v13 = vld [vmem:[#allocation11 + $0x428] sm:$0xff] }
 0x512   : > { %12884 = vmatpush.bf16.msra.mxu0 %v21069_v2  ;;  %12897 = vmatpush.bf16.msra.mxu1 %v21077_v7  ;;  %v21064_v29 = vld [vmem:[#allocation11 + $0x390] sm:$0xff]  ;;  %v21055_v2 = vld [vmem:[#allocation11 + $0x348] sm:$0xff] }
 0x513   : > { %12840 = vmatmul.bf16.vlgmr.msrb.gmra.mxu0 %v8548_v37  ;;  %12853 = vmatmul.bf16.vlgmr.msrb.gmra.mxu1 %v8549_v62  ;;  %v22411_v60 = vadd.f32 %v8418_v36, %v8406_v5  ;;  %v8379_v0 = vpop.f32.mrf.mxu2  ;;  %v8392_v35 = vpop.f32.mrf.mxu3  ;;  %v21063_v7 = vld [vmem:[#allocation11 + $0x388] sm:$0xff]  ;;  %v21054_v62 = vld [vmem:[#allocation11 + $0x340] sm:$0xff]  ;;  %v21109_v36 = vld [vmem:[#allocation11 + $0x4f8] sm:$0xff] }
 0x514   : > { %v8380_v1 = vadd.f32 %v8379_v0, %v1622_v42  ;;  %v21062_v37 = vld [vmem:[#allocation11 + $0x380] sm:$0xff]  ;;  %v21084_v5 = vld [vmem:[#allocation11 + $0x430] sm:$0xff]  ;;  %v21091_v42 = vld [vmem:[#allocation11 + $0x468] sm:$0xff] }
 0x515   : > { %12859 = vmatpush.bf16.msrb.mxu2 %v21052_v22  ;;  %12872 = vmatpush.bf16.msrb.mxu3 %v21060_v18  ;;  %v21046_v18 = vld [vmem:[#allocation11 + $0x300] sm:$0xff] }
 0x516   : > { %12885 = vmatpush.bf16.msra.mxu0 %v21068_v24  ;;  %12898 = vmatpush.bf16.msra.mxu1 %v21076_v25  ;;  %v22413_v14 = vadd.f32 %v8392_v35, %v8380_v1  ;;  %v21070_v24 = vld [vmem:[#allocation11 + $0x3c0] sm:$0xff]  ;;  %v8487_v25 = vmax.f32 %v22159_v40, 0.0  ;;  %v21092_v40 = vld [vmem:[#allocation11 + $0x470] sm:$0xff] }
 0x517   : > { %v21082_v35 = vld [vmem:[#allocation11 + $0x420] sm:$0xff] }
 0x518   : > { %v8407_v33 = vpop.f32.mrf.mxu0  ;;  %v8420_v27 = vpop.f32.mrf.mxu1  ;;  %v21090_v1 = vld [vmem:[#allocation11 + $0x460] sm:$0xff] }
 0x519   : > { %12860 = vmatpush.bf16.msrb.mxu2 %v21051_v46  ;;  %12873 = vmatpush.bf16.msrb.mxu3 %v21059_v15  ;;  %v8486_v46 = vmax.f32 %v22161_v59, 0.0  ;;  %v21085_v15 = vld [vmem:[#allocation11 + $0x438] sm:$0xff]  ;;  %v8552_v59 = vpack.c.bf16 %v8488_v4, %v8488_v4  ;;  %v21098_v27 = vld [vmem:[#allocation11 + $0x4a0] sm:$0xff]  ;;  %v21103_v4 = vld [vmem:[#allocation11 + $0x4c8] sm:$0xff] }
 0x51a   : > { %12886 = vmatpush.bf16.msra.mxu0 %v21067_v34  ;;  %12899 = vmatpush.bf16.msra.mxu1 %v21075_v61  ;;  %v21093_v34 = vld [vmem:[#allocation11 + $0x478] sm:$0xff]  ;;  %v8489_v61 = vmax.f32 %v22169_v58, 0.0  ;;  %v21108_v58 = vld [vmem:[#allocation11 + $0x4f0] sm:$0xff] }
 0x51b   : > { %v8381_v47 = vpop.f32.mrf.mxu2  ;;  %v8394_v22 = vpop.f32.mrf.mxu3 }
 0x51d   : > { %12861 = vmatpush.bf16.msrb.mxu2 %v21050_v41  ;;  %12874 = vmatpush.bf16.msrb.mxu3 %v21058_v63  ;;  %v8551_v41 = vpack.c.bf16 %v8487_v25, %v8487_v25  ;;  %v8550_v63 = vpack.c.bf16 %v8486_v46, %v8486_v46  ;;  %v21096_v25 = vld [vmem:[#allocation11 + $0x490] sm:$0xff] }
 0x51e   : > { %12887 = vmatpush.bf16.msra.mxu0 %v21066_v19  ;;  %12900 = vmatpush.bf16.msra.mxu1 %v21074_v51  ;;  %v8553_v19 = vpack.c.bf16 %v8489_v61, %v8489_v61  ;;  %v21100_v51 = vld [vmem:[#allocation11 + $0x4b0] sm:$0xff]  ;;  %v21095_v61 = vld [vmem:[#allocation11 + $0x488] sm:$0xff] }
 0x51f   : > { %v21104_v46 = vld [vmem:[#allocation11 + $0x4d0] sm:$0xff] }
 0x521   : > { %12862 = vmatpush.bf16.msrb.mxu2 %v21049_v6  ;;  %12875 = vmatpush.bf16.msrb.mxu3 %v21057_v30  ;;  %v21099_v6 = vld [vmem:[#allocation11 + $0x4a8] sm:$0xff] }
 0x522   : > { %12888 = vmatpush.bf16.msra.mxu0 %v21065_v23  ;;  %12901 = vmatpush.bf16.msra.mxu1 %v21073_v17  ;;  %v21107_v30 = vld [vmem:[#allocation11 + $0x4e8] sm:$0xff]  ;;  %v1625_v23 = vperm.slane %v22387_v28, 7 }
 0x525   : > { %12863 = vmatpush.bf16.msrb.mxu2 %v21048_v9  ;;  %12876 = vmatpush.bf16.msrb.mxu3 %v21056_v26  ;;  %v21106_v9 = vld [vmem:[#allocation11 + $0x4e0] sm:$0xff]  ;;  %v1624_v26 = vperm.slane %v22387_v28, 6  ;;  %v21080_v28 = vld [vmem:[#allocation11 + $0x410] sm:$0xff] }
 0x526   : > { %12889 = vmatpush.bf16.msra.mxu0 %v21064_v29  ;;  %12902 = vmatpush.bf16.msra.mxu1 %v21072_v52  ;;  %v21081_v52 = vld [vmem:[#allocation11 + $0x418] sm:$0xff] }
 0x529   : > { %12864 = vmatpush.bf16.msrb.mxu2 %v21047_v10  ;;  %12877 = vmatpush.bf16.msrb.mxu3 %v21055_v2  ;;  %v21089_v10 = vld [vmem:[#allocation11 + $0x458] sm:$0xff] }
 0x52a   : > { %12890 = vmatpush.bf16.msra.mxu0 %v21063_v7  ;;  %12903 = vmatpush.bf16.msra.mxu1 %v21071_v49  ;;  %v21097_v2 = vld [vmem:[#allocation11 + $0x498] sm:$0xff] }
 0x52b   : > { %v21105_v7 = vld [vmem:[#allocation11 + $0x4d8] sm:$0xff] }
 0x52d   : > { %12865 = vmatpush.bf16.msrb.mxu2 %v21046_v18  ;;  %12878 = vmatpush.bf16.msrb.mxu3 %v21054_v62 }
 0x52e   : > { %12891 = vmatpush.bf16.msra.mxu0 %v21062_v37  ;;  %12904 = vmatpush.bf16.msra.mxu1 %v21070_v24  ;;  %v21088_v24 = vld [vmem:[#allocation11 + $0x450] sm:$0xff] }
 0x530   : > { %12866 = vmatmul.bf16.vlgmr.msrb.gmra.mxu2 %v8550_v63  ;;  %12879 = vmatmul.bf16.vlgmr.msrb.gmra.mxu3 %v8551_v41  ;;  %v8457_v17 = vpop.f32.mrf.mxu0  ;;  %v8470_v0 = vpop.f32.mrf.mxu1  ;;  %v21078_v41 = vld [vmem:[#allocation11 + $0x400] sm:$0xff] }
 0x531   : > { %12910 = vmatpush.bf16.msra.mxu2 %v21085_v15  ;;  %12923 = vmatpush.bf16.msra.mxu3 %v21093_v34  ;;  %v8458_v33 = vadd.f32 %v8457_v17, %v1625_v23  ;;  %v21079_v15 = vld [vmem:[#allocation11 + $0x408] sm:$0xff]  ;;  %v21086_v63 = vld [vmem:[#allocation11 + $0x440] sm:$0xff] }
 0x532   : > { %12936 = vmatpush.bf16.msrb.mxu0 %v21101_v56  ;;  %12949 = vmatpush.bf16.msrb.mxu1 %v21109_v36  ;;  %v21087_v34 = vld [vmem:[#allocation11 + $0x448] sm:$0xff] }
 0x533   : > { %12892 = vmatmul.bf16.vlgmr.msra.gmra.mxu0 %v8552_v59  ;;  %12905 = vmatmul.bf16.vlgmr.msra.gmra.mxu1 %v8553_v19  ;;  %v22421_v29 = vadd.f32 %v8470_v0, %v8458_v33  ;;  %v8431_v49 = vpop.f32.mrf.mxu2  ;;  %v8444_v47 = vpop.f32.mrf.mxu3  ;;  %v8491_v19 = vmax.f32 %v22181_v20, 0.0  ;;  %v8490_v59 = vmax.f32 %v22183_v44, 0.0  ;;  %v21116_v0 = vld [vmem:[#allocation11 + $0x530] sm:$0xff]  ;;  %v21123_v33 = vld [vmem:[#allocation11 + $0x568] sm:$0xff] }
 0x534   : > { %v8432_v22 = vadd.f32 %v8431_v49, %v1624_v26  ;;  %v21124_v20 = vld [vmem:[#allocation11 + $0x570] sm:$0xff]  ;;  %v21138_v49 = vld [vmem:[#allocation11 + $0x5e0] sm:$0xff] }
 0x535   : > { %12911 = vmatpush.bf16.msra.mxu2 %v21084_v5  ;;  %12924 = vmatpush.bf16.msra.mxu3 %v21092_v40  ;;  %v21094_v5 = vld [vmem:[#allocation11 + $0x480] sm:$0xff]  ;;  %v8555_v23 = vpack.c.bf16 %v8491_v19, %v8491_v19  ;;  %v8554_v17 = vpack.c.bf16 %v8490_v59, %v8490_v59  ;;  %v21127_v59 = vld [vmem:[#allocation11 + $0x588] sm:$0xff] }
 0x536   : > { %12937 = vmatpush.bf16.msrb.mxu0 %v21100_v51  ;;  %12950 = vmatpush.bf16.msrb.mxu1 %v21108_v58  ;;  %v22423_v18 = vadd.f32 %v8444_v47, %v8432_v22  ;;  %v21102_v40 = vld [vmem:[#allocation11 + $0x4c0] sm:$0xff]  ;;  %v21117_v51 = vld [vmem:[#allocation11 + $0x538] sm:$0xff] }
 0x537   : > { %v21125_v58 = vld [vmem:[#allocation11 + $0x578] sm:$0xff]  ;;  %v21575_v47 = vld [vmem:[#allocation13] ss:$0 sm:$0xff] }
 0x538   : > { %v8459_v62 = vpop.f32.mrf.mxu0  ;;  %v8472_v37 = vpop.f32.mrf.mxu1  ;;  %v21113_v22 = vld [vmem:[#allocation11 + $0x518] sm:$0xff] }
 0x539   : > { %12912 = vmatpush.bf16.msra.mxu2 %v21083_v13  ;;  %12925 = vmatpush.bf16.msra.mxu3 %v21091_v42  ;;  %v8493_v13 = vmax.f32 %v22191_v53, 0.0  ;;  %v8492_v42 = vmax.f32 %v22193_v11, 0.0  ;;  %v21140_v53 = vld [vmem:[#allocation11 + $0x5f0] sm:$0xff]  ;;  %v21115_v11 = vld [vmem:[#allocation11 + $0x528] sm:$0xff]  ;;  %v21121_v62 = vld [vmem:[#allocation11 + $0x558] sm:$0xff] }
 0x53a   : > { %12938 = vmatpush.bf16.msrb.mxu0 %v21099_v6  ;;  %12951 = vmatpush.bf16.msrb.mxu1 %v21107_v30  ;;  %v21133_v6 = vld [vmem:[#allocation11 + $0x5b8] sm:$0xff] }
 0x53b   : > { %v8433_v56 = vpop.f32.mrf.mxu2  ;;  %v8446_v36 = vpop.f32.mrf.mxu3  ;;  %v21141_v30 = vld [vmem:[#allocation11 + $0x5f8] sm:$0xff]  ;;  %v8556_v44 = vpack.c.bf16 %v8492_v42, %v8492_v42  ;;  %v21110_v42 = vld [vmem:[#allocation11 + $0x500] sm:$0xff] }
 0x53c   : > { %v21129_v37 = vld [vmem:[#allocation11 + $0x598] sm:$0xff]  ;;  %v21120_v56 = vld [vmem:[#allocation11 + $0x550] sm:$0xff] }
 0x53d   : > { %12913 = vmatpush.bf16.msra.mxu2 %v21082_v35  ;;  %12926 = vmatpush.bf16.msra.mxu3 %v21090_v1  ;;  %v8557_v35 = vpack.c.bf16 %v8493_v13, %v8493_v13  ;;  %v21132_v1 = vld [vmem:[#allocation11 + $0x5b0] sm:$0xff] }
 0x53e   : > { %12939 = vmatpush.bf16.msrb.mxu0 %v21098_v27  ;;  %12952 = vmatpush.bf16.msrb.mxu1 %v21106_v9  ;;  %v21131_v27 = vld [vmem:[#allocation11 + $0x5a8] sm:$0xff]  ;;  %v21128_v36 = vld [vmem:[#allocation11 + $0x590] sm:$0xff] }
 0x53f   : > { %v21139_v9 = vld [vmem:[#allocation11 + $0x5e8] sm:$0xff] }
 0x541   : > { %12914 = vmatpush.bf16.msra.mxu2 %v21081_v52  ;;  %12927 = vmatpush.bf16.msra.mxu3 %v21089_v10  ;;  %v21114_v10 = vld [vmem:[#allocation11 + $0x520] sm:$0xff] }
 0x542   : > { %12940 = vmatpush.bf16.msrb.mxu0 %v21097_v2  ;;  %12953 = vmatpush.bf16.msrb.mxu1 %v21105_v7  ;;  %v21122_v2 = vld [vmem:[#allocation11 + $0x560] sm:$0xff] }
 0x543   : > { %v21130_v7 = vld [vmem:[#allocation11 + $0x5a0] sm:$0xff] }
 0x545   : > { %12915 = vmatpush.bf16.msra.mxu2 %v21080_v28  ;;  %12928 = vmatpush.bf16.msra.mxu3 %v21088_v24  ;;  %v21137_v28 = vld [vmem:[#allocation11 + $0x5d8] sm:$0xff] }
 0x546   : > { %12941 = vmatpush.bf16.msrb.mxu0 %v21096_v25  ;;  %12954 = vmatpush.bf16.msrb.mxu1 %v21104_v46 }
 0x549   : > { %12916 = vmatpush.bf16.msra.mxu2 %v21079_v15  ;;  %12929 = vmatpush.bf16.msra.mxu3 %v21087_v34 }
 0x54a   : > { %12942 = vmatpush.bf16.msrb.mxu0 %v21095_v61  ;;  %12955 = vmatpush.bf16.msrb.mxu1 %v21103_v4  ;;  %v21112_v4 = vld [vmem:[#allocation11 + $0x510] sm:$0xff] }
 0x54d   : > { %12917 = vmatpush.bf16.msra.mxu2 %v21078_v41  ;;  %12930 = vmatpush.bf16.msra.mxu3 %v21086_v63  ;;  %v21136_v41 = vld [vmem:[#allocation11 + $0x5d0] sm:$0xff] }
 0x54e   : > { %12943 = vmatpush.bf16.msrb.mxu0 %v21094_v5  ;;  %12956 = vmatpush.bf16.msrb.mxu1 %v21102_v40  ;;  %v21111_v5 = vld [vmem:[#allocation11 + $0x508] sm:$0xff] }
 0x54f   : > { %v21119_v40 = vld [vmem:[#allocation11 + $0x548] sm:$0xff] }
 0x550   : > { %12918 = vmatmul.bf16.vlgmr.msra.gmra.mxu2 %v8554_v17  ;;  %12931 = vmatmul.bf16.vlgmr.msra.gmra.mxu3 %v8555_v23  ;;  %v12737_v26 = vpop.f32.mrf.mxu0  ;;  %v12750_v52 = vpop.f32.mrf.mxu1  ;;  %v21134_v23 = vld [vmem:[#allocation11 + $0x5c0] sm:$0xff]  ;;  %v8495_v17 = vmax.f32 %v22201_v31, 0.0  ;;  %v21156_v31 = vld [vmem:[#allocation11 + $0x670] sm:$0xff] }
 0x551   : > { %12962 = vmatpush.bf16.msrb.mxu2 %v21117_v51  ;;  %12975 = vmatpush.bf16.msrb.mxu3 %v21125_v58  ;;  %v21135_v51 = vld [vmem:[#allocation11 + $0x5c8] sm:$0xff] }
 0x552   : > { %12988 = vmatpush.bf16.msra.mxu0 %v21133_v6  ;;  %13001 = vmatpush.bf16.msra.mxu1 %v21141_v30  ;;  %v21118_v6 = vld [vmem:[#allocation11 + $0x540] sm:$0xff] }
 0x553   : > { %12944 = vmatmul.bf16.vlgmr.msrb.gmra.mxu0 %v8556_v44  ;;  %12957 = vmatmul.bf16.vlgmr.msrb.gmra.mxu1 %v8557_v35  ;;  %v12711_v24 = vpop.f32.mrf.mxu2  ;;  %v12724_v25 = vpop.f32.mrf.mxu3  ;;  %v21126_v30 = vld [vmem:[#allocation11 + $0x580] sm:$0xff]  ;;  %v21157_v35 = vld [vmem:[#allocation11 + $0x678] sm:$0xff]  ;;  %v8497_v44 = vmax.f32 %v22211_v16, 0.0  ;;  %v21172_v16 = vld [vmem:[#allocation11 + $0x6f0] sm:$0xff] }
 0x554   : > { %v12712_v46 = vadd.f32 %v21575_v47, %v12711_v24  ;;  %v21145_v24 = vld [vmem:[#allocation11 + $0x618] sm:$0xff] }
 0x555   : > { %12963 = vmatpush.bf16.msrb.mxu2 %v21116_v0  ;;  %12976 = vmatpush.bf16.msrb.mxu3 %v21124_v20  ;;  %v8494_v0 = vmax.f32 %v22203_v55, 0.0  ;;  %v21149_v20 = vld [vmem:[#allocation11 + $0x638] sm:$0xff] }
 0x556   : > { %12989 = vmatpush.bf16.msra.mxu0 %v21132_v1  ;;  %13002 = vmatpush.bf16.msra.mxu1 %v21140_v53  ;;  %v12725_v15 = vadd.f32 %v12724_v25, %v12712_v46  ;;  %v8496_v1 = vmax.f32 %v22213_v43, 0.0  ;;  %v21165_v53 = vld [vmem:[#allocation11 + $0x6b8] sm:$0xff]  ;;  %v21147_v43 = vld [vmem:[#allocation11 + $0x628] sm:$0xff] }
 0x557   : > { %v21153_v25 = vld [vmem:[#allocation11 + $0x658] sm:$0xff] }
 0x558   : > { %v12739_v34 = vpop.f32.mrf.mxu0  ;;  %v12752_v61 = vpop.f32.mrf.mxu1  ;;  %v12738_v63 = vadd.f32 %v12737_v26, %v12725_v15  ;;  %v8561_v26 = vpack.c.bf16 %v8497_v44, %v8497_v44  ;;  %v8560_v55 = vpack.c.bf16 %v8496_v1, %v8496_v1  ;;  %v21161_v46 = vld [vmem:[#allocation11 + $0x698] sm:$0xff]  ;;  %v8499_v44 = vmax.f32 %v22223_v8, 0.0  ;;  %v21188_v8 = vld [vmem:[#allocation11 + $0x770] sm:$0xff] }
 0x559   : > { %12964 = vmatpush.bf16.msrb.mxu2 %v21115_v11  ;;  %12977 = vmatpush.bf16.msrb.mxu3 %v21123_v33  ;;  %v21173_v11 = vld [vmem:[#allocation11 + $0x6f8] sm:$0xff]  ;;  %v8559_v33 = vpack.c.bf16 %v8495_v17, %v8495_v17  ;;  %v21142_v17 = vld [vmem:[#allocation11 + $0x600] sm:$0xff]  ;;  %v8498_v1 = vmax.f32 %v22225_v39, 0.0 }
 0x55a   : > { %12990 = vmatpush.bf16.msra.mxu0 %v21131_v27  ;;  %13003 = vmatpush.bf16.msra.mxu1 %v21139_v9  ;;  %v22429_v19 = vadd.f32 %v12750_v52, %v12738_v63  ;;  %v8558_v27 = vpack.c.bf16 %v8494_v0, %v8494_v0  ;;  %v21148_v9 = vld [vmem:[#allocation11 + $0x630] sm:$0xff]  ;;  %v21169_v15 = vld [vmem:[#allocation11 + $0x6d8] sm:$0xff]  ;;  %v21150_v0 = vld [vmem:[#allocation11 + $0x640] sm:$0xff] }
 0x55b   : > { %v12713_v58 = vpop.f32.mrf.mxu2  ;;  %v12726_v13 = vpop.f32.mrf.mxu3  ;;  %v21164_v52 = vld [vmem:[#allocation11 + $0x6b0] sm:$0xff] }
 0x55c   : > { %v21144_v63 = vld [vmem:[#allocation11 + $0x610] sm:$0xff]  ;;  %v21143_v58 = vld [vmem:[#allocation11 + $0x608] sm:$0xff] }
 0x55d   : > { %12965 = vmatpush.bf16.msrb.mxu2 %v21114_v10  ;;  %12978 = vmatpush.bf16.msrb.mxu3 %v21122_v2  ;;  %v21155_v10 = vld [vmem:[#allocation11 + $0x668] sm:$0xff] }
 0x55e   : > { %12991 = vmatpush.bf16.msra.mxu0 %v21130_v7  ;;  %13004 = vmatpush.bf16.msra.mxu1 %v21138_v49  ;;  %v21163_v2 = vld [vmem:[#allocation11 + $0x6a8] sm:$0xff] }
 0x55f   : > { %v21171_v7 = vld [vmem:[#allocation11 + $0x6e8] sm:$0xff] }
 0x560   : > { %v21151_v13 = vld [vmem:[#allocation11 + $0x648] sm:$0xff] }
 0x561   : > { %12966 = vmatpush.bf16.msrb.mxu2 %v21113_v22  ;;  %12979 = vmatpush.bf16.msrb.mxu3 %v21121_v62  ;;  %v21146_v22 = vld [vmem:[#allocation11 + $0x620] sm:$0xff] }
 0x562   : > { %12992 = vmatpush.bf16.msra.mxu0 %v21129_v37  ;;  %13005 = vmatpush.bf16.msra.mxu1 %v21137_v28  ;;  %v21154_v62 = vld [vmem:[#allocation11 + $0x660] sm:$0xff] }
 0x563   : > { %v21162_v37 = vld [vmem:[#allocation11 + $0x6a0] sm:$0xff] }
 0x564   : > { %v21170_v28 = vld [vmem:[#allocation11 + $0x6e0] sm:$0xff] }
 0x565   : > { %12967 = vmatpush.bf16.msrb.mxu2 %v21112_v4  ;;  %12980 = vmatpush.bf16.msrb.mxu3 %v21120_v56 }
 0x566   : > { %12993 = vmatpush.bf16.msra.mxu0 %v21128_v36  ;;  %13006 = vmatpush.bf16.msra.mxu1 %v21136_v41 }
 0x569   : > { %12968 = vmatpush.bf16.msrb.mxu2 %v21111_v5  ;;  %12981 = vmatpush.bf16.msrb.mxu3 %v21119_v40  ;;  %v21152_v5 = vld [vmem:[#allocation11 + $0x650] sm:$0xff] }
 0x56a   : > { %12994 = vmatpush.bf16.msra.mxu0 %v21127_v59  ;;  %13007 = vmatpush.bf16.msra.mxu1 %v21135_v51  ;;  %v21160_v40 = vld [vmem:[#allocation11 + $0x690] sm:$0xff] }
 0x56b   : > { %v21168_v59 = vld [vmem:[#allocation11 + $0x6d0] sm:$0xff] }
 0x56d   : > { %12969 = vmatpush.bf16.msrb.mxu2 %v21110_v42  ;;  %12982 = vmatpush.bf16.msrb.mxu3 %v21118_v6  ;;  %v21167_v6 = vld [vmem:[#allocation11 + $0x6c8] sm:$0xff] }
 0x56e   : > { %12995 = vmatpush.bf16.msra.mxu0 %v21126_v30  ;;  %13008 = vmatpush.bf16.msra.mxu1 %v21134_v23 }
 0x570   : > { %12970 = vmatmul.bf16.vlgmr.msrb.gmra.mxu2 %v8558_v27  ;;  %12983 = vmatmul.bf16.vlgmr.msrb.gmra.mxu3 %v8559_v33  ;;  %v12789_v49 = vpop.f32.mrf.mxu0  ;;  %v12802_v47 = vpop.f32.mrf.mxu1  ;;  %v8501_v33 = vmax.f32 %v22233_v12, 0.0  ;;  %v8500_v27 = vmax.f32 %v22235_v48, 0.0  ;;  %v21204_v12 = vld [vmem:[#allocation11 + $0x7f0] sm:$0xff]  ;;  %v21179_v48 = vld [vmem:[#allocation11 + $0x728] sm:$0xff] }
 0x571   : > { %13014 = vmatpush.bf16.msra.mxu2 %v21149_v20  ;;  %13027 = vmatpush.bf16.msra.mxu3 %v21157_v35  ;;  %v21158_v20 = vld [vmem:[#allocation11 + $0x680] sm:$0xff] }
 0x572   : > { %13040 = vmatpush.bf16.msrb.mxu0 %v21165_v53  ;;  %13053 = vmatpush.bf16.msrb.mxu1 %v21173_v11  ;;  %v21166_v35 = vld [vmem:[#allocation11 + $0x6c0] sm:$0xff]  ;;  %v21181_v53 = vld [vmem:[#allocation11 + $0x738] sm:$0xff]  ;;  %v8564_v39 = vpack.c.bf16 %v8500_v27, %v8500_v27 }
 0x573   : > { %12996 = vmatmul.bf16.vlgmr.msra.gmra.mxu0 %v8560_v55  ;;  %13009 = vmatmul.bf16.vlgmr.msra.gmra.mxu1 %v8561_v26  ;;  %v12763_v34 = vpop.f32.mrf.mxu2  ;;  %v12776_v61 = vpop.f32.mrf.mxu3  ;;  %v21189_v11 = vld [vmem:[#allocation11 + $0x778] sm:$0xff]  ;;  %v8563_v26 = vpack.c.bf16 %v8499_v44, %v8499_v44  ;;  %v8562_v55 = vpack.c.bf16 %v8498_v1, %v8498_v1 }
 0x574   : > { %v12764_v4 = vadd.f32 %v12763_v34, %v22429_v19  ;;  %v21159_v19 = vld [vmem:[#allocation11 + $0x688] sm:$0xff]  ;;  %v22580_v44 = vld [vmem:[#allocation20_spill] sm:$0xff] }
 0x575   : > { %13015 = vmatpush.bf16.msra.mxu2 %v21148_v9  ;;  %13028 = vmatpush.bf16.msra.mxu3 %v21156_v31  ;;  %v21197_v9 = vld [vmem:[#allocation11 + $0x7b8] sm:$0xff]  ;;  %v8503_v1 = vmax.f32 %v22580_v44, 0.0  ;;  %v21206_v44 = vld [vmem:[#allocation11 + $0x800] sm:$0xff] }
 0x576   : > { %13041 = vmatpush.bf16.msrb.mxu0 %v21164_v52  ;;  %13054 = vmatpush.bf16.msrb.mxu1 %v21172_v16  ;;  %v12777_v56 = vadd.f32 %v12776_v61, %v12764_v4  ;;  %v21205_v31 = vld [vmem:[#allocation11 + $0x7f8] sm:$0xff]  ;;  %v21180_v52 = vld [vmem:[#allocation11 + $0x730] sm:$0xff]  ;;  %v8565_v16 = vpack.c.bf16 %v8501_v33, %v8501_v33 }
 0x577   : > { %v21213_v33 = vld [vmem:[#allocation11 + $0x838] sm:$0xff] }
 0x578   : > { %v12791_v36 = vpop.f32.mrf.mxu0  ;;  %v12804_v41 = vpop.f32.mrf.mxu1  ;;  %v12790_v51 = vadd.f32 %v12789_v49, %v12777_v56  ;;  %v21221_v27 = vld [vmem:[#allocation11 + $0x878] sm:$0xff] }
 0x579   : > { %13016 = vmatpush.bf16.msra.mxu2 %v21147_v43  ;;  %13029 = vmatpush.bf16.msra.mxu3 %v21155_v10  ;;  %v21196_v43 = vld [vmem:[#allocation11 + $0x7b0] sm:$0xff]  ;;  %v21187_v10 = vld [vmem:[#allocation11 + $0x768] sm:$0xff] }
 0x57a   : > { %13042 = vmatpush.bf16.msrb.mxu0 %v21163_v2  ;;  %13055 = vmatpush.bf16.msrb.mxu1 %v21171_v7  ;;  %v22436_v42 = vadd.f32 %v12802_v47, %v12790_v51  ;;  %v21195_v2 = vld [vmem:[#allocation11 + $0x7a8] sm:$0xff] }
 0x57b   : > { %v12765_v30 = vpop.f32.mrf.mxu2  ;;  %v12778_v23 = vpop.f32.mrf.mxu3  ;;  %v21203_v7 = vld [vmem:[#allocation11 + $0x7e8] sm:$0xff] }
 0x57d   : > { %13017 = vmatpush.bf16.msra.mxu2 %v21146_v22  ;;  %13030 = vmatpush.bf16.msra.mxu3 %v21154_v62  ;;  %v21178_v22 = vld [vmem:[#allocation11 + $0x720] sm:$0xff] }
 0x57e   : > { %13043 = vmatpush.bf16.msrb.mxu0 %v21162_v37  ;;  %13056 = vmatpush.bf16.msrb.mxu1 %v21170_v28  ;;  %v21186_v62 = vld [vmem:[#allocation11 + $0x760] sm:$0xff] }
 0x57f   : > { %v21194_v37 = vld [vmem:[#allocation11 + $0x7a0] sm:$0xff] }
 0x580   : > { %v21202_v28 = vld [vmem:[#allocation11 + $0x7e0] sm:$0xff] }
 0x581   : > { %13018 = vmatpush.bf16.msra.mxu2 %v21145_v24  ;;  %13031 = vmatpush.bf16.msra.mxu3 %v21153_v25  ;;  %v21177_v24 = vld [vmem:[#allocation11 + $0x718] sm:$0xff] }
 0x582   : > { %13044 = vmatpush.bf16.msrb.mxu0 %v21161_v46  ;;  %13057 = vmatpush.bf16.msrb.mxu1 %v21169_v15  ;;  %v21185_v25 = vld [vmem:[#allocation11 + $0x758] sm:$0xff] }
 0x583   : > { %v21193_v46 = vld [vmem:[#allocation11 + $0x798] sm:$0xff] }
 0x584   : > { %v21201_v15 = vld [vmem:[#allocation11 + $0x7d8] sm:$0xff] }
 0x585   : > { %13019 = vmatpush.bf16.msra.mxu2 %v21144_v63  ;;  %13032 = vmatpush.bf16.msra.mxu3 %v21152_v5  ;;  %v21176_v63 = vld [vmem:[#allocation11 + $0x710] sm:$0xff] }
 0x586   : > { %13045 = vmatpush.bf16.msrb.mxu0 %v21160_v40  ;;  %13058 = vmatpush.bf16.msrb.mxu1 %v21168_v59  ;;  %v21184_v5 = vld [vmem:[#allocation11 + $0x750] sm:$0xff] }
 0x587   : > { %v21192_v40 = vld [vmem:[#allocation11 + $0x790] sm:$0xff] }
 0x588   : > { %v21200_v59 = vld [vmem:[#allocation11 + $0x7d0] sm:$0xff] }
 0x589   : > { %13020 = vmatpush.bf16.msra.mxu2 %v21143_v58  ;;  %13033 = vmatpush.bf16.msra.mxu3 %v21151_v13  ;;  %v21175_v58 = vld [vmem:[#allocation11 + $0x708] sm:$0xff] }
 0x58a   : > { %13046 = vmatpush.bf16.msrb.mxu0 %v21159_v19  ;;  %13059 = vmatpush.bf16.msrb.mxu1 %v21167_v6  ;;  %v21183_v13 = vld [vmem:[#allocation11 + $0x748] sm:$0xff] }
 0x58b   : > { %v21199_v6 = vld [vmem:[#allocation11 + $0x7c8] sm:$0xff] }
 0x58d   : > { %13021 = vmatpush.bf16.msra.mxu2 %v21142_v17  ;;  %13034 = vmatpush.bf16.msra.mxu3 %v21150_v0  ;;  %v21174_v17 = vld [vmem:[#allocation11 + $0x700] sm:$0xff] }
 0x58e   : > { %13047 = vmatpush.bf16.msrb.mxu0 %v21158_v20  ;;  %13060 = vmatpush.bf16.msrb.mxu1 %v21166_v35  ;;  %v21182_v0 = vld [vmem:[#allocation11 + $0x740] sm:$0xff] }
 0x58f   : > { %v21190_v20 = vld [vmem:[#allocation11 + $0x780] sm:$0xff] }
 0x590   : > { %13022 = vmatmul.bf16.vlgmr.msra.gmra.mxu2 %v8562_v55  ;;  %13035 = vmatmul.bf16.vlgmr.msra.gmra.mxu3 %v8563_v26  ;;  %v12841_v49 = vpop.f32.mrf.mxu0  ;;  %v12854_v47 = vpop.f32.mrf.mxu1  ;;  %v21198_v35 = vld [vmem:[#allocation11 + $0x7c0] sm:$0xff]  ;;  %v22583_v26 = vld [vmem:[#allocation23_spill] sm:$0xff] }
 0x591   : > { %13066 = vmatpush.bf16.msrb.mxu2 %v21181_v53  ;;  %13079 = vmatpush.bf16.msrb.mxu3 %v21189_v11  ;;  %v22581_v53 = vld [vmem:[#allocation21_spill] sm:$0xff]  ;;  %v8504_v55 = vmax.f32 %v22583_v26, 0.0 }
 0x592   : > { %13092 = vmatpush.bf16.msra.mxu0 %v21197_v9  ;;  %13105 = vmatpush.bf16.msra.mxu1 %v21205_v31  ;;  %v8502_v11 = vmax.f32 %v22581_v53, 0.0  ;;  %v22582_v9 = vld [vmem:[#allocation22_spill] sm:$0xff]  ;;  %v21245_v26 = vld [vmem:[#allocation11 + $0x938] sm:$0xff] }
 0x593   : > { %13048 = vmatmul.bf16.vlgmr.msrb.gmra.mxu0 %v8564_v39  ;;  %13061 = vmatmul.bf16.vlgmr.msrb.gmra.mxu1 %v8565_v16  ;;  %v12815_v34 = vpop.f32.mrf.mxu2  ;;  %v12828_v61 = vpop.f32.mrf.mxu3  ;;  %v8505_v31 = vmax.f32 %v22582_v9, 0.0  ;;  %v8567_v16 = vpack.c.bf16 %v8503_v1, %v8503_v1  ;;  %v21214_v1 = vld [vmem:[#allocation11 + $0x840] sm:$0xff] }
 0x594   : > { %v12816_v4 = vadd.f32 %v12815_v34, %v22436_v42  ;;  %v21191_v42 = vld [vmem:[#allocation11 + $0x788] sm:$0xff]  ;;  %v8566_v39 = vpack.c.bf16 %v8502_v11, %v8502_v11  ;;  %v21209_v34 = vld [vmem:[#allocation11 + $0x818] sm:$0xff]  ;;  %v21222_v53 = vld [vmem:[#allocation11 + $0x880] sm:$0xff] }
 0x595   : > { %13067 = vmatpush.bf16.msrb.mxu2 %v21180_v52  ;;  %13080 = vmatpush.bf16.msrb.mxu3 %v21188_v8  ;;  %v21229_v52 = vld [vmem:[#allocation11 + $0x8b8] sm:$0xff]  ;;  %v21230_v11 = vld [vmem:[#allocation11 + $0x8c0] sm:$0xff] }
 0x596   : > { %13093 = vmatpush.bf16.msra.mxu0 %v21196_v43  ;;  %13106 = vmatpush.bf16.msra.mxu1 %v21204_v12  ;;  %v12829_v56 = vadd.f32 %v12828_v61, %v12816_v4  ;;  %v21237_v8 = vld [vmem:[#allocation11 + $0x8f8] sm:$0xff]  ;;  %v21212_v43 = vld [vmem:[#allocation11 + $0x830] sm:$0xff] }
 0x597   : > { %v21220_v12 = vld [vmem:[#allocation11 + $0x870] sm:$0xff]  ;;  %v21217_v61 = vld [vmem:[#allocation11 + $0x858] sm:$0xff] }
 0x598   : > { %v12843_v36 = vpop.f32.mrf.mxu0  ;;  %v12856_v41 = vpop.f32.mrf.mxu1  ;;  %v12842_v51 = vadd.f32 %v12841_v49, %v12829_v56  ;;  %v21211_v49 = vld [vmem:[#allocation11 + $0x828] sm:$0xff]  ;;  %v21225_v4 = vld [vmem:[#allocation11 + $0x898] sm:$0xff] }
 0x599   : > { %13068 = vmatpush.bf16.msrb.mxu2 %v21179_v48  ;;  %13081 = vmatpush.bf16.msrb.mxu3 %v21187_v10  ;;  %v8569_v48 = vpack.c.bf16 %v8505_v31, %v8505_v31  ;;  %v8568_v10 = vpack.c.bf16 %v8504_v55, %v8504_v55  ;;  %v21233_v56 = vld [vmem:[#allocation11 + $0x8d8] sm:$0xff] }
 0x59a   : > { %13094 = vmatpush.bf16.msra.mxu0 %v21195_v2  ;;  %13107 = vmatpush.bf16.msra.mxu1 %v21203_v7  ;;  %v22443_v19 = vadd.f32 %v12854_v47, %v12842_v51  ;;  %v21228_v2 = vld [vmem:[#allocation11 + $0x8b0] sm:$0xff]  ;;  %v21219_v47 = vld [vmem:[#allocation11 + $0x868] sm:$0xff]  ;;  %v22585_v9 = vld [vmem:[#allocation25_spill] sm:$0xff] }
 0x59b   : > { %v12817_v30 = vpop.f32.mrf.mxu2  ;;  %v12830_v23 = vpop.f32.mrf.mxu3  ;;  %v21236_v7 = vld [vmem:[#allocation11 + $0x8f0] sm:$0xff]  ;;  %v8506_v31 = vmax.f32 %v22585_v9, 0.0  ;;  %v21253_v55 = vld [vmem:[#allocation11 + $0x978] sm:$0xff]  ;;  %v21254_v9 = vld [vmem:[#allocation11 + $0x980] sm:$0xff] }
 0x59c   : > { %v21208_v51 = vld [vmem:[#allocation11 + $0x810] sm:$0xff]  ;;  %v21207_v30 = vld [vmem:[#allocation11 + $0x808] sm:$0xff] }
 0x59d   : > { %13069 = vmatpush.bf16.msrb.mxu2 %v21178_v22  ;;  %13082 = vmatpush.bf16.msrb.mxu3 %v21186_v62  ;;  %v21227_v22 = vld [vmem:[#allocation11 + $0x8a8] sm:$0xff] }
 0x59e   : > { %13095 = vmatpush.bf16.msra.mxu0 %v21194_v37  ;;  %13108 = vmatpush.bf16.msra.mxu1 %v21202_v28  ;;  %v21235_v62 = vld [vmem:[#allocation11 + $0x8e8] sm:$0xff] }
 0x59f   : > { %v21215_v23 = vld [vmem:[#allocation11 + $0x848] sm:$0xff] }
 0x5a1   : > { %13070 = vmatpush.bf16.msrb.mxu2 %v21177_v24  ;;  %13083 = vmatpush.bf16.msrb.mxu3 %v21185_v25  ;;  %v21210_v24 = vld [vmem:[#allocation11 + $0x820] sm:$0xff] }
 0x5a2   : > { %13096 = vmatpush.bf16.msra.mxu0 %v21193_v46  ;;  %13109 = vmatpush.bf16.msra.mxu1 %v21201_v15  ;;  %v21218_v25 = vld [vmem:[#allocation11 + $0x860] sm:$0xff] }
 0x5a3   : > { %v21226_v46 = vld [vmem:[#allocation11 + $0x8a0] sm:$0xff] }
 0x5a4   : > { %v21234_v15 = vld [vmem:[#allocation11 + $0x8e0] sm:$0xff] }
 0x5a5   : > { %13071 = vmatpush.bf16.msrb.mxu2 %v21176_v63  ;;  %13084 = vmatpush.bf16.msrb.mxu3 %v21184_v5 }
 0x5a6   : > { %13097 = vmatpush.bf16.msra.mxu0 %v21192_v40  ;;  %13110 = vmatpush.bf16.msra.mxu1 %v21200_v59 }
 0x5a9   : > { %13072 = vmatpush.bf16.msrb.mxu2 %v21175_v58  ;;  %13085 = vmatpush.bf16.msrb.mxu3 %v21183_v13  ;;  %v21216_v58 = vld [vmem:[#allocation11 + $0x850] sm:$0xff] }
 0x5aa   : > { %13098 = vmatpush.bf16.msra.mxu0 %v21191_v42  ;;  %13111 = vmatpush.bf16.msra.mxu1 %v21199_v6  ;;  %v21224_v13 = vld [vmem:[#allocation11 + $0x890] sm:$0xff] }
 0x5ab   : > { %v21232_v42 = vld [vmem:[#allocation11 + $0x8d0] sm:$0xff] }
 0x5ad   : > { %13073 = vmatpush.bf16.msrb.mxu2 %v21174_v17  ;;  %13086 = vmatpush.bf16.msrb.mxu3 %v21182_v0  ;;  %v21231_v0 = vld [vmem:[#allocation11 + $0x8c8] sm:$0xff] }
 0x5ae   : > { %13099 = vmatpush.bf16.msra.mxu0 %v21190_v20  ;;  %13112 = vmatpush.bf16.msra.mxu1 %v21198_v35 }
 0x5b0   : > { %13074 = vmatmul.bf16.vlgmr.msrb.gmra.mxu2 %v8566_v39  ;;  %13087 = vmatmul.bf16.vlgmr.msrb.gmra.mxu3 %v8567_v16  ;;  %v12893_v37 = vpop.f32.mrf.mxu0  ;;  %v12906_v28 = vpop.f32.mrf.mxu1  ;;  %v22587_v16 = vld [vmem:[#allocation27_spill] sm:$0xff] }
 0x5b1   : > { %13118 = vmatpush.bf16.msra.mxu2 %v21213_v33  ;;  %13131 = vmatpush.bf16.msra.mxu3 %v21221_v27  ;;  %v22584_v33 = vld [vmem:[#allocation24_spill] sm:$0xff]  ;;  %v8508_v39 = vmax.f32 %v22587_v16, 0.0 }
 0x5b2   : > { %13144 = vmatpush.bf16.msrb.mxu0 %v21229_v52  ;;  %13157 = vmatpush.bf16.msrb.mxu1 %v21237_v8  ;;  %v8507_v27 = vmax.f32 %v22584_v33, 0.0  ;;  %v22586_v52 = vld [vmem:[#allocation26_spill] sm:$0xff]  ;;  %v21277_v16 = vld [vmem:[#allocation11 + $0xa38] sm:$0xff] }
 0x5b3   : > { %13100 = vmatmul.bf16.vlgmr.msra.gmra.mxu0 %v8568_v10  ;;  %13113 = vmatmul.bf16.vlgmr.msra.gmra.mxu1 %v8569_v48  ;;  %v12867_v36 = vpop.f32.mrf.mxu2  ;;  %v12880_v41 = vpop.f32.mrf.mxu3  ;;  %v8509_v8 = vmax.f32 %v22586_v52, 0.0  ;;  %v8570_v10 = vpack.c.bf16 %v8506_v31, %v8506_v31  ;;  %v21238_v33 = vld [vmem:[#allocation11 + $0x900] sm:$0xff] }
 0x5b4   : > { %v12868_v63 = vadd.f32 %v12867_v36, %v22443_v19  ;;  %v21223_v19 = vld [vmem:[#allocation11 + $0x888] sm:$0xff]  ;;  %v8571_v48 = vpack.c.bf16 %v8507_v27, %v8507_v27  ;;  %v21241_v36 = vld [vmem:[#allocation11 + $0x918] sm:$0xff]  ;;  %v21246_v27 = vld [vmem:[#allocation11 + $0x940] sm:$0xff] }
 0x5b5   : > { %13119 = vmatpush.bf16.msra.mxu2 %v21212_v43  ;;  %13132 = vmatpush.bf16.msra.mxu3 %v21220_v12  ;;  %v21261_v43 = vld [vmem:[#allocation11 + $0x9b8] sm:$0xff]  ;;  %v21262_v31 = vld [vmem:[#allocation11 + $0x9c0] sm:$0xff] }
 0x5b6   : > { %13145 = vmatpush.bf16.msrb.mxu0 %v21228_v2  ;;  %13158 = vmatpush.bf16.msrb.mxu1 %v21236_v7  ;;  %v12881_v5 = vadd.f32 %v12880_v41, %v12868_v63  ;;  %v21269_v12 = vld [vmem:[#allocation11 + $0x9f8] sm:$0xff]  ;;  %v21244_v2 = vld [vmem:[#allocation11 + $0x930] sm:$0xff] }
 0x5b7   : > { %v21252_v7 = vld [vmem:[#allocation11 + $0x970] sm:$0xff]  ;;  %v21249_v41 = vld [vmem:[#allocation11 + $0x958] sm:$0xff] }
 0x5b8   : > { %v12895_v40 = vpop.f32.mrf.mxu0  ;;  %v12908_v59 = vpop.f32.mrf.mxu1  ;;  %v12894_v6 = vadd.f32 %v12893_v37, %v12881_v5  ;;  %v21243_v37 = vld [vmem:[#allocation11 + $0x928] sm:$0xff]  ;;  %v21257_v63 = vld [vmem:[#allocation11 + $0x998] sm:$0xff] }
 0x5b9   : > { %13120 = vmatpush.bf16.msra.mxu2 %v21211_v49  ;;  %13133 = vmatpush.bf16.msra.mxu3 %v21219_v47  ;;  %v8573_v49 = vpack.c.bf16 %v8509_v8, %v8509_v8  ;;  %v8572_v47 = vpack.c.bf16 %v8508_v39, %v8508_v39  ;;  %v21265_v5 = vld [vmem:[#allocation11 + $0x9d8] sm:$0xff] }
 0x5ba   : > { %13146 = vmatpush.bf16.msrb.mxu0 %v21227_v22  ;;  %13159 = vmatpush.bf16.msrb.mxu1 %v21235_v62  ;;  %v22450_v17 = vadd.f32 %v12906_v28, %v12894_v6  ;;  %v21260_v22 = vld [vmem:[#allocation11 + $0x9b0] sm:$0xff]  ;;  %v21251_v28 = vld [vmem:[#allocation11 + $0x968] sm:$0xff]  ;;  %v22589_v52 = vld [vmem:[#allocation29_spill] sm:$0xff] }
 0x5bb   : > { %v12869_v20 = vpop.f32.mrf.mxu2  ;;  %v12882_v35 = vpop.f32.mrf.mxu3  ;;  %v21268_v62 = vld [vmem:[#allocation11 + $0x9f0] sm:$0xff]  ;;  %v8510_v8 = vmax.f32 %v22589_v52, 0.0  ;;  %v21285_v39 = vld [vmem:[#allocation11 + $0xa78] sm:$0xff]  ;;  %v21286_v52 = vld [vmem:[#allocation11 + $0xa80] sm:$0xff] }
 0x5bc   : > { %v21240_v6 = vld [vmem:[#allocation11 + $0x910] sm:$0xff]  ;;  %v21239_v20 = vld [vmem:[#allocation11 + $0x908] sm:$0xff] }
 0x5bd   : > { %13121 = vmatpush.bf16.msra.mxu2 %v21210_v24  ;;  %13134 = vmatpush.bf16.msra.mxu3 %v21218_v25  ;;  %v21259_v24 = vld [vmem:[#allocation11 + $0x9a8] sm:$0xff] }
 0x5be   : > { %13147 = vmatpush.bf16.msrb.mxu0 %v21226_v46  ;;  %13160 = vmatpush.bf16.msrb.mxu1 %v21234_v15  ;;  %v21267_v25 = vld [vmem:[#allocation11 + $0x9e8] sm:$0xff] }
 0x5bf   : > { %v21247_v35 = vld [vmem:[#allocation11 + $0x948] sm:$0xff] }
 0x5c1   : > { %13122 = vmatpush.bf16.msra.mxu2 %v21209_v34  ;;  %13135 = vmatpush.bf16.msra.mxu3 %v21217_v61  ;;  %v21242_v34 = vld [vmem:[#allocation11 + $0x920] sm:$0xff] }
 0x5c2   : > { %13148 = vmatpush.bf16.msrb.mxu0 %v21225_v4  ;;  %13161 = vmatpush.bf16.msrb.mxu1 %v21233_v56  ;;  %v21250_v61 = vld [vmem:[#allocation11 + $0x960] sm:$0xff] }
 0x5c3   : > { %v21258_v4 = vld [vmem:[#allocation11 + $0x9a0] sm:$0xff] }
 0x5c4   : > { %v21266_v56 = vld [vmem:[#allocation11 + $0x9e0] sm:$0xff] }
 0x5c5   : > { %13123 = vmatpush.bf16.msra.mxu2 %v21208_v51  ;;  %13136 = vmatpush.bf16.msra.mxu3 %v21216_v58 }
 0x5c6   : > { %13149 = vmatpush.bf16.msrb.mxu0 %v21224_v13  ;;  %13162 = vmatpush.bf16.msrb.mxu1 %v21232_v42 }
 0x5c9   : > { %13124 = vmatpush.bf16.msra.mxu2 %v21207_v30  ;;  %13137 = vmatpush.bf16.msra.mxu3 %v21215_v23  ;;  %v21248_v30 = vld [vmem:[#allocation11 + $0x950] sm:$0xff] }
 0x5ca   : > { %13150 = vmatpush.bf16.msrb.mxu0 %v21223_v19  ;;  %13163 = vmatpush.bf16.msrb.mxu1 %v21231_v0  ;;  %v21256_v23 = vld [vmem:[#allocation11 + $0x990] sm:$0xff] }
 0x5cb   : > { %v21264_v19 = vld [vmem:[#allocation11 + $0x9d0] sm:$0xff] }
 0x5cd   : > { %13125 = vmatpush.bf16.msra.mxu2 %v21206_v44  ;;  %13138 = vmatpush.bf16.msra.mxu3 %v21214_v1  ;;  %v21263_v1 = vld [vmem:[#allocation11 + $0x9c8] sm:$0xff] }
 0x5ce   : > { %13151 = vmatpush.bf16.msrb.mxu0 %v21222_v53  ;;  %13164 = vmatpush.bf16.msrb.mxu1 %v21230_v11 }
 0x5d0   : > { %13126 = vmatmul.bf16.vlgmr.msra.gmra.mxu2 %v8570_v10  ;;  %13139 = vmatmul.bf16.vlgmr.msra.gmra.mxu3 %v8571_v48  ;;  %v12945_v46 = vpop.f32.mrf.mxu0  ;;  %v12958_v15 = vpop.f32.mrf.mxu1  ;;  %v22591_v48 = vld [vmem:[#allocation31_spill] sm:$0xff] }
 0x5d1   : > { %13170 = vmatpush.bf16.msrb.mxu2 %v21245_v26  ;;  %13183 = vmatpush.bf16.msrb.mxu3 %v21253_v55  ;;  %v22588_v26 = vld [vmem:[#allocation28_spill] sm:$0xff]  ;;  %v8512_v10 = vmax.f32 %v22591_v48, 0.0 }
 0x5d2   : > { %13196 = vmatpush.bf16.msra.mxu0 %v21261_v43  ;;  %13209 = vmatpush.bf16.msra.mxu1 %v21269_v12  ;;  %v8511_v55 = vmax.f32 %v22588_v26, 0.0  ;;  %v22590_v43 = vld [vmem:[#allocation30_spill] sm:$0xff]  ;;  %v21309_v48 = vld [vmem:[#allocation11 + $0xb38] sm:$0xff] }
 0x5d3   : > { %13152 = vmatmul.bf16.vlgmr.msrb.gmra.mxu0 %v8572_v47  ;;  %13165 = vmatmul.bf16.vlgmr.msrb.gmra.mxu1 %v8573_v49  ;;  %v12919_v40 = vpop.f32.mrf.mxu2  ;;  %v12932_v59 = vpop.f32.mrf.mxu3  ;;  %v8513_v12 = vmax.f32 %v22590_v43, 0.0  ;;  %v8574_v47 = vpack.c.bf16 %v8510_v8, %v8510_v8  ;;  %v21270_v26 = vld [vmem:[#allocation11 + $0xa00] sm:$0xff] }
 0x5d4   : > { %v12920_v51 = vadd.f32 %v12919_v40, %v22450_v17  ;;  %v21255_v17 = vld [vmem:[#allocation11 + $0x988] sm:$0xff]  ;;  %v8575_v49 = vpack.c.bf16 %v8511_v55, %v8511_v55  ;;  %v21273_v40 = vld [vmem:[#allocation11 + $0xa18] sm:$0xff]  ;;  %v21278_v55 = vld [vmem:[#allocation11 + $0xa40] sm:$0xff] }
 0x5d5   : > { %13171 = vmatpush.bf16.msrb.mxu2 %v21244_v2  ;;  %13184 = vmatpush.bf16.msrb.mxu3 %v21252_v7  ;;  %v21293_v2 = vld [vmem:[#allocation11 + $0xab8] sm:$0xff]  ;;  %v21294_v8 = vld [vmem:[#allocation11 + $0xac0] sm:$0xff] }
 0x5d6   : > { %13197 = vmatpush.bf16.msra.mxu0 %v21260_v22  ;;  %13210 = vmatpush.bf16.msra.mxu1 %v21268_v62  ;;  %v12933_v58 = vadd.f32 %v12932_v59, %v12920_v51  ;;  %v21301_v7 = vld [vmem:[#allocation11 + $0xaf8] sm:$0xff]  ;;  %v21276_v22 = vld [vmem:[#allocation11 + $0xa30] sm:$0xff] }
 0x5d7   : > { %v21284_v62 = vld [vmem:[#allocation11 + $0xa70] sm:$0xff]  ;;  %v21281_v59 = vld [vmem:[#allocation11 + $0xa58] sm:$0xff] }
 0x5d8   : > { %v12947_v13 = vpop.f32.mrf.mxu0  ;;  %v12960_v42 = vpop.f32.mrf.mxu1  ;;  %v12946_v0 = vadd.f32 %v12945_v46, %v12933_v58  ;;  %v21275_v46 = vld [vmem:[#allocation11 + $0xa28] sm:$0xff]  ;;  %v21289_v51 = vld [vmem:[#allocation11 + $0xa98] sm:$0xff] }
 0x5d9   : > { %13172 = vmatpush.bf16.msrb.mxu2 %v21243_v37  ;;  %13185 = vmatpush.bf16.msrb.mxu3 %v21251_v28  ;;  %v8577_v37 = vpack.c.bf16 %v8513_v12, %v8513_v12  ;;  %v8576_v28 = vpack.c.bf16 %v8512_v10, %v8512_v10  ;;  %v21297_v58 = vld [vmem:[#allocation11 + $0xad8] sm:$0xff] }
 0x5da   : > { %13198 = vmatpush.bf16.msra.mxu0 %v21259_v24  ;;  %13211 = vmatpush.bf16.msra.mxu1 %v21267_v25  ;;  %v22457_v44 = vadd.f32 %v12958_v15, %v12946_v0  ;;  %v21292_v24 = vld [vmem:[#allocation11 + $0xab0] sm:$0xff]  ;;  %v21283_v15 = vld [vmem:[#allocation11 + $0xa68] sm:$0xff]  ;;  %v22593_v43 = vld [vmem:[#allocation33_spill] sm:$0xff] }
 0x5db   : > { %v12921_v53 = vpop.f32.mrf.mxu2  ;;  %v12934_v11 = vpop.f32.mrf.mxu3  ;;  %v21300_v25 = vld [vmem:[#allocation11 + $0xaf0] sm:$0xff]  ;;  %v8514_v12 = vmax.f32 %v22593_v43, 0.0  ;;  %v21317_v10 = vld [vmem:[#allocation11 + $0xb78] sm:$0xff]  ;;  %v21318_v43 = vld [vmem:[#allocation11 + $0xb80] sm:$0xff] }
 0x5dc   : > { %v21272_v0 = vld [vmem:[#allocation11 + $0xa10] sm:$0xff]  ;;  %v21271_v53 = vld [vmem:[#allocation11 + $0xa08] sm:$0xff] }
 0x5dd   : > { %13173 = vmatpush.bf16.msrb.mxu2 %v21242_v34  ;;  %13186 = vmatpush.bf16.msrb.mxu3 %v21250_v61  ;;  %v21291_v34 = vld [vmem:[#allocation11 + $0xaa8] sm:$0xff] }
 0x5de   : > { %13199 = vmatpush.bf16.msra.mxu0 %v21258_v4  ;;  %13212 = vmatpush.bf16.msra.mxu1 %v21266_v56  ;;  %v21299_v61 = vld [vmem:[#allocation11 + $0xae8] sm:$0xff] }
 0x5df   : > { %v21279_v11 = vld [vmem:[#allocation11 + $0xa48] sm:$0xff] }
 0x5e1   : > { %13174 = vmatpush.bf16.msrb.mxu2 %v21241_v36  ;;  %13187 = vmatpush.bf16.msrb.mxu3 %v21249_v41  ;;  %v21274_v36 = vld [vmem:[#allocation11 + $0xa20] sm:$0xff] }
 0x5e2   : > { %13200 = vmatpush.bf16.msra.mxu0 %v21257_v63  ;;  %13213 = vmatpush.bf16.msra.mxu1 %v21265_v5  ;;  %v21282_v41 = vld [vmem:[#allocation11 + $0xa60] sm:$0xff] }
 0x5e3   : > { %v21290_v63 = vld [vmem:[#allocation11 + $0xaa0] sm:$0xff] }
 0x5e4   : > { %v21298_v5 = vld [vmem:[#allocation11 + $0xae0] sm:$0xff] }
 0x5e5   : > { %13175 = vmatpush.bf16.msrb.mxu2 %v21240_v6  ;;  %13188 = vmatpush.bf16.msrb.mxu3 %v21248_v30 }
 0x5e6   : > { %13201 = vmatpush.bf16.msra.mxu0 %v21256_v23  ;;  %13214 = vmatpush.bf16.msra.mxu1 %v21264_v19 }
 0x5e9   : > { %13176 = vmatpush.bf16.msrb.mxu2 %v21239_v20  ;;  %13189 = vmatpush.bf16.msrb.mxu3 %v21247_v35  ;;  %v21280_v20 = vld [vmem:[#allocation11 + $0xa50] sm:$0xff] }
 0x5ea   : > { %13202 = vmatpush.bf16.msra.mxu0 %v21255_v17  ;;  %13215 = vmatpush.bf16.msra.mxu1 %v21263_v1  ;;  %v21288_v35 = vld [vmem:[#allocation11 + $0xa90] sm:$0xff] }
 0x5eb   : > { %v21296_v17 = vld [vmem:[#allocation11 + $0xad0] sm:$0xff] }
 0x5ed   : > { %13177 = vmatpush.bf16.msrb.mxu2 %v21238_v33  ;;  %13190 = vmatpush.bf16.msrb.mxu3 %v21246_v27  ;;  %v21295_v27 = vld [vmem:[#allocation11 + $0xac8] sm:$0xff] }
 0x5ee   : > { %13203 = vmatpush.bf16.msra.mxu0 %v21254_v9  ;;  %13216 = vmatpush.bf16.msra.mxu1 %v21262_v31 }
 0x5f0   : > { %13178 = vmatmul.bf16.vlgmr.msrb.gmra.mxu2 %v8574_v47  ;;  %13191 = vmatmul.bf16.vlgmr.msrb.gmra.mxu3 %v8575_v49  ;;  %v12997_v4 = vpop.f32.mrf.mxu0  ;;  %v13010_v56 = vpop.f32.mrf.mxu1  ;;  %v22595_v49 = vld [vmem:[#allocation35_spill] sm:$0xff] }
 0x5f1   : > { %13222 = vmatpush.bf16.msra.mxu2 %v21277_v16  ;;  %13235 = vmatpush.bf16.msra.mxu3 %v21285_v39  ;;  %v22592_v16 = vld [vmem:[#allocation32_spill] sm:$0xff]  ;;  %v8516_v47 = vmax.f32 %v22595_v49, 0.0 }
 0x5f2   : > { %13248 = vmatpush.bf16.msrb.mxu0 %v21293_v2  ;;  %13261 = vmatpush.bf16.msrb.mxu1 %v21301_v7  ;;  %v8515_v39 = vmax.f32 %v22592_v16, 0.0  ;;  %v22594_v2 = vld [vmem:[#allocation34_spill] sm:$0xff]  ;;  %v21341_v49 = vld [vmem:[#allocation11 + $0xc38] sm:$0xff] }
 0x5f3   : > { %13204 = vmatmul.bf16.vlgmr.msra.gmra.mxu0 %v8576_v28  ;;  %13217 = vmatmul.bf16.vlgmr.msra.gmra.mxu1 %v8577_v37  ;;  %v12971_v13 = vpop.f32.mrf.mxu2  ;;  %v12984_v42 = vpop.f32.mrf.mxu3  ;;  %v8517_v7 = vmax.f32 %v22594_v2, 0.0  ;;  %v8578_v28 = vpack.c.bf16 %v8514_v12, %v8514_v12  ;;  %v21302_v16 = vld [vmem:[#allocation11 + $0xb00] sm:$0xff] }
 0x5f4   : > { %v12972_v6 = vadd.f32 %v12971_v13, %v22457_v44  ;;  %v21287_v44 = vld [vmem:[#allocation11 + $0xa88] sm:$0xff]  ;;  %v8579_v37 = vpack.c.bf16 %v8515_v39, %v8515_v39  ;;  %v21305_v13 = vld [vmem:[#allocation11 + $0xb18] sm:$0xff]  ;;  %v21310_v39 = vld [vmem:[#allocation11 + $0xb40] sm:$0xff] }
 0x5f5   : > { %13223 = vmatpush.bf16.msra.mxu2 %v21276_v22  ;;  %13236 = vmatpush.bf16.msra.mxu3 %v21284_v62  ;;  %v21325_v22 = vld [vmem:[#allocation11 + $0xbb8] sm:$0xff]  ;;  %v21326_v12 = vld [vmem:[#allocation11 + $0xbc0] sm:$0xff] }
 0x5f6   : > { %13249 = vmatpush.bf16.msrb.mxu0 %v21292_v24  ;;  %13262 = vmatpush.bf16.msrb.mxu1 %v21300_v25  ;;  %v12985_v30 = vadd.f32 %v12984_v42, %v12972_v6  ;;  %v21333_v62 = vld [vmem:[#allocation11 + $0xbf8] sm:$0xff]  ;;  %v21308_v24 = vld [vmem:[#allocation11 + $0xb30] sm:$0xff] }
 0x5f7   : > { %v21316_v25 = vld [vmem:[#allocation11 + $0xb70] sm:$0xff]  ;;  %v21313_v42 = vld [vmem:[#allocation11 + $0xb58] sm:$0xff] }
 0x5f8   : > { %v12999_v23 = vpop.f32.mrf.mxu0  ;;  %v13012_v19 = vpop.f32.mrf.mxu1  ;;  %v12998_v1 = vadd.f32 %v12997_v4, %v12985_v30  ;;  %v21307_v4 = vld [vmem:[#allocation11 + $0xb28] sm:$0xff]  ;;  %v21321_v6 = vld [vmem:[#allocation11 + $0xb98] sm:$0xff] }
 0x5f9   : > { %13224 = vmatpush.bf16.msra.mxu2 %v21275_v46  ;;  %13237 = vmatpush.bf16.msra.mxu3 %v21283_v15  ;;  %v8581_v46 = vpack.c.bf16 %v8517_v7, %v8517_v7  ;;  %v8580_v15 = vpack.c.bf16 %v8516_v47, %v8516_v47  ;;  %v21329_v30 = vld [vmem:[#allocation11 + $0xbd8] sm:$0xff] }
 0x5fa   : > { %13250 = vmatpush.bf16.msrb.mxu0 %v21291_v34  ;;  %13263 = vmatpush.bf16.msrb.mxu1 %v21299_v61  ;;  %v22464_v33 = vadd.f32 %v13010_v56, %v12998_v1  ;;  %v21324_v34 = vld [vmem:[#allocation11 + $0xbb0] sm:$0xff]  ;;  %v21315_v56 = vld [vmem:[#allocation11 + $0xb68] sm:$0xff]  ;;  %v22597_v2 = vld [vmem:[#allocation37_spill] sm:$0xff] }
 0x5fb   : > { %v12973_v9 = vpop.f32.mrf.mxu2  ;;  %v12986_v31 = vpop.f32.mrf.mxu3  ;;  %v21332_v61 = vld [vmem:[#allocation11 + $0xbf0] sm:$0xff]  ;;  %v8518_v7 = vmax.f32 %v22597_v2, 0.0  ;;  %v21349_v47 = vld [vmem:[#allocation11 + $0xc78] sm:$0xff]  ;;  %v21350_v2 = vld [vmem:[#allocation11 + $0xc80] sm:$0xff] }
 0x5fc   : > { %v21304_v1 = vld [vmem:[#allocation11 + $0xb10] sm:$0xff]  ;;  %v21303_v9 = vld [vmem:[#allocation11 + $0xb08] sm:$0xff] }
 0x5fd   : > { %13225 = vmatpush.bf16.msra.mxu2 %v21274_v36  ;;  %13238 = vmatpush.bf16.msra.mxu3 %v21282_v41  ;;  %v21323_v36 = vld [vmem:[#allocation11 + $0xba8] sm:$0xff] }
 0x5fe   : > { %13251 = vmatpush.bf16.msrb.mxu0 %v21290_v63  ;;  %13264 = vmatpush.bf16.msrb.mxu1 %v21298_v5  ;;  %v21331_v41 = vld [vmem:[#allocation11 + $0xbe8] sm:$0xff] }
 0x5ff   : > { %v21311_v31 = vld [vmem:[#allocation11 + $0xb48] sm:$0xff] }
 0x601   : > { %13226 = vmatpush.bf16.msra.mxu2 %v21273_v40  ;;  %13239 = vmatpush.bf16.msra.mxu3 %v21281_v59  ;;  %v21306_v40 = vld [vmem:[#allocation11 + $0xb20] sm:$0xff] }
 0x602   : > { %13252 = vmatpush.bf16.msrb.mxu0 %v21289_v51  ;;  %13265 = vmatpush.bf16.msrb.mxu1 %v21297_v58  ;;  %v21314_v59 = vld [vmem:[#allocation11 + $0xb60] sm:$0xff] }
 0x603   : > { %v21322_v51 = vld [vmem:[#allocation11 + $0xba0] sm:$0xff] }
 0x604   : > { %v21330_v58 = vld [vmem:[#allocation11 + $0xbe0] sm:$0xff] }
 0x605   : > { %13227 = vmatpush.bf16.msra.mxu2 %v21272_v0  ;;  %13240 = vmatpush.bf16.msra.mxu3 %v21280_v20 }
 0x606   : > { %13253 = vmatpush.bf16.msrb.mxu0 %v21288_v35  ;;  %13266 = vmatpush.bf16.msrb.mxu1 %v21296_v17 }
 0x609   : > { %13228 = vmatpush.bf16.msra.mxu2 %v21271_v53  ;;  %13241 = vmatpush.bf16.msra.mxu3 %v21279_v11  ;;  %v21312_v53 = vld [vmem:[#allocation11 + $0xb50] sm:$0xff] }
 0x60a   : > { %13254 = vmatpush.bf16.msrb.mxu0 %v21287_v44  ;;  %13267 = vmatpush.bf16.msrb.mxu1 %v21295_v27  ;;  %v21320_v11 = vld [vmem:[#allocation11 + $0xb90] sm:$0xff] }
 0x60b   : > { %v21328_v44 = vld [vmem:[#allocation11 + $0xbd0] sm:$0xff] }
 0x60d   : > { %13229 = vmatpush.bf16.msra.mxu2 %v21270_v26  ;;  %13242 = vmatpush.bf16.msra.mxu3 %v21278_v55  ;;  %v21327_v55 = vld [vmem:[#allocation11 + $0xbc8] sm:$0xff] }
 0x60e   : > { %13255 = vmatpush.bf16.msrb.mxu0 %v21286_v52  ;;  %13268 = vmatpush.bf16.msrb.mxu1 %v21294_v8 }
 0x610   : > { %13230 = vmatmul.bf16.vlgmr.msra.gmra.mxu2 %v8578_v28  ;;  %13243 = vmatmul.bf16.vlgmr.msra.gmra.mxu3 %v8579_v37  ;;  %v13049_v63 = vpop.f32.mrf.mxu0  ;;  %v13062_v5 = vpop.f32.mrf.mxu1  ;;  %v22599_v37 = vld [vmem:[#allocation39_spill] sm:$0xff] }
 0x611   : > { %13274 = vmatpush.bf16.msrb.mxu2 %v21309_v48  ;;  %13287 = vmatpush.bf16.msrb.mxu3 %v21317_v10  ;;  %v22596_v48 = vld [vmem:[#allocation36_spill] sm:$0xff]  ;;  %v8520_v28 = vmax.f32 %v22599_v37, 0.0 }
 0x612   : > { %13300 = vmatpush.bf16.msra.mxu0 %v21325_v22  ;;  %13313 = vmatpush.bf16.msra.mxu1 %v21333_v62  ;;  %v8519_v10 = vmax.f32 %v22596_v48, 0.0  ;;  %v22598_v22 = vld [vmem:[#allocation38_spill] sm:$0xff]  ;;  %v21373_v37 = vld [vmem:[#allocation11 + $0xd38] sm:$0xff] }
 0x613   : > { %13256 = vmatmul.bf16.vlgmr.msrb.gmra.mxu0 %v8580_v15  ;;  %13269 = vmatmul.bf16.vlgmr.msrb.gmra.mxu1 %v8581_v46  ;;  %v13023_v23 = vpop.f32.mrf.mxu2  ;;  %v13036_v19 = vpop.f32.mrf.mxu3  ;;  %v8521_v62 = vmax.f32 %v22598_v22, 0.0  ;;  %v8582_v15 = vpack.c.bf16 %v8518_v7, %v8518_v7  ;;  %v21334_v48 = vld [vmem:[#allocation11 + $0xc00] sm:$0xff] }
 0x614   : > { %v13024_v0 = vadd.f32 %v13023_v23, %v22464_v33  ;;  %v21319_v33 = vld [vmem:[#allocation11 + $0xb88] sm:$0xff]  ;;  %v8583_v46 = vpack.c.bf16 %v8519_v10, %v8519_v10  ;;  %v21337_v23 = vld [vmem:[#allocation11 + $0xc18] sm:$0xff]  ;;  %v21342_v10 = vld [vmem:[#allocation11 + $0xc40] sm:$0xff] }
 0x615   : > { %13275 = vmatpush.bf16.msrb.mxu2 %v21308_v24  ;;  %13288 = vmatpush.bf16.msrb.mxu3 %v21316_v25  ;;  %v21357_v24 = vld [vmem:[#allocation11 + $0xcb8] sm:$0xff]  ;;  %v21358_v7 = vld [vmem:[#allocation11 + $0xcc0] sm:$0xff] }
 0x616   : > { %13301 = vmatpush.bf16.msra.mxu0 %v21324_v34  ;;  %13314 = vmatpush.bf16.msra.mxu1 %v21332_v61  ;;  %v13037_v20 = vadd.f32 %v13036_v19, %v13024_v0  ;;  %v21365_v25 = vld [vmem:[#allocation11 + $0xcf8] sm:$0xff]  ;;  %v21340_v34 = vld [vmem:[#allocation11 + $0xc30] sm:$0xff] }
 0x617   : > { %v21348_v61 = vld [vmem:[#allocation11 + $0xc70] sm:$0xff]  ;;  %v21345_v19 = vld [vmem:[#allocation11 + $0xc58] sm:$0xff] }
 0x618   : > { %v13051_v35 = vpop.f32.mrf.mxu0  ;;  %v13064_v17 = vpop.f32.mrf.mxu1  ;;  %v13050_v27 = vadd.f32 %v13049_v63, %v13037_v20  ;;  %v21339_v63 = vld [vmem:[#allocation11 + $0xc28] sm:$0xff]  ;;  %v21353_v0 = vld [vmem:[#allocation11 + $0xc98] sm:$0xff] }
 0x619   : > { %13276 = vmatpush.bf16.msrb.mxu2 %v21307_v4  ;;  %13289 = vmatpush.bf16.msrb.mxu3 %v21315_v56  ;;  %v8585_v4 = vpack.c.bf16 %v8521_v62, %v8521_v62  ;;  %v8584_v56 = vpack.c.bf16 %v8520_v28, %v8520_v28  ;;  %v21361_v20 = vld [vmem:[#allocation11 + $0xcd8] sm:$0xff] }
 0x61a   : > { %13302 = vmatpush.bf16.msra.mxu0 %v21323_v36  ;;  %13315 = vmatpush.bf16.msra.mxu1 %v21331_v41  ;;  %v22471_v26 = vadd.f32 %v13062_v5, %v13050_v27  ;;  %v21356_v36 = vld [vmem:[#allocation11 + $0xcb0] sm:$0xff]  ;;  %v21347_v5 = vld [vmem:[#allocation11 + $0xc68] sm:$0xff]  ;;  %v22601_v22 = vld [vmem:[#allocation41_spill] sm:$0xff] }
 0x61b   : > { %v13025_v52 = vpop.f32.mrf.mxu2  ;;  %v13038_v8 = vpop.f32.mrf.mxu3  ;;  %v21364_v41 = vld [vmem:[#allocation11 + $0xcf0] sm:$0xff]  ;;  %v8522_v62 = vmax.f32 %v22601_v22, 0.0  ;;  %v21381_v28 = vld [vmem:[#allocation11 + $0xd78] sm:$0xff]  ;;  %v21382_v22 = vld [vmem:[#allocation11 + $0xd80] sm:$0xff] }
 0x61c   : > { %v21336_v27 = vld [vmem:[#allocation11 + $0xc10] sm:$0xff]  ;;  %v21335_v52 = vld [vmem:[#allocation11 + $0xc08] sm:$0xff] }
 0x61d   : > { %13277 = vmatpush.bf16.msrb.mxu2 %v21306_v40  ;;  %13290 = vmatpush.bf16.msrb.mxu3 %v21314_v59  ;;  %v21355_v40 = vld [vmem:[#allocation11 + $0xca8] sm:$0xff] }
 0x61e   : > { %13303 = vmatpush.bf16.msra.mxu0 %v21322_v51  ;;  %13316 = vmatpush.bf16.msra.mxu1 %v21330_v58  ;;  %v21363_v59 = vld [vmem:[#allocation11 + $0xce8] sm:$0xff] }
 0x61f   : > { %v21343_v8 = vld [vmem:[#allocation11 + $0xc48] sm:$0xff] }
 0x621   : > { %13278 = vmatpush.bf16.msrb.mxu2 %v21305_v13  ;;  %13291 = vmatpush.bf16.msrb.mxu3 %v21313_v42  ;;  %v21338_v13 = vld [vmem:[#allocation11 + $0xc20] sm:$0xff] }
 0x622   : > { %13304 = vmatpush.bf16.msra.mxu0 %v21321_v6  ;;  %13317 = vmatpush.bf16.msra.mxu1 %v21329_v30  ;;  %v21346_v42 = vld [vmem:[#allocation11 + $0xc60] sm:$0xff] }
 0x623   : > { %v21354_v6 = vld [vmem:[#allocation11 + $0xca0] sm:$0xff] }
 0x624   : > { %v21362_v30 = vld [vmem:[#allocation11 + $0xce0] sm:$0xff] }
 0x625   : > { %13279 = vmatpush.bf16.msrb.mxu2 %v21304_v1  ;;  %13292 = vmatpush.bf16.msrb.mxu3 %v21312_v53 }
 0x626   : > { %13305 = vmatpush.bf16.msra.mxu0 %v21320_v11  ;;  %13318 = vmatpush.bf16.msra.mxu1 %v21328_v44 }
 0x629   : > { %13280 = vmatpush.bf16.msrb.mxu2 %v21303_v9  ;;  %13293 = vmatpush.bf16.msrb.mxu3 %v21311_v31  ;;  %v21344_v9 = vld [vmem:[#allocation11 + $0xc50] sm:$0xff] }
 0x62a   : > { %13306 = vmatpush.bf16.msra.mxu0 %v21319_v33  ;;  %13319 = vmatpush.bf16.msra.mxu1 %v21327_v55  ;;  %v21352_v31 = vld [vmem:[#allocation11 + $0xc90] sm:$0xff] }
 0x62b   : > { %v21360_v33 = vld [vmem:[#allocation11 + $0xcd0] sm:$0xff] }
 0x62d   : > { %13281 = vmatpush.bf16.msrb.mxu2 %v21302_v16  ;;  %13294 = vmatpush.bf16.msrb.mxu3 %v21310_v39  ;;  %v21359_v39 = vld [vmem:[#allocation11 + $0xcc8] sm:$0xff] }
 0x62e   : > { %13307 = vmatpush.bf16.msra.mxu0 %v21318_v43  ;;  %13320 = vmatpush.bf16.msra.mxu1 %v21326_v12 }
 0x630   : > { %13282 = vmatmul.bf16.vlgmr.msrb.gmra.mxu2 %v8582_v15  ;;  %13295 = vmatmul.bf16.vlgmr.msrb.gmra.mxu3 %v8583_v46  ;;  %v13101_v51 = vpop.f32.mrf.mxu0  ;;  %v13114_v58 = vpop.f32.mrf.mxu1  ;;  %v22603_v46 = vld [vmem:[#allocation43_spill] sm:$0xff] }
 0x631   : > { %13326 = vmatpush.bf16.msra.mxu2 %v21341_v49  ;;  %13339 = vmatpush.bf16.msra.mxu3 %v21349_v47  ;;  %v22600_v49 = vld [vmem:[#allocation40_spill] sm:$0xff]  ;;  %v8524_v15 = vmax.f32 %v22603_v46, 0.0  ;;  %v8529_v46 = vmax.f32 %v22379_v54, 0.0 }
 0x632   : > { %13352 = vmatpush.bf16.msrb.mxu0 %v21357_v24  ;;  %13365 = vmatpush.bf16.msrb.mxu1 %v21365_v25  ;;  %v8523_v47 = vmax.f32 %v22600_v49, 0.0  ;;  %v22602_v24 = vld [vmem:[#allocation42_spill] sm:$0xff]  ;;  %v21428_v54 = vld [vmem:[#allocation11 + $0xef0] sm:$0xff] }
 0x633   : > { %13308 = vmatmul.bf16.vlgmr.msra.gmra.mxu0 %v8584_v56  ;;  %13321 = vmatmul.bf16.vlgmr.msra.gmra.mxu1 %v8585_v4  ;;  %v13075_v35 = vpop.f32.mrf.mxu2  ;;  %v13088_v17 = vpop.f32.mrf.mxu3  ;;  %v8525_v25 = vmax.f32 %v22602_v24, 0.0  ;;  %v8586_v56 = vpack.c.bf16 %v8522_v62, %v8522_v62  ;;  %v21366_v49 = vld [vmem:[#allocation11 + $0xd00] sm:$0xff]  ;;  %v21405_v24 = vld [vmem:[#allocation11 + $0xe38] sm:$0xff] }
 0x634   : > { %v13076_v1 = vadd.f32 %v13075_v35, %v22471_v26  ;;  %v21351_v26 = vld [vmem:[#allocation11 + $0xc88] sm:$0xff]  ;;  %v8587_v4 = vpack.c.bf16 %v8523_v47, %v8523_v47  ;;  %v21369_v35 = vld [vmem:[#allocation11 + $0xd18] sm:$0xff]  ;;  %v21374_v47 = vld [vmem:[#allocation11 + $0xd40] sm:$0xff] }
 0x635   : > { %13327 = vmatpush.bf16.msra.mxu2 %v21340_v34  ;;  %13340 = vmatpush.bf16.msra.mxu3 %v21348_v61  ;;  %v21389_v34 = vld [vmem:[#allocation11 + $0xdb8] sm:$0xff]  ;;  %v21390_v62 = vld [vmem:[#allocation11 + $0xdc0] sm:$0xff] }
 0x636   : > { %13353 = vmatpush.bf16.msrb.mxu0 %v21356_v36  ;;  %13366 = vmatpush.bf16.msrb.mxu1 %v21364_v41  ;;  %v13089_v53 = vadd.f32 %v13088_v17, %v13076_v1  ;;  %v21397_v61 = vld [vmem:[#allocation11 + $0xdf8] sm:$0xff]  ;;  %v21372_v36 = vld [vmem:[#allocation11 + $0xd30] sm:$0xff] }
 0x637   : > { %v21380_v41 = vld [vmem:[#allocation11 + $0xd70] sm:$0xff]  ;;  %v21377_v17 = vld [vmem:[#allocation11 + $0xd58] sm:$0xff] }
 0x638   : > { %v13103_v11 = vpop.f32.mrf.mxu0  ;;  %v13116_v44 = vpop.f32.mrf.mxu1  ;;  %v13102_v55 = vadd.f32 %v13101_v51, %v13089_v53  ;;  %v21371_v51 = vld [vmem:[#allocation11 + $0xd28] sm:$0xff]  ;;  %v21385_v1 = vld [vmem:[#allocation11 + $0xd98] sm:$0xff] }
 0x639   : > { %13328 = vmatpush.bf16.msra.mxu2 %v21339_v63  ;;  %13341 = vmatpush.bf16.msra.mxu3 %v21347_v5  ;;  %v8589_v63 = vpack.c.bf16 %v8525_v25, %v8525_v25  ;;  %v8588_v5 = vpack.c.bf16 %v8524_v15, %v8524_v15  ;;  %v21393_v53 = vld [vmem:[#allocation11 + $0xdd8] sm:$0xff]  ;;  %v8528_v15 = vmax.f32 %v22381_v3, 0.0  ;;  %v21403_v3 = vld [vmem:[#allocation11 + $0xe28] sm:$0xff] }
 0x63a   : > { %13354 = vmatpush.bf16.msrb.mxu0 %v21355_v40  ;;  %13367 = vmatpush.bf16.msrb.mxu1 %v21363_v59  ;;  %v22478_v16 = vadd.f32 %v13114_v58, %v13102_v55  ;;  %v21388_v40 = vld [vmem:[#allocation11 + $0xdb0] sm:$0xff]  ;;  %v21379_v58 = vld [vmem:[#allocation11 + $0xd68] sm:$0xff]  ;;  %v21413_v25 = vld [vmem:[#allocation11 + $0xe78] sm:$0xff] }
 0x63b   : > { %v13077_v43 = vpop.f32.mrf.mxu2  ;;  %v13090_v12 = vpop.f32.mrf.mxu3  ;;  %v21396_v59 = vld [vmem:[#allocation11 + $0xdf0] sm:$0xff] }
 0x63c   : > { %v21368_v55 = vld [vmem:[#allocation11 + $0xd10] sm:$0xff]  ;;  %v21367_v43 = vld [vmem:[#allocation11 + $0xd08] sm:$0xff] }
 0x63d   : > { %13329 = vmatpush.bf16.msra.mxu2 %v21338_v13  ;;  %13342 = vmatpush.bf16.msra.mxu3 %v21346_v42  ;;  %v21387_v13 = vld [vmem:[#allocation11 + $0xda8] sm:$0xff] }
 0x63e   : > { %13355 = vmatpush.bf16.msrb.mxu0 %v21354_v6  ;;  %13368 = vmatpush.bf16.msrb.mxu1 %v21362_v30  ;;  %v21395_v42 = vld [vmem:[#allocation11 + $0xde8] sm:$0xff] }
 0x63f   : > { %v21375_v12 = vld [vmem:[#allocation11 + $0xd48] sm:$0xff] }
 0x641   : > { %13330 = vmatpush.bf16.msra.mxu2 %v21337_v23  ;;  %13343 = vmatpush.bf16.msra.mxu3 %v21345_v19  ;;  %v21370_v23 = vld [vmem:[#allocation11 + $0xd20] sm:$0xff] }
 0x642   : > { %13356 = vmatpush.bf16.msrb.mxu0 %v21353_v0  ;;  %13369 = vmatpush.bf16.msrb.mxu1 %v21361_v20  ;;  %v21378_v19 = vld [vmem:[#allocation11 + $0xd60] sm:$0xff] }
 0x643   : > { %v21386_v0 = vld [vmem:[#allocation11 + $0xda0] sm:$0xff] }
 0x644   : > { %v21394_v20 = vld [vmem:[#allocation11 + $0xde0] sm:$0xff] }
 0x645   : > { %13331 = vmatpush.bf16.msra.mxu2 %v21336_v27  ;;  %13344 = vmatpush.bf16.msra.mxu3 %v21344_v9 }
 0x646   : > { %13357 = vmatpush.bf16.msrb.mxu0 %v21352_v31  ;;  %13370 = vmatpush.bf16.msrb.mxu1 %v21360_v33 }
 0x649   : > { %13332 = vmatpush.bf16.msra.mxu2 %v21335_v52  ;;  %13345 = vmatpush.bf16.msra.mxu3 %v21343_v8  ;;  %v21376_v52 = vld [vmem:[#allocation11 + $0xd50] sm:$0xff] }
 0x64a   : > { %13358 = vmatpush.bf16.msrb.mxu0 %v21351_v26  ;;  %13371 = vmatpush.bf16.msrb.mxu1 %v21359_v39  ;;  %v21384_v8 = vld [vmem:[#allocation11 + $0xd90] sm:$0xff] }
 0x64b   : > { %v21392_v26 = vld [vmem:[#allocation11 + $0xdd0] sm:$0xff] }
 0x64d   : > { %13333 = vmatpush.bf16.msra.mxu2 %v21334_v48  ;;  %13346 = vmatpush.bf16.msra.mxu3 %v21342_v10  ;;  %v21391_v10 = vld [vmem:[#allocation11 + $0xdc8] sm:$0xff] }
 0x64e   : > { %13359 = vmatpush.bf16.msrb.mxu0 %v21350_v2  ;;  %13372 = vmatpush.bf16.msrb.mxu1 %v21358_v7 }
 0x650   : > { %13334 = vmatmul.bf16.vlgmr.msra.gmra.mxu2 %v8586_v56  ;;  %13347 = vmatmul.bf16.vlgmr.msra.gmra.mxu3 %v8587_v4  ;;  %v13153_v6 = vpop.f32.mrf.mxu0  ;;  %v13166_v30 = vpop.f32.mrf.mxu1 }
 0x651   : > { %13378 = vmatpush.bf16.msrb.mxu2 %v21373_v37  ;;  %13391 = vmatpush.bf16.msrb.mxu3 %v21381_v28  ;;  %v8527_v37 = vmax.f32 %v22369_v45, 0.0  ;;  %v8526_v28 = vmax.f32 %v22371_v38, 0.0  ;;  %v21412_v45 = vld [vmem:[#allocation11 + $0xe70] sm:$0xff]  ;;  %v8592_v38 = vpack.c.bf16 %v8528_v15, %v8528_v15 }
 0x652   : > { %13404 = vmatpush.bf16.msra.mxu0 %v21389_v34  ;;  %13417 = vmatpush.bf16.msra.mxu1 %v21397_v61  ;;  %v21421_v34 = vld [vmem:[#allocation11 + $0xeb8] sm:$0xff] }
 0x653   : > { %13360 = vmatmul.bf16.vlgmr.msrb.gmra.mxu0 %v8588_v5  ;;  %13373 = vmatmul.bf16.vlgmr.msrb.gmra.mxu1 %v8589_v63  ;;  %v13127_v11 = vpop.f32.mrf.mxu2  ;;  %v13140_v44 = vpop.f32.mrf.mxu3  ;;  %v21429_v61 = vld [vmem:[#allocation11 + $0xef8] sm:$0xff]  ;;  %v8591_v4 = vpack.c.bf16 %v8527_v37, %v8527_v37  ;;  %v8590_v56 = vpack.c.bf16 %v8526_v28, %v8526_v28  ;;  %v21420_v63 = vld [vmem:[#allocation11 + $0xeb0] sm:$0xff]  ;;  %v21411_v5 = vld [vmem:[#allocation11 + $0xe68] sm:$0xff]  ;;  %v8533_v37 = vmax.f32 %v22401_v57, 0.0  ;;  %v8532_v28 = vmax.f32 %v22403_v50, 0.0 }
 0x654   : > { %v13128_v27 = vadd.f32 %v13127_v11, %v22478_v16  ;;  %v21383_v16 = vld [vmem:[#allocation11 + $0xd88] sm:$0xff]  ;;  %v21460_v57 = vld [vmem:[#allocation11 + $0xff0] sm:$0xff] }
 0x655   : > { %13379 = vmatpush.bf16.msrb.mxu2 %v21372_v36  ;;  %13392 = vmatpush.bf16.msrb.mxu3 %v21380_v41  ;;  %v21404_v36 = vld [vmem:[#allocation11 + $0xe30] sm:$0xff]  ;;  %v8593_v41 = vpack.c.bf16 %v8529_v46, %v8529_v46  ;;  %v21435_v50 = vld [vmem:[#allocation11 + $0xf28] sm:$0xff] }
 0x656   : > { %13405 = vmatpush.bf16.msra.mxu0 %v21388_v40  ;;  %13418 = vmatpush.bf16.msra.mxu1 %v21396_v59  ;;  %v13141_v9 = vadd.f32 %v13140_v44, %v13128_v27  ;;  %v21419_v40 = vld [vmem:[#allocation11 + $0xea8] sm:$0xff]  ;;  %v21400_v27 = vld [vmem:[#allocation11 + $0xe10] sm:$0xff] }
 0x657   : > { %v21427_v59 = vld [vmem:[#allocation11 + $0xee8] sm:$0xff] }
 0x658   : > { %v13155_v31 = vpop.f32.mrf.mxu0  ;;  %v13168_v33 = vpop.f32.mrf.mxu1  ;;  %v13154_v39 = vadd.f32 %v13153_v6, %v13141_v9  ;;  %v21418_v6 = vld [vmem:[#allocation11 + $0xea0] sm:$0xff]  ;;  %v21408_v9 = vld [vmem:[#allocation11 + $0xe50] sm:$0xff] }
 0x659   : > { %13380 = vmatpush.bf16.msrb.mxu2 %v21371_v51  ;;  %13393 = vmatpush.bf16.msrb.mxu3 %v21379_v58  ;;  %v21416_v31 = vld [vmem:[#allocation11 + $0xe90] sm:$0xff] }
 0x65a   : > { %13406 = vmatpush.bf16.msra.mxu0 %v21387_v13  ;;  %13419 = vmatpush.bf16.msra.mxu1 %v21395_v42  ;;  %v22485_v48 = vadd.f32 %v13166_v30, %v13154_v39  ;;  %v21402_v13 = vld [vmem:[#allocation11 + $0xe20] sm:$0xff]  ;;  %v21424_v33 = vld [vmem:[#allocation11 + $0xed0] sm:$0xff]  ;;  %v21415_v39 = vld [vmem:[#allocation11 + $0xe88] sm:$0xff] }
 0x65b   : > { %v13129_v2 = vpop.f32.mrf.mxu2  ;;  %v13142_v7 = vpop.f32.mrf.mxu3  ;;  %v21410_v42 = vld [vmem:[#allocation11 + $0xe60] sm:$0xff] }
 0x65c   : > { %v21426_v30 = vld [vmem:[#allocation11 + $0xee0] sm:$0xff] }
 0x65d   : > { %13381 = vmatpush.bf16.msrb.mxu2 %v21370_v23  ;;  %13394 = vmatpush.bf16.msrb.mxu3 %v21378_v19  ;;  %v21401_v23 = vld [vmem:[#allocation11 + $0xe18] sm:$0xff]  ;;  %v21414_v2 = vld [vmem:[#allocation11 + $0xe80] sm:$0xff] }
 0x65e   : > { %13407 = vmatpush.bf16.msra.mxu0 %v21386_v0  ;;  %13420 = vmatpush.bf16.msra.mxu1 %v21394_v20  ;;  %v21409_v19 = vld [vmem:[#allocation11 + $0xe58] sm:$0xff]  ;;  %v21422_v7 = vld [vmem:[#allocation11 + $0xec0] sm:$0xff] }
 0x65f   : > { %v21417_v0 = vld [vmem:[#allocation11 + $0xe98] sm:$0xff] }
 0x660   : > { %v21425_v20 = vld [vmem:[#allocation11 + $0xed8] sm:$0xff] }
 0x661   : > { %13382 = vmatpush.bf16.msrb.mxu2 %v21369_v35  ;;  %13395 = vmatpush.bf16.msrb.mxu3 %v21377_v17 }
 0x662   : > { %13408 = vmatpush.bf16.msra.mxu0 %v21385_v1  ;;  %13421 = vmatpush.bf16.msra.mxu1 %v21393_v53 }
 0x665   : > { %13383 = vmatpush.bf16.msrb.mxu2 %v21368_v55  ;;  %13396 = vmatpush.bf16.msrb.mxu3 %v21376_v52  ;;  %v21399_v52 = vld [vmem:[#allocation11 + $0xe08] sm:$0xff] }
 0x666   : > { %13409 = vmatpush.bf16.msra.mxu0 %v21384_v8  ;;  %13422 = vmatpush.bf16.msra.mxu1 %v21392_v26  ;;  %v21407_v8 = vld [vmem:[#allocation11 + $0xe48] sm:$0xff] }
 0x669   : > { %13384 = vmatpush.bf16.msrb.mxu2 %v21367_v43  ;;  %13397 = vmatpush.bf16.msrb.mxu3 %v21375_v12  ;;  %v21423_v43 = vld [vmem:[#allocation11 + $0xec8] sm:$0xff] }
 0x66a   : > { %13410 = vmatpush.bf16.msra.mxu0 %v21383_v16  ;;  %13423 = vmatpush.bf16.msra.mxu1 %v21391_v10  ;;  %v21398_v16 = vld [vmem:[#allocation11 + $0xe00] sm:$0xff] }
 0x66b   : > { %v21406_v10 = vld [vmem:[#allocation11 + $0xe40] sm:$0xff] }
 0x66d   : > { %13385 = vmatpush.bf16.msrb.mxu2 %v21366_v49  ;;  %13398 = vmatpush.bf16.msrb.mxu3 %v21374_v47  ;;  %v8531_v49 = vmax.f32 %v22391_v21, 0.0  ;;  %v8530_v47 = vmax.f32 %v22393_v32, 0.0  ;;  %v21444_v21 = vld [vmem:[#allocation11 + $0xf70] sm:$0xff]  ;;  %v8596_v32 = vpack.c.bf16 %v8532_v28, %v8532_v28 }
 0x66e   : > { %13411 = vmatpush.bf16.msra.mxu0 %v21382_v22  ;;  %13424 = vmatpush.bf16.msra.mxu1 %v21390_v62  ;;  %v21437_v22 = vld [vmem:[#allocation11 + $0xf38] sm:$0xff] }
 0x66f   : > { %v21445_v62 = vld [vmem:[#allocation11 + $0xf78] sm:$0xff]  ;;  %v8595_v46 = vpack.c.bf16 %v8531_v49, %v8531_v49  ;;  %v8594_v15 = vpack.c.bf16 %v8530_v47, %v8530_v47 }
 0x670   : > { %13386 = vmatmul.bf16.vlgmr.msrb.gmra.mxu2 %v8590_v56  ;;  %13399 = vmatmul.bf16.vlgmr.msrb.gmra.mxu3 %v8591_v4  ;;  %v13205_v51 = vpop.f32.mrf.mxu0  ;;  %v13218_v58 = vpop.f32.mrf.mxu1  ;;  %v21452_v4 = vld [vmem:[#allocation11 + $0xfb0] sm:$0xff]  ;;  %v21443_v56 = vld [vmem:[#allocation11 + $0xf68] sm:$0xff] }
 0x671   : > { %13430 = vmatpush.bf16.msra.mxu2 %v21405_v24  ;;  %13443 = vmatpush.bf16.msra.mxu3 %v21413_v25  ;;  %v21453_v24 = vld [vmem:[#allocation11 + $0xfb8] sm:$0xff] }
 0x672   : > { %13456 = vmatpush.bf16.msrb.mxu0 %v21421_v34  ;;  %13469 = vmatpush.bf16.msrb.mxu1 %v21429_v61  ;;  %v21461_v25 = vld [vmem:[#allocation11 + $0xff8] sm:$0xff]  ;;  %v21436_v34 = vld [vmem:[#allocation11 + $0xf30] sm:$0xff]  ;;  %v8597_v61 = vpack.c.bf16 %v8533_v37, %v8533_v37 }
 0x673   : > { %13412 = vmatmul.bf16.vlgmr.msra.gmra.mxu0 %v8592_v38  ;;  %13425 = vmatmul.bf16.vlgmr.msra.gmra.mxu1 %v8593_v41  ;;  %v13179_v35 = vpop.f32.mrf.mxu2  ;;  %v13192_v17 = vpop.f32.mrf.mxu3 }
 0x674   : > { %v13180_v1 = vadd.f32 %v13179_v35, %v22485_v48  ;;  %v21448_v35 = vld [vmem:[#allocation11 + $0xf90] sm:$0xff] }
 0x675   : > { %13431 = vmatpush.bf16.msra.mxu2 %v21404_v36  ;;  %13444 = vmatpush.bf16.msra.mxu3 %v21412_v45  ;;  %v21451_v36 = vld [vmem:[#allocation11 + $0xfa8] sm:$0xff] }
 0x676   : > { %13457 = vmatpush.bf16.msrb.mxu0 %v21420_v63  ;;  %13470 = vmatpush.bf16.msrb.mxu1 %v21428_v54  ;;  %v13193_v53 = vadd.f32 %v13192_v17, %v13180_v1  ;;  %v21459_v45 = vld [vmem:[#allocation11 + $0xfe8] sm:$0xff]  ;;  %v21434_v63 = vld [vmem:[#allocation11 + $0xf20] sm:$0xff]  ;;  %v21456_v17 = vld [vmem:[#allocation11 + $0xfd0] sm:$0xff] }
 0x677   : > { %v21442_v54 = vld [vmem:[#allocation11 + $0xf60] sm:$0xff] }
 0x678   : > { %v13207_v11 = vpop.f32.mrf.mxu0  ;;  %v13220_v44 = vpop.f32.mrf.mxu1  ;;  %v13206_v55 = vadd.f32 %v13205_v51, %v13193_v53  ;;  %v21449_v51 = vld [vmem:[#allocation11 + $0xf98] sm:$0xff]  ;;  %v21431_v53 = vld [vmem:[#allocation11 + $0xf08] sm:$0xff] }
 0x679   : > { %13432 = vmatpush.bf16.msra.mxu2 %v21403_v3  ;;  %13445 = vmatpush.bf16.msra.mxu3 %v21411_v5  ;;  %v21450_v3 = vld [vmem:[#allocation11 + $0xfa0] sm:$0xff]  ;;  %v21439_v11 = vld [vmem:[#allocation11 + $0xf48] sm:$0xff] }
 0x67a   : > { %13458 = vmatpush.bf16.msrb.mxu0 %v21419_v40  ;;  %13471 = vmatpush.bf16.msrb.mxu1 %v21427_v59  ;;  %v22492_v26 = vadd.f32 %v13218_v58, %v13206_v55  ;;  %v21458_v5 = vld [vmem:[#allocation11 + $0xfe0] sm:$0xff]  ;;  %v21433_v40 = vld [vmem:[#allocation11 + $0xf18] sm:$0xff] }
 0x67b   : > { %v13181_v12 = vpop.f32.mrf.mxu2  ;;  %v13194_v48 = vpop.f32.mrf.mxu3  ;;  %v21441_v59 = vld [vmem:[#allocation11 + $0xf58] sm:$0xff]  ;;  %v21430_v55 = vld [vmem:[#allocation11 + $0xf00] sm:$0xff] }
 0x67c   : > { %v21457_v58 = vld [vmem:[#allocation11 + $0xfd8] sm:$0xff]  ;;  %v8537_v12 = vmax.f32 %v22421_v29, 0.0  ;;  %v8536_v48 = vmax.f32 %v22423_v18, 0.0 }
 0x67d   : > { %13433 = vmatpush.bf16.msra.mxu2 %v21402_v13  ;;  %13446 = vmatpush.bf16.msra.mxu3 %v21410_v42 }
 0x67e   : > { %13459 = vmatpush.bf16.msrb.mxu0 %v21418_v6  ;;  %13472 = vmatpush.bf16.msrb.mxu1 %v21426_v30 }
 0x681   : > { %13434 = vmatpush.bf16.msra.mxu2 %v21401_v23  ;;  %13447 = vmatpush.bf16.msra.mxu3 %v21409_v19 }
 0x682   : > { %13460 = vmatpush.bf16.msrb.mxu0 %v21417_v0  ;;  %13473 = vmatpush.bf16.msrb.mxu1 %v21425_v20  ;;  %v21432_v0 = vld [vmem:[#allocation11 + $0xf10] sm:$0xff] }
 0x683   : > { %v21440_v20 = vld [vmem:[#allocation11 + $0xf50] sm:$0xff] }
 0x685   : > { %13435 = vmatpush.bf16.msra.mxu2 %v21400_v27  ;;  %13448 = vmatpush.bf16.msra.mxu3 %v21408_v9  ;;  %v21447_v27 = vld [vmem:[#allocation11 + $0xf88] sm:$0xff] }
 0x686   : > { %13461 = vmatpush.bf16.msrb.mxu0 %v21416_v31  ;;  %13474 = vmatpush.bf16.msrb.mxu1 %v21424_v33  ;;  %v21455_v9 = vld [vmem:[#allocation11 + $0xfc8] sm:$0xff] }
 0x689   : > { %13436 = vmatpush.bf16.msra.mxu2 %v21399_v52  ;;  %13449 = vmatpush.bf16.msra.mxu3 %v21407_v8  ;;  %v21438_v52 = vld [vmem:[#allocation11 + $0xf40] sm:$0xff]  ;;  %v8535_v8 = vmax.f32 %v22411_v60, 0.0 }
 0x68a   : > { %13462 = vmatpush.bf16.msrb.mxu0 %v21415_v39  ;;  %13475 = vmatpush.bf16.msrb.mxu1 %v21423_v43  ;;  %v21446_v39 = vld [vmem:[#allocation11 + $0xf80] sm:$0xff] }
 0x68b   : > { %v21454_v43 = vld [vmem:[#allocation11 + $0xfc0] sm:$0xff] }
 0x68d   : > { %13437 = vmatpush.bf16.msra.mxu2 %v21398_v16  ;;  %13450 = vmatpush.bf16.msra.mxu3 %v21406_v10  ;;  %v8599_v16 = vpack.c.bf16 %v8535_v8, %v8535_v8 }
 0x68e   : > { %13463 = vmatpush.bf16.msrb.mxu0 %v21414_v2  ;;  %13476 = vmatpush.bf16.msrb.mxu1 %v21422_v7  ;;  %v8601_v2 = vpack.c.bf16 %v8537_v12, %v8537_v12  ;;  %v8600_v7 = vpack.c.bf16 %v8536_v48, %v8536_v48 }
 0x690   : > { %13438 = vmatmul.bf16.vlgmr.msra.gmra.mxu2 %v8594_v15  ;;  %13451 = vmatmul.bf16.vlgmr.msra.gmra.mxu3 %v8595_v46  ;;  %v13257_v41 = vpop.f32.mrf.mxu0  ;;  %v13270_v38 = vpop.f32.mrf.mxu1 }
 0x691   : > { %13482 = vmatpush.bf16.msrb.mxu2 %v21437_v22  ;;  %13495 = vmatpush.bf16.msrb.mxu3 %v21445_v62 }
 0x692   : > { %13508 = vmatpush.bf16.msra.mxu0 %v21453_v24  ;;  %13521 = vmatpush.bf16.msra.mxu1 %v21461_v25 }
 0x693   : > { %13464 = vmatmul.bf16.vlgmr.msrb.gmra.mxu0 %v8596_v32  ;;  %13477 = vmatmul.bf16.vlgmr.msrb.gmra.mxu1 %v8597_v61  ;;  %v13231_v13 = vpop.f32.mrf.mxu2  ;;  %v13244_v42 = vpop.f32.mrf.mxu3 }
 0x694   : > { %v13232_v6 = vadd.f32 %v13231_v13, %v22492_v26  ;;  %v8534_v26 = vmax.f32 %v22413_v14, 0.0 }
 0x695   : > { %13483 = vmatpush.bf16.msrb.mxu2 %v21436_v34  ;;  %13496 = vmatpush.bf16.msrb.mxu3 %v21444_v21 }
 0x696   : > { %13509 = vmatpush.bf16.msra.mxu0 %v21452_v4  ;;  %13522 = vmatpush.bf16.msra.mxu1 %v21460_v57  ;;  %v13245_v30 = vadd.f32 %v13244_v42, %v13232_v6  ;;  %v8598_v10 = vpack.c.bf16 %v8534_v26, %v8534_v26 }
 0x698   : > { %v13259_v23 = vpop.f32.mrf.mxu0  ;;  %v13272_v19 = vpop.f32.mrf.mxu1  ;;  %v13258_v1 = vadd.f32 %v13257_v41, %v13245_v30 }
 0x699   : > { %13484 = vmatpush.bf16.msrb.mxu2 %v21435_v50  ;;  %13497 = vmatpush.bf16.msrb.mxu3 %v21443_v56 }
 0x69a   : > { %13510 = vmatpush.bf16.msra.mxu0 %v21451_v36  ;;  %13523 = vmatpush.bf16.msra.mxu1 %v21459_v45  ;;  %v13271_v44 = vadd.f32 %v13270_v38, %v13258_v1 }
 0x69b   : > { %v13233_v31 = vpop.f32.mrf.mxu2  ;;  %v13246_v33 = vpop.f32.mrf.mxu3 }
 0x69d   : > { %13485 = vmatpush.bf16.msrb.mxu2 %v21434_v63  ;;  %13498 = vmatpush.bf16.msrb.mxu3 %v21442_v54 }
 0x69e   : > { %13511 = vmatpush.bf16.msra.mxu0 %v21450_v3  ;;  %13524 = vmatpush.bf16.msra.mxu1 %v21458_v5 }
 0x6a1   : > { %13486 = vmatpush.bf16.msrb.mxu2 %v21433_v40  ;;  %13499 = vmatpush.bf16.msrb.mxu3 %v21441_v59 }
 0x6a2   : > { %13512 = vmatpush.bf16.msra.mxu0 %v21449_v51  ;;  %13525 = vmatpush.bf16.msra.mxu1 %v21457_v58 }
 0x6a5   : > { %13487 = vmatpush.bf16.msrb.mxu2 %v21432_v0  ;;  %13500 = vmatpush.bf16.msrb.mxu3 %v21440_v20 }
 0x6a6   : > { %13513 = vmatpush.bf16.msra.mxu0 %v21448_v35  ;;  %13526 = vmatpush.bf16.msra.mxu1 %v21456_v17 }
 0x6a9   : > { %13488 = vmatpush.bf16.msrb.mxu2 %v21431_v53  ;;  %13501 = vmatpush.bf16.msrb.mxu3 %v21439_v11 }
 0x6aa   : > { %13514 = vmatpush.bf16.msra.mxu0 %v21447_v27  ;;  %13527 = vmatpush.bf16.msra.mxu1 %v21455_v9 }
 0x6ad   : > { %13489 = vmatpush.bf16.msrb.mxu2 %v21430_v55  ;;  %13502 = vmatpush.bf16.msrb.mxu3 %v21438_v52 }
 0x6ae   : > { %13515 = vmatpush.bf16.msra.mxu0 %v21446_v39  ;;  %13528 = vmatpush.bf16.msra.mxu1 %v21454_v43 }
 0x6b0   : > { %13490 = vmatmul.bf16.vlgmr.msrb.gmra.mxu2 %v8598_v10  ;;  %13503 = vmatmul.bf16.vlgmr.msrb.gmra.mxu3 %v8599_v16  ;;  %v13309_v60 = vpop.f32.mrf.mxu0  ;;  %v13322_v14 = vpop.f32.mrf.mxu1 }
 0x6b1   : > { %13516 = vmatmul.bf16.vlgmr.msra.gmra.mxu0 %v8600_v7  ;;  %13529 = vmatmul.bf16.vlgmr.msra.gmra.mxu1 %v8601_v2 }
 0x6b3   : > { %v13283_v49 = vpop.f32.mrf.mxu2  ;;  %v13296_v47 = vpop.f32.mrf.mxu3 }
 0x6b4   : > { %v13284_v22 = vadd.f32 %v13283_v49, %v13271_v44 }
 0x6b6   : > { %v13297_v29 = vadd.f32 %v13296_v47, %v13284_v22 }
 0x6b8   : > { %v13311_v62 = vpop.f32.mrf.mxu0  ;;  %v13324_v18 = vpop.f32.mrf.mxu1  ;;  %v13310_v37 = vadd.f32 %v13309_v60, %v13297_v29 }
 0x6ba   : > { %v13323_v28 = vadd.f32 %v13322_v14, %v13310_v37 }
 0x6bb   : > { %v13285_v24 = vpop.f32.mrf.mxu2  ;;  %v13298_v25 = vpop.f32.mrf.mxu3 }
 0x6d0   : > { %v13361_v46 = vpop.f32.mrf.mxu0  ;;  %v13374_v15 = vpop.f32.mrf.mxu1 }
 0x6d3   : > { %v13335_v34 = vpop.f32.mrf.mxu2  ;;  %v13348_v21 = vpop.f32.mrf.mxu3 }
 0x6d4   : > { %v13336_v61 = vadd.f32 %v13335_v34, %v13323_v28 }
 0x6d6   : > { %v13349_v32 = vadd.f32 %v13348_v21, %v13336_v61 }
 0x6d8   : > { %v13363_v4 = vpop.f32.mrf.mxu0  ;;  %v13376_v57 = vpop.f32.mrf.mxu1  ;;  %v13362_v50 = vadd.f32 %v13361_v46, %v13349_v32 }
 0x6da   : > { %v13375_v56 = vadd.f32 %v13374_v15, %v13362_v50 }
 0x6db   : > { %v13337_v36 = vpop.f32.mrf.mxu2  ;;  %v13350_v45 = vpop.f32.mrf.mxu3 }
 0x6f0   : > { %v13413_v41 = vpop.f32.mrf.mxu0  ;;  %v13426_v38 = vpop.f32.mrf.mxu1 }
 0x6f3   : > { %v13387_v63 = vpop.f32.mrf.mxu2  ;;  %v13400_v54 = vpop.f32.mrf.mxu3 }
 0x6f4   : > { %v13388_v6 = vadd.f32 %v13387_v63, %v13375_v56 }
 0x6f6   : > { %v13401_v19 = vadd.f32 %v13400_v54, %v13388_v6 }
 0x6f8   : > { %v13415_v3 = vpop.f32.mrf.mxu0  ;;  %v13428_v5 = vpop.f32.mrf.mxu1  ;;  %v13414_v35 = vadd.f32 %v13413_v41, %v13401_v19 }
 0x6fa   : > { %v13427_v17 = vadd.f32 %v13426_v38, %v13414_v35 }
 0x6fb   : > { %v13389_v40 = vpop.f32.mrf.mxu2  ;;  %v13402_v59 = vpop.f32.mrf.mxu3 }
 0x710   : > { %v13465_v51 = vpop.f32.mrf.mxu0  ;;  %v13478_v58 = vpop.f32.mrf.mxu1 }
 0x713   : > { %v13439_v13 = vpop.f32.mrf.mxu2  ;;  %v13452_v42 = vpop.f32.mrf.mxu3 }
 0x714   : > { %v13440_v1 = vadd.f32 %v13439_v13, %v13427_v17 }
 0x716   : > { %v13453_v53 = vadd.f32 %v13452_v42, %v13440_v1 }
 0x718   : > { %v13467_v30 = vpop.f32.mrf.mxu0  ;;  %v13480_v23 = vpop.f32.mrf.mxu1  ;;  %v13466_v11 = vadd.f32 %v13465_v51, %v13453_v53 }
 0x71a   : > { %v13479_v9 = vadd.f32 %v13478_v58, %v13466_v11 }
 0x71b   : > { %v13441_v0 = vpop.f32.mrf.mxu2  ;;  %v13454_v20 = vpop.f32.mrf.mxu3 }
 0x72e   : > { %v13517_v44 = vpop.f32.mrf.mxu0  ;;  %v13530_v27 = vpop.f32.mrf.mxu1 }
 0x733   : > { %v13491_v31 = vpop.f32.mrf.mxu2  ;;  %v13504_v33 = vpop.f32.mrf.mxu3 }
 0x734   : > { %v13492_v55 = vadd.f32 %v13491_v31, %v13479_v9 }
 0x736   : > { %v13505_v52 = vadd.f32 %v13504_v33, %v13492_v55  ;;  %v13519_v8 = vpop.f32.mrf.mxu0  ;;  %v13532_v26 = vpop.f32.mrf.mxu1 }
 0x738   : > { %v13518_v39 = vadd.f32 %v13517_v44, %v13505_v52 }
 0x73a   : > { %v13531_v43 = vadd.f32 %v13530_v27, %v13518_v39 }
 0x73b   : > { %v13493_v12 = vpop.f32.mrf.mxu2  ;;  %v13506_v48 = vpop.f32.mrf.mxu3 }
 0x73c   : > { %13534 = vst [vmem:[%s388_s30] sm:$0xff] %v13531_v43 }
 0x73d   : > { %21813 = shalt.err (!%p21810_p9)
}
 0x73e   : > { %21488 = dma.vmem_to_hbm [thread:$0]  (%p22015_p4), %s13549_s13, 128, %s13551_s11, %s13536_s8  }
 0x73f PF: > { %s13562_s18 = sand.u32 1, %s21852_s24   ;;  %p22604_p10 = scmp.ge.s32.totalorder %s21864_s27, 2 }
 0x740   : > { %s13563_s1 = scalar_lea.sflag [#allocation4], %s13562_s18 }
 0x741   : > { %p21514_p13 = pnand %p22604_p10, %p22019_p6 }
 0x743   : > { %p21515_p11 = pneg %p21514_p13 }
 0x745   : > { %21847 = dma.done.wait (%p21515_p11), %s13563_s1, 128  }
 0x746   : > { %21849 = vsyncadd (%p21515_p11), %s13563_s1, 4294967168  ;;  %p23_p0 = scmp.ge.s32.totalorder %s21989_s16, 4   ;;  %s22605_s24 = smov %s21856_s25 }
 0x747   : > { %s22606_s25 = smov %s21860_s26  ;;  %s22607_s26 = smov %s22000_s14 }
 0x748   : > { %s22608_s27 = smov %s21989_s16  ;;  %25 = sbr.rel (!%p23_p0) target bundleno = 11 (0xb), region = 117 }
 0x74d   :  { %13569 = vsyncpa [#allocation3], 1 }
 0x74e   :  { %13571 = vsyncpa [#allocation3 + $0x1], 1 }
 0x74f   :  { %13572 = vsyncpa [#allocation6], 1 }
 0x750   :  { %13573 = vsyncpa [#allocation9], 1 }
 0x751   :  { %13574 = vsyncpa [#allocation12], 1 }
 0x752   :  { %13575 = vsyncpa [#allocation4], 1 }
 0x753   :  { %13577 = vsyncpa [#allocation4 + $0x1], 1 }

</bundles_post_ra>
